<compile_context>
chip_gen: v5e
topology: v5e:2x2
jax: 0.10.0
libtpu: 0.0.40
codegen_flags: <defaults>
</compile_context>

<pallas_src>
import functools

import jax
import jax.numpy as jnp
import numpy as np
from jax.experimental import pallas as pl
from jax.experimental.pallas import tpu as pltpu

_COMPUTE_DTYPE = jnp.bfloat16      # MXU operand dtype (accumulation stays f32)


def _vmem_limit_bytes():
    """Generation-dependent VMEM limit: ~3/4 of per-core capacity, capped at 110 MiB."""
    try:
        cap = int(pltpu.get_tpu_info().vmem_capacity_bytes)
        return int(min(max(cap * 3 // 4, 32 << 20), 110 << 20))
    except Exception:
        return 48 << 20            # safe on every generation (fits v7x's 64 MiB/TC)


_VMEM_LIMIT = _vmem_limit_bytes()
_TILE_BUDGET = int(_VMEM_LIMIT * 0.6)   # conservative budget for tile-size derivation
_TARGET_BAND_ROWS = 8192                # target matmul-M rows per grid step (banded 3x3 path)
_TARGET_M_GENERIC = 4096                # target matmul-M rows per grid step (im2col path)


def _compiler_params():
    return pltpu.CompilerParams(
        dimension_semantics=("parallel", "parallel"),
        vmem_limit_bytes=_VMEM_LIMIT)


def _const_spec(shape, index_map):
    """BlockSpec for grid-invariant operands (weights/bias): single-buffered."""
    try:
        return pl.BlockSpec(shape, index_map, pipeline_mode=pl.Buffered(1))
    except Exception:
        return pl.BlockSpec(shape, index_map)


def _act_fn(acc, act):
    if act == "relu":
        return jnp.maximum(acc, 0.0)
    if act == "sigmoid":
        return jax.nn.sigmoid(acc)
    return acc


# ----------------------------------------------------------------------------
# Kernel A: generic conv-as-matmul (1x1 convs, 7x7/2 stem).  One MXU dot over
# the full contraction, fused bias + activation, narrow store for 1-ch heads.
# ----------------------------------------------------------------------------
def _mm_conv_kernel(p_ref, w_ref, b_ref, o_ref, *, cout_store, act):
    acc = jnp.dot(p_ref[...], w_ref[...], preferred_element_type=jnp.float32)
    acc = acc + b_ref[...]
    acc = _act_fn(acc, act)
    if cout_store != acc.shape[-1]:
        acc = acc[:, :cout_store]          # 1-channel heads: store only column 0
    o_ref[...] = acc.astype(o_ref.dtype)


# ----------------------------------------------------------------------------
# Kernel B: 3x3 stride-1 conv on a halo'd H-band.  The band is the flattened
# padded image rows [i*th, i*th+th+3) x Wp; tap (dy,dx) is the contiguous
# static slice starting at dy*Wp+dx of length th*Wp (outputs at the 2 padded
# columns per row are garbage and discarded by the wrapper).
# ----------------------------------------------------------------------------
def _conv3x3_band_kernel(x_ref, w_ref, b_ref, o_ref, *, wp, th, cout_store, act):
    rows = th * wp
    acc = None
    for dy in range(3):
        for dx in range(3):
            start = dy * wp + dx
            part = jnp.dot(x_ref[pl.ds(start, rows), :], w_ref[dy * 3 + dx],
                           preferred_element_type=jnp.float32)
            acc = part if acc is None else acc + part
    acc = acc + b_ref[...]
    acc = _act_fn(acc, act)
    if cout_store != acc.shape[-1]:
        acc = acc[:, :cout_store]
    o_ref[...] = acc.astype(o_ref.dtype)


# ----------------------------------------------------------------------------
# Tile-size selection (VMEM-budget driven, big bands, >=2 steps when worthwhile)
# ----------------------------------------------------------------------------
def _pick_band_h(ho, wp, cin, cout_e, cout_store):
    per_row = 4 * wp * (cin + cout_store + cout_e)        # in(2x bf16) + out(2x bf16) + f32 acc
    fixed = 12 * wp * cin + 36 * cin * cout_e + (1 << 20)  # halo rows + weights(2x) + margin
    th = (_TILE_BUDGET - fixed) // per_row
    th = min(th, max(1, _TARGET_BAND_ROWS // wp), ho)
    if th >= ho and ho >= 2 and ho * wp >= 2048:
        th = (ho + 1) // 2            # >=2 band steps so v7x's two TCs both get work
    return max(1, int(th))


def _pick_m_tile(m, k, cout_e, cout_store):
    per_row = 4 * (k + cout_store + cout_e)
    fixed = 4 * k * cout_e + (1 << 20)
    tm = (_TILE_BUDGET - fixed) // per_row
    tm = min(tm, _TARGET_M_GENERIC, m)
    if tm >= m and m >= 2048:
        tm = (m + 1) // 2
    return max(8, (int(tm) // 8) * 8)


# ----------------------------------------------------------------------------
# Fused Conv2d (+folded BN + activation) wrapper
# ----------------------------------------------------------------------------
def conv2d(x, p, *, pad, stride=1, act=None):
    """x: (N,H,W,Cin).  p: dict(w,scale,bias,act).  Returns (N,Ho,Wo,Cout) bf16."""
    w = p["w"]
    KH, KW, Cin, Cout = w.shape
    activation = p["act"] if act is None else act

    # Fold the BN scale into the conv weights; keep the bias as a separate f32 row.
    scale = p["scale"].reshape(-1).astype(jnp.float32)
    bias = p["bias"].reshape(-1).astype(jnp.float32)
    w = w.astype(jnp.float32) * scale[None, None, None, :]

    cout_store = Cout
    cout_e = Cout
    if Cout == 1:
        cout_e = 128                       # MXU-friendly matmul N; only column 0 is stored
        w = jnp.pad(w, ((0, 0), (0, 0), (0, 0), (0, cout_e - Cout)))
        bias = jnp.pad(bias, (0, cout_e - Cout))
    bias = bias.reshape(1, cout_e)

    xb = x.astype(_COMPUTE_DTYPE)

    if stride == 1 and KH == 3 and KW == 3 and pad == 1:
        return _conv3x3_banded(xb, w, bias, cout_e, cout_store, activation)
    return _conv_generic(xb, w, bias, cout_e, cout_store, activation,
                         pad=pad, stride=stride, kh=KH, kw=KW)


def _conv3x3_banded(xb, w, bias, cout_e, cout_store, act):
    N, H, W, Cin = xb.shape
    Ho, Wo = H, W
    Wp = W + 2
    th = _pick_band_h(Ho, Wp, Cin, cout_e, cout_store)
    nb = -(-Ho // th)

    # Pad: 1 halo row on top + enough zero rows below so every (th+3)-row band slice is valid.
    extra_bottom = nb * th + 3 - (Ho + 2)
    xp = jnp.pad(xb, ((0, 0), (1, 1 + extra_bottom), (1, 1), (0, 0)))
    bands = jnp.stack([xp[:, i * th:i * th + th + 3] for i in range(nb)], axis=1)
    band_rows = (th + 3) * Wp
    bands = bands.reshape(N, nb, band_rows, Cin)

    wmat = w.astype(_COMPUTE_DTYPE).reshape(9, Cin, cout_e)
    rows = th * Wp

    flops = 2 * N * nb * rows * 9 * Cin * cout_e
    bytes_accessed = (bands.size * 2 + wmat.size * 2 + bias.size * 4
                      + N * nb * rows * cout_store * 2)
    trans = N * nb * rows * cout_e if act == "sigmoid" else 0

    out = pl.pallas_call(
        functools.partial(_conv3x3_band_kernel, wp=Wp, th=th,
                          cout_store=cout_store, act=act),
        out_shape=jax.ShapeDtypeStruct((N, nb, rows, cout_store), _COMPUTE_DTYPE),
        grid=(N, nb),
        in_specs=[
            pl.BlockSpec((None, None, band_rows, Cin), lambda n, i: (n, i, 0, 0)),
            _const_spec((9, Cin, cout_e), lambda n, i: (0, 0, 0)),
            _const_spec((1, cout_e), lambda n, i: (0, 0)),
        ],
        out_specs=pl.BlockSpec((None, None, rows, cout_store),
                               lambda n, i: (n, i, 0, 0)),
        compiler_params=_compiler_params(),
        cost_estimate=pl.CostEstimate(flops=int(flops), transcendentals=int(trans),
                                      bytes_accessed=int(bytes_accessed)),
    )(bands, wmat, bias)

    # (N, nb, th*Wp, C) -> (N, nb*th, Wp, C); drop the padded columns / extra rows.
    out = out.reshape(N, nb * th, Wp, cout_store)[:, :Ho, :Wo, :]
    return out


def _conv_generic(xb, w, bias, cout_e, cout_store, act, *, pad, stride, kh, kw):
    N, H, W, Cin = xb.shape
    xp = jnp.pad(xb, ((0, 0), (pad, pad), (pad, pad), (0, 0))) if pad else xb
    Hp, Wp = H + 2 * pad, W + 2 * pad
    Ho = (Hp - kh) // stride + 1
    Wo = (Wp - kw) // stride + 1

    # im2col (1x1 convs -> plain reshape, zero inflation; 7x7/2 stem uses strided slices so
    # only the kept output positions are materialized).
    taps = []
    for dy in range(kh):
        for dx in range(kw):
            taps.append(
                xp[:, dy:dy + (Ho - 1) * stride + 1:stride,
                   dx:dx + (Wo - 1) * stride + 1:stride, :].reshape(N, Ho * Wo, Cin))
    patches = taps[0] if len(taps) == 1 else jnp.concatenate(taps, axis=-1)

    K = kh * kw * Cin
    M = Ho * Wo
    tm = _pick_m_tile(M, K, cout_e, cout_store)
    nm = -(-M // tm)
    Mp = nm * tm
    if Mp != M:
        patches = jnp.pad(patches, ((0, 0), (0, Mp - M), (0, 0)))
    wmat = w.astype(_COMPUTE_DTYPE).reshape(K, cout_e)

    flops = 2 * N * Mp * K * cout_e
    bytes_accessed = (patches.size * 2 + wmat.size * 2 + bias.size * 4
                      + N * Mp * cout_store * 2)
    trans = N * Mp * cout_e if act == "sigmoid" else 0

    out = pl.pallas_call(
        functools.partial(_mm_conv_kernel, cout_store=cout_store, act=act),
        out_shape=jax.ShapeDtypeStruct((N, Mp, cout_store), _COMPUTE_DTYPE),
        grid=(N, nm),
        in_specs=[
            pl.BlockSpec((None, tm, K), lambda n, m: (n, m, 0)),
            _const_spec((K, cout_e), lambda n, m: (0, 0)),
            _const_spec((1, cout_e), lambda n, m: (0, 0)),
        ],
        out_specs=pl.BlockSpec((None, tm, cout_store), lambda n, m: (n, m, 0)),
        compiler_params=_compiler_params(),
        cost_estimate=pl.CostEstimate(flops=int(flops), transcendentals=int(trans),
                                      bytes_accessed=int(bytes_accessed)),
    )(patches, wmat, bias)

    out = out[:, :M, :].reshape(N, Ho, Wo, cout_store)
    return out


# ----------------------------------------------------------------------------
# Plain-JAX glue ops (cheap relative to the convs)
# ----------------------------------------------------------------------------
def maxpool2x2(x):
    N, H, W, C = x.shape
    return jnp.max(x.reshape(N, H // 2, 2, W // 2, 2, C), axis=(2, 4))


def maxpool3x3_s2_p1(x):
    neg_inf = jnp.array(-jnp.inf, dtype=x.dtype)
    return jax.lax.reduce_window(
        x, neg_inf, jax.lax.max,
        window_dimensions=(1, 3, 3, 1), window_strides=(1, 2, 2, 1),
        padding=((0, 0), (1, 1), (1, 1), (0, 0)))


def _interp_matrix(inn, out):
    # align_corners=True bilinear weights
    if inn == 1 or out == 1:
        return jnp.zeros((out, inn), jnp.float32).at[:, 0].set(1.0)
    src = jnp.arange(out, dtype=jnp.float32) * (inn - 1) / (out - 1)
    lo = jnp.clip(jnp.floor(src).astype(jnp.int32), 0, inn - 1)
    hi = jnp.clip(lo + 1, 0, inn - 1)
    frac = src - lo.astype(jnp.float32)
    rows = jnp.arange(out)
    m = jnp.zeros((out, inn), jnp.float32)
    m = m.at[rows, lo].add(1.0 - frac)
    m = m.at[rows, hi].add(frac)
    return m


def bilinear_resize(x, out_h, out_w):
    # x: (N,H,W,C); matches F.interpolate(mode='bilinear', align_corners=True)
    N, H, W, C = x.shape
    My = _interp_matrix(H, out_h)
    Mx = _interp_matrix(W, out_w)
    y = jnp.einsum("oh,nhwc->nowc", My, x.astype(jnp.float32))
    y = jnp.einsum("pw,nowc->nopc", Mx, y)
    return y.astype(x.dtype)


# ----------------------------------------------------------------------------
# Deterministic synthetic parameters (conv weight + folded inference-mode BN)
# ----------------------------------------------------------------------------
def _conv_params(nk, kh, kw, cin, cout, *, bn=True, act="relu", groups=1,
                 conv_bias=True):
    fan_in = kh * kw * (cin // groups)
    w = jax.random.normal(nk(), (kh, kw, cin, cout), jnp.float32) * np.sqrt(2.0 / fan_in)
    if groups > 1:
        # grouped conv expressed as a block-diagonal dense weight (exact semantics)
        gi = jnp.arange(cin) // (cin // groups)
        go = jnp.arange(cout) // (cout // groups)
        mask = (gi[:, None] == go[None, :]).astype(jnp.float32)
        w = w * mask[None, None]
    b = (jax.random.normal(nk(), (cout,), jnp.float32) * 0.01
         if conv_bias else jnp.zeros((cout,), jnp.float32))
    if bn:
        gamma = 1.0 + 0.1 * jax.random.normal(nk(), (cout,), jnp.float32)
        beta = 0.05 * jax.random.normal(nk(), (cout,), jnp.float32)
        mean = 0.05 * jax.random.normal(nk(), (cout,), jnp.float32)
        var = 1.0 + 0.1 * jnp.abs(jax.random.normal(nk(), (cout,), jnp.float32))
        scale = gamma / jnp.sqrt(var + 1e-5)
        bias = (b - mean) * scale + beta
    else:
        scale = jnp.ones((cout,), jnp.float32)
        bias = b
    return dict(w=w, scale=scale.reshape(1, cout), bias=bias.reshape(1, cout), act=act)


def build_params(seed=0):
    key = jax.random.PRNGKey(seed)
    cnt = [0]

    def nk():
        cnt[0] += 1
        return jax.random.fold_in(key, cnt[0])

    def cbr(cin, cout, k=3, **kw):
        return _conv_params(nk, k, k, cin, cout, **kw)

    bw = 64
    dsn = {
        "enc1": [cbr(5, bw), cbr(bw, bw)],
        "enc2": [cbr(bw, 2 * bw), cbr(2 * bw, 2 * bw)],
        "enc3": [cbr(2 * bw, 4 * bw), cbr(4 * bw, 4 * bw)],
        "enc4": [cbr(4 * bw, 8 * bw), cbr(8 * bw, 8 * bw)],
        "enc5": [cbr(8 * bw, 8 * bw), cbr(8 * bw, 8 * bw)],
        "enc6": [cbr(8 * bw, 8 * bw), cbr(8 * bw, 8 * bw)],
        "up_b": cbr(8 * bw, 8 * bw),
        "db_b": [cbr(16 * bw, 8 * bw), cbr(8 * bw, 8 * bw)],
        "up1": cbr(8 * bw, 4 * bw),
        "db1": [cbr(12 * bw, 4 * bw), cbr(4 * bw, 4 * bw)],
        "up2": cbr(4 * bw, 2 * bw),
        "db2": [cbr(6 * bw, 2 * bw), cbr(2 * bw, 2 * bw)],
        "up3": cbr(2 * bw, bw),
        "db3": [cbr(3 * bw, bw), cbr(bw, bw)],
        "up4": cbr(bw, bw),
        "db4": [cbr(2 * bw, bw), cbr(bw, bw)],
        "fin1": cbr(4 * bw, 1, bn=False, act="none"),
        "fin2": cbr(2 * bw, 1, bn=False, act="none"),
        "fin3": cbr(bw, 1, bn=False, act="none"),
        "fin4": cbr(bw, 1, bn=False, act="none"),
    }

    # ResNeXt101_32x8d stem + layer1 (synthetic weights).
    def bottleneck(cin, width, cout, downsample):
        d = {
            "c1": cbr(cin, width, k=1, conv_bias=False),
            "c2": cbr(width, width, k=3, groups=32, conv_bias=False),
            "c3": cbr(width, cout, k=1, conv_bias=False, act="none"),
        }
        if downsample:
            d["down"] = cbr(cin, cout, k=1, conv_bias=False, act="none")
        return d

    enc = {
        "conv1": cbr(3, 64, k=7, conv_bias=False),  # stride 2, pad 3
        "layer1": [bottleneck(64, 256, 256, True),
                   bottleneck(256, 256, 256, False),
                   bottleneck(256, 256, 256, False)],
    }

    edf = {
        "lle": [cbr(256, 128, act="none"), cbr(128, 64, act="none")],
        "ef": [cbr(320, 128, act="none"), cbr(128, 64, act="none"),
               cbr(64, 1, bn=False, act="none")],
    }

    refine = cbr(10, 1, k=1, bn=False, act="none")

    return {"dsn": dsn, "edge": {"enc": enc, "edf": edf}, "refine": refine}


# ----------------------------------------------------------------------------
# Model forward (NHWC internally)
# ----------------------------------------------------------------------------
def _block2(ps, t):
    # TODO(synk): fuse these two 3x3 convs into one banded kernel (conv1 band kept in VMEM).
    t = conv2d(t, ps[0], pad=1)
    return conv2d(t, ps[1], pad=1)


def dsn_forward(p, x):
    N, H, W, _ = x.shape
    b1 = _block2(p["enc1"], x); mp1 = maxpool2x2(b1)
    b2 = _block2(p["enc2"], mp1); mp2 = maxpool2x2(b2)
    b3 = _block2(p["enc3"], mp2); mp3 = maxpool2x2(b3)
    b4 = _block2(p["enc4"], mp3); mp4 = maxpool2x2(b4)
    b5 = _block2(p["enc5"], mp4); mp5 = maxpool2x2(b5)
    b6 = _block2(p["enc6"], mp5)

    def up(t, pp):
        t = bilinear_resize(t, t.shape[1] * 2, t.shape[2] * 2)
        return conv2d(t, pp, pad=1)

    up_b = up(b6, p["up_b"]); db_b = _block2(p["db_b"], jnp.concatenate([up_b, b5], -1))
    up1 = up(db_b, p["up1"]); db1 = _block2(p["db1"], jnp.concatenate([up1, b4], -1))
    up2 = up(db1, p["up2"]);  db2 = _block2(p["db2"], jnp.concatenate([up2, b3], -1))
    up3 = up(db2, p["up3"]);  db3 = _block2(p["db3"], jnp.concatenate([up3, b2], -1))
    up4 = up(db3, p["up4"]);  db4 = _block2(p["db4"], jnp.concatenate([up4, b1], -1))

    f1 = conv2d(db1, p["fin1"], pad=1)
    f2 = conv2d(db2, p["fin2"], pad=1)
    f3 = conv2d(db3, p["fin3"], pad=1)
    f4 = conv2d(db4, p["fin4"], pad=1)
    f1 = bilinear_resize(f1, H, W)
    f2 = bilinear_resize(f2, H, W)
    f3 = bilinear_resize(f3, H, W)
    return f1, f2, f3, f4, db1


def resnext_low_level(p, x):
    t = conv2d(x, p["conv1"], pad=3, stride=2)   # 7x7/2 + BN + ReLU (strided im2col)
    t = maxpool3x3_s2_p1(t)
    for bp in p["layer1"]:
        out = conv2d(t, bp["c1"], pad=0)
        out = conv2d(out, bp["c2"], pad=1)
        out = conv2d(out, bp["c3"], pad=0)
        idn = conv2d(t, bp["down"], pad=0) if "down" in bp else t
        t = jnp.maximum(out + idn, 0.0)          # residual add + ReLU (glue)
    # TODO(synk): ResNeXt layers 2-4 are evaluated in the reference but their outputs are
    # never consumed by MMM's returns (EDFModule only uses layer1 output), so they are skipped.
    return t


def edge_model_forward(p, x, db1):
    N, H, W, _ = x.shape
    low = resnext_low_level(p["enc"], x)                       # (N, H/4, W/4, 256)
    le = conv2d(low, p["edf"]["lle"][0], pad=1)
    le = conv2d(le, p["edf"]["lle"][1], pad=1)
    he = bilinear_resize(db1, le.shape[1], le.shape[2])
    t = jnp.concatenate([le, he], axis=-1)
    t = conv2d(t, p["edf"]["ef"][0], pad=1)
    t = conv2d(t, p["edf"]["ef"][1], pad=1)
    t = conv2d(t, p["edf"]["ef"][2], pad=1)
    return bilinear_resize(t, H, W)


def mmm_forward(params, x_nchw, y_nchw, z_nchw, mode_flag):
    to_nhwc = lambda t: jnp.transpose(t, (0, 2, 3, 1))
    to_nchw = lambda t: jnp.transpose(t, (0, 3, 1, 2)).astype(jnp.float32)
    x, y, z = to_nhwc(x_nchw), to_nhwc(y_nchw), to_nhwc(z_nchw)
    input_cat = jnp.concatenate([x, y, z], axis=-1)            # 5 channels

    f1, f2, f3, f4, db1 = dsn_forward(params["dsn"], input_cat)
    if mode_flag == 1:
        return tuple(to_nchw(f) for f in (f1, f2, f3, f4))

    edge_out = edge_model_forward(params["edge"], x, db1)
    if mode_flag == 2:
        return to_nchw(edge_out)

    cat = jnp.concatenate([f1, f2, f3, f4, edge_out, input_cat], axis=-1)  # 10 ch
    act = "none" if mode_flag == 3 else "sigmoid"  # sigmoid fused in the Pallas kernel
    final = conv2d(cat, params["refine"], pad=0, act=act)
    return to_nchw(final)


# ----------------------------------------------------------------------------
if __name__ == "__main__":
    key = jax.random.PRNGKey(0)
    kx, ky, kz = jax.random.split(key, 3)
    B, H, W = 2, 32, 32                       # H,W must be divisible by 32 (5 maxpools)
    x = jax.random.normal(kx, (B, 3, H, W), jnp.float32)   # NCHW, like PyTorch
    y = jax.random.normal(ky, (B, 1, H, W), jnp.float32)
    z = jax.random.normal(kz, (B, 1, H, W), jnp.float32)

    params = build_params(seed=0)
    out = mmm_forward(params, x, y, z, mode_flag=0)         # full path incl. sigmoid
    out = jax.block_until_ready(out)
    assert out.shape == (B, 1, H, W)
    assert bool(jnp.all(jnp.isfinite(out)))
    print("KERNEL_OK")
</pallas_src>

<mosaic_0001>
module attributes {stable_mosaic.version = 11 : i64} {
  func.func @_conv3x3_band_kernel(%arg0: i32, %arg1: i32, %arg2: memref<1x1x1190x5xbf16, #tpu.memory_space<vmem>>, %arg3: memref<9x5x64xbf16, #tpu.memory_space<vmem>>, %arg4: memref<1x64xf32, #tpu.memory_space<vmem>>, %arg5: memref<1x1x1088x64xbf16, #tpu.memory_space<vmem>>) attributes {dimension_semantics = [#tpu.dimension_semantics<parallel>, #tpu.dimension_semantics<parallel>], iteration_bounds = array<i64: 2, 1>, scalar_prefetch = 0 : i64, scratch_operands = 0 : i64, tpu.core_type = #tpu.core_type<tc>, window_params = [{transform_indices = @transform_0, window_bounds = array<i64: 1, 1, 1190, 5>}, {pipeline_mode = #tpu.pipeline_mode<synchronous>, transform_indices = @transform_1, window_bounds = array<i64: 9, 5, 64>}, {pipeline_mode = #tpu.pipeline_mode<synchronous>, transform_indices = @transform_2, window_bounds = array<i64: 1, 64>}, {transform_indices = @transform_3, window_bounds = array<i64: 1, 1, 1088, 64>}]} {
    %c0 = arith.constant 0 : index
    %c0_0 = arith.constant 0 : index
    %c0_1 = arith.constant 0 : index
    %c0_2 = arith.constant 0 : index
    %0 = vector.load %arg2[%c0, %c0_0, %c0_1, %c0_2] : memref<1x1x1190x5xbf16, #tpu.memory_space<vmem>>, vector<1x1x1088x5xbf16>
    %1 = vector.shape_cast %0 : vector<1x1x1088x5xbf16> to vector<1088x5xbf16>
    %c0_3 = arith.constant 0 : index
    %c0_4 = arith.constant 0 : index
    %c0_5 = arith.constant 0 : index
    %2 = vector.load %arg3[%c0_3, %c0_4, %c0_5] : memref<9x5x64xbf16, #tpu.memory_space<vmem>>, vector<1x5x64xbf16>
    %3 = vector.shape_cast %2 : vector<1x5x64xbf16> to vector<5x64xbf16>
    %cst = arith.constant dense<0.000000e+00> : vector<1088x64xf32>
    %4 = tpu.matmul %1, %3, %cst {dimension_numbers = #tpu.dot_dimension_numbers<[1], [0], [0], [1], [0, 0, 1, 1], [], []>} : vector<1088x5xbf16>, vector<5x64xbf16>, vector<1088x64xf32> -> vector<1088x64xf32>
    %c0_6 = arith.constant 0 : index
    %c0_7 = arith.constant 0 : index
    %c1 = arith.constant 1 : index
    %c0_8 = arith.constant 0 : index
    %5 = vector.load %arg2[%c0_6, %c0_7, %c1, %c0_8] : memref<1x1x1190x5xbf16, #tpu.memory_space<vmem>>, vector<1x1x1088x5xbf16>
    %6 = vector.shape_cast %5 : vector<1x1x1088x5xbf16> to vector<1088x5xbf16>
    %c1_9 = arith.constant 1 : index
    %c0_10 = arith.constant 0 : index
    %c0_11 = arith.constant 0 : index
    %7 = vector.load %arg3[%c1_9, %c0_10, %c0_11] : memref<9x5x64xbf16, #tpu.memory_space<vmem>>, vector<1x5x64xbf16>
    %8 = vector.shape_cast %7 : vector<1x5x64xbf16> to vector<5x64xbf16>
    %cst_12 = arith.constant dense<0.000000e+00> : vector<1088x64xf32>
    %9 = tpu.matmul %6, %8, %cst_12 {dimension_numbers = #tpu.dot_dimension_numbers<[1], [0], [0], [1], [0, 0, 1, 1], [], []>} : vector<1088x5xbf16>, vector<5x64xbf16>, vector<1088x64xf32> -> vector<1088x64xf32>
    %10 = arith.addf %4, %9 : vector<1088x64xf32>
    %c0_13 = arith.constant 0 : index
    %c0_14 = arith.constant 0 : index
    %c2 = arith.constant 2 : index
    %c0_15 = arith.constant 0 : index
    %11 = vector.load %arg2[%c0_13, %c0_14, %c2, %c0_15] : memref<1x1x1190x5xbf16, #tpu.memory_space<vmem>>, vector<1x1x1088x5xbf16>
    %12 = vector.shape_cast %11 : vector<1x1x1088x5xbf16> to vector<1088x5xbf16>
    %c2_16 = arith.constant 2 : index
    %c0_17 = arith.constant 0 : index
    %c0_18 = arith.constant 0 : index
    %13 = vector.load %arg3[%c2_16, %c0_17, %c0_18] : memref<9x5x64xbf16, #tpu.memory_space<vmem>>, vector<1x5x64xbf16>
    %14 = vector.shape_cast %13 : vector<1x5x64xbf16> to vector<5x64xbf16>
    %cst_19 = arith.constant dense<0.000000e+00> : vector<1088x64xf32>
    %15 = tpu.matmul %12, %14, %cst_19 {dimension_numbers = #tpu.dot_dimension_numbers<[1], [0], [0], [1], [0, 0, 1, 1], [], []>} : vector<1088x5xbf16>, vector<5x64xbf16>, vector<1088x64xf32> -> vector<1088x64xf32>
    %16 = arith.addf %10, %15 : vector<1088x64xf32>
    %c0_20 = arith.constant 0 : index
    %c0_21 = arith.constant 0 : index
    %c34 = arith.constant 34 : index
    %c0_22 = arith.constant 0 : index
    %17 = vector.load %arg2[%c0_20, %c0_21, %c34, %c0_22] : memref<1x1x1190x5xbf16, #tpu.memory_space<vmem>>, vector<1x1x1088x5xbf16>
    %18 = vector.shape_cast %17 : vector<1x1x1088x5xbf16> to vector<1088x5xbf16>
    %c3 = arith.constant 3 : index
    %c0_23 = arith.constant 0 : index
    %c0_24 = arith.constant 0 : index
    %19 = vector.load %arg3[%c3, %c0_23, %c0_24] : memref<9x5x64xbf16, #tpu.memory_space<vmem>>, vector<1x5x64xbf16>
    %20 = vector.shape_cast %19 : vector<1x5x64xbf16> to vector<5x64xbf16>
    %cst_25 = arith.constant dense<0.000000e+00> : vector<1088x64xf32>
    %21 = tpu.matmul %18, %20, %cst_25 {dimension_numbers = #tpu.dot_dimension_numbers<[1], [0], [0], [1], [0, 0, 1, 1], [], []>} : vector<1088x5xbf16>, vector<5x64xbf16>, vector<1088x64xf32> -> vector<1088x64xf32>
    %22 = arith.addf %16, %21 : vector<1088x64xf32>
    %c0_26 = arith.constant 0 : index
    %c0_27 = arith.constant 0 : index
    %c35 = arith.constant 35 : index
    %c0_28 = arith.constant 0 : index
    %23 = vector.load %arg2[%c0_26, %c0_27, %c35, %c0_28] : memref<1x1x1190x5xbf16, #tpu.memory_space<vmem>>, vector<1x1x1088x5xbf16>
    %24 = vector.shape_cast %23 : vector<1x1x1088x5xbf16> to vector<1088x5xbf16>
    %c4 = arith.constant 4 : index
    %c0_29 = arith.constant 0 : index
    %c0_30 = arith.constant 0 : index
    %25 = vector.load %arg3[%c4, %c0_29, %c0_30] : memref<9x5x64xbf16, #tpu.memory_space<vmem>>, vector<1x5x64xbf16>
    %26 = vector.shape_cast %25 : vector<1x5x64xbf16> to vector<5x64xbf16>
    %cst_31 = arith.constant dense<0.000000e+00> : vector<1088x64xf32>
    %27 = tpu.matmul %24, %26, %cst_31 {dimension_numbers = #tpu.dot_dimension_numbers<[1], [0], [0], [1], [0, 0, 1, 1], [], []>} : vector<1088x5xbf16>, vector<5x64xbf16>, vector<1088x64xf32> -> vector<1088x64xf32>
    %28 = arith.addf %22, %27 : vector<1088x64xf32>
    %c0_32 = arith.constant 0 : index
    %c0_33 = arith.constant 0 : index
    %c36 = arith.constant 36 : index
    %c0_34 = arith.constant 0 : index
    %29 = vector.load %arg2[%c0_32, %c0_33, %c36, %c0_34] : memref<1x1x1190x5xbf16, #tpu.memory_space<vmem>>, vector<1x1x1088x5xbf16>
    %30 = vector.shape_cast %29 : vector<1x1x1088x5xbf16> to vector<1088x5xbf16>
    %c5 = arith.constant 5 : index
    %c0_35 = arith.constant 0 : index
    %c0_36 = arith.constant 0 : index
    %31 = vector.load %arg3[%c5, %c0_35, %c0_36] : memref<9x5x64xbf16, #tpu.memory_space<vmem>>, vector<1x5x64xbf16>
    %32 = vector.shape_cast %31 : vector<1x5x64xbf16> to vector<5x64xbf16>
    %cst_37 = arith.constant dense<0.000000e+00> : vector<1088x64xf32>
    %33 = tpu.matmul %30, %32, %cst_37 {dimension_numbers = #tpu.dot_dimension_numbers<[1], [0], [0], [1], [0, 0, 1, 1], [], []>} : vector<1088x5xbf16>, vector<5x64xbf16>, vector<1088x64xf32> -> vector<1088x64xf32>
    %34 = arith.addf %28, %33 : vector<1088x64xf32>
    %c0_38 = arith.constant 0 : index
    %c0_39 = arith.constant 0 : index
    %c68 = arith.constant 68 : index
    %c0_40 = arith.constant 0 : index
    %35 = vector.load %arg2[%c0_38, %c0_39, %c68, %c0_40] : memref<1x1x1190x5xbf16, #tpu.memory_space<vmem>>, vector<1x1x1088x5xbf16>
    %36 = vector.shape_cast %35 : vector<1x1x1088x5xbf16> to vector<1088x5xbf16>
    %c6 = arith.constant 6 : index
    %c0_41 = arith.constant 0 : index
    %c0_42 = arith.constant 0 : index
    %37 = vector.load %arg3[%c6, %c0_41, %c0_42] : memref<9x5x64xbf16, #tpu.memory_space<vmem>>, vector<1x5x64xbf16>
    %38 = vector.shape_cast %37 : vector<1x5x64xbf16> to vector<5x64xbf16>
    %cst_43 = arith.constant dense<0.000000e+00> : vector<1088x64xf32>
    %39 = tpu.matmul %36, %38, %cst_43 {dimension_numbers = #tpu.dot_dimension_numbers<[1], [0], [0], [1], [0, 0, 1, 1], [], []>} : vector<1088x5xbf16>, vector<5x64xbf16>, vector<1088x64xf32> -> vector<1088x64xf32>
    %40 = arith.addf %34, %39 : vector<1088x64xf32>
    %c0_44 = arith.constant 0 : index
    %c0_45 = arith.constant 0 : index
    %c69 = arith.constant 69 : index
    %c0_46 = arith.constant 0 : index
    %41 = vector.load %arg2[%c0_44, %c0_45, %c69, %c0_46] : memref<1x1x1190x5xbf16, #tpu.memory_space<vmem>>, vector<1x1x1088x5xbf16>
    %42 = vector.shape_cast %41 : vector<1x1x1088x5xbf16> to vector<1088x5xbf16>
    %c7 = arith.constant 7 : index
    %c0_47 = arith.constant 0 : index
    %c0_48 = arith.constant 0 : index
    %43 = vector.load %arg3[%c7, %c0_47, %c0_48] : memref<9x5x64xbf16, #tpu.memory_space<vmem>>, vector<1x5x64xbf16>
    %44 = vector.shape_cast %43 : vector<1x5x64xbf16> to vector<5x64xbf16>
    %cst_49 = arith.constant dense<0.000000e+00> : vector<1088x64xf32>
    %45 = tpu.matmul %42, %44, %cst_49 {dimension_numbers = #tpu.dot_dimension_numbers<[1], [0], [0], [1], [0, 0, 1, 1], [], []>} : vector<1088x5xbf16>, vector<5x64xbf16>, vector<1088x64xf32> -> vector<1088x64xf32>
    %46 = arith.addf %40, %45 : vector<1088x64xf32>
    %c0_50 = arith.constant 0 : index
    %c0_51 = arith.constant 0 : index
    %c70 = arith.constant 70 : index
    %c0_52 = arith.constant 0 : index
    %47 = vector.load %arg2[%c0_50, %c0_51, %c70, %c0_52] : memref<1x1x1190x5xbf16, #tpu.memory_space<vmem>>, vector<1x1x1088x5xbf16>
    %48 = vector.shape_cast %47 : vector<1x1x1088x5xbf16> to vector<1088x5xbf16>
    %c8 = arith.constant 8 : index
    %c0_53 = arith.constant 0 : index
    %c0_54 = arith.constant 0 : index
    %49 = vector.load %arg3[%c8, %c0_53, %c0_54] : memref<9x5x64xbf16, #tpu.memory_space<vmem>>, vector<1x5x64xbf16>
    %50 = vector.shape_cast %49 : vector<1x5x64xbf16> to vector<5x64xbf16>
    %cst_55 = arith.constant dense<0.000000e+00> : vector<1088x64xf32>
    %51 = tpu.matmul %48, %50, %cst_55 {dimension_numbers = #tpu.dot_dimension_numbers<[1], [0], [0], [1], [0, 0, 1, 1], [], []>} : vector<1088x5xbf16>, vector<5x64xbf16>, vector<1088x64xf32> -> vector<1088x64xf32>
    %52 = arith.addf %46, %51 : vector<1088x64xf32>
    %c0_56 = arith.constant 0 : index
    %c0_57 = arith.constant 0 : index
    %53 = vector.load %arg4[%c0_56, %c0_57] : memref<1x64xf32, #tpu.memory_space<vmem>>, vector<1x64xf32>
    %54 = vector.broadcast %53 : vector<1x64xf32> to vector<1088x64xf32>
    %55 = arith.addf %52, %54 : vector<1088x64xf32>
    %cst_58 = arith.constant 0.000000e+00 : f32
    %56 = vector.broadcast %cst_58 : f32 to vector<1088x64xf32>
    %57 = arith.maximumf %55, %56 : vector<1088x64xf32>
    %58 = arith.truncf %57 : vector<1088x64xf32> to vector<1088x64xbf16>
    %c0_59 = arith.constant 0 : index
    %c0_60 = arith.constant 0 : index
    %c0_61 = arith.constant 0 : index
    %c0_62 = arith.constant 0 : index
    %59 = vector.load %arg5[%c0_59, %c0_60, %c0_61, %c0_62] : memref<1x1x1088x64xbf16, #tpu.memory_space<vmem>>, vector<1x1x1088x64xbf16>
    %60 = vector.shape_cast %59 : vector<1x1x1088x64xbf16> to vector<1088x64xbf16>
    %61 = vector.shape_cast %58 : vector<1088x64xbf16> to vector<1x1x1088x64xbf16>
    tpu.vector_store %arg5[%c0_59, %c0_60, %c0_61, %c0_62], %61 {strides = array<i32>} : memref<1x1x1088x64xbf16, #tpu.memory_space<vmem>>, vector<1x1x1088x64xbf16>,
    return
  }
  func.func @transform_0(%arg0: i32, %arg1: i32) -> (i32, i32, i32, i32) {
    %c0_i32 = arith.constant 0 : i32
    %c0_i32_0 = arith.constant 0 : i32
    %c0_i32_1 = arith.constant 0 : i32
    return %arg0, %arg1, %c0_i32, %c0_i32_0 : i32, i32, i32, i32
  }
  func.func @transform_1(%arg0: i32, %arg1: i32) -> (i32, i32, i32) {
    %c0_i32 = arith.constant 0 : i32
    %c0_i32_0 = arith.constant 0 : i32
    %c0_i32_1 = arith.constant 0 : i32
    %c0_i32_2 = arith.constant 0 : i32
    return %c0_i32, %c0_i32_0, %c0_i32_1 : i32, i32, i32
  }
  func.func @transform_2(%arg0: i32, %arg1: i32) -> (i32, i32) {
    %c0_i32 = arith.constant 0 : i32
    %c0_i32_0 = arith.constant 0 : i32
    %c0_i32_1 = arith.constant 0 : i32
    return %c0_i32, %c0_i32_0 : i32, i32
  }
  func.func @transform_3(%arg0: i32, %arg1: i32) -> (i32, i32, i32, i32) {
    %c0_i32 = arith.constant 0 : i32
    %c0_i32_0 = arith.constant 0 : i32
    %c0_i32_1 = arith.constant 0 : i32
    return %arg0, %arg1, %c0_i32, %c0_i32_0 : i32, i32, i32, i32
  }
}

</mosaic_0001>

<bundles_post_ra>
// kernel: tpu_custom_call.1
= control target key start
LH: loop header
LB: loop body
LE: loop exit
PB: predicated region body
PF: predicated region fallthrough
CT: control target
= control target key end

     0   :  { %s12554_s12 = smov 0   ;;  %s12556_s13 = smov 0   ;;  %s15852_s0 = inlined_call_operand.vmem [shape: bf16[2,1,1190,5], index: 0, kind: input, shape index: {}]   ;;  %s15853_s1 = inlined_call_operand.vmem [shape: bf16[9,5,64], index: 1, kind: input, shape index: {}]   ;;  %s15854_s2 = inlined_call_operand.vmem [shape: f32[1,64], index: 2, kind: input, shape index: {}]   ;;  %s15855_s3 = inlined_call_operand.vmem [shape: bf16[2,1,1088,64], index: 3, kind: output, shape index: {}]  }
   0x1   :  { %s12558_s14 = smov 0  }
   0x2 LB: > { %s25_s15 = sadd.s32 1, %s12527_s13  ;;  %p10702_p0 = scmp.ge.s32.totalorder %s12531_s14, 1  ;;  %s12531_s14 = sphi %s12558_s14, %s13_s14   ;;  %s12527_s13 = sphi %s12556_s13, %s16266_s13   ;;  %s12523_s12 = sphi %s12554_s12, %s16265_s12  }
   0x3   : > { %p27_p1 = scmp.ge.s32.totalorder %s25_s15, 2  ;;  %p157_p2 = scmp.lt.s32.totalorder %s12531_s14, 3 }
   0x5   : > { %s16268_s15 = smov (%p27_p1, %s25_s15), 0  ;;  %p158_p3 = pnand %p10702_p0, %p157_p2 }
   0x7   : > { %161 = sbr.rel (%p158_p3) target bundleno = 2612 (0xa34), region = 32 }
   0xc   : > { %v10705_v0 = vld [vmem:[%s15853_s1 + $0x4] sm:$0x7]  ;;  %vm1445_vm0 = vcmask 1041408   ;;  %vm1446_vm1 = vcmask 1042432   ;;  %p189_p4 = scmp.lt.s32.totalorder %s12523_s12, 1  ;;  %v12533_v1 = vmov 65535  }
   0xd   : > { %v1447_v2 = vsel %vm1445_vm0, 4294967295, %v12533_v1  ;;  %v11110_v3 = vld [vmem:[%s15853_s1 + $0x8] sm:$0x7]  ;;  %v11179_v5 = vld [vmem:[%s15853_s1 + $0xc] sm:$0x7]  ;;  %vm1240_vm3 = vcmask 39936  }
   0xe   : > { %v12578_v4 = vsel %vm1446_vm1, %v1447_v2, 0  ;;  %s16270_s12 = smov (!%p189_p4, %s12523_s12), 1  ;;  %v344_v6 = vld [vmem:[%s15853_s1] sm:$0x7]  ;;  %v11516_v10 = vld [vmem:[%s15853_s1 + $0x10] sm:$0x7] }
   0xf   : > { %v1450_v7 = vand.u32 %v10705_v0, %v12578_v4  ;;  %v2638_v8 = vand.u32 %v11110_v3, %v12578_v4  ;;  %v3949_v9 = vand.u32 %v11179_v5, %v12578_v4  ;;  %s12342_s26 = smul.u32 596, %s16270_s12  ;;  %v1938_v11 = vand.u32 %v12578_v4, %v344_v6 }
  0x10   : > { %v5268_v12 = vand.u32 %v11516_v10, %v12578_v4  ;;  %vm691_vm2 = vsmask.f32 7424  ;;  %vm2295_vm4 = vcmask 1046528   ;;  %vm4442_vm5 = vsmask.f32 6400  ;;  %s12343_s17 = smul.u32 544, %s16270_s12 }
  0x11   : > { %12339 = vmatpush.bf16.msra.mxu1 %v1450_v7  ;;  %12340 = vmatpush.bf16.msra.mxu2 %v1450_v7  ;;  %s12600_s29 = scalar_lea.vmem %s15852_s0, %s12342_s26  ;;  %vm5761_vm6 = vcmask 1045504   ;;  %vm7908_vm7 = vsmask.f32 5376  ;;  %vm9227_vm8 = vcmask 1044480   ;;  %vm10469_vm9 = vcmask 519168  }
  0x12   : > { %12341 = vmatpush.bf16.msra.mxu3 %v1450_v7  ;;  %1459 = vmatpush.bf16.msra.mxu0 %v1450_v7  ;;  %v12147_v13 = vld [vmem:[%s12600_s29 + $0x88] sm:$0xff]  ;;  %v12148_v14 = vld [vmem:[%s12600_s29 + $0x90] sm:$0xff]  ;;  %v12165_v16 = vld [vmem:[%s12600_s29 + $0x118] sm:$0xff]  ;;  %s14349_s12 = scalar_lea.vmem %s15855_s3, %s12343_s17 }
  0x13   : > { %v12164_v15 = vld [vmem:[%s12600_s29 + $0x110] sm:$0xff]  ;;  %v12181_v17 = vld [vmem:[%s12600_s29 + $0x198] sm:$0xff]  ;;  %v12182_v18 = vld [vmem:[%s12600_s29 + $0x1a0] sm:$0xff]  ;;  %v828_v19 = vshll.u32 %v12147_v13, 16  ;;  %v832_v20 = vshrl.u32 %v12147_v13, 16  ;;  %v836_v21 = vshll.u32 %v12148_v14, 16 }
  0x14   : > { %v964_v22 = vshll.u32 %v12164_v15, 16  ;;  %v12333_v23 = vld [vmem:[%s12600_s29] sm:$0xff]   ;;  %v12131_v24 = vld [vmem:[%s12600_s29 + $0x8] sm:$0xff]  ;;  %v968_v25 = vshrl.u32 %v12164_v15, 16  ;;  %v972_v26 = vshll.u32 %v12165_v16, 16  ;;  %v1100_v27 = vshll.u32 %v12181_v17, 16 }
  0x15   : > { %2647 = vmatpush.bf16.msrb.mxu2 %v2638_v8  ;;  %1947 = vmatpush.bf16.msrb.mxu1 %v1938_v11  ;;  %v1104_v28 = vshrl.u32 %v12181_v17, 16  ;;  %v12610_v29 = vrot.slane %v828_v19, 1  ;;  %v838_v30 = vrot.slane %v836_v21, 1  ;;  %v1108_v32 = vshll.u32 %v12182_v18, 16  ;;  %v12149_v48 = vld [vmem:[%s12600_s29 + $0x98] sm:$0xff]  ;;  %v12166_v49 = vld [vmem:[%s12600_s29 + $0x120] sm:$0xff] }
  0x16   : > { %3958 = vmatpush.bf16.msrb.mxu3 %v3949_v9  ;;  %5277 = vmatpush.bf16.msrb.mxu0 %v5268_v12  ;;  %v12612_v31 = vrot.slane %v964_v22, 1  ;;  %v974_v33 = vrot.slane %v972_v26, 1  ;;  %v12614_v34 = vrot.slane %v1100_v27, 1  ;;  %v693_v35 = vshrl.u32 %v12333_v23, 16  ;;  %v12183_v51 = vld [vmem:[%s12600_s29 + $0x1a8] sm:$0xff]  ;;  %v12132_v52 = vld [vmem:[%s12600_s29 + $0x10] sm:$0xff] }
  0x17   : > { %v695_v36 = vshll.u32 %v12333_v23, 16  ;;  %v834_v37 = vor.u32 %v832_v20, %v12610_v29  ;;  %v1110_v39 = vrot.slane %v1108_v32, 1  ;;  %v700_v40 = vshll.u32 %v12131_v24, 16  ;;  %v12150_v10 = vld [vmem:[%s12600_s29 + $0xa0] sm:$0xff]  ;;  %v12167_v11 = vld [vmem:[%s12600_s29 + $0x128] sm:$0xff]  ;;  %v12184_v12 = vld [vmem:[%s12600_s29 + $0x1b0] sm:$0xff] }
  0x18   : > { %v970_v38 = vor.u32 %v968_v25, %v12612_v31  ;;  %v1106_v41 = vor.u32 %v1104_v28, %v12614_v34  ;;  %v840_v53 = vshrl.u32 %v12148_v14, 16  ;;  %v844_v54 = vshll.u32 %v12149_v48, 16  ;;  %v12133_v13 = vld [vmem:[%s12600_s29 + $0x18] sm:$0xff] }
  0x19   : > { %v697_v42 = vrot.slane %v695_v36, 1  ;;  %v839_v43 = vsel %vm691_vm2, %v834_v37, %v838_v30  ;;  %v702_v45 = vrot.slane %v700_v40, 1  ;;  %v976_v55 = vshrl.u32 %v12165_v16, 16  ;;  %v12151_v37 = vld [vmem:[%s12600_s29 + $0xa8] sm:$0xff]  ;;  %v12134_v40 = vld [vmem:[%s12600_s29 + $0x20] sm:$0xff] }
  0x1a   : > { %v975_v44 = vsel %vm691_vm2, %v970_v38, %v974_v33  ;;  %10991 = vmatmul.msk.bf16.vlgmr.msra.gmra.mxu1 %vm1240_vm3, %v839_v43  ;;  %v1111_v46 = vsel %vm691_vm2, %v1106_v41, %v1110_v39  ;;  %v980_v56 = vshll.u32 %v12166_v49, 16  ;;  %v1112_v57 = vshrl.u32 %v12182_v18, 16  ;;  %v12168_v38 = vld [vmem:[%s12600_s29 + $0x130] sm:$0xff] }
  0x1b   : > { %11008 = vmatmul.msk.bf16.vlgmr.msra.gmra.mxu2 %vm1240_vm3, %v975_v44  ;;  %v698_v47 = vor.u32 %v697_v42, %v693_v35  ;;  %11025 = vmatmul.msk.bf16.vlgmr.msra.gmra.mxu3 %vm1240_vm3, %v1111_v46  ;;  %v1116_v58 = vshll.u32 %v12183_v51, 16  ;;  %v704_v59 = vshrl.u32 %v12131_v24, 16  ;;  %v708_v60 = vshll.u32 %v12132_v52, 16 }
  0x1c   : > { %v842_v61 = vor.u32 %v840_v53, %v838_v30  ;;  %v846_v62 = vrot.slane %v844_v54, 1  ;;  %v978_v63 = vor.u32 %v976_v55, %v974_v33  ;;  %v982_v0 = vrot.slane %v980_v56, 1 }
  0x1d   : > { %v703_v50 = vsel %vm691_vm2, %v698_v47, %v702_v45  ;;  %v1114_v1 = vor.u32 %v1112_v57, %v1110_v39  ;;  %v1118_v2 = vrot.slane %v1116_v58, 1  ;;  %v706_v3 = vor.u32 %v704_v59, %v702_v45  ;;  %v12185_v39 = vld [vmem:[%s12600_s29 + $0x1b8] sm:$0xff] }
  0x1e   : > { %10974 = vmatmul.msk.bf16.vlgmr.msra.gmra.mxu0 %vm1240_vm3, %v703_v50  ;;  %v710_v5 = vrot.slane %v708_v60, 1  ;;  %v847_v6 = vsel %vm691_vm2, %v842_v61, %v846_v62  ;;  %v983_v7 = vsel %vm691_vm2, %v978_v63, %v982_v0  ;;  %v848_v14 = vshrl.u32 %v12149_v48, 16  ;;  %v12152_v61 = vld [vmem:[%s12600_s29 + $0xb0] sm:$0xff]  ;;  %v12186_v63 = vld [vmem:[%s12600_s29 + $0x1c0] sm:$0xff] }
  0x1f   : > { %v1119_v8 = vsel %vm691_vm2, %v1114_v1, %v1118_v2  ;;  %v852_v15 = vshll.u32 %v12150_v10, 16  ;;  %v984_v16 = vshrl.u32 %v12166_v49, 16  ;;  %v988_v17 = vshll.u32 %v12167_v11, 16 }
  0x20   : > { %v711_v9 = vsel %vm691_vm2, %v706_v3, %v710_v5  ;;  %v1120_v18 = vshrl.u32 %v12183_v51, 16  ;;  %v1124_v19 = vshll.u32 %v12184_v12, 16  ;;  %v712_v20 = vshrl.u32 %v12132_v52, 16 }
  0x21   : > { %v716_v21 = vshll.u32 %v12133_v13, 16  ;;  %v850_v22 = vor.u32 %v848_v14, %v846_v62  ;;  %v854_v23 = vrot.slane %v852_v15, 1  ;;  %v986_v24 = vor.u32 %v984_v16, %v982_v0  ;;  %v12169_v62 = vld [vmem:[%s12600_s29 + $0x138] sm:$0xff]  ;;  %v12135_v0 = vld [vmem:[%s12600_s29 + $0x28] sm:$0xff] }
  0x22   : > { %v990_v25 = vrot.slane %v988_v17, 1  ;;  %v1122_v26 = vor.u32 %v1120_v18, %v1118_v2  ;;  %v1126_v27 = vrot.slane %v1124_v19, 1  ;;  %v714_v28 = vor.u32 %v712_v20, %v710_v5 }
  0x23   : > { %v718_v30 = vrot.slane %v716_v21, 1  ;;  %v855_v32 = vsel %vm691_vm2, %v850_v22, %v854_v23  ;;  %v856_v41 = vshrl.u32 %v12150_v10, 16  ;;  %v860_v42 = vshll.u32 %v12151_v37, 16  ;;  %v12153_v22 = vld [vmem:[%s12600_s29 + $0xb8] sm:$0xff] }
  0x24   : > { %v991_v33 = vsel %vm691_vm2, %v986_v24, %v990_v25  ;;  %v1127_v35 = vsel %vm691_vm2, %v1122_v26, %v1126_v27  ;;  %v992_v43 = vshrl.u32 %v12167_v11, 16  ;;  %v996_v44 = vshll.u32 %v12168_v38, 16  ;;  %v12187_v24 = vld [vmem:[%s12600_s29 + $0x1c8] sm:$0xff] }
  0x25   : > { %v719_v36 = vsel %vm691_vm2, %v714_v28, %v718_v30  ;;  %v1128_v45 = vshrl.u32 %v12184_v12, 16  ;;  %v1132_v46 = vshll.u32 %v12185_v39, 16  ;;  %v720_v47 = vshrl.u32 %v12133_v13, 16 }
  0x26   : > { %v724_v48 = vshll.u32 %v12134_v40, 16  ;;  %v858_v49 = vor.u32 %v856_v41, %v854_v23  ;;  %v862_v50 = vrot.slane %v860_v42, 1  ;;  %v994_v51 = vor.u32 %v992_v43, %v990_v25  ;;  %v12170_v23 = vld [vmem:[%s12600_s29 + $0x140] sm:$0xff]  ;;  %v12136_v25 = vld [vmem:[%s12600_s29 + $0x30] sm:$0xff] }
  0x27   : > { %v998_v52 = vrot.slane %v996_v44, 1  ;;  %v1130_v53 = vor.u32 %v1128_v45, %v1126_v27  ;;  %v1134_v54 = vrot.slane %v1132_v46, 1  ;;  %v722_v55 = vor.u32 %v720_v47, %v718_v30 }
  0x28   : > { %v726_v56 = vrot.slane %v724_v48, 1  ;;  %v863_v57 = vsel %vm691_vm2, %v858_v49, %v862_v50  ;;  %v864_v1 = vshrl.u32 %v12151_v37, 16  ;;  %v868_v2 = vshll.u32 %v12152_v61, 16  ;;  %v12154_v49 = vld [vmem:[%s12600_s29 + $0xc0] sm:$0xff] }
  0x29   : > { %v999_v58 = vsel %vm691_vm2, %v994_v51, %v998_v52  ;;  %v1135_v59 = vsel %vm691_vm2, %v1130_v53, %v1134_v54  ;;  %v1000_v3 = vshrl.u32 %v12168_v38, 16  ;;  %v1004_v5 = vshll.u32 %v12169_v62, 16  ;;  %v12188_v51 = vld [vmem:[%s12600_s29 + $0x1d0] sm:$0xff] }
  0x2a   : > { %10992 = vmatmul.msk.bf16.gmra.mxu1 %vm1240_vm3, %v847_v6  ;;  %v727_v60 = vsel %vm691_vm2, %v722_v55, %v726_v56  ;;  %v1136_v6 = vshrl.u32 %v12185_v39, 16  ;;  %v866_v10 = vor.u32 %v864_v1, %v862_v50  ;;  %v870_v11 = vrot.slane %v868_v2, 1  ;;  %v12171_v50 = vld [vmem:[%s12600_s29 + $0x148] sm:$0xff] }
  0x2b   : > { %11009 = vmatmul.msk.bf16.gmra.mxu2 %vm1240_vm3, %v983_v7  ;;  %11026 = vmatmul.msk.bf16.gmra.mxu3 %vm1240_vm3, %v1119_v8  ;;  %v1140_v7 = vshll.u32 %v12186_v63, 16  ;;  %v728_v8 = vshrl.u32 %v12134_v40, 16  ;;  %v1002_v12 = vor.u32 %v1000_v3, %v998_v52  ;;  %v1006_v13 = vrot.slane %v1004_v5, 1  ;;  %v12137_v52 = vld [vmem:[%s12600_s29 + $0x38] sm:$0xff] }
  0x2c   : > { %v1138_v14 = vor.u32 %v1136_v6, %v1134_v54  ;;  %v871_v18 = vsel %vm691_vm2, %v866_v10, %v870_v11  ;;  %v872_v26 = vshrl.u32 %v12152_v61, 16  ;;  %v876_v27 = vshll.u32 %v12153_v22, 16  ;;  %v12155_v10 = vld [vmem:[%s12600_s29 + $0xc8] sm:$0xff] }
  0x2d   : > { %v1142_v15 = vrot.slane %v1140_v7, 1  ;;  %v730_v16 = vor.u32 %v728_v8, %v726_v56  ;;  %v1007_v19 = vsel %vm691_vm2, %v1002_v12, %v1006_v13  ;;  %v1008_v28 = vshrl.u32 %v12169_v62, 16  ;;  %v12189_v12 = vld [vmem:[%s12600_s29 + $0x1d8] sm:$0xff] }
  0x2e   : > { %10975 = vmatmul.msk.bf16.gmra.mxu0 %vm1240_vm3, %v711_v9  ;;  %v732_v9 = vshll.u32 %v12135_v0, 16  ;;  %v1012_v30 = vshll.u32 %v12170_v23, 16  ;;  %v874_v37 = vor.u32 %v872_v26, %v870_v11  ;;  %v878_v38 = vrot.slane %v876_v27, 1  ;;  %v12172_v11 = vld [vmem:[%s12600_s29 + $0x150] sm:$0xff] }
  0x2f   : > { %v1143_v20 = vsel %vm691_vm2, %v1138_v14, %v1142_v15  ;;  %v1010_v39 = vor.u32 %v1008_v28, %v1006_v13  ;;  %v880_v53 = vshrl.u32 %v12153_v22, 16  ;;  %v884_v54 = vshll.u32 %v12154_v49, 16  ;;  %v12138_v13 = vld [vmem:[%s12600_s29 + $0x40] sm:$0xff] }
  0x30   : > { %v734_v17 = vrot.slane %v732_v9, 1  ;;  %v1014_v40 = vrot.slane %v1012_v30, 1  ;;  %v879_v45 = vsel %vm691_vm2, %v874_v37, %v878_v38  ;;  %v1016_v55 = vshrl.u32 %v12170_v23, 16  ;;  %v12156_v37 = vld [vmem:[%s12600_s29 + $0xd0] sm:$0xff] }
  0x31   : > { %v1020_v56 = vshll.u32 %v12171_v50, 16  ;;  %v882_v61 = vor.u32 %v880_v53, %v878_v38  ;;  %v886_v62 = vrot.slane %v884_v54, 1  ;;  %v888_v14 = vshrl.u32 %v12154_v49, 16  ;;  %v12173_v38 = vld [vmem:[%s12600_s29 + $0x158] sm:$0xff] }
  0x32   : > { %v735_v21 = vsel %vm691_vm2, %v730_v16, %v734_v17  ;;  %v1015_v46 = vsel %vm691_vm2, %v1010_v39, %v1014_v40  ;;  %v1024_v16 = vshrl.u32 %v12171_v50, 16  ;;  %v12190_v39 = vld [vmem:[%s12600_s29 + $0x1e0] sm:$0xff] }
  0x33   : > { %v887_v6 = vsel %vm691_vm2, %v882_v61, %v886_v62  ;;  %v890_v22 = vor.u32 %v888_v14, %v886_v62 }
  0x3a   : > { %10993 = vmatmul.msk.bf16.gmra.mxu1 %vm1240_vm3, %v855_v32  ;;  %v1144_v32 = vshrl.u32 %v12186_v63, 16  ;;  %v1018_v63 = vor.u32 %v1016_v55, %v1014_v40  ;;  %v12139_v40 = vld [vmem:[%s12600_s29 + $0x48] sm:$0xff] }
  0x3b   : > { %11010 = vmatmul.msk.bf16.gmra.mxu2 %vm1240_vm3, %v991_v33  ;;  %11027 = vmatmul.msk.bf16.gmra.mxu3 %vm1240_vm3, %v1127_v35  ;;  %v1148_v33 = vshll.u32 %v12187_v24, 16  ;;  %v736_v35 = vshrl.u32 %v12135_v0, 16  ;;  %v1022_v0 = vrot.slane %v1020_v56, 1  ;;  %v768_v14 = vshrl.u32 %v12139_v40, 16 }
  0x3c   : > { %v1146_v41 = vor.u32 %v1144_v32, %v1142_v15  ;;  %v892_v15 = vshll.u32 %v12155_v10, 16 }
  0x3d   : > { %v1150_v42 = vrot.slane %v1148_v33, 1  ;;  %v738_v43 = vor.u32 %v736_v35, %v734_v17  ;;  %v1023_v7 = vsel %vm691_vm2, %v1018_v63, %v1022_v0  ;;  %v1028_v17 = vshll.u32 %v12172_v11, 16  ;;  %v12157_v63 = vld [vmem:[%s12600_s29 + $0xd8] sm:$0xff] }
  0x3e   : > { %10976 = vmatmul.msk.bf16.gmra.mxu0 %vm1240_vm3, %v719_v36  ;;  %v740_v36 = vshll.u32 %v12136_v25, 16  ;;  %v894_v23 = vrot.slane %v892_v15, 1 }
  0x3f   : > { %v1151_v47 = vsel %vm691_vm2, %v1146_v41, %v1150_v42  ;;  %v896_v41 = vshrl.u32 %v12155_v10, 16 }
  0x40   : > { %v742_v44 = vrot.slane %v740_v36, 1  ;;  %v895_v32 = vsel %vm691_vm2, %v890_v22, %v894_v23 }
  0x41   : > { %v898_v49 = vor.u32 %v896_v41, %v894_v23 }
  0x42   : > { %v743_v48 = vsel %vm691_vm2, %v738_v43, %v742_v44  ;;  %v1032_v43 = vshrl.u32 %v12172_v11, 16  ;;  %v1176_v11 = vshrl.u32 %v12190_v39, 16 }
  0x4a   : > { %10994 = vmatmul.msk.bf16.gmra.mxu1 %vm1240_vm3, %v863_v57  ;;  %v1152_v57 = vshrl.u32 %v12187_v24, 16  ;;  %v1026_v24 = vor.u32 %v1024_v16, %v1022_v0  ;;  %v12174_v0 = vld [vmem:[%s12600_s29 + $0x160] sm:$0xff] }
  0x4b   : > { %11011 = vmatmul.msk.bf16.gmra.mxu2 %vm1240_vm3, %v999_v58  ;;  %11028 = vmatmul.msk.bf16.gmra.mxu3 %vm1240_vm3, %v1135_v59  ;;  %v1156_v58 = vshll.u32 %v12188_v51, 16  ;;  %v744_v59 = vshrl.u32 %v12136_v25, 16  ;;  %v1030_v25 = vrot.slane %v1028_v17, 1  ;;  %v1044_v10 = vshll.u32 %v12174_v0, 16 }
  0x4c   : > { %v1154_v1 = vor.u32 %v1152_v57, %v1150_v42  ;;  %v900_v42 = vshll.u32 %v12156_v37, 16 }
  0x4d   : > { %v1158_v2 = vrot.slane %v1156_v58, 1  ;;  %v746_v3 = vor.u32 %v744_v59, %v742_v44  ;;  %v1031_v33 = vsel %vm691_vm2, %v1026_v24, %v1030_v25  ;;  %v1036_v44 = vshll.u32 %v12173_v38, 16 }
  0x4e   : > { %10977 = vmatmul.msk.bf16.gmra.mxu0 %vm1240_vm3, %v727_v60  ;;  %v748_v60 = vshll.u32 %v12137_v52, 16  ;;  %v902_v50 = vrot.slane %v900_v42, 1  ;;  %v912_v42 = vshrl.u32 %v12157_v63, 16 }
  0x4f   : > { %v1159_v8 = vsel %vm691_vm2, %v1154_v1, %v1158_v2  ;;  %v12191_v1 = vld [vmem:[%s12600_s29 + $0x1e8] sm:$0xff] }
  0x50   : > { %v750_v5 = vrot.slane %v748_v60, 1  ;;  %v903_v58 = vsel %vm691_vm2, %v898_v49, %v902_v50 }
  0x52   : > { %v751_v9 = vsel %vm691_vm2, %v746_v3, %v750_v5 }
  0x5a   : > { %10995 = vmatmul.msk.bf16.gmra.mxu1 %vm1240_vm3, %v871_v18  ;;  %v1160_v18 = vshrl.u32 %v12188_v51, 16  ;;  %v1034_v51 = vor.u32 %v1032_v43, %v1030_v25 }
  0x5b   : > { %11012 = vmatmul.msk.bf16.gmra.mxu2 %vm1240_vm3, %v1007_v19  ;;  %11029 = vmatmul.msk.bf16.gmra.mxu3 %vm1240_vm3, %v1143_v20  ;;  %v1164_v19 = vshll.u32 %v12189_v12, 16  ;;  %v752_v20 = vshrl.u32 %v12137_v52, 16  ;;  %v1038_v52 = vrot.slane %v1036_v44, 1  ;;  %v1048_v44 = vshrl.u32 %v12174_v0, 16 }
  0x5c   : > { %v1162_v26 = vor.u32 %v1160_v18, %v1158_v2 }
  0x5d   : > { %v1166_v27 = vrot.slane %v1164_v19, 1  ;;  %v754_v28 = vor.u32 %v752_v20, %v750_v5  ;;  %v1039_v59 = vsel %vm691_vm2, %v1034_v51, %v1038_v52  ;;  %v12140_v5 = vld [vmem:[%s12600_s29 + $0x50] sm:$0xff]  ;;  %v1046_v19 = vrot.slane %v1044_v10, 1 }
  0x5e   : > { %10978 = vmatmul.msk.bf16.gmra.mxu0 %vm1240_vm3, %v735_v21  ;;  %v756_v21 = vshll.u32 %v12138_v13, 16  ;;  %v772_v15 = vshll.u32 %v12140_v5, 16  ;;  %v776_v49 = vshrl.u32 %v12140_v5, 16  ;;  %v12176_v10 = vld [vmem:[%s12600_s29 + $0x170] sm:$0xff] }
  0x5f   : > { %v1167_v35 = vsel %vm691_vm2, %v1162_v26, %v1166_v27 }
  0x60   : > { %v758_v30 = vrot.slane %v756_v21, 1  ;;  %v774_v25 = vrot.slane %v772_v15, 1  ;;  %v12142_v15 = vld [vmem:[%s12600_s29 + $0x60] sm:$0xff] }
  0x62   : > { %v759_v36 = vsel %vm691_vm2, %v754_v28, %v758_v30 }
  0x6a   : > { %10996 = vmatmul.msk.bf16.gmra.mxu1 %vm1240_vm3, %v879_v45  ;;  %v1168_v45 = vshrl.u32 %v12189_v12, 16  ;;  %v1180_v12 = vshll.u32 %v12191_v1, 16 }
  0x6b   : > { %11013 = vmatmul.msk.bf16.gmra.mxu2 %vm1240_vm3, %v1015_v46  ;;  %11030 = vmatmul.msk.bf16.gmra.mxu3 %vm1240_vm3, %v1151_v47  ;;  %v1172_v46 = vshll.u32 %v12190_v39, 16  ;;  %v760_v47 = vshrl.u32 %v12138_v13, 16 }
  0x6c   : > { %v1170_v53 = vor.u32 %v1168_v45, %v1166_v27  ;;  %v1182_v21 = vrot.slane %v1180_v12, 1 }
  0x6d   : > { %v1174_v54 = vrot.slane %v1172_v46, 1  ;;  %v762_v55 = vor.u32 %v760_v47, %v758_v30  ;;  %v1184_v46 = vshrl.u32 %v12191_v1, 16 }
  0x6e   : > { %10979 = vmatmul.msk.bf16.gmra.mxu0 %vm1240_vm3, %v743_v48  ;;  %v764_v48 = vshll.u32 %v12139_v40, 16  ;;  %v12141_v40 = vld [vmem:[%s12600_s29 + $0x58] sm:$0xff] }
  0x6f   : > { %v1175_v60 = vsel %vm691_vm2, %v1170_v53, %v1174_v54  ;;  %v1178_v20 = vor.u32 %v1176_v11, %v1174_v54  ;;  %v1050_v53 = vor.u32 %v1048_v44, %v1046_v19  ;;  %v12193_v11 = vld [vmem:[%s12600_s29 + $0x1f8] sm:$0xff] }
  0x70   : > { %v766_v56 = vrot.slane %v764_v48, 1 }
  0x71   : > { %v1183_v30 = vsel %vm691_vm2, %v1178_v20, %v1182_v21  ;;  %v1060_v20 = vshll.u32 %v12176_v10, 16 }
  0x72   : > { %v767_v62 = vsel %vm691_vm2, %v762_v55, %v766_v56  ;;  %v770_v24 = vor.u32 %v768_v14, %v766_v56  ;;  %v1186_v55 = vor.u32 %v1184_v46, %v1182_v21 }
  0x7a   : > { %10997 = vmatmul.msk.bf16.gmra.mxu1 %vm1240_vm3, %v887_v6 }
  0x7b   : > { %11014 = vmatmul.msk.bf16.gmra.mxu2 %vm1240_vm3, %v1023_v7  ;;  %11031 = vmatmul.msk.bf16.gmra.mxu3 %vm1240_vm3, %v1159_v8  ;;  %v904_v7 = vshrl.u32 %v12156_v37, 16  ;;  %v908_v8 = vshll.u32 %v12157_v63, 16  ;;  %v12192_v37 = vld [vmem:[%s12600_s29 + $0x1f0] sm:$0xff] }
  0x7c   : > { %v1188_v47 = vshll.u32 %v12192_v37, 16  ;;  %v1192_v21 = vshrl.u32 %v12192_v37, 16 }
  0x7d   : > { %v906_v16 = vor.u32 %v904_v7, %v902_v50  ;;  %v910_v17 = vrot.slane %v908_v8, 1  ;;  %v780_v50 = vshll.u32 %v12141_v40, 16 }
  0x7e   : > { %10980 = vmatmul.msk.bf16.gmra.mxu0 %vm1240_vm3, %v751_v9  ;;  %v1040_v9 = vshrl.u32 %v12173_v38, 16  ;;  %v1190_v56 = vrot.slane %v1188_v47, 1 }
  0x7f   : > { %v911_v27 = vsel %vm691_vm2, %v906_v16, %v910_v17  ;;  %v914_v51 = vor.u32 %v912_v42, %v910_v17 }
  0x80   : > { %v1042_v18 = vor.u32 %v1040_v9, %v1038_v52  ;;  %v1191_v5 = vsel %vm691_vm2, %v1186_v55, %v1190_v56  ;;  %v12159_v9 = vld [vmem:[%s12600_s29 + $0xe8] sm:$0xff]  ;;  %v1194_v44 = vor.u32 %v1192_v21, %v1190_v56  ;;  %v12194_v55 = vld [vmem:[%s12600_s29 + $0x200] sm:$0xff]  ;;  %v792_v21 = vshrl.u32 %v12142_v15, 16 }
  0x82   : > { %v1047_v28 = vsel %vm691_vm2, %v1042_v18, %v1046_v19  ;;  %v924_v18 = vshll.u32 %v12159_v9, 16 }
  0x8a   : > { %10998 = vmatmul.msk.bf16.gmra.mxu1 %vm1240_vm3, %v895_v32 }
  0x8b   : > { %11015 = vmatmul.msk.bf16.gmra.mxu2 %vm1240_vm3, %v1031_v33  ;;  %11032 = vmatmul.msk.bf16.gmra.mxu3 %vm1240_vm3, %v1167_v35  ;;  %v775_v33 = vsel %vm691_vm2, %v770_v24, %v774_v25  ;;  %v12158_v35 = vld [vmem:[%s12600_s29 + $0xe0] sm:$0xff]  ;;  %v1196_v24 = vshll.u32 %v12193_v11, 16 }
  0x8c   : > { %v916_v43 = vshll.u32 %v12158_v35, 16  ;;  %v920_v17 = vshrl.u32 %v12158_v35, 16 }
  0x8e   : > { %10981 = vmatmul.msk.bf16.gmra.mxu0 %vm1240_vm3, %v759_v36  ;;  %v12175_v36 = vld [vmem:[%s12600_s29 + $0x168] sm:$0xff]  ;;  %v918_v52 = vrot.slane %v916_v43, 1  ;;  %v1062_v43 = vrot.slane %v1060_v20, 1 }
  0x8f   : > { %v1052_v45 = vshll.u32 %v12175_v36, 16  ;;  %v1056_v19 = vshrl.u32 %v12175_v36, 16 }
  0x90   : > { %v919_v0 = vsel %vm691_vm2, %v914_v51, %v918_v52 }
  0x91   : > { %v1054_v54 = vrot.slane %v1052_v45, 1  ;;  %v1198_v45 = vrot.slane %v1196_v24, 1 }
  0x93   : > { %v1055_v1 = vsel %vm691_vm2, %v1050_v53, %v1054_v54  ;;  %v1058_v42 = vor.u32 %v1056_v19, %v1054_v54  ;;  %v12160_v53 = vld [vmem:[%s12600_s29 + $0xf0] sm:$0xff]  ;;  %v12177_v54 = vld [vmem:[%s12600_s29 + $0x178] sm:$0xff]  ;;  %v1204_v19 = vshll.u32 %v12194_v55, 16 }
  0x97   : > { %v12715_v57 = vpop.f32.mrf.mxu1 }
  0x98   : > { %15860 = vst [vmem:[#allocation2_spill] sm:$0xff] %v12715_v57 }
  0x9a   : > { %10999 = vmatmul.msk.bf16.gmra.mxu1 %vm1240_vm3, %v903_v58 }
  0x9b   : > { %v12720_v61 = vpop.f32.mrf.mxu0  ;;  %11016 = vmatmul.msk.bf16.gmra.mxu2 %vm1240_vm3, %v1039_v59  ;;  %11033 = vmatmul.msk.bf16.gmra.mxu3 %vm1240_vm3, %v1175_v60  ;;  %v778_v60 = vor.u32 %v776_v49, %v774_v25  ;;  %v1063_v49 = vsel %vm691_vm2, %v1058_v42, %v1062_v43 }
  0x9e   : > { %10982 = vmatmul.msk.bf16.gmra.mxu0 %vm1240_vm3, %v767_v62  ;;  %v12730_v2 = vpop.f32.mrf.mxu2  ;;  %v12732_v3 = vpop.f32.mrf.mxu3  ;;  %v782_v62 = vrot.slane %v780_v50, 1  ;;  %v1199_v50 = vsel %vm691_vm2, %v1194_v44, %v1198_v45 }
  0x9f   : > { %15861 = vst [vmem:[#allocation3_spill] sm:$0xff] %v12730_v2  ;;  %v12735_v6 = vpop.f32.mrf.mxu1 }
  0xa0   : > { %15862 = vst [vmem:[#allocation4_spill] sm:$0xff] %v12732_v3  ;;  %v783_v8 = vsel %vm691_vm2, %v778_v60, %v782_v62 }
  0xa1   : > { %15863 = vst [vmem:[#allocation5_spill] sm:$0xff] %v12735_v6 }
  0xa3   : > { %v12737_v13 = vpop.f32.mrf.mxu0 }
  0xa6   : > { %v12739_v22 = vpop.f32.mrf.mxu2  ;;  %v12741_v23 = vpop.f32.mrf.mxu3 }
  0xa7   : > { %15864 = vst [vmem:[#allocation6_spill] sm:$0xff] %v12739_v22  ;;  %v12743_v26 = vpop.f32.mrf.mxu1 }
  0xa8   : > { %15865 = vst [vmem:[#allocation7_spill] sm:$0xff] %v12741_v23 }
  0xa9   : > { %15866 = vst [vmem:[#allocation8_spill] sm:$0xff] %v12743_v26 }
  0xaa   : > { %11000 = vmatmul.msk.bf16.gmra.mxu1 %vm1240_vm3, %v911_v27  ;;  %v784_v27 = vshrl.u32 %v12141_v40, 16 }
  0xab   : > { %v12748_v32 = vpop.f32.mrf.mxu0  ;;  %11017 = vmatmul.msk.bf16.gmra.mxu2 %vm1240_vm3, %v1047_v28  ;;  %11034 = vmatmul.msk.bf16.gmra.mxu3 %vm1240_vm3, %v1183_v30  ;;  %v788_v28 = vshll.u32 %v12142_v15, 16  ;;  %v922_v30 = vor.u32 %v920_v17, %v918_v52  ;;  %v1068_v17 = vshll.u32 %v12177_v54, 16 }
  0xac   : > { %v786_v36 = vor.u32 %v784_v27, %v782_v62  ;;  %v12819_v62 = vld [vmem:[%s12600_s29 + $0x68] sm:$0xff] }
  0xad   : > { %v790_v37 = vrot.slane %v788_v28, 1  ;;  %v796_v24 = vshll.u32 %v12819_v62, 16  ;;  %v1070_v42 = vrot.slane %v1068_v17, 1  ;;  %v12850_v17 = vld [vmem:[%s12600_s29 + $0x70] sm:$0xff] }
  0xae   : > { %10983 = vmatmul.msk.bf16.gmra.mxu0 %vm1240_vm3, %v775_v33  ;;  %v12758_v38 = vpop.f32.mrf.mxu2  ;;  %v12760_v39 = vpop.f32.mrf.mxu3  ;;  %v926_v33 = vrot.slane %v924_v18, 1  ;;  %v1200_v18 = vshrl.u32 %v12193_v11, 16 }
  0xaf   : > { %15867 = vst [vmem:[#allocation9_spill] sm:$0xff] %v12758_v38  ;;  %v12763_v41 = vpop.f32.mrf.mxu1  ;;  %v791_v52 = vsel %vm691_vm2, %v786_v36, %v790_v37  ;;  %v1206_v36 = vrot.slane %v1204_v19, 1  ;;  %v794_v11 = vor.u32 %v792_v21, %v790_v37  ;;  %v12161_v37 = vld [vmem:[%s12600_s29 + $0xf8] sm:$0xff]  ;;  %v936_v19 = vshrl.u32 %v12160_v53, 16 }
  0xb0   : > { %15868 = vst [vmem:[#allocation10_spill] sm:$0xff] %v12760_v39  ;;  %v927_v40 = vsel %vm691_vm2, %v922_v30, %v926_v33  ;;  %v1202_v44 = vor.u32 %v1200_v18, %v1198_v45  ;;  %v940_v21 = vshll.u32 %v12161_v37, 16 }
  0xb1   : > { %15869 = vst [vmem:[#allocation11_spill] sm:$0xff] %v12763_v41 }
  0xb3   : > { %v12765_v48 = vpop.f32.mrf.mxu0 }
  0xb6   : > { %v12767_v58 = vpop.f32.mrf.mxu2  ;;  %v12769_v59 = vpop.f32.mrf.mxu3 }
  0xb7   : > { %15870 = vst [vmem:[#allocation12_spill] sm:$0xff] %v12767_v58  ;;  %v12771_v63 = vpop.f32.mrf.mxu1  ;;  %v345_v58 = vld [vmem:[%s12600_s29 + $0x220] sm:$0x1] }
  0xb8   : > { %15871 = vst [vmem:[#allocation13_spill] sm:$0xff] %v12769_v59 }
  0xb9   : > { %15872 = vst [vmem:[#allocation14_spill] sm:$0xff] %v12771_v63 }
  0xba   : > { %11001 = vmatmul.msk.bf16.gmra.mxu1 %vm1240_vm3, %v919_v0 }
  0xbb   : > { %v12776_v7 = vpop.f32.mrf.mxu0  ;;  %11018 = vmatmul.msk.bf16.gmra.mxu2 %vm1240_vm3, %v1055_v1  ;;  %11035 = vmatmul.msk.bf16.gmra.mxu3 %vm1240_vm3, %v1191_v5  ;;  %v928_v1 = vshrl.u32 %v12159_v9, 16  ;;  %v932_v5 = vshll.u32 %v12160_v53, 16 }
  0xbd   : > { %v930_v27 = vor.u32 %v928_v1, %v926_v33  ;;  %v934_v28 = vrot.slane %v932_v5, 1  ;;  %v12195_v1 = vld [vmem:[%s12600_s29 + $0x208] sm:$0xff] }
  0xbe   : > { %10984 = vmatmul.msk.bf16.gmra.mxu0 %vm1240_vm3, %v783_v8  ;;  %v12786_v12 = vpop.f32.mrf.mxu2  ;;  %v12788_v14 = vpop.f32.mrf.mxu3  ;;  %v1064_v8 = vshrl.u32 %v12176_v10, 16 }
  0xbf   : > { %15873 = vst [vmem:[#allocation15_spill] sm:$0xff] %v12786_v12  ;;  %v12791_v16 = vpop.f32.mrf.mxu1  ;;  %v935_v15 = vsel %vm691_vm2, %v930_v27, %v934_v28 }
  0xc0   : > { %15874 = vst [vmem:[#allocation16_spill] sm:$0xff] %v12788_v14  ;;  %v1066_v30 = vor.u32 %v1064_v8, %v1062_v43  ;;  %v1207_v43 = vsel %vm691_vm2, %v1202_v44, %v1206_v36  ;;  %v1212_v44 = vshll.u32 %v12195_v1, 16 }
  0xc1   : > { %15875 = vst [vmem:[#allocation17_spill] sm:$0xff] %v12791_v16 }
  0xc2   : > { %v1071_v33 = vsel %vm691_vm2, %v1066_v30, %v1070_v42  ;;  %v1208_v30 = vshrl.u32 %v12194_v55, 16 }
  0xc3   : > { %v12793_v25 = vpop.f32.mrf.mxu0 }
  0xc6   : > { %v12795_v46 = vpop.f32.mrf.mxu2  ;;  %v12797_v35 = vpop.f32.mrf.mxu3 }
  0xc7   : > { %15876 = vst [vmem:[#allocation18_spill] sm:$0xff] %v12795_v46  ;;  %v12799_v47 = vpop.f32.mrf.mxu1 }
  0xc8   : > { %15877 = vst [vmem:[#allocation19_spill] sm:$0xff] %v12797_v35  ;;  %v1214_v35 = vrot.slane %v1212_v44, 1 }
  0xc9   : > { %15878 = vst [vmem:[#allocation20_spill] sm:$0xff] %v12799_v47 }
  0xca   : > { %11002 = vmatmul.msk.bf16.gmra.mxu1 %vm1240_vm3, %v927_v40  ;;  %v798_v40 = vrot.slane %v796_v24, 1  ;;  %v1072_v24 = vshrl.u32 %v12177_v54, 16 }
  0xcb   : > { %v12804_v51 = vpop.f32.mrf.mxu0  ;;  %11019 = vmatmul.msk.bf16.gmra.mxu2 %vm1240_vm3, %v1063_v49  ;;  %11036 = vmatmul.msk.bf16.gmra.mxu3 %vm1240_vm3, %v1199_v50 }
  0xcc   : > { %v799_v45 = vsel %vm691_vm2, %v794_v11, %v798_v40 }
  0xce   : > { %10985 = vmatmul.msk.bf16.gmra.mxu0 %vm1240_vm3, %v791_v52  ;;  %v12814_v56 = vpop.f32.mrf.mxu2  ;;  %v12816_v60 = vpop.f32.mrf.mxu3  ;;  %v12178_v52 = vld [vmem:[%s12600_s29 + $0x180] sm:$0xff] }
  0xcf   : > { %15879 = vst [vmem:[#allocation21_spill] sm:$0xff] %v12814_v56  ;;  %v12821_v0 = vpop.f32.mrf.mxu1  ;;  %v1076_v27 = vshll.u32 %v12178_v52, 16 }
  0xd0   : > { %15880 = vst [vmem:[#allocation22_spill] sm:$0xff] %v12816_v60  ;;  %v1210_v60 = vor.u32 %v1208_v30, %v1206_v36 }
  0xd1   : > { %15881 = vst [vmem:[#allocation23_spill] sm:$0xff] %v12821_v0 }
  0xd3   : > { %v12823_v20 = vpop.f32.mrf.mxu0 }
  0xd6   : > { %v12826_v9 = vpop.f32.mrf.mxu2  ;;  %v12828_v10 = vpop.f32.mrf.mxu3 }
  0xd7   : > { %15882 = vst [vmem:[#allocation24_spill] sm:$0xff] %v12826_v9  ;;  %v12830_v49 = vpop.f32.mrf.mxu1 }
  0xd8   : > { %15883 = vst [vmem:[#allocation25_spill] sm:$0xff] %v12828_v10  ;;  %v1074_v10 = vor.u32 %v1072_v24, %v1070_v42  ;;  %v1215_v42 = vsel %vm691_vm2, %v1210_v60, %v1214_v35  ;;  %v12196_v24 = vld [vmem:[%s12600_s29 + $0x210] sm:$0xff]  ;;  %v12882_v60 = vld [vmem:[%s12600_s29 + $0x78] sm:$0xff] }
  0xd9   : > { %15884 = vst [vmem:[#allocation26_spill] sm:$0xff] %v12830_v49 }
  0xda   : > { %11003 = vmatmul.msk.bf16.gmra.mxu1 %vm1240_vm3, %v935_v15  ;;  %v800_v15 = vshrl.u32 %v12819_v62, 16 }
  0xdb   : > { %v12835_v50 = vpop.f32.mrf.mxu0  ;;  %11020 = vmatmul.msk.bf16.gmra.mxu2 %vm1240_vm3, %v1071_v33  ;;  %11037 = vmatmul.msk.bf16.gmra.mxu3 %vm1240_vm3, %v1207_v43  ;;  %v804_v33 = vshll.u32 %v12850_v17, 16  ;;  %v938_v43 = vor.u32 %v936_v19, %v934_v28 }
  0xdc   : > { %v802_v55 = vor.u32 %v800_v15, %v798_v40  ;;  %v12162_v40 = vld [vmem:[%s12600_s29 + $0x100] sm:$0xff]  ;;  %v1080_v15 = vshrl.u32 %v12178_v52, 16 }
  0xdd   : > { %v806_v14 = vrot.slane %v804_v33, 1  ;;  %v948_v44 = vshll.u32 %v12162_v40, 16 }
  0xde   : > { %10986 = vmatmul.msk.bf16.gmra.mxu0 %vm1240_vm3, %v799_v45  ;;  %v12845_v5 = vpop.f32.mrf.mxu2  ;;  %v12847_v8 = vpop.f32.mrf.mxu3  ;;  %v942_v45 = vrot.slane %v940_v21, 1  ;;  %v12179_v21 = vld [vmem:[%s12600_s29 + $0x188] sm:$0xff] }
  0xdf   : > { %15885 = vst [vmem:[#allocation27_spill] sm:$0xff] %v12845_v5  ;;  %v12852_v18 = vpop.f32.mrf.mxu1  ;;  %v807_v36 = vsel %vm691_vm2, %v802_v55, %v806_v14  ;;  %v1084_v33 = vshll.u32 %v12179_v21, 16  ;;  %v1220_v55 = vshll.u32 %v12196_v24, 16  ;;  %v950_v23 = vrot.slane %v948_v44, 1  ;;  %v12180_v44 = vld [vmem:[%s12600_s29 + $0x190] sm:$0xff] }
  0xe0   : > { %15886 = vst [vmem:[#allocation28_spill] sm:$0xff] %v12847_v8  ;;  %v1078_v8 = vrot.slane %v1076_v27, 1  ;;  %v943_v39 = vsel %vm691_vm2, %v938_v43, %v942_v45  ;;  %v1216_v43 = vshrl.u32 %v12195_v1, 16 }
  0xe1   : > { %15887 = vst [vmem:[#allocation29_spill] sm:$0xff] %v12852_v18 }
  0xe2   : > { %v1079_v28 = vsel %vm691_vm2, %v1074_v10, %v1078_v8  ;;  %v1082_v3 = vor.u32 %v1080_v15, %v1078_v8  ;;  %v12908_v15 = vld [vmem:[%s12600_s29 + $0x218] sm:$0xff] }
  0xe3   : > { %v12854_v11 = vpop.f32.mrf.mxu0 }
  0xe6   : > { %v12858_v53 = vpop.f32.mrf.mxu2  ;;  %v12860_v54 = vpop.f32.mrf.mxu3 }
  0xe7   : > { %15888 = vst [vmem:[#allocation30_spill] sm:$0xff] %v12858_v53  ;;  %v12862_v59 = vpop.f32.mrf.mxu1  ;;  %v1222_v53 = vrot.slane %v1220_v55, 1  ;;  %v1088_v55 = vshrl.u32 %v12179_v21, 16 }
  0xe8   : > { %15889 = vst [vmem:[#allocation31_spill] sm:$0xff] %v12860_v54 }
  0xe9   : > { %15890 = vst [vmem:[#allocation32_spill] sm:$0xff] %v12862_v59 }
  0xea   : > { %11004 = vmatmul.msk.bf16.gmra.mxu1 %vm1240_vm3, %v943_v39  ;;  %v944_v39 = vshrl.u32 %v12161_v37, 16 }
  0xeb   : > { %v12867_v19 = vpop.f32.mrf.mxu0  ;;  %11021 = vmatmul.msk.bf16.gmra.mxu2 %vm1240_vm3, %v1079_v28  ;;  %11038 = vmatmul.msk.bf16.gmra.mxu3 %vm1240_vm3, %v1215_v42  ;;  %v808_v42 = vshrl.u32 %v12850_v17, 16 }
  0xec   : > { %v946_v54 = vor.u32 %v944_v39, %v942_v45 }
  0xed   : > { %v810_v1 = vor.u32 %v808_v42, %v806_v14  ;;  %v12163_v14 = vld [vmem:[%s12600_s29 + $0x108] sm:$0xff]  ;;  %v1092_v42 = vshll.u32 %v12180_v44, 16 }
  0xee   : > { %10987 = vmatmul.msk.bf16.gmra.mxu0 %vm1240_vm3, %v807_v36  ;;  %v12877_v27 = vpop.f32.mrf.mxu2  ;;  %v12879_v10 = vpop.f32.mrf.mxu3  ;;  %v812_v36 = vshll.u32 %v12882_v60, 16  ;;  %v951_v56 = vsel %vm691_vm2, %v946_v54, %v950_v23 }
  0xef   : > { %15891 = vst [vmem:[#allocation33_spill] sm:$0xff] %v12877_v27  ;;  %v12884_v30 = vpop.f32.mrf.mxu1  ;;  %v1218_v27 = vor.u32 %v1216_v43, %v1214_v35  ;;  %v956_v43 = vshll.u32 %v12163_v14, 16 }
  0xf0   : > { %15892 = vst [vmem:[#allocation34_spill] sm:$0xff] %v12879_v10  ;;  %v1086_v10 = vrot.slane %v1084_v33, 1  ;;  %v814_v5 = vrot.slane %v812_v36, 1  ;;  %v1224_v36 = vshrl.u32 %v12196_v24, 16 }
  0xf1   : > { %15893 = vst [vmem:[#allocation35_spill] sm:$0xff] %v12884_v30  ;;  %v1223_v8 = vsel %vm691_vm2, %v1218_v27, %v1222_v53  ;;  %v12916_v27 = vld [vmem:[%s12600_s29 + $0x80] sm:$0xff] }
  0xf2   : > { %v1087_v45 = vsel %vm691_vm2, %v1082_v3, %v1086_v10  ;;  %v815_v35 = vsel %vm691_vm2, %v810_v1, %v814_v5  ;;  %v1228_v1 = vshll.u32 %v12908_v15, 16  ;;  %v1226_v46 = vor.u32 %v1224_v36, %v1222_v53 }
  0xf3   : > { %v12886_v28 = vpop.f32.mrf.mxu0  ;;  %v1096_v36 = vshrl.u32 %v12180_v44, 16  ;;  %v12972_v44 = vld [vmem:[%s12600_s29 + $0x14] sm:$0xf] }
  0xf4   : > { %v1230_v12 = vrot.slane %v1228_v1, 1  ;;  %15907 = vst [vmem:[#allocation49_spill] sm:$0xff] %v12972_v44 }
  0xf6   : > { %v12890_v37 = vpop.f32.mrf.mxu2  ;;  %v12892_v52 = vpop.f32.mrf.mxu3 }
  0xf7   : > { %15894 = vst [vmem:[#allocation36_spill] sm:$0xff] %v12890_v37  ;;  %v12894_v9 = vpop.f32.mrf.mxu1  ;;  %v1094_v37 = vrot.slane %v1092_v42, 1  ;;  %v960_v42 = vshrl.u32 %v12163_v14, 16  ;;  %v3125_v14 = vld [vmem:[%s12600_s29 + $0x10] sm:$0xe] }
  0xf8   : > { %15895 = vst [vmem:[#allocation37_spill] sm:$0xff] %v12892_v52 }
  0xf9   : > { %15896 = vst [vmem:[#allocation38_spill] sm:$0xff] %v12894_v9 }
  0xfa   : > { %11005 = vmatmul.msk.bf16.gmra.mxu1 %vm1240_vm3, %v951_v56  ;;  %v952_v56 = vshrl.u32 %v12162_v40, 16 }
  0xfb   : > { %v12899_v39 = vpop.f32.mrf.mxu0  ;;  %11022 = vmatmul.msk.bf16.gmra.mxu2 %vm1240_vm3, %v1087_v45  ;;  %11039 = vmatmul.msk.bf16.gmra.mxu3 %vm1240_vm3, %v1223_v8  ;;  %v816_v8 = vshrl.u32 %v12882_v60, 16 }
  0xfc   : > { %v954_v52 = vor.u32 %v952_v56, %v950_v23  ;;  %v1231_v23 = vsel %vm691_vm2, %v1226_v46, %v1230_v12  ;;  %v621_v56 = vunpack.c.l.b16 %v345_v58 }
  0xfd   : > { %v818_v24 = vor.u32 %v816_v8, %v814_v5  ;;  %v11654_v5 = vld [vmem:[%s15853_s1 + $0x18] sm:$0x7]  ;;  %v1232_v8 = vshrl.u32 %v12908_v15, 16 }
  0xfe   : > { %10988 = vmatmul.msk.bf16.gmra.mxu0 %vm1240_vm3, %v815_v35  ;;  %v12911_v54 = vpop.f32.mrf.mxu2  ;;  %v12913_v3 = vpop.f32.mrf.mxu3  ;;  %v820_v35 = vshll.u32 %v12916_v27, 16 }
  0xff   : > { %15897 = vst [vmem:[#allocation39_spill] sm:$0xff] %v12911_v54  ;;  %v12918_v33 = vpop.f32.mrf.mxu1  ;;  %v1090_v54 = vor.u32 %v1088_v55, %v1086_v10  ;;  %v1234_v15 = vor.u32 %v1232_v8, %v1230_v12  ;;  %v12198_v8 = vld [vmem:[%s12600_s29 + $0x18] sm:$0xff] }
 0x100   : > { %15898 = vst [vmem:[#allocation40_spill] sm:$0xff] %v12913_v3  ;;  %v958_v3 = vrot.slane %v956_v43, 1  ;;  %v822_v38 = vrot.slane %v820_v35, 1  ;;  %v11585_v43 = vld [vmem:[%s15853_s1 + $0x14] sm:$0x7] }
 0x101   : > { %15899 = vst [vmem:[#allocation41_spill] sm:$0xff] %v12918_v33  ;;  %v1095_v33 = vsel %vm691_vm2, %v1090_v54, %v1094_v37  ;;  %v7415_v54 = vand.u32 %v11654_v5, %v12578_v4  ;;  %v6104_v1 = vand.u32 %v11585_v43, %v12578_v4  ;;  %v1098_v5 = vor.u32 %v1096_v36, %v1094_v37 }
 0x102   : > { %v959_v2 = vsel %vm691_vm2, %v954_v52, %v958_v3  ;;  %v823_v53 = vsel %vm691_vm2, %v818_v24, %v822_v38  ;;  %v12944_v52 = vpack.c.b16 %v621_v56, %v621_v56  ;;  %v12060_v56 = vld [vmem:[%s15853_s1 + $0x20] sm:$0x7] }
 0x103   : > { %v12921_v45 = vpop.f32.mrf.mxu0  ;;  %7424 = vmatpush.bf16.msra.mxu2 %v7415_v54  ;;  %6113 = vmatpush.bf16.msra.mxu1 %v6104_v1  ;;  %v9570_v54 = vand.u32 %v12060_v56, %v12578_v4 }
 0x104   : > { %15903 = vst [vmem:[#allocation45_spill] sm:$0xff] %v12944_v52  ;;  %v1236_v35 = vshll.u32 %v12944_v52, 16  ;;  %v3401_v52 = vunpack.c.l.b16 %v3125_v14  ;;  %v4452_v14 = vshrl.u32 %v12198_v8, 16 }
 0x105   : > { %9579 = vmatpush.bf16.msra.mxu0 %v9570_v54  ;;  %v4455_v54 = vshll.u32 %v12198_v8, 16 }
 0x106   : > { %v12925_v40 = vpop.f32.mrf.mxu2  ;;  %v12928_v21 = vpop.f32.mrf.mxu3 }
 0x107   : > { %15900 = vst [vmem:[#allocation42_spill] sm:$0xff] %v12925_v40  ;;  %v12930_v22 = vpop.f32.mrf.mxu1 }
 0x108   : > { %15901 = vst [vmem:[#allocation43_spill] sm:$0xff] %v12928_v21 }
 0x109   : > { %15902 = vst [vmem:[#allocation44_spill] sm:$0xff] %v12930_v22 }
 0x10a   : > { %11006 = vmatmul.msk.bf16.gmra.mxu1 %vm1240_vm3, %v959_v2  ;;  %v11991_v2 = vld [vmem:[%s15853_s1 + $0x1c] sm:$0x7] }
 0x10b   : > { %v12935_v10 = vpop.f32.mrf.mxu0  ;;  %11023 = vmatmul.msk.bf16.gmra.mxu2 %vm1240_vm3, %v1095_v33  ;;  %11040 = vmatmul.msk.bf16.gmra.mxu3 %vm1240_vm3, %v1231_v23  ;;  %v8734_v33 = vand.u32 %v11991_v2, %v12578_v4  ;;  %v824_v23 = vshrl.u32 %v12916_v27, 16  ;;  %v1238_v2 = vrot.slane %v1236_v35, 1  ;;  %v1103_v4 = vsel %vm691_vm2, %v1098_v5, %v12614_v34 }
 0x10d   : > { %8743 = vmatpush.bf16.msra.mxu3 %v8734_v33  ;;  %v826_v1 = vor.u32 %v824_v23, %v822_v38  ;;  %v1239_v12 = vsel %vm691_vm2, %v1234_v15, %v1238_v2  ;;  %v12337_v23 = vld [vmem:[%s12600_s29] sm:$0xe] }
 0x10e   : > { %10989 = vmatmul.msk.bf16.gmra.mxu0 %vm1240_vm3, %v823_v53  ;;  %v12948_v58 = vpop.f32.mrf.mxu2  ;;  %v12953_v46 = vpop.f32.mrf.mxu3  ;;  %v962_v53 = vor.u32 %v960_v42, %v958_v3  ;;  %v15857_v3 = vunpack.c.l.b16 %v12972_v44 }
 0x10f   : > { %15904 = vst [vmem:[#allocation46_spill] sm:$0xff] %v12948_v58  ;;  %v12959_v55 = vpop.f32.mrf.mxu1  ;;  %v831_v38 = vsel %vm691_vm2, %v826_v1, %v12610_v29 }
 0x110   : > { %15905 = vst [vmem:[#allocation47_spill] sm:$0xff] %v12953_v46  ;;  %v967_v42 = vsel %vm691_vm2, %v962_v53, %v12612_v31  ;;  %v3538_v35 = vpack.c.b16 %v15857_v3, %v3401_v52  ;;  %v12336_v31 = vld [vmem:[%s12600_s29] sm:$0xf0] }
 0x111   : > { %15906 = vst [vmem:[#allocation48_spill] sm:$0xff] %v12959_v55  ;;  %v12338_v15 = vor.u32 %v12337_v23, %v12336_v31 }
 0x112   : > { %v4444_v53 = vshrl.u32 %v3538_v35, 16  ;;  %v4447_v5 = vshll.u32 %v3538_v35, 16  ;;  %v3607_v44 = vrot.slane %v3538_v35, 1  ;;  %v12199_v35 = vld [vmem:[%s12600_s29 + $0x20] sm:$0xff] }
 0x113   : > { %v12964_v24 = vpop.f32.mrf.mxu0 }
 0x114   : > { %v4446_v52 = vrot.slane %v4444_v53, 1  ;;  %v4449_v1 = vrot.slane %v4447_v5, 2 }
 0x116   : > { %v12975_v33 = vpop.f32.mrf.mxu2  ;;  %v12977_v43 = vpop.f32.mrf.mxu3  ;;  %v4450_v21 = vor.u32 %v4449_v1, %v4446_v52  ;;  %v4464_v1 = vshll.u32 %v12199_v35, 16 }
 0x117   : > { %15908 = vst [vmem:[#allocation50_spill] sm:$0xff] %v12975_v33  ;;  %v12980_v37 = vpop.f32.mrf.mxu1 }
 0x118   : > { %15909 = vst [vmem:[#allocation51_spill] sm:$0xff] %v12977_v43 }
 0x119   : > { %15910 = vst [vmem:[#allocation52_spill] sm:$0xff] %v12980_v37 }
 0x11a   : > { %11007 = vmatmul.msk.bf16.gmra.mxu1 %vm1240_vm3, %v967_v42  ;;  %v4454_v42 = vrot.slane %v4452_v14, 1 }
 0x11b   : > { %v12987_v36 = vpop.f32.mrf.mxu0  ;;  %11024 = vmatmul.msk.bf16.gmra.mxu2 %vm1240_vm3, %v1103_v4  ;;  %11041 = vmatmul.msk.bf16.gmra.mxu3 %vm1240_vm3, %v1239_v12  ;;  %v4457_v4 = vrot.slane %v4455_v54, 2  ;;  %v2296_v12 = vrot.slane %v12338_v15, 1  ;;  %v12371_v54 = vld [vmem:[%s12600_s29] sm:$0xff]  }
 0x11d   : > { %v4458_v31 = vor.u32 %v4457_v4, %v4454_v42 }
 0x11e   : > { %10990 = vmatmul.msk.bf16.gmra.mxu0 %vm1240_vm3, %v831_v38  ;;  %v13000_v34 = vpop.f32.mrf.mxu2  ;;  %v13002_v56 = vpop.f32.mrf.mxu3  ;;  %v12370_v38 = vld [vmem:[%s12600_s29 + $0x8] sm:$0xff] }
 0x11f   : > { %15911 = vst [vmem:[#allocation53_spill] sm:$0xff] %v13000_v34  ;;  %v13004_v29 = vpop.f32.mrf.mxu1  ;;  %v2297_v3 = vrot.slane %v12370_v38, 1 }
 0x120   : > { %15912 = vst [vmem:[#allocation54_spill] sm:$0xff] %v13002_v56  ;;  %v3608_v56 = vrot.slane %v12198_v8, 1  ;;  %v4459_v8 = vsel %vm4442_vm5, %v4450_v21, %v4458_v31 }
 0x121   : > { %15913 = vst [vmem:[#allocation55_spill] sm:$0xff] %v13004_v29  ;;  %v2298_v53 = vsel %vm2295_vm4, %v2296_v12, %v2297_v3 }
 0x122   : > { %v3609_v5 = vsel %vm2295_vm4, %v3607_v44, %v3608_v56  ;;  %v4461_v44 = vshrl.u32 %v12199_v35, 16 }
 0x123   : > { %v13006_v2 = vpop.f32.mrf.mxu0 }
 0x124   : > { %v4463_v12 = vrot.slane %v4461_v44, 1  ;;  %v12200_v44 = vld [vmem:[%s12600_s29 + $0x28] sm:$0xff] }
 0x125   : > { %v3612_v58 = vrot.slane %v12200_v44, 1 }
 0x126   : > { %v13009_v43 = vpop.f32.mrf.mxu2  ;;  %v13011_v46 = vpop.f32.mrf.mxu3 }
 0x127   : > { %15914 = vst [vmem:[#allocation56_spill] sm:$0xff] %v13009_v43  ;;  %v13013_v23 = vpop.f32.mrf.mxu1 }
 0x128   : > { %15915 = vst [vmem:[#allocation57_spill] sm:$0xff] %v13011_v46  ;;  %v3610_v46 = vrot.slane %v12199_v35, 1 }
 0x129   : > { %15916 = vst [vmem:[#allocation58_spill] sm:$0xff] %v13013_v23 }
 0x12a   : > { %11042 = vmatmul.msk.bf16.vlgmr.msrb.gmra.mxu1 %vm1240_vm3, %v12371_v54  ;;  %v12372_v54 = vld [vmem:[%s12600_s29 + $0x10] sm:$0xff]  ;;  %v3611_v34 = vsel %vm2295_vm4, %v3608_v56, %v3610_v46  ;;  %v4473_v56 = vshll.u32 %v12200_v44, 16 }
 0x12b   : > { %v13017_v14 = vpop.f32.mrf.mxu0  ;;  %11111 = vmatmul.msk.bf16.vlgmr.msrb.gmra.mxu2 %vm1240_vm3, %v2298_v53  ;;  %11448 = vmatmul.msk.bf16.vlgmr.msrb.gmra.mxu3 %vm1240_vm3, %v3609_v5  ;;  %v4466_v53 = vrot.slane %v4464_v1, 2  ;;  %v2299_v21 = vrot.slane %v12372_v54, 1 }
 0x12e   : > { %11517 = vmatmul.msk.bf16.vlgmr.msrb.gmra.mxu0 %vm1240_vm3, %v4459_v8  ;;  %v13026_v15 = vpop.f32.mrf.mxu2  ;;  %v13028_v52 = vpop.f32.mrf.mxu3  ;;  %v4467_v8 = vor.u32 %v4466_v53, %v4463_v12 }
 0x12f   : > { %15917 = vst [vmem:[#allocation59_spill] sm:$0xff] %v13026_v15  ;;  %v13030_v42 = vpop.f32.mrf.mxu1 }
 0x130   : > { %15918 = vst [vmem:[#allocation60_spill] sm:$0xff] %v13028_v52  ;;  %v2300_v52 = vsel %vm2295_vm4, %v2297_v3, %v2299_v21  ;;  %v4468_v35 = vsel %vm4442_vm5, %v4458_v31, %v4467_v8  ;;  %v4470_v3 = vshrl.u32 %v12200_v44, 16 }
 0x131   : > { %15919 = vst [vmem:[#allocation61_spill] sm:$0xff] %v13030_v42 }
 0x133   : > { %v13032_v4 = vpop.f32.mrf.mxu0 }
 0x136   : > { %v13035_v43 = vpop.f32.mrf.mxu2  ;;  %v13037_v5 = vpop.f32.mrf.mxu3 }
 0x137   : > { %15920 = vst [vmem:[#allocation62_spill] sm:$0xff] %v13035_v43  ;;  %v13039_v15 = vpop.f32.mrf.mxu1  ;;  %v12373_v43 = vld [vmem:[%s12600_s29 + $0x18] sm:$0xff] }
 0x138   : > { %15921 = vst [vmem:[#allocation63_spill] sm:$0xff] %v13037_v5  ;;  %v2301_v31 = vrot.slane %v12373_v43, 1 }
 0x139   : > { %15922 = vst [vmem:[#allocation64_spill] sm:$0xff] %v13039_v15  ;;  %v3613_v15 = vsel %vm2295_vm4, %v3610_v46, %v3612_v58 }
 0x13a   : > { %11043 = vmatmul.msk.bf16.gmra.mxu1 %vm1240_vm3, %v12370_v38  ;;  %v4472_v38 = vrot.slane %v4470_v3, 1  ;;  %v12201_v3 = vld [vmem:[%s12600_s29 + $0x30] sm:$0xff] }
 0x13b   : > { %v13043_v33 = vpop.f32.mrf.mxu0  ;;  %11112 = vmatmul.msk.bf16.gmra.mxu2 %vm1240_vm3, %v2300_v52  ;;  %11449 = vmatmul.msk.bf16.gmra.mxu3 %vm1240_vm3, %v3611_v34  ;;  %v4475_v52 = vrot.slane %v4473_v56, 2  ;;  %v4482_v46 = vshll.u32 %v12201_v3, 16 }
 0x13e   : > { %11518 = vmatmul.msk.bf16.gmra.mxu0 %vm1240_vm3, %v4468_v35  ;;  %v13051_v1 = vpop.f32.mrf.mxu2  ;;  %v13053_v12 = vpop.f32.mrf.mxu3  ;;  %v4476_v35 = vor.u32 %v4475_v52, %v4472_v38 }
 0x13f   : > { %15923 = vst [vmem:[#allocation65_spill] sm:$0xff] %v13051_v1  ;;  %v13055_v53 = vpop.f32.mrf.mxu1 }
 0x140   : > { %15924 = vst [vmem:[#allocation66_spill] sm:$0xff] %v13053_v12  ;;  %v2302_v12 = vsel %vm2295_vm4, %v2299_v21, %v2301_v31  ;;  %v4477_v44 = vsel %vm4442_vm5, %v4467_v8, %v4476_v35  ;;  %v4479_v21 = vshrl.u32 %v12201_v3, 16 }
 0x141   : > { %15925 = vst [vmem:[#allocation67_spill] sm:$0xff] %v13055_v53 }
 0x143   : > { %v13057_v5 = vpop.f32.mrf.mxu0 }
 0x146   : > { %v13060_v40 = vpop.f32.mrf.mxu2  ;;  %v13062_v34 = vpop.f32.mrf.mxu3 }
 0x147   : > { %15926 = vst [vmem:[#allocation68_spill] sm:$0xff] %v13060_v40  ;;  %v13064_v1 = vpop.f32.mrf.mxu1  ;;  %v12374_v40 = vld [vmem:[%s12600_s29 + $0x20] sm:$0xff] }
 0x148   : > { %15927 = vst [vmem:[#allocation69_spill] sm:$0xff] %v13062_v34  ;;  %v2303_v8 = vrot.slane %v12374_v40, 1 }
 0x149   : > { %15928 = vst [vmem:[#allocation70_spill] sm:$0xff] %v13064_v1  ;;  %v3614_v1 = vrot.slane %v12201_v3, 1 }
 0x14a   : > { %11044 = vmatmul.msk.bf16.gmra.mxu1 %vm1240_vm3, %v12372_v54  ;;  %v4481_v54 = vrot.slane %v4479_v21, 1  ;;  %v12202_v21 = vld [vmem:[%s12600_s29 + $0x38] sm:$0xff] }
 0x14b   : > { %v13068_v53 = vpop.f32.mrf.mxu0  ;;  %11113 = vmatmul.msk.bf16.gmra.mxu2 %vm1240_vm3, %v2302_v12  ;;  %11450 = vmatmul.msk.bf16.gmra.mxu3 %vm1240_vm3, %v3613_v15  ;;  %v4484_v12 = vrot.slane %v4482_v46, 2  ;;  %v3615_v23 = vsel %vm2295_vm4, %v3612_v58, %v3614_v1  ;;  %v4491_v58 = vshll.u32 %v12202_v21, 16 }
 0x14e   : > { %11519 = vmatmul.msk.bf16.gmra.mxu0 %vm1240_vm3, %v4477_v44  ;;  %v13076_v56 = vpop.f32.mrf.mxu2  ;;  %v13078_v38 = vpop.f32.mrf.mxu3  ;;  %v4485_v44 = vor.u32 %v4484_v12, %v4481_v54 }
 0x14f   : > { %15929 = vst [vmem:[#allocation71_spill] sm:$0xff] %v13076_v56  ;;  %v13080_v52 = vpop.f32.mrf.mxu1 }
 0x150   : > { %15930 = vst [vmem:[#allocation72_spill] sm:$0xff] %v13078_v38  ;;  %v2304_v38 = vsel %vm2295_vm4, %v2301_v31, %v2303_v8  ;;  %v4486_v3 = vsel %vm4442_vm5, %v4476_v35, %v4485_v44  ;;  %v4488_v31 = vshrl.u32 %v12202_v21, 16 }
 0x151   : > { %15931 = vst [vmem:[#allocation73_spill] sm:$0xff] %v13080_v52 }
 0x153   : > { %v13082_v34 = vpop.f32.mrf.mxu0 }
 0x156   : > { %v13085_v42 = vpop.f32.mrf.mxu2  ;;  %v13087_v15 = vpop.f32.mrf.mxu3 }
 0x157   : > { %15932 = vst [vmem:[#allocation74_spill] sm:$0xff] %v13085_v42  ;;  %v13089_v56 = vpop.f32.mrf.mxu1  ;;  %v12375_v42 = vld [vmem:[%s12600_s29 + $0x28] sm:$0xff] }
 0x158   : > { %15933 = vst [vmem:[#allocation75_spill] sm:$0xff] %v13087_v15  ;;  %v2305_v35 = vrot.slane %v12375_v42, 1 }
 0x159   : > { %15934 = vst [vmem:[#allocation76_spill] sm:$0xff] %v13089_v56  ;;  %v3616_v56 = vrot.slane %v12202_v21, 1 }
 0x15a   : > { %11045 = vmatmul.msk.bf16.gmra.mxu1 %vm1240_vm3, %v12373_v43  ;;  %v4490_v43 = vrot.slane %v4488_v31, 1  ;;  %v12203_v31 = vld [vmem:[%s12600_s29 + $0x40] sm:$0xff] }
 0x15b   : > { %v13093_v52 = vpop.f32.mrf.mxu0  ;;  %11114 = vmatmul.msk.bf16.gmra.mxu2 %vm1240_vm3, %v2304_v38  ;;  %11451 = vmatmul.msk.bf16.gmra.mxu3 %vm1240_vm3, %v3615_v23  ;;  %v4493_v38 = vrot.slane %v4491_v58, 2  ;;  %v3617_v37 = vsel %vm2295_vm4, %v3614_v1, %v3616_v56  ;;  %v4500_v1 = vshll.u32 %v12203_v31, 16 }
 0x15e   : > { %11520 = vmatmul.msk.bf16.gmra.mxu0 %vm1240_vm3, %v4486_v3  ;;  %v13101_v46 = vpop.f32.mrf.mxu2  ;;  %v13103_v54 = vpop.f32.mrf.mxu3  ;;  %v4494_v3 = vor.u32 %v4493_v38, %v4490_v43 }
 0x15f   : > { %15935 = vst [vmem:[#allocation77_spill] sm:$0xff] %v13101_v46  ;;  %v13105_v12 = vpop.f32.mrf.mxu1 }
 0x160   : > { %15936 = vst [vmem:[#allocation78_spill] sm:$0xff] %v13103_v54  ;;  %v2306_v54 = vsel %vm2295_vm4, %v2303_v8, %v2305_v35  ;;  %v4495_v21 = vsel %vm4442_vm5, %v4485_v44, %v4494_v3  ;;  %v4497_v8 = vshrl.u32 %v12203_v31, 16 }
 0x161   : > { %15937 = vst [vmem:[#allocation79_spill] sm:$0xff] %v13105_v12 }
 0x163   : > { %v13107_v15 = vpop.f32.mrf.mxu0 }
 0x166   : > { %v13110_v29 = vpop.f32.mrf.mxu2  ;;  %v13112_v23 = vpop.f32.mrf.mxu3 }
 0x167   : > { %15938 = vst [vmem:[#allocation80_spill] sm:$0xff] %v13110_v29  ;;  %v13114_v46 = vpop.f32.mrf.mxu1  ;;  %v12376_v29 = vld [vmem:[%s12600_s29 + $0x30] sm:$0xff] }
 0x168   : > { %15939 = vst [vmem:[#allocation81_spill] sm:$0xff] %v13112_v23  ;;  %v2307_v44 = vrot.slane %v12376_v29, 1 }
 0x169   : > { %15940 = vst [vmem:[#allocation82_spill] sm:$0xff] %v13114_v46  ;;  %v3618_v46 = vrot.slane %v12203_v31, 1 }
 0x16a   : > { %11046 = vmatmul.msk.bf16.gmra.mxu1 %vm1240_vm3, %v12374_v40  ;;  %v4499_v40 = vrot.slane %v4497_v8, 1  ;;  %v12204_v8 = vld [vmem:[%s12600_s29 + $0x48] sm:$0xff] }
 0x16b   : > { %v13118_v12 = vpop.f32.mrf.mxu0  ;;  %11115 = vmatmul.msk.bf16.gmra.mxu2 %vm1240_vm3, %v2306_v54  ;;  %11452 = vmatmul.msk.bf16.gmra.mxu3 %vm1240_vm3, %v3617_v37  ;;  %v4502_v54 = vrot.slane %v4500_v1, 2  ;;  %v3619_v22 = vsel %vm2295_vm4, %v3616_v56, %v3618_v46  ;;  %v4509_v56 = vshll.u32 %v12204_v8, 16 }
 0x16e   : > { %11521 = vmatmul.msk.bf16.gmra.mxu0 %vm1240_vm3, %v4495_v21  ;;  %v13126_v58 = vpop.f32.mrf.mxu2  ;;  %v13128_v43 = vpop.f32.mrf.mxu3  ;;  %v4503_v21 = vor.u32 %v4502_v54, %v4499_v40 }
 0x16f   : > { %15941 = vst [vmem:[#allocation83_spill] sm:$0xff] %v13126_v58  ;;  %v13130_v38 = vpop.f32.mrf.mxu1 }
 0x170   : > { %15942 = vst [vmem:[#allocation84_spill] sm:$0xff] %v13128_v43  ;;  %v2308_v43 = vsel %vm2295_vm4, %v2305_v35, %v2307_v44  ;;  %v4504_v31 = vsel %vm4442_vm5, %v4494_v3, %v4503_v21  ;;  %v4506_v35 = vshrl.u32 %v12204_v8, 16 }
 0x171   : > { %15943 = vst [vmem:[#allocation85_spill] sm:$0xff] %v13130_v38 }
 0x173   : > { %v13132_v23 = vpop.f32.mrf.mxu0 }
 0x176   : > { %v13135_v55 = vpop.f32.mrf.mxu2  ;;  %v13137_v37 = vpop.f32.mrf.mxu3 }
 0x177   : > { %15944 = vst [vmem:[#allocation86_spill] sm:$0xff] %v13135_v55  ;;  %v13139_v58 = vpop.f32.mrf.mxu1  ;;  %v12377_v55 = vld [vmem:[%s12600_s29 + $0x38] sm:$0xff] }
 0x178   : > { %15945 = vst [vmem:[#allocation87_spill] sm:$0xff] %v13137_v37  ;;  %v2309_v3 = vrot.slane %v12377_v55, 1 }
 0x179   : > { %15946 = vst [vmem:[#allocation88_spill] sm:$0xff] %v13139_v58  ;;  %v3620_v58 = vrot.slane %v12204_v8, 1 }
 0x17a   : > { %11047 = vmatmul.msk.bf16.gmra.mxu1 %vm1240_vm3, %v12375_v42  ;;  %v4508_v42 = vrot.slane %v4506_v35, 1  ;;  %v12205_v35 = vld [vmem:[%s12600_s29 + $0x50] sm:$0xff] }
 0x17b   : > { %v13143_v38 = vpop.f32.mrf.mxu0  ;;  %11116 = vmatmul.msk.bf16.gmra.mxu2 %vm1240_vm3, %v2308_v43  ;;  %11453 = vmatmul.msk.bf16.gmra.mxu3 %vm1240_vm3, %v3619_v22  ;;  %v4511_v43 = vrot.slane %v4509_v56, 2  ;;  %v3621_v30 = vsel %vm2295_vm4, %v3618_v46, %v3620_v58  ;;  %v4518_v46 = vshll.u32 %v12205_v35, 16 }
 0x17e   : > { %11522 = vmatmul.msk.bf16.gmra.mxu0 %vm1240_vm3, %v4504_v31  ;;  %v13151_v1 = vpop.f32.mrf.mxu2  ;;  %v13153_v40 = vpop.f32.mrf.mxu3  ;;  %v4512_v31 = vor.u32 %v4511_v43, %v4508_v42 }
 0x17f   : > { %15947 = vst [vmem:[#allocation89_spill] sm:$0xff] %v13151_v1  ;;  %v13155_v54 = vpop.f32.mrf.mxu1 }
 0x180   : > { %15948 = vst [vmem:[#allocation90_spill] sm:$0xff] %v13153_v40  ;;  %v2310_v40 = vsel %vm2295_vm4, %v2307_v44, %v2309_v3  ;;  %v4513_v8 = vsel %vm4442_vm5, %v4503_v21, %v4512_v31  ;;  %v4515_v44 = vshrl.u32 %v12205_v35, 16 }
 0x181   : > { %15949 = vst [vmem:[#allocation91_spill] sm:$0xff] %v13155_v54 }
 0x183   : > { %v13157_v37 = vpop.f32.mrf.mxu0 }
 0x186   : > { %v13160_v9 = vpop.f32.mrf.mxu2  ;;  %v13162_v22 = vpop.f32.mrf.mxu3 }
 0x187   : > { %15950 = vst [vmem:[#allocation92_spill] sm:$0xff] %v13160_v9  ;;  %v13164_v1 = vpop.f32.mrf.mxu1  ;;  %v12378_v9 = vld [vmem:[%s12600_s29 + $0x40] sm:$0xff] }
 0x188   : > { %15951 = vst [vmem:[#allocation93_spill] sm:$0xff] %v13162_v22  ;;  %v2311_v21 = vrot.slane %v12378_v9, 1 }
 0x189   : > { %15952 = vst [vmem:[#allocation94_spill] sm:$0xff] %v13164_v1  ;;  %v3622_v1 = vrot.slane %v12205_v35, 1 }
 0x18a   : > { %11048 = vmatmul.msk.bf16.gmra.mxu1 %vm1240_vm3, %v12376_v29  ;;  %v4517_v29 = vrot.slane %v4515_v44, 1  ;;  %v12206_v44 = vld [vmem:[%s12600_s29 + $0x58] sm:$0xff] }
 0x18b   : > { %v13168_v54 = vpop.f32.mrf.mxu0  ;;  %11117 = vmatmul.msk.bf16.gmra.mxu2 %vm1240_vm3, %v2310_v40  ;;  %11454 = vmatmul.msk.bf16.gmra.mxu3 %vm1240_vm3, %v3621_v30  ;;  %v4520_v40 = vrot.slane %v4518_v46, 2  ;;  %v3623_v18 = vsel %vm2295_vm4, %v3620_v58, %v3622_v1  ;;  %v4527_v58 = vshll.u32 %v12206_v44, 16 }
 0x18e   : > { %11523 = vmatmul.msk.bf16.gmra.mxu0 %vm1240_vm3, %v4513_v8  ;;  %v13176_v56 = vpop.f32.mrf.mxu2  ;;  %v13178_v42 = vpop.f32.mrf.mxu3  ;;  %v4521_v8 = vor.u32 %v4520_v40, %v4517_v29 }
 0x18f   : > { %15953 = vst [vmem:[#allocation95_spill] sm:$0xff] %v13176_v56  ;;  %v13180_v43 = vpop.f32.mrf.mxu1 }
 0x190   : > { %15954 = vst [vmem:[#allocation96_spill] sm:$0xff] %v13178_v42  ;;  %v2312_v42 = vsel %vm2295_vm4, %v2309_v3, %v2311_v21  ;;  %v4522_v35 = vsel %vm4442_vm5, %v4512_v31, %v4521_v8  ;;  %v4524_v3 = vshrl.u32 %v12206_v44, 16 }
 0x191   : > { %15955 = vst [vmem:[#allocation97_spill] sm:$0xff] %v13180_v43 }
 0x193   : > { %v13182_v22 = vpop.f32.mrf.mxu0 }
 0x196   : > { %v13185_v59 = vpop.f32.mrf.mxu2  ;;  %v13187_v30 = vpop.f32.mrf.mxu3 }
 0x197   : > { %15956 = vst [vmem:[#allocation98_spill] sm:$0xff] %v13185_v59  ;;  %v13189_v56 = vpop.f32.mrf.mxu1  ;;  %v12379_v59 = vld [vmem:[%s12600_s29 + $0x48] sm:$0xff] }
 0x198   : > { %15957 = vst [vmem:[#allocation99_spill] sm:$0xff] %v13187_v30  ;;  %v2313_v31 = vrot.slane %v12379_v59, 1 }
 0x199   : > { %15958 = vst [vmem:[#allocation100_spill] sm:$0xff] %v13189_v56  ;;  %v3624_v56 = vrot.slane %v12206_v44, 1 }
 0x19a   : > { %11049 = vmatmul.msk.bf16.gmra.mxu1 %vm1240_vm3, %v12377_v55  ;;  %v4526_v55 = vrot.slane %v4524_v3, 1 }
 0x19b   : > { %v13193_v43 = vpop.f32.mrf.mxu0  ;;  %11118 = vmatmul.msk.bf16.gmra.mxu2 %vm1240_vm3, %v2312_v42  ;;  %11455 = vmatmul.msk.bf16.gmra.mxu3 %vm1240_vm3, %v3623_v18  ;;  %v4529_v42 = vrot.slane %v4527_v58, 2  ;;  %v3625_v0 = vsel %vm2295_vm4, %v3622_v1, %v3624_v56  ;;  %v12207_v58 = vld [vmem:[%s12600_s29 + $0x60] sm:$0xff] }
 0x19c   : > { %v4536_v1 = vshll.u32 %v12207_v58, 16 }
 0x19e   : > { %11524 = vmatmul.msk.bf16.gmra.mxu0 %vm1240_vm3, %v4522_v35  ;;  %v13201_v46 = vpop.f32.mrf.mxu2  ;;  %v13203_v29 = vpop.f32.mrf.mxu3  ;;  %v4530_v35 = vor.u32 %v4529_v42, %v4526_v55 }
 0x19f   : > { %15959 = vst [vmem:[#allocation101_spill] sm:$0xff] %v13201_v46  ;;  %v13205_v40 = vpop.f32.mrf.mxu1 }
 0x1a0   : > { %15960 = vst [vmem:[#allocation102_spill] sm:$0xff] %v13203_v29  ;;  %v2314_v29 = vsel %vm2295_vm4, %v2311_v21, %v2313_v31  ;;  %v4531_v3 = vsel %vm4442_vm5, %v4521_v8, %v4530_v35  ;;  %v12380_v8 = vld [vmem:[%s12600_s29 + $0x50] sm:$0xff] }
 0x1a1   : > { %15961 = vst [vmem:[#allocation103_spill] sm:$0xff] %v13205_v40  ;;  %v2315_v41 = vrot.slane %v12380_v8, 1 }
 0x1a3   : > { %v13207_v30 = vpop.f32.mrf.mxu0  ;;  %v2316_v6 = vsel %vm2295_vm4, %v2313_v31, %v2315_v41 }
 0x1a6   : > { %v13210_v49 = vpop.f32.mrf.mxu2  ;;  %v13212_v18 = vpop.f32.mrf.mxu3 }
 0x1a7   : > { %15962 = vst [vmem:[#allocation104_spill] sm:$0xff] %v13210_v49  ;;  %v1949_v46 = vpop.f32.mrf.mxu1 }
 0x1a8   : > { %15963 = vst [vmem:[#allocation105_spill] sm:$0xff] %v13212_v18  ;;  %v1950_v44 = vadd.f32 %v1949_v46, %v12720_v61  ;;  %v4533_v18 = vshrl.u32 %v12207_v58, 16  ;;  %v3626_v61 = vrot.slane %v12207_v58, 1 }
 0x1aa   : > { %11050 = vmatmul.msk.bf16.gmra.mxu1 %vm1240_vm3, %v12378_v9  ;;  %v4535_v16 = vrot.slane %v4533_v18, 1 }
 0x1ab   : > { %v5279_v47 = vpop.f32.mrf.mxu0  ;;  %11119 = vmatmul.msk.bf16.gmra.mxu2 %vm1240_vm3, %v2314_v29  ;;  %11456 = vmatmul.msk.bf16.gmra.mxu3 %vm1240_vm3, %v3625_v0  ;;  %v4538_v29 = vrot.slane %v4536_v1, 2 }
 0x1ae   : > { %11525 = vmatmul.msk.bf16.gmra.mxu0 %vm1240_vm3, %v4531_v3  ;;  %v2649_v55 = vpop.f32.mrf.mxu2  ;;  %v3960_v21 = vpop.f32.mrf.mxu3 }
 0x1af   : > { %v2989_v42 = vadd.f32 %v2649_v55, %v1950_v44  ;;  %v1951_v49 = vpop.f32.mrf.mxu1  ;;  %v4539_v44 = vor.u32 %v4538_v29, %v4535_v16 }
 0x1b0   : > { %v1952_v0 = vadd.f32 %v1951_v49, %v12737_v13 }
 0x1b1   : > { %v4300_v40 = vadd.f32 %v3960_v21, %v2989_v42  ;;  %v3627_v42 = vsel %vm2295_vm4, %v3624_v56, %v3626_v61 }
 0x1b3   : > { %v5281_v9 = vpop.f32.mrf.mxu0  ;;  %v13223_v63 = vadd.f32 %v5279_v47, %v4300_v40  ;;  %v4540_v47 = vsel %vm4442_vm5, %v4530_v35, %v4539_v44  ;;  %v12208_v40 = vld [vmem:[%s12600_s29 + $0x68] sm:$0xff] }
 0x1b4   : > { %v4542_v31 = vshrl.u32 %v12208_v40, 16  ;;  %v4545_v58 = vshll.u32 %v12208_v40, 16 }
 0x1b6   : > { %v2651_v46 = vpop.f32.mrf.mxu2  ;;  %v3962_v26 = vpop.f32.mrf.mxu3  ;;  %v4544_v1 = vrot.slane %v4542_v31, 1  ;;  %v4547_v35 = vrot.slane %v4545_v58, 2  ;;  %v12209_v31 = vld [vmem:[%s12600_s29 + $0x70] sm:$0xff] }
 0x1b7   : > { %v2990_v3 = vadd.f32 %v2651_v46, %v1952_v0  ;;  %v1954_v55 = vpop.f32.mrf.mxu1 }
 0x1b8   : > { %v1955_v16 = vadd.f32 %v1954_v55, %v12748_v32  ;;  %v3628_v32 = vrot.slane %v12208_v40, 1 }
 0x1b9   : > { %v4301_v57 = vadd.f32 %v3962_v26, %v2990_v3 }
 0x1ba   : > { %11051 = vmatmul.msk.bf16.gmra.mxu1 %vm1240_vm3, %v12379_v59 }
 0x1bb   : > { %v5284_v18 = vpop.f32.mrf.mxu0  ;;  %11120 = vmatmul.msk.bf16.gmra.mxu2 %vm1240_vm3, %v2316_v6  ;;  %v13233_v13 = vadd.f32 %v5281_v9, %v4301_v57  ;;  %11457 = vmatmul.msk.bf16.gmra.mxu3 %vm1240_vm3, %v3627_v42  ;;  %v12381_v57 = vld [vmem:[%s12600_s29 + $0x58] sm:$0xff]  ;;  %v4548_v42 = vor.u32 %v4547_v35, %v4544_v1 }
 0x1bc   : > { %v2317_v9 = vrot.slane %v12381_v57, 1 }
 0x1be   : > { %11526 = vmatmul.msk.bf16.gmra.mxu0 %vm1240_vm3, %v4540_v47  ;;  %v2654_v26 = vpop.f32.mrf.mxu2  ;;  %v3965_v56 = vpop.f32.mrf.mxu3 }
 0x1bf   : > { %v2991_v49 = vadd.f32 %v2654_v26, %v1955_v16  ;;  %v1956_v59 = vpop.f32.mrf.mxu1  ;;  %v2318_v16 = vsel %vm2295_vm4, %v2315_v41, %v2317_v9 }
 0x1c0   : > { %v1957_v0 = vadd.f32 %v1956_v59, %v12765_v48  ;;  %v4551_v59 = vshrl.u32 %v12209_v31, 16 }
 0x1c1   : > { %v4302_v21 = vadd.f32 %v3965_v56, %v2991_v49  ;;  %v3629_v49 = vsel %vm2295_vm4, %v3626_v61, %v3628_v32 }
 0x1c3   : > { %v5286_v6 = vpop.f32.mrf.mxu0  ;;  %v13238_v29 = vadd.f32 %v5284_v18, %v4302_v21  ;;  %v4549_v18 = vsel %vm4442_vm5, %v4539_v44, %v4548_v42  ;;  %v4554_v21 = vshll.u32 %v12209_v31, 16 }
 0x1c5   : > { %v4556_v44 = vrot.slane %v4554_v21, 2 }
 0x1c6   : > { %v2656_v46 = vpop.f32.mrf.mxu2  ;;  %v3967_v55 = vpop.f32.mrf.mxu3 }
 0x1c7   : > { %v2992_v3 = vadd.f32 %v2656_v46, %v1957_v0  ;;  %v1959_v47 = vpop.f32.mrf.mxu1  ;;  %v4553_v0 = vrot.slane %v4551_v59, 1  ;;  %v12210_v59 = vld [vmem:[%s12600_s29 + $0x78] sm:$0xff] }
 0x1c8   : > { %v1960_v40 = vadd.f32 %v1959_v47, %v12776_v7  ;;  %v3630_v7 = vrot.slane %v12209_v31, 1 }
 0x1c9   : > { %v4303_v26 = vadd.f32 %v3967_v55, %v2992_v3 }
 0x1ca   : > { %11052 = vmatmul.msk.bf16.gmra.mxu1 %vm1240_vm3, %v12380_v8 }
 0x1cb   : > { %v5289_v56 = vpop.f32.mrf.mxu0  ;;  %11121 = vmatmul.msk.bf16.gmra.mxu2 %vm1240_vm3, %v2318_v16  ;;  %v13248_v48 = vadd.f32 %v5286_v6, %v4303_v26  ;;  %11458 = vmatmul.msk.bf16.gmra.mxu3 %vm1240_vm3, %v3629_v49  ;;  %v12382_v6 = vld [vmem:[%s12600_s29 + $0x60] sm:$0xff]  ;;  %v4557_v49 = vor.u32 %v4556_v44, %v4553_v0 }
 0x1cc   : > { %v2319_v3 = vrot.slane %v12382_v6, 1 }
 0x1ce   : > { %11527 = vmatmul.msk.bf16.gmra.mxu0 %vm1240_vm3, %v4549_v18  ;;  %v2659_v41 = vpop.f32.mrf.mxu2  ;;  %v3970_v61 = vpop.f32.mrf.mxu3 }
 0x1cf   : > { %v2993_v58 = vadd.f32 %v2659_v41, %v1960_v40  ;;  %v1961_v8 = vpop.f32.mrf.mxu1  ;;  %v2320_v40 = vsel %vm2295_vm4, %v2317_v9, %v2319_v3 }
 0x1d0   : > { %v1962_v55 = vadd.f32 %v1961_v8, %v12793_v25 }
 0x1d1   : > { %v4304_v1 = vadd.f32 %v3970_v61, %v2993_v58  ;;  %v3631_v58 = vsel %vm2295_vm4, %v3628_v32, %v3630_v7  ;;  %v4560_v32 = vshrl.u32 %v12210_v59, 16 }
 0x1d3   : > { %v5291_v35 = vpop.f32.mrf.mxu0  ;;  %v13253_v46 = vadd.f32 %v5289_v56, %v4304_v1  ;;  %v4558_v56 = vsel %vm4442_vm5, %v4548_v42, %v4557_v49  ;;  %v4563_v1 = vshll.u32 %v12210_v59, 16 }
 0x1d6   : > { %v2661_v47 = vpop.f32.mrf.mxu2  ;;  %v3972_v26 = vpop.f32.mrf.mxu3 }
 0x1d7   : > { %v2994_v16 = vadd.f32 %v2661_v47, %v1962_v55  ;;  %v1964_v18 = vpop.f32.mrf.mxu1  ;;  %v4562_v55 = vrot.slane %v4560_v32, 1  ;;  %v4565_v47 = vrot.slane %v4563_v1, 2 }
 0x1d8   : > { %v1965_v31 = vadd.f32 %v1964_v18, %v12804_v51  ;;  %v3632_v51 = vrot.slane %v12210_v59, 1 }
 0x1d9   : > { %v4305_v41 = vadd.f32 %v3972_v26, %v2994_v16 }
 0x1da   : > { %11053 = vmatmul.msk.bf16.gmra.mxu1 %vm1240_vm3, %v12381_v57 }
 0x1db   : > { %v5294_v61 = vpop.f32.mrf.mxu0  ;;  %11122 = vmatmul.msk.bf16.gmra.mxu2 %vm1240_vm3, %v2320_v40  ;;  %v13263_v25 = vadd.f32 %v5291_v35, %v4305_v41  ;;  %11459 = vmatmul.msk.bf16.gmra.mxu3 %vm1240_vm3, %v3631_v58  ;;  %v2321_v35 = vrot.slane %v12819_v62, 1  ;;  %v4566_v41 = vor.u32 %v4565_v47, %v4562_v55 }
 0x1dd   : > { %v4567_v62 = vsel %vm4442_vm5, %v4557_v49, %v4566_v41 }
 0x1de   : > { %11528 = vmatmul.msk.bf16.gmra.mxu0 %vm1240_vm3, %v4558_v56  ;;  %v2664_v9 = vpop.f32.mrf.mxu2  ;;  %v3975_v8 = vpop.f32.mrf.mxu3  ;;  %v2322_v56 = vsel %vm2295_vm4, %v2319_v3, %v2321_v35 }
 0x1df   : > { %v2995_v21 = vadd.f32 %v2664_v9, %v1965_v31  ;;  %v1966_v0 = vpop.f32.mrf.mxu1  ;;  %v3633_v9 = vsel %vm2295_vm4, %v3630_v7, %v3632_v51 }
 0x1e0   : > { %v1967_v16 = vadd.f32 %v1966_v0, %v12823_v20 }
 0x1e1   : > { %v4306_v57 = vadd.f32 %v3975_v8, %v2995_v21 }
 0x1e3   : > { %v5296_v44 = vpop.f32.mrf.mxu0  ;;  %v13268_v42 = vadd.f32 %v5294_v61, %v4306_v57  ;;  %v12211_v61 = vld [vmem:[%s12600_s29 + $0x80] sm:$0xff] }
 0x1e4   : > { %v4569_v7 = vshrl.u32 %v12211_v61, 16  ;;  %v4572_v1 = vshll.u32 %v12211_v61, 16 }
 0x1e6   : > { %v2666_v26 = vpop.f32.mrf.mxu2  ;;  %v3977_v40 = vpop.f32.mrf.mxu3  ;;  %v4571_v55 = vrot.slane %v4569_v7, 1  ;;  %v4574_v49 = vrot.slane %v4572_v1, 2 }
 0x1e7   : > { %v2996_v18 = vadd.f32 %v2666_v26, %v1967_v16  ;;  %v1969_v58 = vpop.f32.mrf.mxu1  ;;  %v3634_v16 = vrot.slane %v12211_v61, 1 }
 0x1e8   : > { %v1970_v59 = vadd.f32 %v1969_v58, %v12835_v50  ;;  %v4575_v58 = vor.u32 %v4574_v49, %v4571_v55 }
 0x1e9   : > { %v4307_v31 = vadd.f32 %v3977_v40, %v2996_v18 }
 0x1ea   : > { %11054 = vmatmul.msk.bf16.gmra.mxu1 %vm1240_vm3, %v12382_v6 }
 0x1eb   : > { %v5299_v21 = vpop.f32.mrf.mxu0  ;;  %11123 = vmatmul.msk.bf16.gmra.mxu2 %vm1240_vm3, %v2322_v56  ;;  %v13278_v20 = vadd.f32 %v5296_v44, %v4307_v31  ;;  %11460 = vmatmul.msk.bf16.gmra.mxu3 %vm1240_vm3, %v3633_v9  ;;  %v2323_v44 = vrot.slane %v12850_v17, 1  ;;  %v4576_v17 = vsel %vm4442_vm5, %v4566_v41, %v4575_v58 }
 0x1ed   : > { %v2324_v31 = vsel %vm2295_vm4, %v2321_v35, %v2323_v44 }
 0x1ee   : > { %11529 = vmatmul.msk.bf16.gmra.mxu0 %vm1240_vm3, %v4567_v62  ;;  %v2669_v3 = vpop.f32.mrf.mxu2  ;;  %v3980_v32 = vpop.f32.mrf.mxu3  ;;  %v3635_v62 = vsel %vm2295_vm4, %v3632_v51, %v3634_v16 }
 0x1ef   : > { %v2997_v8 = vadd.f32 %v2669_v3, %v1970_v59  ;;  %v1971_v0 = vpop.f32.mrf.mxu1  ;;  %v12383_v3 = vld [vmem:[%s12600_s29 + $0x68] sm:$0xff] }
 0x1f0   : > { %v1972_v50 = vadd.f32 %v1971_v0, %v12854_v11  ;;  %v12212_v11 = vld [vmem:[%s12600_s29 + $0x88] sm:$0xff] }
 0x1f1   : > { %v4308_v6 = vadd.f32 %v3980_v32, %v2997_v8  ;;  %v4578_v32 = vshrl.u32 %v12212_v11, 16  ;;  %v4581_v7 = vshll.u32 %v12212_v11, 16 }
 0x1f3   : > { %v5301_v57 = vpop.f32.mrf.mxu0  ;;  %v13283_v47 = vadd.f32 %v5299_v21, %v4308_v6  ;;  %v4580_v55 = vrot.slane %v4578_v32, 1  ;;  %v4583_v41 = vrot.slane %v4581_v7, 2 }
 0x1f6   : > { %v2671_v26 = vpop.f32.mrf.mxu2  ;;  %v3982_v40 = vpop.f32.mrf.mxu3 }
 0x1f7   : > { %v2998_v18 = vadd.f32 %v2671_v26, %v1972_v50  ;;  %v1974_v56 = vpop.f32.mrf.mxu1  ;;  %v3636_v50 = vrot.slane %v12212_v11, 1 }
 0x1f8   : > { %v1975_v61 = vadd.f32 %v1974_v56, %v12867_v19  ;;  %v4584_v56 = vor.u32 %v4583_v41, %v4580_v55 }
 0x1f9   : > { %v4309_v9 = vadd.f32 %v3982_v40, %v2998_v18 }
 0x1fa   : > { %11055 = vmatmul.msk.bf16.gmra.mxu1 %vm1240_vm3, %v12383_v3  ;;  %v3637_v3 = vsel %vm2295_vm4, %v3634_v16, %v3636_v50 }
 0x1fb   : > { %v5304_v59 = vpop.f32.mrf.mxu0  ;;  %11124 = vmatmul.msk.bf16.gmra.mxu2 %vm1240_vm3, %v2324_v31  ;;  %v13294_v21 = vadd.f32 %v5301_v57, %v4309_v9  ;;  %11461 = vmatmul.msk.bf16.gmra.mxu3 %vm1240_vm3, %v3635_v62  ;;  %v2325_v57 = vrot.slane %v12882_v60, 1  ;;  %v4585_v60 = vsel %vm4442_vm5, %v4575_v58, %v4584_v56 }
 0x1fd   : > { %v2326_v9 = vsel %vm2295_vm4, %v2323_v44, %v2325_v57 }
 0x1fe   : > { %11530 = vmatmul.msk.bf16.gmra.mxu0 %vm1240_vm3, %v4576_v17  ;;  %v2674_v35 = vpop.f32.mrf.mxu2  ;;  %v3985_v51 = vpop.f32.mrf.mxu3 }
 0x1ff   : > { %v2999_v8 = vadd.f32 %v2674_v35, %v1975_v61  ;;  %v1976_v1 = vpop.f32.mrf.mxu1  ;;  %v12384_v61 = vld [vmem:[%s12600_s29 + $0x70] sm:$0xff] }
 0x200   : > { %v1977_v19 = vadd.f32 %v1976_v1, %v12886_v28  ;;  %v12213_v28 = vld [vmem:[%s12600_s29 + $0x90] sm:$0xff] }
 0x201   : > { %v4310_v0 = vadd.f32 %v3985_v51, %v2999_v8  ;;  %v4587_v8 = vshrl.u32 %v12213_v28, 16  ;;  %v4590_v51 = vshll.u32 %v12213_v28, 16  ;;  %v3638_v41 = vrot.slane %v12213_v28, 1 }
 0x203   : > { %v5306_v6 = vpop.f32.mrf.mxu0  ;;  %v13299_v49 = vadd.f32 %v5304_v59, %v4310_v0  ;;  %v4589_v0 = vrot.slane %v4587_v8, 1  ;;  %v4592_v58 = vrot.slane %v4590_v51, 2 }
 0x206   : > { %v2676_v26 = vpop.f32.mrf.mxu2  ;;  %v3987_v40 = vpop.f32.mrf.mxu3 }
 0x207   : > { %v3000_v18 = vadd.f32 %v2676_v26, %v1977_v19  ;;  %v1979_v31 = vpop.f32.mrf.mxu1 }
 0x208   : > { %v1980_v11 = vadd.f32 %v1979_v31, %v12899_v39 }
 0x209   : > { %v4311_v62 = vadd.f32 %v3987_v40, %v3000_v18  ;;  %v4593_v40 = vor.u32 %v4592_v58, %v4589_v0 }
 0x20a   : > { %11056 = vmatmul.msk.bf16.gmra.mxu1 %vm1240_vm3, %v12384_v61 }
 0x20b   : > { %v5309_v17 = vpop.f32.mrf.mxu0  ;;  %11125 = vmatmul.msk.bf16.gmra.mxu2 %vm1240_vm3, %v2326_v9  ;;  %v13310_v59 = vadd.f32 %v5306_v6, %v4311_v62  ;;  %11462 = vmatmul.msk.bf16.gmra.mxu3 %vm1240_vm3, %v3637_v3  ;;  %v2327_v6 = vrot.slane %v12916_v27, 1  ;;  %v3639_v3 = vsel %vm2295_vm4, %v3636_v50, %v3638_v41  ;;  %v4594_v27 = vsel %vm4442_vm5, %v4584_v56, %v4593_v40 }
 0x20d   : > { %v2328_v9 = vsel %vm2295_vm4, %v2325_v57, %v2327_v6 }
 0x20e   : > { %11531 = vmatmul.msk.bf16.gmra.mxu0 %vm1240_vm3, %v4585_v60  ;;  %v2679_v44 = vpop.f32.mrf.mxu2  ;;  %v3990_v16 = vpop.f32.mrf.mxu3  ;;  %v12385_v60 = vld [vmem:[%s12600_s29 + $0x78] sm:$0xff] }
 0x20f   : > { %v3001_v35 = vadd.f32 %v2679_v44, %v1980_v11  ;;  %v1981_v32 = vpop.f32.mrf.mxu1 }
 0x210   : > { %v1982_v39 = vadd.f32 %v1981_v32, %v12921_v45  ;;  %v12214_v45 = vld [vmem:[%s12600_s29 + $0x98] sm:$0xff] }
 0x211   : > { %v4312_v7 = vadd.f32 %v3990_v16, %v3001_v35  ;;  %v4596_v44 = vshrl.u32 %v12214_v45, 16  ;;  %v4599_v35 = vshll.u32 %v12214_v45, 16  ;;  %v3640_v58 = vrot.slane %v12214_v45, 1 }
 0x213   : > { %v5311_v1 = vpop.f32.mrf.mxu0  ;;  %v13315_v55 = vadd.f32 %v5309_v17, %v4312_v7  ;;  %v4598_v32 = vrot.slane %v4596_v44, 1  ;;  %v4601_v56 = vrot.slane %v4599_v35, 2 }
 0x216   : > { %v2681_v19 = vpop.f32.mrf.mxu2  ;;  %v3992_v18 = vpop.f32.mrf.mxu3 }
 0x217   : > { %v3002_v26 = vadd.f32 %v2681_v19, %v1982_v39  ;;  %v1984_v31 = vpop.f32.mrf.mxu1 }
 0x218   : > { %v1985_v28 = vadd.f32 %v1984_v31, %v12935_v10 }
 0x219   : > { %v4313_v62 = vadd.f32 %v3992_v18, %v3002_v26  ;;  %v4602_v18 = vor.u32 %v4601_v56, %v4598_v32 }
 0x21a   : > { %11057 = vmatmul.msk.bf16.gmra.mxu1 %vm1240_vm3, %v12385_v60 }
 0x21b   : > { %v5314_v61 = vpop.f32.mrf.mxu0  ;;  %11126 = vmatmul.msk.bf16.gmra.mxu2 %vm1240_vm3, %v2328_v9  ;;  %v13326_v17 = vadd.f32 %v5311_v1, %v4313_v62  ;;  %11463 = vmatmul.msk.bf16.gmra.mxu3 %vm1240_vm3, %v3639_v3  ;;  %v12386_v1 = vld [vmem:[%s12600_s29 + $0x88] sm:$0xff]  ;;  %v3641_v3 = vsel %vm2295_vm4, %v3638_v41, %v3640_v58 }
 0x21c   : > { %v2329_v0 = vrot.slane %v12386_v1, 1 }
 0x21e   : > { %11532 = vmatmul.msk.bf16.gmra.mxu0 %vm1240_vm3, %v4594_v27  ;;  %v2684_v57 = vpop.f32.mrf.mxu2  ;;  %v3995_v11 = vpop.f32.mrf.mxu3  ;;  %v2330_v9 = vsel %vm2295_vm4, %v2327_v6, %v2329_v0  ;;  %v12387_v27 = vld [vmem:[%s12600_s29 + $0x80] sm:$0xff] }
 0x21f   : > { %v3003_v50 = vadd.f32 %v2684_v57, %v1985_v28  ;;  %v1986_v16 = vpop.f32.mrf.mxu1 }
 0x220   : > { %v1987_v10 = vadd.f32 %v1986_v16, %v12964_v24  ;;  %v12215_v24 = vld [vmem:[%s12600_s29 + $0xa0] sm:$0xff] }
 0x221   : > { %v4314_v8 = vadd.f32 %v3995_v11, %v3003_v50  ;;  %v4605_v50 = vshrl.u32 %v12215_v24, 16  ;;  %v4608_v11 = vshll.u32 %v12215_v24, 16 }
 0x223   : > { %v5316_v51 = vpop.f32.mrf.mxu0  ;;  %v13331_v7 = vadd.f32 %v5314_v61, %v4314_v8  ;;  %v4603_v61 = vsel %vm4442_vm5, %v4593_v40, %v4602_v18  ;;  %v4607_v8 = vrot.slane %v4605_v50, 1  ;;  %v4610_v40 = vrot.slane %v4608_v11, 2 }
 0x226   : > { %v2686_v39 = vpop.f32.mrf.mxu2  ;;  %v3997_v26 = vpop.f32.mrf.mxu3 }
 0x227   : > { %v3004_v19 = vadd.f32 %v2686_v39, %v1987_v10  ;;  %v1989_v31 = vpop.f32.mrf.mxu1 }
 0x228   : > { %v1990_v28 = vadd.f32 %v1989_v31, %v12987_v36  ;;  %v3642_v36 = vrot.slane %v12215_v24, 1  ;;  %v4611_v31 = vor.u32 %v4610_v40, %v4607_v8 }
 0x229   : > { %v4315_v62 = vadd.f32 %v3997_v26, %v3004_v19 }
 0x22a   : > { %11058 = vmatmul.msk.bf16.gmra.mxu1 %vm1240_vm3, %v12387_v27  ;;  %v3643_v27 = vsel %vm2295_vm4, %v3640_v58, %v3642_v36 }
 0x22b   : > { %v5319_v60 = vpop.f32.mrf.mxu0  ;;  %11127 = vmatmul.msk.bf16.gmra.mxu2 %vm1240_vm3, %v2330_v9  ;;  %v13342_v45 = vadd.f32 %v5316_v51, %v4315_v62  ;;  %11464 = vmatmul.msk.bf16.gmra.mxu3 %vm1240_vm3, %v3641_v3  ;;  %v12388_v51 = vld [vmem:[%s12600_s29 + $0x90] sm:$0xff] }
 0x22c   : > { %v2331_v56 = vrot.slane %v12388_v51, 1 }
 0x22e   : > { %11533 = vmatmul.msk.bf16.gmra.mxu0 %vm1240_vm3, %v4603_v61  ;;  %v2689_v6 = vpop.f32.mrf.mxu2  ;;  %v4000_v57 = vpop.f32.mrf.mxu3  ;;  %v2332_v62 = vsel %vm2295_vm4, %v2329_v0, %v2331_v56 }
 0x22f   : > { %v3005_v41 = vadd.f32 %v2689_v6, %v1990_v28  ;;  %v1991_v44 = vpop.f32.mrf.mxu1  ;;  %v12216_v28 = vld [vmem:[%s12600_s29 + $0xa8] sm:$0xff] }
 0x230   : > { %v1992_v10 = vadd.f32 %v1991_v44, %v13006_v2 }
 0x231   : > { %v4316_v35 = vadd.f32 %v4000_v57, %v3005_v41  ;;  %v4614_v41 = vshrl.u32 %v12216_v28, 16  ;;  %v4617_v57 = vshll.u32 %v12216_v28, 16 }
 0x233   : > { %v5321_v16 = vpop.f32.mrf.mxu0  ;;  %v13347_v32 = vadd.f32 %v5319_v60, %v4316_v35  ;;  %v4612_v60 = vsel %vm4442_vm5, %v4602_v18, %v4611_v31  ;;  %v4616_v44 = vrot.slane %v4614_v41, 1  ;;  %v4619_v18 = vrot.slane %v4617_v57, 2 }
 0x236   : > { %v2691_v39 = vpop.f32.mrf.mxu2  ;;  %v4002_v26 = vpop.f32.mrf.mxu3 }
 0x237   : > { %v3006_v19 = vadd.f32 %v2691_v39, %v1992_v10  ;;  %v1994_v9 = vpop.f32.mrf.mxu1 }
 0x238   : > { %v1995_v24 = vadd.f32 %v1994_v9, %v13017_v14  ;;  %v3644_v14 = vrot.slane %v12216_v28, 1 }
 0x239   : > { %v4317_v3 = vadd.f32 %v4002_v26, %v3006_v19  ;;  %v4620_v26 = vor.u32 %v4619_v18, %v4616_v44 }
 0x23a   : > { %11059 = vmatmul.msk.bf16.gmra.mxu1 %vm1240_vm3, %v12386_v1 }
 0x23b   : > { %v5324_v61 = vpop.f32.mrf.mxu0  ;;  %11128 = vmatmul.msk.bf16.gmra.mxu2 %vm1240_vm3, %v2332_v62  ;;  %v13357_v2 = vadd.f32 %v5321_v16, %v4317_v3  ;;  %11465 = vmatmul.msk.bf16.gmra.mxu3 %vm1240_vm3, %v3643_v27  ;;  %v12389_v16 = vld [vmem:[%s12600_s29 + $0x98] sm:$0xff]  ;;  %v3645_v27 = vsel %vm2295_vm4, %v3642_v36, %v3644_v14 }
 0x23c   : > { %v2333_v8 = vrot.slane %v12389_v16, 1 }
 0x23e   : > { %11534 = vmatmul.msk.bf16.gmra.mxu0 %vm1240_vm3, %v4612_v60  ;;  %v2694_v0 = vpop.f32.mrf.mxu2  ;;  %v4005_v58 = vpop.f32.mrf.mxu3  ;;  %v2334_v62 = vsel %vm2295_vm4, %v2331_v56, %v2333_v8 }
 0x23f   : > { %v3007_v6 = vadd.f32 %v2694_v0, %v1995_v24  ;;  %v1996_v1 = vpop.f32.mrf.mxu1  ;;  %v12217_v24 = vld [vmem:[%s12600_s29 + $0xb0] sm:$0xff] }
 0x240   : > { %v1997_v40 = vadd.f32 %v1996_v1, %v13032_v4 }
 0x241   : > { %v4318_v50 = vadd.f32 %v4005_v58, %v3007_v6  ;;  %v4623_v6 = vshrl.u32 %v12217_v24, 16  ;;  %v4626_v58 = vshll.u32 %v12217_v24, 16 }
 0x243   : > { %v5326_v11 = vpop.f32.mrf.mxu0  ;;  %v13362_v35 = vadd.f32 %v5324_v61, %v4318_v50  ;;  %v4621_v61 = vsel %vm4442_vm5, %v4611_v31, %v4620_v26  ;;  %v4625_v1 = vrot.slane %v4623_v6, 1  ;;  %v4628_v31 = vrot.slane %v4626_v58, 2 }
 0x246   : > { %v2696_v10 = vpop.f32.mrf.mxu2  ;;  %v4007_v19 = vpop.f32.mrf.mxu3 }
 0x247   : > { %v3008_v39 = vadd.f32 %v2696_v10, %v1997_v40  ;;  %v1999_v9 = vpop.f32.mrf.mxu1 }
 0x248   : > { %v2000_v28 = vadd.f32 %v1999_v9, %v13043_v33  ;;  %v3646_v33 = vrot.slane %v12217_v24, 1 }
 0x249   : > { %v4319_v3 = vadd.f32 %v4007_v19, %v3008_v39  ;;  %v4629_v19 = vor.u32 %v4628_v31, %v4625_v1 }
 0x24a   : > { %11060 = vmatmul.msk.bf16.gmra.mxu1 %vm1240_vm3, %v12388_v51 }
 0x24b   : > { %v5329_v60 = vpop.f32.mrf.mxu0  ;;  %11129 = vmatmul.msk.bf16.gmra.mxu2 %vm1240_vm3, %v2334_v62  ;;  %v13372_v4 = vadd.f32 %v5326_v11, %v4319_v3  ;;  %11466 = vmatmul.msk.bf16.gmra.mxu3 %vm1240_vm3, %v3645_v27  ;;  %v12390_v11 = vld [vmem:[%s12600_s29 + $0xa0] sm:$0xff]  ;;  %v3647_v27 = vsel %vm2295_vm4, %v3644_v14, %v3646_v33 }
 0x24c   : > { %v2335_v44 = vrot.slane %v12390_v11, 1 }
 0x24e   : > { %11535 = vmatmul.msk.bf16.gmra.mxu0 %vm1240_vm3, %v4621_v61  ;;  %v2699_v56 = vpop.f32.mrf.mxu2  ;;  %v4010_v36 = vpop.f32.mrf.mxu3  ;;  %v2336_v62 = vsel %vm2295_vm4, %v2333_v8, %v2335_v44 }
 0x24f   : > { %v3009_v0 = vadd.f32 %v2699_v56, %v2000_v28  ;;  %v2001_v51 = vpop.f32.mrf.mxu1  ;;  %v12218_v28 = vld [vmem:[%s12600_s29 + $0xb8] sm:$0xff] }
 0x250   : > { %v2002_v18 = vadd.f32 %v2001_v51, %v13057_v5 }
 0x251   : > { %v4320_v41 = vadd.f32 %v4010_v36, %v3009_v0  ;;  %v4632_v0 = vshrl.u32 %v12218_v28, 16  ;;  %v4635_v36 = vshll.u32 %v12218_v28, 16 }
 0x253   : > { %v5331_v57 = vpop.f32.mrf.mxu0  ;;  %v13377_v50 = vadd.f32 %v5329_v60, %v4320_v41  ;;  %v4630_v60 = vsel %vm4442_vm5, %v4620_v26, %v4629_v19  ;;  %v4634_v51 = vrot.slane %v4632_v0, 1  ;;  %v4637_v26 = vrot.slane %v4635_v36, 2 }
 0x256   : > { %v2701_v40 = vpop.f32.mrf.mxu2  ;;  %v4012_v39 = vpop.f32.mrf.mxu3 }
 0x257   : > { %v3010_v10 = vadd.f32 %v2701_v40, %v2002_v18  ;;  %v2004_v9 = vpop.f32.mrf.mxu1 }
 0x258   : > { %v2005_v24 = vadd.f32 %v2004_v9, %v13068_v53  ;;  %v3648_v53 = vrot.slane %v12218_v28, 1 }
 0x259   : > { %v4321_v3 = vadd.f32 %v4012_v39, %v3010_v10  ;;  %v4638_v39 = vor.u32 %v4637_v26, %v4634_v51 }
 0x25a   : > { %11061 = vmatmul.msk.bf16.gmra.mxu1 %vm1240_vm3, %v12389_v16 }
 0x25b   : > { %v5334_v61 = vpop.f32.mrf.mxu0  ;;  %11130 = vmatmul.msk.bf16.gmra.mxu2 %vm1240_vm3, %v2336_v62  ;;  %v13387_v5 = vadd.f32 %v5331_v57, %v4321_v3  ;;  %11467 = vmatmul.msk.bf16.gmra.mxu3 %vm1240_vm3, %v3647_v27  ;;  %v12391_v57 = vld [vmem:[%s12600_s29 + $0xa8] sm:$0xff]  ;;  %v3649_v27 = vsel %vm2295_vm4, %v3646_v33, %v3648_v53 }
 0x25c   : > { %v2337_v1 = vrot.slane %v12391_v57, 1 }
 0x25e   : > { %11536 = vmatmul.msk.bf16.gmra.mxu0 %vm1240_vm3, %v4630_v60  ;;  %v2704_v8 = vpop.f32.mrf.mxu2  ;;  %v4015_v14 = vpop.f32.mrf.mxu3  ;;  %v2338_v62 = vsel %vm2295_vm4, %v2335_v44, %v2337_v1 }
 0x25f   : > { %v3011_v56 = vadd.f32 %v2704_v8, %v2005_v24  ;;  %v2006_v16 = vpop.f32.mrf.mxu1  ;;  %v12219_v24 = vld [vmem:[%s12600_s29 + $0xc0] sm:$0xff] }
 0x260   : > { %v2007_v31 = vadd.f32 %v2006_v16, %v13082_v34 }
 0x261   : > { %v4322_v6 = vadd.f32 %v4015_v14, %v3011_v56  ;;  %v4641_v56 = vshrl.u32 %v12219_v24, 16  ;;  %v4644_v14 = vshll.u32 %v12219_v24, 16 }
 0x263   : > { %v5336_v58 = vpop.f32.mrf.mxu0  ;;  %v13392_v41 = vadd.f32 %v5334_v61, %v4322_v6  ;;  %v4639_v61 = vsel %vm4442_vm5, %v4629_v19, %v4638_v39  ;;  %v4643_v16 = vrot.slane %v4641_v56, 1  ;;  %v4646_v19 = vrot.slane %v4644_v14, 2 }
 0x266   : > { %v2706_v18 = vpop.f32.mrf.mxu2  ;;  %v4017_v10 = vpop.f32.mrf.mxu3 }
 0x267   : > { %v3012_v40 = vadd.f32 %v2706_v18, %v2007_v31  ;;  %v2009_v9 = vpop.f32.mrf.mxu1 }
 0x268   : > { %v2010_v28 = vadd.f32 %v2009_v9, %v13093_v52  ;;  %v3650_v52 = vrot.slane %v12219_v24, 1 }
 0x269   : > { %v4323_v3 = vadd.f32 %v4017_v10, %v3012_v40  ;;  %v4647_v10 = vor.u32 %v4646_v19, %v4643_v16 }
 0x26a   : > { %11062 = vmatmul.msk.bf16.gmra.mxu1 %vm1240_vm3, %v12390_v11 }
 0x26b   : > { %v5339_v60 = vpop.f32.mrf.mxu0  ;;  %11131 = vmatmul.msk.bf16.gmra.mxu2 %vm1240_vm3, %v2338_v62  ;;  %v13402_v34 = vadd.f32 %v5336_v58, %v4323_v3  ;;  %11468 = vmatmul.msk.bf16.gmra.mxu3 %vm1240_vm3, %v3649_v27  ;;  %v12392_v58 = vld [vmem:[%s12600_s29 + $0xb0] sm:$0xff]  ;;  %v3651_v27 = vsel %vm2295_vm4, %v3648_v53, %v3650_v52 }
 0x26c   : > { %v2339_v51 = vrot.slane %v12392_v58, 1 }
 0x26e   : > { %11537 = vmatmul.msk.bf16.gmra.mxu0 %vm1240_vm3, %v4639_v61  ;;  %v2709_v44 = vpop.f32.mrf.mxu2  ;;  %v4020_v33 = vpop.f32.mrf.mxu3  ;;  %v2340_v62 = vsel %vm2295_vm4, %v2337_v1, %v2339_v51 }
 0x26f   : > { %v3013_v8 = vadd.f32 %v2709_v44, %v2010_v28  ;;  %v2011_v11 = vpop.f32.mrf.mxu1  ;;  %v12220_v28 = vld [vmem:[%s12600_s29 + $0xc8] sm:$0xff] }
 0x270   : > { %v2012_v26 = vadd.f32 %v2011_v11, %v13107_v15 }
 0x271   : > { %v4324_v0 = vadd.f32 %v4020_v33, %v3013_v8  ;;  %v4650_v8 = vshrl.u32 %v12220_v28, 16  ;;  %v4653_v33 = vshll.u32 %v12220_v28, 16 }
 0x273   : > { %v5341_v36 = vpop.f32.mrf.mxu0  ;;  %v13407_v6 = vadd.f32 %v5339_v60, %v4324_v0  ;;  %v4648_v60 = vsel %vm4442_vm5, %v4638_v39, %v4647_v10  ;;  %v4652_v11 = vrot.slane %v4650_v8, 1  ;;  %v4655_v39 = vrot.slane %v4653_v33, 2 }
 0x276   : > { %v2711_v31 = vpop.f32.mrf.mxu2  ;;  %v4022_v40 = vpop.f32.mrf.mxu3 }
 0x277   : > { %v3014_v18 = vadd.f32 %v2711_v31, %v2012_v26  ;;  %v2014_v9 = vpop.f32.mrf.mxu1 }
 0x278   : > { %v2015_v24 = vadd.f32 %v2014_v9, %v13118_v12  ;;  %v3652_v12 = vrot.slane %v12220_v28, 1 }
 0x279   : > { %v4325_v3 = vadd.f32 %v4022_v40, %v3014_v18  ;;  %v4656_v40 = vor.u32 %v4655_v39, %v4652_v11 }
 0x27a   : > { %11063 = vmatmul.msk.bf16.gmra.mxu1 %vm1240_vm3, %v12391_v57 }
 0x27b   : > { %v5344_v61 = vpop.f32.mrf.mxu0  ;;  %11132 = vmatmul.msk.bf16.gmra.mxu2 %vm1240_vm3, %v2340_v62  ;;  %v13417_v15 = vadd.f32 %v5341_v36, %v4325_v3  ;;  %11469 = vmatmul.msk.bf16.gmra.mxu3 %vm1240_vm3, %v3651_v27  ;;  %v12393_v36 = vld [vmem:[%s12600_s29 + $0xb8] sm:$0xff]  ;;  %v3653_v27 = vsel %vm2295_vm4, %v3650_v52, %v3652_v12 }
 0x27c   : > { %v2341_v16 = vrot.slane %v12393_v36, 1 }
 0x27e   : > { %11538 = vmatmul.msk.bf16.gmra.mxu0 %vm1240_vm3, %v4648_v60  ;;  %v2714_v1 = vpop.f32.mrf.mxu2  ;;  %v4025_v53 = vpop.f32.mrf.mxu3  ;;  %v2342_v62 = vsel %vm2295_vm4, %v2339_v51, %v2341_v16 }
 0x27f   : > { %v3015_v44 = vadd.f32 %v2714_v1, %v2015_v24  ;;  %v2016_v57 = vpop.f32.mrf.mxu1  ;;  %v12221_v24 = vld [vmem:[%s12600_s29 + $0xd0] sm:$0xff] }
 0x280   : > { %v2017_v19 = vadd.f32 %v2016_v57, %v13132_v23 }
 0x281   : > { %v4326_v56 = vadd.f32 %v4025_v53, %v3015_v44  ;;  %v4659_v44 = vshrl.u32 %v12221_v24, 16  ;;  %v4662_v53 = vshll.u32 %v12221_v24, 16 }
 0x283   : > { %v5346_v14 = vpop.f32.mrf.mxu0  ;;  %v13422_v0 = vadd.f32 %v5344_v61, %v4326_v56  ;;  %v4657_v61 = vsel %vm4442_vm5, %v4647_v10, %v4656_v40  ;;  %v4661_v57 = vrot.slane %v4659_v44, 1  ;;  %v4664_v10 = vrot.slane %v4662_v53, 2 }
 0x286   : > { %v2716_v26 = vpop.f32.mrf.mxu2  ;;  %v4027_v18 = vpop.f32.mrf.mxu3 }
 0x287   : > { %v3016_v31 = vadd.f32 %v2716_v26, %v2017_v19  ;;  %v2019_v9 = vpop.f32.mrf.mxu1 }
 0x288   : > { %v2020_v28 = vadd.f32 %v2019_v9, %v13143_v38  ;;  %v3654_v38 = vrot.slane %v12221_v24, 1 }
 0x289   : > { %v4327_v3 = vadd.f32 %v4027_v18, %v3016_v31  ;;  %v4665_v18 = vor.u32 %v4664_v10, %v4661_v57 }
 0x28a   : > { %11064 = vmatmul.msk.bf16.gmra.mxu1 %vm1240_vm3, %v12392_v58 }
 0x28b   : > { %v5349_v60 = vpop.f32.mrf.mxu0  ;;  %11133 = vmatmul.msk.bf16.gmra.mxu2 %vm1240_vm3, %v2342_v62  ;;  %v13432_v23 = vadd.f32 %v5346_v14, %v4327_v3  ;;  %11470 = vmatmul.msk.bf16.gmra.mxu3 %vm1240_vm3, %v3653_v27  ;;  %v12394_v14 = vld [vmem:[%s12600_s29 + $0xc0] sm:$0xff]  ;;  %v3655_v27 = vsel %vm2295_vm4, %v3652_v12, %v3654_v38 }
 0x28c   : > { %v2343_v11 = vrot.slane %v12394_v14, 1 }
 0x28e   : > { %11539 = vmatmul.msk.bf16.gmra.mxu0 %vm1240_vm3, %v4657_v61  ;;  %v2719_v51 = vpop.f32.mrf.mxu2  ;;  %v4030_v52 = vpop.f32.mrf.mxu3  ;;  %v2344_v62 = vsel %vm2295_vm4, %v2341_v16, %v2343_v11 }
 0x28f   : > { %v3017_v1 = vadd.f32 %v2719_v51, %v2020_v28  ;;  %v2021_v58 = vpop.f32.mrf.mxu1  ;;  %v12222_v28 = vld [vmem:[%s12600_s29 + $0xd8] sm:$0xff] }
 0x290   : > { %v2022_v39 = vadd.f32 %v2021_v58, %v13157_v37 }
 0x291   : > { %v4328_v8 = vadd.f32 %v4030_v52, %v3017_v1  ;;  %v4668_v1 = vshrl.u32 %v12222_v28, 16  ;;  %v4671_v52 = vshll.u32 %v12222_v28, 16 }
 0x293   : > { %v5351_v33 = vpop.f32.mrf.mxu0  ;;  %v13437_v56 = vadd.f32 %v5349_v60, %v4328_v8  ;;  %v4666_v60 = vsel %vm4442_vm5, %v4656_v40, %v4665_v18  ;;  %v4670_v58 = vrot.slane %v4668_v1, 1  ;;  %v4673_v40 = vrot.slane %v4671_v52, 2 }
 0x296   : > { %v2721_v19 = vpop.f32.mrf.mxu2  ;;  %v4032_v31 = vpop.f32.mrf.mxu3 }
 0x297   : > { %v3018_v26 = vadd.f32 %v2721_v19, %v2022_v39  ;;  %v2024_v9 = vpop.f32.mrf.mxu1 }
 0x298   : > { %v2025_v24 = vadd.f32 %v2024_v9, %v13168_v54  ;;  %v3656_v54 = vrot.slane %v12222_v28, 1 }
 0x299   : > { %v4329_v3 = vadd.f32 %v4032_v31, %v3018_v26  ;;  %v4674_v31 = vor.u32 %v4673_v40, %v4670_v58 }
 0x29a   : > { %11065 = vmatmul.msk.bf16.gmra.mxu1 %vm1240_vm3, %v12393_v36 }
 0x29b   : > { %v5354_v61 = vpop.f32.mrf.mxu0  ;;  %11134 = vmatmul.msk.bf16.gmra.mxu2 %vm1240_vm3, %v2344_v62  ;;  %v13447_v37 = vadd.f32 %v5351_v33, %v4329_v3  ;;  %11471 = vmatmul.msk.bf16.gmra.mxu3 %vm1240_vm3, %v3655_v27  ;;  %v12395_v33 = vld [vmem:[%s12600_s29 + $0xc8] sm:$0xff]  ;;  %v3657_v27 = vsel %vm2295_vm4, %v3654_v38, %v3656_v54 }
 0x29c   : > { %v2345_v57 = vrot.slane %v12395_v33, 1 }
 0x29e   : > { %11540 = vmatmul.msk.bf16.gmra.mxu0 %vm1240_vm3, %v4666_v60  ;;  %v2724_v16 = vpop.f32.mrf.mxu2  ;;  %v4035_v12 = vpop.f32.mrf.mxu3  ;;  %v2346_v62 = vsel %vm2295_vm4, %v2343_v11, %v2345_v57 }
 0x29f   : > { %v3019_v51 = vadd.f32 %v2724_v16, %v2025_v24  ;;  %v2026_v36 = vpop.f32.mrf.mxu1  ;;  %v12223_v24 = vld [vmem:[%s12600_s29 + $0xe0] sm:$0xff] }
 0x2a0   : > { %v2027_v10 = vadd.f32 %v2026_v36, %v13182_v22 }
 0x2a1   : > { %v4330_v44 = vadd.f32 %v4035_v12, %v3019_v51  ;;  %v4677_v51 = vshrl.u32 %v12223_v24, 16  ;;  %v4680_v12 = vshll.u32 %v12223_v24, 16 }
 0x2a3   : > { %v5356_v53 = vpop.f32.mrf.mxu0  ;;  %v13452_v8 = vadd.f32 %v5354_v61, %v4330_v44  ;;  %v4675_v61 = vsel %vm4442_vm5, %v4665_v18, %v4674_v31  ;;  %v4679_v36 = vrot.slane %v4677_v51, 1  ;;  %v4682_v18 = vrot.slane %v4680_v12, 2 }
 0x2a6   : > { %v2726_v39 = vpop.f32.mrf.mxu2  ;;  %v4037_v26 = vpop.f32.mrf.mxu3 }
 0x2a7   : > { %v3020_v19 = vadd.f32 %v2726_v39, %v2027_v10  ;;  %v2029_v9 = vpop.f32.mrf.mxu1 }
 0x2a8   : > { %v2030_v28 = vadd.f32 %v2029_v9, %v13193_v43  ;;  %v3658_v43 = vrot.slane %v12223_v24, 1  ;;  %v15965_v24 = vld [vmem:[#allocation2_spill] sm:$0xff] }
 0x2a9   : > { %v4331_v3 = vadd.f32 %v4037_v26, %v3020_v19  ;;  %v4683_v26 = vor.u32 %v4682_v18, %v4679_v36 }
 0x2aa   : > { %11066 = vmatmul.msk.bf16.gmra.mxu1 %vm1240_vm3, %v12394_v14 }
 0x2ab   : > { %v5359_v60 = vpop.f32.mrf.mxu0  ;;  %11135 = vmatmul.msk.bf16.gmra.mxu2 %vm1240_vm3, %v2346_v62  ;;  %v13462_v22 = vadd.f32 %v5356_v53, %v4331_v3  ;;  %11472 = vmatmul.msk.bf16.gmra.mxu3 %vm1240_vm3, %v3657_v27  ;;  %v12396_v53 = vld [vmem:[%s12600_s29 + $0xd0] sm:$0xff]  ;;  %v3659_v27 = vsel %vm2295_vm4, %v3656_v54, %v3658_v43 }
 0x2ac   : > { %v2347_v58 = vrot.slane %v12396_v53, 1 }
 0x2ae   : > { %11541 = vmatmul.msk.bf16.gmra.mxu0 %vm1240_vm3, %v4675_v61  ;;  %v2729_v11 = vpop.f32.mrf.mxu2  ;;  %v4040_v38 = vpop.f32.mrf.mxu3  ;;  %v2348_v62 = vsel %vm2295_vm4, %v2345_v57, %v2347_v58 }
 0x2af   : > { %v3021_v16 = vadd.f32 %v2729_v11, %v2030_v28  ;;  %v2031_v14 = vpop.f32.mrf.mxu1  ;;  %v12224_v28 = vld [vmem:[%s12600_s29 + $0xe8] sm:$0xff] }
 0x2b0   : > { %v2032_v40 = vadd.f32 %v2031_v14, %v13207_v30  ;;  %v4689_v51 = vshll.u32 %v12224_v28, 16 }
 0x2b1   : > { %v4332_v1 = vadd.f32 %v4040_v38, %v3021_v16  ;;  %v4686_v38 = vshrl.u32 %v12224_v28, 16 }
 0x2b3   : > { %v5361_v52 = vpop.f32.mrf.mxu0  ;;  %v13467_v44 = vadd.f32 %v5359_v60, %v4332_v1  ;;  %v4684_v60 = vsel %vm4442_vm5, %v4674_v31, %v4683_v26  ;;  %v4688_v1 = vrot.slane %v4686_v38, 1  ;;  %v4691_v31 = vrot.slane %v4689_v51, 2 }
 0x2b6   : > { %v2731_v10 = vpop.f32.mrf.mxu2  ;;  %v4042_v19 = vpop.f32.mrf.mxu3 }
 0x2b7   : > { %v3022_v39 = vadd.f32 %v2731_v10, %v2032_v40  ;;  %v2034_v9 = vpop.f32.mrf.mxu1  ;;  %v15967_v40 = vld [vmem:[#allocation5_spill] sm:$0xff] }
 0x2b8   : > { %v2035_v11 = vadd.f32 %v2034_v9, %v15965_v24 }
 0x2b9   : > { %v4333_v3 = vadd.f32 %v4042_v19, %v3022_v39  ;;  %v3660_v39 = vrot.slane %v12224_v28, 1 }
 0x2ba   : > { %11067 = vmatmul.msk.bf16.gmra.mxu1 %vm1240_vm3, %v12395_v33 }
 0x2bb   : > { %v5364_v61 = vpop.f32.mrf.mxu0  ;;  %11136 = vmatmul.msk.bf16.gmra.mxu2 %vm1240_vm3, %v2348_v62  ;;  %v13477_v30 = vadd.f32 %v5361_v52, %v4333_v3  ;;  %11473 = vmatmul.msk.bf16.gmra.mxu3 %vm1240_vm3, %v3659_v27  ;;  %v12397_v52 = vld [vmem:[%s12600_s29 + $0xd8] sm:$0xff]  ;;  %v4692_v3 = vor.u32 %v4691_v31, %v4688_v1 }
 0x2bc   : > { %v2349_v18 = vrot.slane %v12397_v52, 1 }
 0x2bd   : > { %15964 = vst [vmem:[#allocation106_spill] sm:$0xff] %v13477_v30 }
 0x2be   : > { %11542 = vmatmul.msk.bf16.gmra.mxu0 %vm1240_vm3, %v4684_v60  ;;  %v2734_v57 = vpop.f32.mrf.mxu2  ;;  %v4045_v54 = vpop.f32.mrf.mxu3  ;;  %v2350_v60 = vsel %vm2295_vm4, %v2347_v58, %v2349_v18 }
 0x2bf   : > { %v3023_v16 = vadd.f32 %v2734_v57, %v2035_v11  ;;  %v2036_v33 = vpop.f32.mrf.mxu1  ;;  %v3661_v11 = vsel %vm2295_vm4, %v3658_v43, %v3660_v39 }
 0x2c0   : > { %v2037_v10 = vadd.f32 %v2036_v33, %v15967_v40 }
 0x2c1   : > { %v4334_v12 = vadd.f32 %v4045_v54, %v3023_v16  ;;  %v12225_v16 = vld [vmem:[%s12600_s29 + $0xf0] sm:$0xff] }
 0x2c2   : > { %v15969_v54 = vld [vmem:[#allocation8_spill] sm:$0xff]  ;;  %v4695_v33 = vshrl.u32 %v12225_v16, 16 }
 0x2c3   : > { %v5366_v14 = vpop.f32.mrf.mxu0  ;;  %v13482_v36 = vadd.f32 %v5364_v61, %v4334_v12  ;;  %v4693_v61 = vsel %vm4442_vm5, %v4683_v26, %v4692_v3  ;;  %v4698_v12 = vshll.u32 %v12225_v16, 16 }
 0x2c4   : > { %v4697_v40 = vrot.slane %v4695_v33, 1  ;;  %v12226_v33 = vld [vmem:[%s12600_s29 + $0xf8] sm:$0xff] }
 0x2c5   : > { %15966 = vst [vmem:[#allocation2_spill] sm:$0xff] %v13482_v36  ;;  %v4700_v26 = vrot.slane %v4698_v12, 2  ;;  %v15973_v12 = vld [vmem:[#allocation14_spill] sm:$0xff] }
 0x2c6   : > { %v2736_v19 = vpop.f32.mrf.mxu2  ;;  %v4047_v62 = vpop.f32.mrf.mxu3 }
 0x2c7   : > { %v3024_v9 = vadd.f32 %v2736_v19, %v2037_v10  ;;  %v2039_v27 = vpop.f32.mrf.mxu1 }
 0x2c8   : > { %v2040_v38 = vadd.f32 %v2039_v27, %v15969_v54  ;;  %v3662_v27 = vrot.slane %v12225_v16, 1 }
 0x2c9   : > { %v4335_v24 = vadd.f32 %v4047_v62, %v3024_v9  ;;  %v15971_v9 = vld [vmem:[#allocation11_spill] sm:$0xff] }
 0x2ca   : > { %11068 = vmatmul.msk.bf16.gmra.mxu1 %vm1240_vm3, %v12396_v53 }
 0x2cb   : > { %v5369_v57 = vpop.f32.mrf.mxu0  ;;  %11137 = vmatmul.msk.bf16.gmra.mxu2 %vm1240_vm3, %v2350_v60  ;;  %v13492_v28 = vadd.f32 %v5366_v14, %v4335_v24  ;;  %11474 = vmatmul.msk.bf16.gmra.mxu3 %vm1240_vm3, %v3661_v11  ;;  %v12398_v14 = vld [vmem:[%s12600_s29 + $0xe0] sm:$0xff] }
 0x2cc   : > { %v2351_v19 = vrot.slane %v12398_v14, 1 }
 0x2cd   : > { %15968 = vst [vmem:[#allocation5_spill] sm:$0xff] %v13492_v28 }
 0x2ce   : > { %11543 = vmatmul.msk.bf16.gmra.mxu0 %vm1240_vm3, %v4693_v61  ;;  %v2739_v58 = vpop.f32.mrf.mxu2  ;;  %v4050_v43 = vpop.f32.mrf.mxu3  ;;  %v4701_v61 = vor.u32 %v4700_v26, %v4697_v40  ;;  %v4704_v40 = vshrl.u32 %v12226_v33, 16  ;;  %v4707_v26 = vshll.u32 %v12226_v33, 16 }
 0x2cf   : > { %v3025_v51 = vadd.f32 %v2739_v58, %v2040_v38  ;;  %v2041_v53 = vpop.f32.mrf.mxu1  ;;  %v2352_v38 = vsel %vm2295_vm4, %v2349_v18, %v2351_v19 }
 0x2d0   : > { %v2042_v62 = vadd.f32 %v2041_v53, %v15971_v9 }
 0x2d1   : > { %v4336_v1 = vadd.f32 %v4050_v43, %v3025_v51  ;;  %v3663_v51 = vsel %vm2295_vm4, %v3660_v39, %v3662_v27 }
 0x2d3   : > { %v5371_v31 = vpop.f32.mrf.mxu0  ;;  %v13497_v10 = vadd.f32 %v5369_v57, %v4336_v1  ;;  %v4702_v57 = vsel %vm4442_vm5, %v4692_v3, %v4701_v61  ;;  %v4709_v3 = vrot.slane %v4707_v26, 2  ;;  %v15977_v26 = vld [vmem:[#allocation20_spill] sm:$0xff] }
 0x2d5   : > { %15970 = vst [vmem:[#allocation8_spill] sm:$0xff] %v13497_v10 }
 0x2d6   : > { %v2741_v60 = vpop.f32.mrf.mxu2  ;;  %v4052_v11 = vpop.f32.mrf.mxu3 }
 0x2d7   : > { %v3026_v24 = vadd.f32 %v2741_v60, %v2042_v62  ;;  %v2044_v54 = vpop.f32.mrf.mxu1  ;;  %v4706_v60 = vrot.slane %v4704_v40, 1  ;;  %v12227_v40 = vld [vmem:[%s12600_s29 + $0x100] sm:$0xff] }
 0x2d8   : > { %v2045_v53 = vadd.f32 %v2044_v54, %v15973_v12  ;;  %v3664_v54 = vrot.slane %v12226_v33, 1 }
 0x2d9   : > { %v4337_v58 = vadd.f32 %v4052_v11, %v3026_v24 }
 0x2da   : > { %11069 = vmatmul.msk.bf16.gmra.mxu1 %vm1240_vm3, %v12397_v52 }
 0x2db   : > { %v5374_v43 = vpop.f32.mrf.mxu0  ;;  %11138 = vmatmul.msk.bf16.gmra.mxu2 %vm1240_vm3, %v2352_v38  ;;  %v13507_v16 = vadd.f32 %v5371_v31, %v4337_v58  ;;  %11475 = vmatmul.msk.bf16.gmra.mxu3 %vm1240_vm3, %v3663_v51  ;;  %v12399_v31 = vld [vmem:[%s12600_s29 + $0xe8] sm:$0xff]  ;;  %v15975_v38 = vld [vmem:[#allocation17_spill] sm:$0xff] }
 0x2dc   : > { %v2353_v11 = vrot.slane %v12399_v31, 1 }
 0x2dd   : > { %15972 = vst [vmem:[#allocation11_spill] sm:$0xff] %v13507_v16 }
 0x2de   : > { %11544 = vmatmul.msk.bf16.gmra.mxu0 %vm1240_vm3, %v4702_v57  ;;  %v2744_v18 = vpop.f32.mrf.mxu2  ;;  %v4055_v39 = vpop.f32.mrf.mxu3  ;;  %v2354_v16 = vsel %vm2295_vm4, %v2351_v19, %v2353_v11 }
 0x2df   : > { %v3027_v1 = vadd.f32 %v2744_v18, %v2045_v53  ;;  %v2046_v52 = vpop.f32.mrf.mxu1  ;;  %v4710_v53 = vor.u32 %v4709_v3, %v4706_v60  ;;  %v4713_v60 = vshrl.u32 %v12227_v40, 16  ;;  %v4716_v3 = vshll.u32 %v12227_v40, 16 }
 0x2e0   : > { %v2047_v58 = vadd.f32 %v2046_v52, %v15975_v38 }
 0x2e1   : > { %v4338_v9 = vadd.f32 %v4055_v39, %v3027_v1  ;;  %v3665_v1 = vsel %vm2295_vm4, %v3662_v27, %v3664_v54 }
 0x2e3   : > { %v5376_v62 = vpop.f32.mrf.mxu0  ;;  %v13512_v24 = vadd.f32 %v5374_v43, %v4338_v9  ;;  %v4711_v43 = vsel %vm4442_vm5, %v4701_v61, %v4710_v53  ;;  %v4718_v61 = vrot.slane %v4716_v3, 2  ;;  %v15981_v3 = vld [vmem:[#allocation26_spill] sm:$0xff] }
 0x2e5   : > { %15974 = vst [vmem:[#allocation14_spill] sm:$0xff] %v13512_v24 }
 0x2e6   : > { %v2746_v51 = vpop.f32.mrf.mxu2  ;;  %v4057_v12 = vpop.f32.mrf.mxu3 }
 0x2e7   : > { %v3028_v57 = vadd.f32 %v2746_v51, %v2047_v58  ;;  %v2049_v18 = vpop.f32.mrf.mxu1  ;;  %v4715_v58 = vrot.slane %v4713_v60, 1  ;;  %v12228_v60 = vld [vmem:[%s12600_s29 + $0x108] sm:$0xff] }
 0x2e8   : > { %v2050_v52 = vadd.f32 %v2049_v18, %v15977_v26  ;;  %v3666_v18 = vrot.slane %v12227_v40, 1 }
 0x2e9   : > { %v4339_v10 = vadd.f32 %v4057_v12, %v3028_v57  ;;  %v15979_v57 = vld [vmem:[#allocation23_spill] sm:$0xff] }
 0x2ea   : > { %11070 = vmatmul.msk.bf16.gmra.mxu1 %vm1240_vm3, %v12398_v14 }
 0x2eb   : > { %v5379_v39 = vpop.f32.mrf.mxu0  ;;  %11139 = vmatmul.msk.bf16.gmra.mxu2 %vm1240_vm3, %v2354_v16  ;;  %v13522_v33 = vadd.f32 %v5376_v62, %v4339_v10  ;;  %11476 = vmatmul.msk.bf16.gmra.mxu3 %vm1240_vm3, %v3665_v1  ;;  %v12400_v10 = vld [vmem:[%s12600_s29 + $0xf0] sm:$0xff] }
 0x2ec   : > { %v2355_v62 = vrot.slane %v12400_v10, 1 }
 0x2ed   : > { %15976 = vst [vmem:[#allocation17_spill] sm:$0xff] %v13522_v33 }
 0x2ee   : > { %11545 = vmatmul.msk.bf16.gmra.mxu0 %vm1240_vm3, %v4711_v43  ;;  %v2749_v19 = vpop.f32.mrf.mxu2  ;;  %v4060_v27 = vpop.f32.mrf.mxu3  ;;  %v2356_v33 = vsel %vm2295_vm4, %v2353_v11, %v2355_v62 }
 0x2ef   : > { %v3029_v9 = vadd.f32 %v2749_v19, %v2050_v52  ;;  %v2051_v14 = vpop.f32.mrf.mxu1  ;;  %v4719_v52 = vor.u32 %v4718_v61, %v4715_v58  ;;  %v4722_v58 = vshrl.u32 %v12228_v60, 16  ;;  %v4725_v61 = vshll.u32 %v12228_v60, 16 }
 0x2f0   : > { %v2052_v12 = vadd.f32 %v2051_v14, %v15979_v57 }
 0x2f1   : > { %v4340_v38 = vadd.f32 %v4060_v27, %v3029_v9  ;;  %v3667_v9 = vsel %vm2295_vm4, %v3664_v54, %v3666_v18 }
 0x2f3   : > { %v5381_v16 = vpop.f32.mrf.mxu0  ;;  %v13527_v51 = vadd.f32 %v5379_v39, %v4340_v38  ;;  %v4720_v39 = vsel %vm4442_vm5, %v4710_v53, %v4719_v52  ;;  %v4727_v53 = vrot.slane %v4725_v61, 2  ;;  %v15985_v61 = vld [vmem:[#allocation32_spill] sm:$0xff] }
 0x2f5   : > { %15978 = vst [vmem:[#allocation20_spill] sm:$0xff] %v13527_v51 }
 0x2f6   : > { %v2751_v1 = vpop.f32.mrf.mxu2  ;;  %v4062_v26 = vpop.f32.mrf.mxu3 }
 0x2f7   : > { %v3030_v43 = vadd.f32 %v2751_v1, %v2052_v12  ;;  %v2054_v19 = vpop.f32.mrf.mxu1  ;;  %v4724_v12 = vrot.slane %v4722_v58, 1  ;;  %v12229_v58 = vld [vmem:[%s12600_s29 + $0x110] sm:$0xff] }
 0x2f8   : > { %v2055_v14 = vadd.f32 %v2054_v19, %v15981_v3  ;;  %v3668_v19 = vrot.slane %v12228_v60, 1 }
 0x2f9   : > { %v4341_v24 = vadd.f32 %v4062_v26, %v3030_v43  ;;  %v15983_v43 = vld [vmem:[#allocation29_spill] sm:$0xff] }
 0x2fa   : > { %11071 = vmatmul.msk.bf16.gmra.mxu1 %vm1240_vm3, %v12399_v31 }
 0x2fb   : > { %v5384_v27 = vpop.f32.mrf.mxu0  ;;  %11140 = vmatmul.msk.bf16.gmra.mxu2 %vm1240_vm3, %v2356_v33  ;;  %v13537_v40 = vadd.f32 %v5381_v16, %v4341_v24  ;;  %11477 = vmatmul.msk.bf16.gmra.mxu3 %vm1240_vm3, %v3667_v9  ;;  %v12401_v24 = vld [vmem:[%s12600_s29 + $0xf8] sm:$0xff] }
 0x2fc   : > { %v2357_v16 = vrot.slane %v12401_v24, 1 }
 0x2fd   : > { %15980 = vst [vmem:[#allocation23_spill] sm:$0xff] %v13537_v40 }
 0x2fe   : > { %11546 = vmatmul.msk.bf16.gmra.mxu0 %vm1240_vm3, %v4720_v39  ;;  %v2754_v11 = vpop.f32.mrf.mxu2  ;;  %v4065_v54 = vpop.f32.mrf.mxu3  ;;  %v2358_v40 = vsel %vm2295_vm4, %v2355_v62, %v2357_v16 }
 0x2ff   : > { %v3031_v38 = vadd.f32 %v2754_v11, %v2055_v14  ;;  %v2056_v31 = vpop.f32.mrf.mxu1  ;;  %v4728_v14 = vor.u32 %v4727_v53, %v4724_v12  ;;  %v4731_v12 = vshrl.u32 %v12229_v58, 16  ;;  %v4734_v53 = vshll.u32 %v12229_v58, 16 }
 0x300   : > { %v2057_v26 = vadd.f32 %v2056_v31, %v15983_v43 }
 0x301   : > { %v4342_v57 = vadd.f32 %v4065_v54, %v3031_v38  ;;  %v3669_v38 = vsel %vm2295_vm4, %v3666_v18, %v3668_v19 }
 0x303   : > { %v5386_v33 = vpop.f32.mrf.mxu0  ;;  %v13542_v1 = vadd.f32 %v5384_v27, %v4342_v57  ;;  %v4729_v27 = vsel %vm4442_vm5, %v4719_v52, %v4728_v14  ;;  %v4736_v52 = vrot.slane %v4734_v53, 2  ;;  %v15989_v53 = vld [vmem:[#allocation38_spill] sm:$0xff] }
 0x305   : > { %15982 = vst [vmem:[#allocation26_spill] sm:$0xff] %v13542_v1 }
 0x306   : > { %v2756_v9 = vpop.f32.mrf.mxu2  ;;  %v4067_v3 = vpop.f32.mrf.mxu3 }
 0x307   : > { %v3032_v39 = vadd.f32 %v2756_v9, %v2057_v26  ;;  %v2059_v11 = vpop.f32.mrf.mxu1  ;;  %v4733_v26 = vrot.slane %v4731_v12, 1  ;;  %v12230_v12 = vld [vmem:[%s12600_s29 + $0x118] sm:$0xff] }
 0x308   : > { %v2060_v31 = vadd.f32 %v2059_v11, %v15985_v61  ;;  %v3670_v11 = vrot.slane %v12229_v58, 1 }
 0x309   : > { %v4343_v51 = vadd.f32 %v4067_v3, %v3032_v39  ;;  %v15987_v39 = vld [vmem:[#allocation35_spill] sm:$0xff] }
 0x30a   : > { %11072 = vmatmul.msk.bf16.gmra.mxu1 %vm1240_vm3, %v12400_v10 }
 0x30b   : > { %v5389_v54 = vpop.f32.mrf.mxu0  ;;  %11141 = vmatmul.msk.bf16.gmra.mxu2 %vm1240_vm3, %v2358_v40  ;;  %v13552_v60 = vadd.f32 %v5386_v33, %v4343_v51  ;;  %11478 = vmatmul.msk.bf16.gmra.mxu3 %vm1240_vm3, %v3669_v38  ;;  %v12402_v51 = vld [vmem:[%s12600_s29 + $0x100] sm:$0xff] }
 0x30c   : > { %v2359_v33 = vrot.slane %v12402_v51, 1 }
 0x30d   : > { %15984 = vst [vmem:[#allocation29_spill] sm:$0xff] %v13552_v60 }
 0x30e   : > { %11547 = vmatmul.msk.bf16.gmra.mxu0 %vm1240_vm3, %v4729_v27  ;;  %v2759_v62 = vpop.f32.mrf.mxu2  ;;  %v4070_v18 = vpop.f32.mrf.mxu3  ;;  %v2360_v60 = vsel %vm2295_vm4, %v2357_v16, %v2359_v33 }
 0x30f   : > { %v3033_v57 = vadd.f32 %v2759_v62, %v2060_v31  ;;  %v2061_v10 = vpop.f32.mrf.mxu1  ;;  %v4737_v31 = vor.u32 %v4736_v52, %v4733_v26  ;;  %v4740_v26 = vshrl.u32 %v12230_v12, 16  ;;  %v4743_v52 = vshll.u32 %v12230_v12, 16 }
 0x310   : > { %v2062_v3 = vadd.f32 %v2061_v10, %v15987_v39 }
 0x311   : > { %v4344_v43 = vadd.f32 %v4070_v18, %v3033_v57  ;;  %v3671_v57 = vsel %vm2295_vm4, %v3668_v19, %v3670_v11 }
 0x313   : > { %v5391_v40 = vpop.f32.mrf.mxu0  ;;  %v13557_v9 = vadd.f32 %v5389_v54, %v4344_v43  ;;  %v4738_v54 = vsel %vm4442_vm5, %v4728_v14, %v4737_v31  ;;  %v4745_v14 = vrot.slane %v4743_v52, 2  ;;  %v15993_v52 = vld [vmem:[#allocation44_spill] sm:$0xff] }
 0x315   : > { %15986 = vst [vmem:[#allocation32_spill] sm:$0xff] %v13557_v9 }
 0x316   : > { %v2761_v38 = vpop.f32.mrf.mxu2  ;;  %v4072_v61 = vpop.f32.mrf.mxu3 }
 0x317   : > { %v3034_v27 = vadd.f32 %v2761_v38, %v2062_v3  ;;  %v2064_v62 = vpop.f32.mrf.mxu1  ;;  %v4742_v3 = vrot.slane %v4740_v26, 1  ;;  %v12231_v26 = vld [vmem:[%s12600_s29 + $0x120] sm:$0xff] }
 0x318   : > { %v2065_v10 = vadd.f32 %v2064_v62, %v15989_v53  ;;  %v3672_v62 = vrot.slane %v12230_v12, 1 }
 0x319   : > { %v4345_v1 = vadd.f32 %v4072_v61, %v3034_v27  ;;  %v15991_v27 = vld [vmem:[#allocation41_spill] sm:$0xff] }
 0x31a   : > { %11073 = vmatmul.msk.bf16.gmra.mxu1 %vm1240_vm3, %v12401_v24 }
 0x31b   : > { %v5394_v18 = vpop.f32.mrf.mxu0  ;;  %11142 = vmatmul.msk.bf16.gmra.mxu2 %vm1240_vm3, %v2360_v60  ;;  %v13567_v58 = vadd.f32 %v5391_v40, %v4345_v1  ;;  %11479 = vmatmul.msk.bf16.gmra.mxu3 %vm1240_vm3, %v3671_v57  ;;  %v12403_v1 = vld [vmem:[%s12600_s29 + $0x108] sm:$0xff] }
 0x31c   : > { %v2361_v40 = vrot.slane %v12403_v1, 1 }
 0x31d   : > { %15988 = vst [vmem:[#allocation35_spill] sm:$0xff] %v13567_v58 }
 0x31e   : > { %11548 = vmatmul.msk.bf16.gmra.mxu0 %vm1240_vm3, %v4738_v54  ;;  %v2764_v16 = vpop.f32.mrf.mxu2  ;;  %v4075_v19 = vpop.f32.mrf.mxu3  ;;  %v2362_v58 = vsel %vm2295_vm4, %v2359_v33, %v2361_v40 }
 0x31f   : > { %v3035_v43 = vadd.f32 %v2764_v16, %v2065_v10  ;;  %v2066_v24 = vpop.f32.mrf.mxu1  ;;  %v4746_v10 = vor.u32 %v4745_v14, %v4742_v3  ;;  %v4749_v3 = vshrl.u32 %v12231_v26, 16  ;;  %v4752_v14 = vshll.u32 %v12231_v26, 16 }
 0x320   : > { %v2067_v61 = vadd.f32 %v2066_v24, %v15991_v27 }
 0x321   : > { %v4346_v39 = vadd.f32 %v4075_v19, %v3035_v43  ;;  %v3673_v43 = vsel %vm2295_vm4, %v3670_v11, %v3672_v62 }
 0x323   : > { %v5396_v60 = vpop.f32.mrf.mxu0  ;;  %v13572_v38 = vadd.f32 %v5394_v18, %v4346_v39  ;;  %v4747_v18 = vsel %vm4442_vm5, %v4737_v31, %v4746_v10  ;;  %v4754_v31 = vrot.slane %v4752_v14, 2  ;;  %v15997_v14 = vld [vmem:[#allocation52_spill] sm:$0xff] }
 0x325   : > { %15990 = vst [vmem:[#allocation38_spill] sm:$0xff] %v13572_v38 }
 0x326   : > { %v2766_v57 = vpop.f32.mrf.mxu2  ;;  %v4077_v53 = vpop.f32.mrf.mxu3 }
 0x327   : > { %v3036_v54 = vadd.f32 %v2766_v57, %v2067_v61  ;;  %v2069_v16 = vpop.f32.mrf.mxu1  ;;  %v4751_v61 = vrot.slane %v4749_v3, 1  ;;  %v12232_v3 = vld [vmem:[%s12600_s29 + $0x128] sm:$0xff] }
 0x328   : > { %v2070_v24 = vadd.f32 %v2069_v16, %v15993_v52  ;;  %v3674_v16 = vrot.slane %v12231_v26, 1 }
 0x329   : > { %v4347_v9 = vadd.f32 %v4077_v53, %v3036_v54  ;;  %v15995_v54 = vld [vmem:[#allocation48_spill] sm:$0xff] }
 0x32a   : > { %11074 = vmatmul.msk.bf16.gmra.mxu1 %vm1240_vm3, %v12402_v51 }
 0x32b   : > { %v5399_v19 = vpop.f32.mrf.mxu0  ;;  %11143 = vmatmul.msk.bf16.gmra.mxu2 %vm1240_vm3, %v2362_v58  ;;  %v13582_v12 = vadd.f32 %v5396_v60, %v4347_v9  ;;  %11480 = vmatmul.msk.bf16.gmra.mxu3 %vm1240_vm3, %v3673_v43  ;;  %v12404_v9 = vld [vmem:[%s12600_s29 + $0x110] sm:$0xff] }
 0x32c   : > { %v2363_v60 = vrot.slane %v12404_v9, 1 }
 0x32d   : > { %15992 = vst [vmem:[#allocation41_spill] sm:$0xff] %v13582_v12 }
 0x32e   : > { %11549 = vmatmul.msk.bf16.gmra.mxu0 %vm1240_vm3, %v4747_v18  ;;  %v2769_v33 = vpop.f32.mrf.mxu2  ;;  %v4080_v11 = vpop.f32.mrf.mxu3  ;;  %v2364_v12 = vsel %vm2295_vm4, %v2361_v40, %v2363_v60 }
 0x32f   : > { %v3037_v39 = vadd.f32 %v2769_v33, %v2070_v24  ;;  %v2071_v51 = vpop.f32.mrf.mxu1  ;;  %v4755_v24 = vor.u32 %v4754_v31, %v4751_v61  ;;  %v4758_v61 = vshrl.u32 %v12232_v3, 16  ;;  %v4761_v31 = vshll.u32 %v12232_v3, 16 }
 0x330   : > { %v2072_v53 = vadd.f32 %v2071_v51, %v15995_v54 }
 0x331   : > { %v4348_v27 = vadd.f32 %v4080_v11, %v3037_v39  ;;  %v3675_v39 = vsel %vm2295_vm4, %v3672_v62, %v3674_v16 }
 0x333   : > { %v5401_v58 = vpop.f32.mrf.mxu0  ;;  %v13587_v57 = vadd.f32 %v5399_v19, %v4348_v27  ;;  %v4756_v19 = vsel %vm4442_vm5, %v4746_v10, %v4755_v24  ;;  %v4763_v10 = vrot.slane %v4761_v31, 2  ;;  %v16001_v31 = vld [vmem:[#allocation58_spill] sm:$0xff] }
 0x335   : > { %15994 = vst [vmem:[#allocation44_spill] sm:$0xff] %v13587_v57 }
 0x336   : > { %v2771_v43 = vpop.f32.mrf.mxu2  ;;  %v4082_v52 = vpop.f32.mrf.mxu3 }
 0x337   : > { %v3038_v18 = vadd.f32 %v2771_v43, %v2072_v53  ;;  %v2074_v33 = vpop.f32.mrf.mxu1  ;;  %v4760_v53 = vrot.slane %v4758_v61, 1  ;;  %v12233_v61 = vld [vmem:[%s12600_s29 + $0x130] sm:$0xff] }
 0x338   : > { %v2075_v51 = vadd.f32 %v2074_v33, %v15997_v14  ;;  %v3676_v33 = vrot.slane %v12232_v3, 1 }
 0x339   : > { %v4349_v38 = vadd.f32 %v4082_v52, %v3038_v18  ;;  %v15999_v18 = vld [vmem:[#allocation55_spill] sm:$0xff] }
 0x33a   : > { %11075 = vmatmul.msk.bf16.gmra.mxu1 %vm1240_vm3, %v12403_v1 }
 0x33b   : > { %v5404_v11 = vpop.f32.mrf.mxu0  ;;  %11144 = vmatmul.msk.bf16.gmra.mxu2 %vm1240_vm3, %v2364_v12  ;;  %v13597_v26 = vadd.f32 %v5401_v58, %v4349_v38  ;;  %11481 = vmatmul.msk.bf16.gmra.mxu3 %vm1240_vm3, %v3675_v39  ;;  %v12405_v38 = vld [vmem:[%s12600_s29 + $0x118] sm:$0xff] }
 0x33c   : > { %v2365_v58 = vrot.slane %v12405_v38, 1 }
 0x33d   : > { %15996 = vst [vmem:[#allocation48_spill] sm:$0xff] %v13597_v26 }
 0x33e   : > { %11550 = vmatmul.msk.bf16.gmra.mxu0 %vm1240_vm3, %v4756_v19  ;;  %v2774_v40 = vpop.f32.mrf.mxu2  ;;  %v4085_v62 = vpop.f32.mrf.mxu3  ;;  %v2366_v26 = vsel %vm2295_vm4, %v2363_v60, %v2365_v58 }
 0x33f   : > { %v3039_v27 = vadd.f32 %v2774_v40, %v2075_v51  ;;  %v2076_v1 = vpop.f32.mrf.mxu1  ;;  %v4764_v51 = vor.u32 %v4763_v10, %v4760_v53  ;;  %v4767_v53 = vshrl.u32 %v12233_v61, 16  ;;  %v4770_v10 = vshll.u32 %v12233_v61, 16 }
 0x340   : > { %v2077_v52 = vadd.f32 %v2076_v1, %v15999_v18 }
 0x341   : > { %v4350_v54 = vadd.f32 %v4085_v62, %v3039_v27  ;;  %v3677_v27 = vsel %vm2295_vm4, %v3674_v16, %v3676_v33 }
 0x343   : > { %v5406_v12 = vpop.f32.mrf.mxu0  ;;  %v13602_v43 = vadd.f32 %v5404_v11, %v4350_v54  ;;  %v4765_v11 = vsel %vm4442_vm5, %v4755_v24, %v4764_v51  ;;  %v4772_v24 = vrot.slane %v4770_v10, 2  ;;  %v16005_v10 = vld [vmem:[#allocation64_spill] sm:$0xff] }
 0x345   : > { %15998 = vst [vmem:[#allocation52_spill] sm:$0xff] %v13602_v43 }
 0x346   : > { %v2776_v39 = vpop.f32.mrf.mxu2  ;;  %v4087_v14 = vpop.f32.mrf.mxu3 }
 0x347   : > { %v3040_v19 = vadd.f32 %v2776_v39, %v2077_v52  ;;  %v2079_v40 = vpop.f32.mrf.mxu1  ;;  %v4769_v52 = vrot.slane %v4767_v53, 1  ;;  %v12234_v53 = vld [vmem:[%s12600_s29 + $0x138] sm:$0xff] }
 0x348   : > { %v2080_v1 = vadd.f32 %v2079_v40, %v16001_v31  ;;  %v3678_v40 = vrot.slane %v12233_v61, 1 }
 0x349   : > { %v4351_v57 = vadd.f32 %v4087_v14, %v3040_v19  ;;  %v16003_v19 = vld [vmem:[#allocation61_spill] sm:$0xff] }
 0x34a   : > { %11076 = vmatmul.msk.bf16.gmra.mxu1 %vm1240_vm3, %v12404_v9 }
 0x34b   : > { %v5409_v62 = vpop.f32.mrf.mxu0  ;;  %11145 = vmatmul.msk.bf16.gmra.mxu2 %vm1240_vm3, %v2366_v26  ;;  %v13612_v3 = vadd.f32 %v5406_v12, %v4351_v57  ;;  %11482 = vmatmul.msk.bf16.gmra.mxu3 %vm1240_vm3, %v3677_v27  ;;  %v12406_v57 = vld [vmem:[%s12600_s29 + $0x120] sm:$0xff] }
 0x34c   : > { %v2367_v12 = vrot.slane %v12406_v57, 1 }
 0x34d   : > { %16000 = vst [vmem:[#allocation55_spill] sm:$0xff] %v13612_v3 }
 0x34e   : > { %11551 = vmatmul.msk.bf16.gmra.mxu0 %vm1240_vm3, %v4765_v11  ;;  %v2779_v60 = vpop.f32.mrf.mxu2  ;;  %v4090_v16 = vpop.f32.mrf.mxu3  ;;  %v2368_v3 = vsel %vm2295_vm4, %v2365_v58, %v2367_v12 }
 0x34f   : > { %v3041_v54 = vadd.f32 %v2779_v60, %v2080_v1  ;;  %v2081_v9 = vpop.f32.mrf.mxu1  ;;  %v4773_v1 = vor.u32 %v4772_v24, %v4769_v52  ;;  %v4776_v52 = vshrl.u32 %v12234_v53, 16  ;;  %v4779_v24 = vshll.u32 %v12234_v53, 16 }
 0x350   : > { %v2082_v14 = vadd.f32 %v2081_v9, %v16003_v19 }
 0x351   : > { %v4352_v18 = vadd.f32 %v4090_v16, %v3041_v54  ;;  %v3679_v54 = vsel %vm2295_vm4, %v3676_v33, %v3678_v40 }
 0x353   : > { %v5411_v26 = vpop.f32.mrf.mxu0  ;;  %v13617_v39 = vadd.f32 %v5409_v62, %v4352_v18  ;;  %v4774_v62 = vsel %vm4442_vm5, %v4764_v51, %v4773_v1  ;;  %v4781_v51 = vrot.slane %v4779_v24, 2  ;;  %v16009_v24 = vld [vmem:[#allocation70_spill] sm:$0xff] }
 0x355   : > { %16002 = vst [vmem:[#allocation58_spill] sm:$0xff] %v13617_v39 }
 0x356   : > { %v2781_v27 = vpop.f32.mrf.mxu2  ;;  %v4092_v31 = vpop.f32.mrf.mxu3 }
 0x357   : > { %v3042_v11 = vadd.f32 %v2781_v27, %v2082_v14  ;;  %v2084_v60 = vpop.f32.mrf.mxu1  ;;  %v4778_v14 = vrot.slane %v4776_v52, 1  ;;  %v12235_v52 = vld [vmem:[%s12600_s29 + $0x140] sm:$0xff] }
 0x358   : > { %v2085_v9 = vadd.f32 %v2084_v60, %v16005_v10  ;;  %v3680_v60 = vrot.slane %v12234_v53, 1 }
 0x359   : > { %v4353_v43 = vadd.f32 %v4092_v31, %v3042_v11  ;;  %v16007_v11 = vld [vmem:[#allocation67_spill] sm:$0xff] }
 0x35a   : > { %11077 = vmatmul.msk.bf16.gmra.mxu1 %vm1240_vm3, %v12405_v38 }
 0x35b   : > { %v5414_v16 = vpop.f32.mrf.mxu0  ;;  %11146 = vmatmul.msk.bf16.gmra.mxu2 %vm1240_vm3, %v2368_v3  ;;  %v13627_v61 = vadd.f32 %v5411_v26, %v4353_v43  ;;  %11483 = vmatmul.msk.bf16.gmra.mxu3 %vm1240_vm3, %v3679_v54  ;;  %v12407_v43 = vld [vmem:[%s12600_s29 + $0x128] sm:$0xff] }
 0x35c   : > { %v2369_v26 = vrot.slane %v12407_v43, 1 }
 0x35d   : > { %16004 = vst [vmem:[#allocation61_spill] sm:$0xff] %v13627_v61 }
 0x35e   : > { %11552 = vmatmul.msk.bf16.gmra.mxu0 %vm1240_vm3, %v4774_v62  ;;  %v2784_v58 = vpop.f32.mrf.mxu2  ;;  %v4095_v33 = vpop.f32.mrf.mxu3  ;;  %v2370_v61 = vsel %vm2295_vm4, %v2367_v12, %v2369_v26 }
 0x35f   : > { %v3043_v18 = vadd.f32 %v2784_v58, %v2085_v9  ;;  %v2086_v38 = vpop.f32.mrf.mxu1  ;;  %v4782_v9 = vor.u32 %v4781_v51, %v4778_v14  ;;  %v4785_v14 = vshrl.u32 %v12235_v52, 16  ;;  %v4788_v51 = vshll.u32 %v12235_v52, 16 }
 0x360   : > { %v2087_v31 = vadd.f32 %v2086_v38, %v16007_v11 }
 0x361   : > { %v4354_v19 = vadd.f32 %v4095_v33, %v3043_v18  ;;  %v3681_v18 = vsel %vm2295_vm4, %v3678_v40, %v3680_v60 }
 0x363   : > { %v5416_v3 = vpop.f32.mrf.mxu0  ;;  %v13632_v27 = vadd.f32 %v5414_v16, %v4354_v19  ;;  %v4783_v16 = vsel %vm4442_vm5, %v4773_v1, %v4782_v9  ;;  %v4790_v1 = vrot.slane %v4788_v51, 2  ;;  %v16013_v51 = vld [vmem:[#allocation76_spill] sm:$0xff] }
 0x365   : > { %16006 = vst [vmem:[#allocation64_spill] sm:$0xff] %v13632_v27 }
 0x366   : > { %v2786_v54 = vpop.f32.mrf.mxu2  ;;  %v4097_v10 = vpop.f32.mrf.mxu3 }
 0x367   : > { %v3044_v62 = vadd.f32 %v2786_v54, %v2087_v31  ;;  %v2089_v58 = vpop.f32.mrf.mxu1  ;;  %v4787_v31 = vrot.slane %v4785_v14, 1  ;;  %v12236_v14 = vld [vmem:[%s12600_s29 + $0x148] sm:$0xff] }
 0x368   : > { %v2090_v38 = vadd.f32 %v2089_v58, %v16009_v24  ;;  %v3682_v58 = vrot.slane %v12235_v52, 1 }
 0x369   : > { %v4355_v39 = vadd.f32 %v4097_v10, %v3044_v62  ;;  %v16011_v62 = vld [vmem:[#allocation73_spill] sm:$0xff] }
 0x36a   : > { %11078 = vmatmul.msk.bf16.gmra.mxu1 %vm1240_vm3, %v12406_v57 }
 0x36b   : > { %v5419_v33 = vpop.f32.mrf.mxu0  ;;  %11147 = vmatmul.msk.bf16.gmra.mxu2 %vm1240_vm3, %v2370_v61  ;;  %v13642_v53 = vadd.f32 %v5416_v3, %v4355_v39  ;;  %11484 = vmatmul.msk.bf16.gmra.mxu3 %vm1240_vm3, %v3681_v18  ;;  %v12408_v39 = vld [vmem:[%s12600_s29 + $0x130] sm:$0xff] }
 0x36c   : > { %v2371_v3 = vrot.slane %v12408_v39, 1 }
 0x36d   : > { %16008 = vst [vmem:[#allocation67_spill] sm:$0xff] %v13642_v53 }
 0x36e   : > { %11553 = vmatmul.msk.bf16.gmra.mxu0 %vm1240_vm3, %v4783_v16  ;;  %v2789_v12 = vpop.f32.mrf.mxu2  ;;  %v4100_v40 = vpop.f32.mrf.mxu3  ;;  %v2372_v53 = vsel %vm2295_vm4, %v2369_v26, %v2371_v3 }
 0x36f   : > { %v3045_v19 = vadd.f32 %v2789_v12, %v2090_v38  ;;  %v2091_v57 = vpop.f32.mrf.mxu1  ;;  %v4791_v38 = vor.u32 %v4790_v1, %v4787_v31  ;;  %v4794_v31 = vshrl.u32 %v12236_v14, 16  ;;  %v4797_v1 = vshll.u32 %v12236_v14, 16 }
 0x370   : > { %v2092_v10 = vadd.f32 %v2091_v57, %v16011_v62 }
 0x371   : > { %v4356_v11 = vadd.f32 %v4100_v40, %v3045_v19  ;;  %v3683_v19 = vsel %vm2295_vm4, %v3680_v60, %v3682_v58 }
 0x373   : > { %v5421_v61 = vpop.f32.mrf.mxu0  ;;  %v13647_v54 = vadd.f32 %v5419_v33, %v4356_v11  ;;  %v4792_v33 = vsel %vm4442_vm5, %v4782_v9, %v4791_v38  ;;  %v4799_v9 = vrot.slane %v4797_v1, 2  ;;  %v16017_v1 = vld [vmem:[#allocation82_spill] sm:$0xff] }
 0x375   : > { %16010 = vst [vmem:[#allocation70_spill] sm:$0xff] %v13647_v54 }
 0x376   : > { %v2791_v18 = vpop.f32.mrf.mxu2  ;;  %v4102_v24 = vpop.f32.mrf.mxu3 }
 0x377   : > { %v3046_v16 = vadd.f32 %v2791_v18, %v2092_v10  ;;  %v2094_v12 = vpop.f32.mrf.mxu1  ;;  %v4796_v10 = vrot.slane %v4794_v31, 1  ;;  %v12237_v31 = vld [vmem:[%s12600_s29 + $0x150] sm:$0xff] }
 0x378   : > { %v2095_v57 = vadd.f32 %v2094_v12, %v16013_v51  ;;  %v3684_v12 = vrot.slane %v12236_v14, 1 }
 0x379   : > { %v4357_v27 = vadd.f32 %v4102_v24, %v3046_v16  ;;  %v16015_v16 = vld [vmem:[#allocation79_spill] sm:$0xff] }
 0x37a   : > { %11079 = vmatmul.msk.bf16.gmra.mxu1 %vm1240_vm3, %v12407_v43 }
 0x37b   : > { %v5424_v40 = vpop.f32.mrf.mxu0  ;;  %11148 = vmatmul.msk.bf16.gmra.mxu2 %vm1240_vm3, %v2372_v53  ;;  %v13657_v52 = vadd.f32 %v5421_v61, %v4357_v27  ;;  %11485 = vmatmul.msk.bf16.gmra.mxu3 %vm1240_vm3, %v3683_v19  ;;  %v12409_v27 = vld [vmem:[%s12600_s29 + $0x138] sm:$0xff] }
 0x37c   : > { %v2373_v61 = vrot.slane %v12409_v27, 1 }
 0x37d   : > { %16012 = vst [vmem:[#allocation73_spill] sm:$0xff] %v13657_v52 }
 0x37e   : > { %11554 = vmatmul.msk.bf16.gmra.mxu0 %vm1240_vm3, %v4792_v33  ;;  %v2794_v26 = vpop.f32.mrf.mxu2  ;;  %v4105_v60 = vpop.f32.mrf.mxu3  ;;  %v2374_v52 = vsel %vm2295_vm4, %v2371_v3, %v2373_v61 }
 0x37f   : > { %v3047_v11 = vadd.f32 %v2794_v26, %v2095_v57  ;;  %v2096_v43 = vpop.f32.mrf.mxu1  ;;  %v4800_v57 = vor.u32 %v4799_v9, %v4796_v10  ;;  %v4803_v10 = vshrl.u32 %v12237_v31, 16  ;;  %v4806_v9 = vshll.u32 %v12237_v31, 16 }
 0x380   : > { %v2097_v24 = vadd.f32 %v2096_v43, %v16015_v16 }
 0x381   : > { %v4358_v62 = vadd.f32 %v4105_v60, %v3047_v11  ;;  %v3685_v11 = vsel %vm2295_vm4, %v3682_v58, %v3684_v12 }
 0x383   : > { %v5426_v53 = vpop.f32.mrf.mxu0  ;;  %v13662_v18 = vadd.f32 %v5424_v40, %v4358_v62  ;;  %v4801_v40 = vsel %vm4442_vm5, %v4791_v38, %v4800_v57  ;;  %v4808_v38 = vrot.slane %v4806_v9, 2  ;;  %v16021_v9 = vld [vmem:[#allocation88_spill] sm:$0xff] }
 0x385   : > { %16014 = vst [vmem:[#allocation76_spill] sm:$0xff] %v13662_v18 }
 0x386   : > { %v2796_v19 = vpop.f32.mrf.mxu2  ;;  %v4107_v51 = vpop.f32.mrf.mxu3 }
 0x387   : > { %v3048_v33 = vadd.f32 %v2796_v19, %v2097_v24  ;;  %v2099_v26 = vpop.f32.mrf.mxu1  ;;  %v4805_v24 = vrot.slane %v4803_v10, 1  ;;  %v12238_v10 = vld [vmem:[%s12600_s29 + $0x158] sm:$0xff] }
 0x388   : > { %v2100_v43 = vadd.f32 %v2099_v26, %v16017_v1  ;;  %v3686_v26 = vrot.slane %v12237_v31, 1 }
 0x389   : > { %v4359_v54 = vadd.f32 %v4107_v51, %v3048_v33  ;;  %v16019_v33 = vld [vmem:[#allocation85_spill] sm:$0xff] }
 0x38a   : > { %11080 = vmatmul.msk.bf16.gmra.mxu1 %vm1240_vm3, %v12408_v39 }
 0x38b   : > { %v5429_v60 = vpop.f32.mrf.mxu0  ;;  %11149 = vmatmul.msk.bf16.gmra.mxu2 %vm1240_vm3, %v2374_v52  ;;  %v13672_v14 = vadd.f32 %v5426_v53, %v4359_v54  ;;  %11486 = vmatmul.msk.bf16.gmra.mxu3 %vm1240_vm3, %v3685_v11  ;;  %v12410_v54 = vld [vmem:[%s12600_s29 + $0x140] sm:$0xff] }
 0x38c   : > { %v2375_v53 = vrot.slane %v12410_v54, 1 }
 0x38d   : > { %16016 = vst [vmem:[#allocation79_spill] sm:$0xff] %v13672_v14 }
 0x38e   : > { %11555 = vmatmul.msk.bf16.gmra.mxu0 %vm1240_vm3, %v4801_v40  ;;  %v2799_v3 = vpop.f32.mrf.mxu2  ;;  %v4110_v58 = vpop.f32.mrf.mxu3  ;;  %v2376_v14 = vsel %vm2295_vm4, %v2373_v61, %v2375_v53 }
 0x38f   : > { %v3049_v62 = vadd.f32 %v2799_v3, %v2100_v43  ;;  %v2101_v39 = vpop.f32.mrf.mxu1  ;;  %v4809_v43 = vor.u32 %v4808_v38, %v4805_v24  ;;  %v4812_v24 = vshrl.u32 %v12238_v10, 16  ;;  %v4815_v38 = vshll.u32 %v12238_v10, 16 }
 0x390   : > { %v2102_v51 = vadd.f32 %v2101_v39, %v16019_v33 }
 0x391   : > { %v4360_v16 = vadd.f32 %v4110_v58, %v3049_v62  ;;  %v3687_v62 = vsel %vm2295_vm4, %v3684_v12, %v3686_v26 }
 0x393   : > { %v5431_v52 = vpop.f32.mrf.mxu0  ;;  %v13677_v19 = vadd.f32 %v5429_v60, %v4360_v16  ;;  %v4810_v60 = vsel %vm4442_vm5, %v4800_v57, %v4809_v43  ;;  %v4817_v57 = vrot.slane %v4815_v38, 2  ;;  %v16025_v38 = vld [vmem:[#allocation94_spill] sm:$0xff] }
 0x395   : > { %16018 = vst [vmem:[#allocation82_spill] sm:$0xff] %v13677_v19 }
 0x396   : > { %v2801_v11 = vpop.f32.mrf.mxu2  ;;  %v4112_v1 = vpop.f32.mrf.mxu3 }
 0x397   : > { %v3050_v40 = vadd.f32 %v2801_v11, %v2102_v51  ;;  %v2104_v3 = vpop.f32.mrf.mxu1  ;;  %v4814_v51 = vrot.slane %v4812_v24, 1  ;;  %v12239_v24 = vld [vmem:[%s12600_s29 + $0x160] sm:$0xff] }
 0x398   : > { %v2105_v39 = vadd.f32 %v2104_v3, %v16021_v9  ;;  %v3688_v3 = vrot.slane %v12238_v10, 1 }
 0x399   : > { %v4361_v18 = vadd.f32 %v4112_v1, %v3050_v40  ;;  %v16023_v40 = vld [vmem:[#allocation91_spill] sm:$0xff] }
 0x39a   : > { %11081 = vmatmul.msk.bf16.gmra.mxu1 %vm1240_vm3, %v12409_v27 }
 0x39b   : > { %v5434_v58 = vpop.f32.mrf.mxu0  ;;  %11150 = vmatmul.msk.bf16.gmra.mxu2 %vm1240_vm3, %v2376_v14  ;;  %v13687_v31 = vadd.f32 %v5431_v52, %v4361_v18  ;;  %11487 = vmatmul.msk.bf16.gmra.mxu3 %vm1240_vm3, %v3687_v62  ;;  %v12411_v18 = vld [vmem:[%s12600_s29 + $0x148] sm:$0xff] }
 0x39c   : > { %v2377_v52 = vrot.slane %v12411_v18, 1 }
 0x39d   : > { %16020 = vst [vmem:[#allocation85_spill] sm:$0xff] %v13687_v31 }
 0x39e   : > { %11556 = vmatmul.msk.bf16.gmra.mxu0 %vm1240_vm3, %v4810_v60  ;;  %v2804_v61 = vpop.f32.mrf.mxu2  ;;  %v4115_v12 = vpop.f32.mrf.mxu3  ;;  %v2378_v31 = vsel %vm2295_vm4, %v2375_v53, %v2377_v52 }
 0x39f   : > { %v3051_v16 = vadd.f32 %v2804_v61, %v2105_v39  ;;  %v2106_v27 = vpop.f32.mrf.mxu1  ;;  %v4818_v39 = vor.u32 %v4817_v57, %v4814_v51  ;;  %v4821_v51 = vshrl.u32 %v12239_v24, 16  ;;  %v4824_v57 = vshll.u32 %v12239_v24, 16 }
 0x3a0   : > { %v2107_v1 = vadd.f32 %v2106_v27, %v16023_v40 }
 0x3a1   : > { %v4362_v33 = vadd.f32 %v4115_v12, %v3051_v16  ;;  %v3689_v16 = vsel %vm2295_vm4, %v3686_v26, %v3688_v3 }
 0x3a3   : > { %v5436_v14 = vpop.f32.mrf.mxu0  ;;  %v13692_v11 = vadd.f32 %v5434_v58, %v4362_v33  ;;  %v4819_v58 = vsel %vm4442_vm5, %v4809_v43, %v4818_v39  ;;  %v4826_v43 = vrot.slane %v4824_v57, 2  ;;  %v16029_v57 = vld [vmem:[#allocation100_spill] sm:$0xff] }
 0x3a5   : > { %16022 = vst [vmem:[#allocation88_spill] sm:$0xff] %v13692_v11 }
 0x3a6   : > { %v2806_v62 = vpop.f32.mrf.mxu2  ;;  %v4117_v9 = vpop.f32.mrf.mxu3 }
 0x3a7   : > { %v3052_v60 = vadd.f32 %v2806_v62, %v2107_v1  ;;  %v2109_v61 = vpop.f32.mrf.mxu1  ;;  %v4823_v1 = vrot.slane %v4821_v51, 1  ;;  %v12240_v51 = vld [vmem:[%s12600_s29 + $0x168] sm:$0xff] }
 0x3a8   : > { %v2110_v27 = vadd.f32 %v2109_v61, %v16025_v38  ;;  %v3690_v61 = vrot.slane %v12239_v24, 1 }
 0x3a9   : > { %v4363_v19 = vadd.f32 %v4117_v9, %v3052_v60  ;;  %v16027_v60 = vld [vmem:[#allocation97_spill] sm:$0xff] }
 0x3aa   : > { %11082 = vmatmul.msk.bf16.gmra.mxu1 %vm1240_vm3, %v12410_v54 }
 0x3ab   : > { %v5439_v12 = vpop.f32.mrf.mxu0  ;;  %11151 = vmatmul.msk.bf16.gmra.mxu2 %vm1240_vm3, %v2378_v31  ;;  %v13702_v10 = vadd.f32 %v5436_v14, %v4363_v19  ;;  %11488 = vmatmul.msk.bf16.gmra.mxu3 %vm1240_vm3, %v3689_v16  ;;  %v12412_v19 = vld [vmem:[%s12600_s29 + $0x150] sm:$0xff] }
 0x3ac   : > { %v2379_v14 = vrot.slane %v12412_v19, 1 }
 0x3ad   : > { %16024 = vst [vmem:[#allocation91_spill] sm:$0xff] %v13702_v10 }
 0x3ae   : > { %11557 = vmatmul.msk.bf16.gmra.mxu0 %vm1240_vm3, %v4819_v58  ;;  %v2809_v53 = vpop.f32.mrf.mxu2  ;;  %v4120_v26 = vpop.f32.mrf.mxu3  ;;  %v2380_v10 = vsel %vm2295_vm4, %v2377_v52, %v2379_v14 }
 0x3af   : > { %v3053_v33 = vadd.f32 %v2809_v53, %v2110_v27  ;;  %v2111_v54 = vpop.f32.mrf.mxu1  ;;  %v4827_v27 = vor.u32 %v4826_v43, %v4823_v1  ;;  %v4830_v1 = vshrl.u32 %v12240_v51, 16  ;;  %v4833_v43 = vshll.u32 %v12240_v51, 16 }
 0x3b0   : > { %v2112_v9 = vadd.f32 %v2111_v54, %v16027_v60 }
 0x3b1   : > { %v4364_v40 = vadd.f32 %v4120_v26, %v3053_v33  ;;  %v3691_v33 = vsel %vm2295_vm4, %v3688_v3, %v3690_v61 }
 0x3b3   : > { %v5441_v31 = vpop.f32.mrf.mxu0  ;;  %v13707_v62 = vadd.f32 %v5439_v12, %v4364_v40  ;;  %v4828_v12 = vsel %vm4442_vm5, %v4818_v39, %v4827_v27  ;;  %v4835_v39 = vrot.slane %v4833_v43, 2  ;;  %v16033_v43 = vld [vmem:[#allocation3_spill] sm:$0xff] }
 0x3b5   : > { %16026 = vst [vmem:[#allocation94_spill] sm:$0xff] %v13707_v62 }
 0x3b6   : > { %v2811_v16 = vpop.f32.mrf.mxu2  ;;  %v4122_v38 = vpop.f32.mrf.mxu3 }
 0x3b7   : > { %v3054_v58 = vadd.f32 %v2811_v16, %v2112_v9  ;;  %v2114_v53 = vpop.f32.mrf.mxu1  ;;  %v4832_v9 = vrot.slane %v4830_v1, 1  ;;  %v12241_v1 = vld [vmem:[%s12600_s29 + $0x170] sm:$0xff] }
 0x3b8   : > { %v2115_v54 = vadd.f32 %v2114_v53, %v16029_v57  ;;  %v3692_v53 = vrot.slane %v12240_v51, 1 }
 0x3b9   : > { %v4365_v11 = vadd.f32 %v4122_v38, %v3054_v58  ;;  %v16031_v58 = vld [vmem:[#allocation103_spill] sm:$0xff] }
 0x3ba   : > { %11083 = vmatmul.msk.bf16.gmra.mxu1 %vm1240_vm3, %v12411_v18 }
 0x3bb   : > { %v5444_v26 = vpop.f32.mrf.mxu0  ;;  %11152 = vmatmul.msk.bf16.gmra.mxu2 %vm1240_vm3, %v2380_v10  ;;  %v13717_v24 = vadd.f32 %v5441_v31, %v4365_v11  ;;  %11489 = vmatmul.msk.bf16.gmra.mxu3 %vm1240_vm3, %v3691_v33  ;;  %v12413_v11 = vld [vmem:[%s12600_s29 + $0x158] sm:$0xff] }
 0x3bc   : > { %v2381_v31 = vrot.slane %v12413_v11, 1 }
 0x3bd   : > { %16028 = vst [vmem:[#allocation97_spill] sm:$0xff] %v13717_v24 }
 0x3be   : > { %11558 = vmatmul.msk.bf16.gmra.mxu0 %vm1240_vm3, %v4828_v12  ;;  %v2814_v52 = vpop.f32.mrf.mxu2  ;;  %v4125_v3 = vpop.f32.mrf.mxu3  ;;  %v2382_v24 = vsel %vm2295_vm4, %v2379_v14, %v2381_v31 }
 0x3bf   : > { %v3055_v40 = vadd.f32 %v2814_v52, %v2115_v54  ;;  %v2116_v18 = vpop.f32.mrf.mxu1  ;;  %v4836_v54 = vor.u32 %v4835_v39, %v4832_v9  ;;  %v4839_v9 = vshrl.u32 %v12241_v1, 16  ;;  %v4842_v39 = vshll.u32 %v12241_v1, 16 }
 0x3c0   : > { %v2117_v38 = vadd.f32 %v2116_v18, %v16031_v58 }
 0x3c1   : > { %v4366_v60 = vadd.f32 %v4125_v3, %v3055_v40  ;;  %v3693_v40 = vsel %vm2295_vm4, %v3690_v61, %v3692_v53 }
 0x3c3   : > { %v5446_v10 = vpop.f32.mrf.mxu0  ;;  %v13722_v16 = vadd.f32 %v5444_v26, %v4366_v60  ;;  %v4837_v26 = vsel %vm4442_vm5, %v4827_v27, %v4836_v54  ;;  %v4844_v27 = vrot.slane %v4842_v39, 2  ;;  %v16037_v39 = vld [vmem:[#allocation9_spill] sm:$0xff] }
 0x3c5   : > { %16030 = vst [vmem:[#allocation100_spill] sm:$0xff] %v13722_v16 }
 0x3c6   : > { %v2816_v33 = vpop.f32.mrf.mxu2  ;;  %v4127_v57 = vpop.f32.mrf.mxu3 }
 0x3c7   : > { %v3056_v12 = vadd.f32 %v2816_v33, %v2117_v38  ;;  %v2119_v52 = vpop.f32.mrf.mxu1  ;;  %v4841_v38 = vrot.slane %v4839_v9, 1  ;;  %v12242_v9 = vld [vmem:[%s12600_s29 + $0x178] sm:$0xff] }
 0x3c8   : > { %v2120_v18 = vadd.f32 %v2119_v52, %v16033_v43  ;;  %v3694_v52 = vrot.slane %v12241_v1, 1 }
 0x3c9   : > { %v4367_v62 = vadd.f32 %v4127_v57, %v3056_v12  ;;  %v16035_v12 = vld [vmem:[#allocation6_spill] sm:$0xff] }
 0x3ca   : > { %11084 = vmatmul.msk.bf16.gmra.mxu1 %vm1240_vm3, %v12412_v19 }
 0x3cb   : > { %v5449_v3 = vpop.f32.mrf.mxu0  ;;  %11153 = vmatmul.msk.bf16.gmra.mxu2 %vm1240_vm3, %v2382_v24  ;;  %v13732_v51 = vadd.f32 %v5446_v10, %v4367_v62  ;;  %11490 = vmatmul.msk.bf16.gmra.mxu3 %vm1240_vm3, %v3693_v40  ;;  %v12414_v62 = vld [vmem:[%s12600_s29 + $0x160] sm:$0xff] }
 0x3cc   : > { %v2383_v10 = vrot.slane %v12414_v62, 1 }
 0x3cd   : > { %16032 = vst [vmem:[#allocation103_spill] sm:$0xff] %v13732_v51 }
 0x3ce   : > { %11559 = vmatmul.msk.bf16.gmra.mxu0 %vm1240_vm3, %v4837_v26  ;;  %v2819_v14 = vpop.f32.mrf.mxu2  ;;  %v4130_v61 = vpop.f32.mrf.mxu3  ;;  %v2384_v51 = vsel %vm2295_vm4, %v2381_v31, %v2383_v10 }
 0x3cf   : > { %v3057_v60 = vadd.f32 %v2819_v14, %v2120_v18  ;;  %v2121_v19 = vpop.f32.mrf.mxu1  ;;  %v4845_v18 = vor.u32 %v4844_v27, %v4841_v38  ;;  %v4848_v38 = vshrl.u32 %v12242_v9, 16  ;;  %v4851_v27 = vshll.u32 %v12242_v9, 16 }
 0x3d0   : > { %v2122_v57 = vadd.f32 %v2121_v19, %v16035_v12 }
 0x3d1   : > { %v4368_v58 = vadd.f32 %v4130_v61, %v3057_v60  ;;  %v3695_v60 = vsel %vm2295_vm4, %v3692_v53, %v3694_v52 }
 0x3d3   : > { %v5451_v24 = vpop.f32.mrf.mxu0  ;;  %v13737_v33 = vadd.f32 %v5449_v3, %v4368_v58  ;;  %v4846_v3 = vsel %vm4442_vm5, %v4836_v54, %v4845_v18  ;;  %v4853_v54 = vrot.slane %v4851_v27, 2  ;;  %v16041_v27 = vld [vmem:[#allocation15_spill] sm:$0xff] }
 0x3d5   : > { %16034 = vst [vmem:[#allocation3_spill] sm:$0xff] %v13737_v33 }
 0x3d6   : > { %v2821_v40 = vpop.f32.mrf.mxu2  ;;  %v4132_v43 = vpop.f32.mrf.mxu3 }
 0x3d7   : > { %v3058_v26 = vadd.f32 %v2821_v40, %v2122_v57  ;;  %v2124_v14 = vpop.f32.mrf.mxu1  ;;  %v4850_v57 = vrot.slane %v4848_v38, 1  ;;  %v12243_v38 = vld [vmem:[%s12600_s29 + $0x180] sm:$0xff] }
 0x3d8   : > { %v2125_v19 = vadd.f32 %v2124_v14, %v16037_v39  ;;  %v3696_v14 = vrot.slane %v12242_v9, 1 }
 0x3d9   : > { %v4369_v16 = vadd.f32 %v4132_v43, %v3058_v26  ;;  %v16039_v26 = vld [vmem:[#allocation12_spill] sm:$0xff] }
 0x3da   : > { %11085 = vmatmul.msk.bf16.gmra.mxu1 %vm1240_vm3, %v12413_v11 }
 0x3db   : > { %v5454_v61 = vpop.f32.mrf.mxu0  ;;  %11154 = vmatmul.msk.bf16.gmra.mxu2 %vm1240_vm3, %v2384_v51  ;;  %v13747_v1 = vadd.f32 %v5451_v24, %v4369_v16  ;;  %11491 = vmatmul.msk.bf16.gmra.mxu3 %vm1240_vm3, %v3695_v60  ;;  %v12415_v16 = vld [vmem:[%s12600_s29 + $0x168] sm:$0xff] }
 0x3dc   : > { %v2385_v24 = vrot.slane %v12415_v16, 1 }
 0x3dd   : > { %16036 = vst [vmem:[#allocation6_spill] sm:$0xff] %v13747_v1 }
 0x3de   : > { %11560 = vmatmul.msk.bf16.gmra.mxu0 %vm1240_vm3, %v4846_v3  ;;  %v2824_v31 = vpop.f32.mrf.mxu2  ;;  %v4135_v53 = vpop.f32.mrf.mxu3  ;;  %v2386_v1 = vsel %vm2295_vm4, %v2383_v10, %v2385_v24 }
 0x3df   : > { %v3059_v58 = vadd.f32 %v2824_v31, %v2125_v19  ;;  %v2126_v11 = vpop.f32.mrf.mxu1  ;;  %v4854_v19 = vor.u32 %v4853_v54, %v4850_v57  ;;  %v4857_v57 = vshrl.u32 %v12243_v38, 16  ;;  %v4860_v54 = vshll.u32 %v12243_v38, 16 }
 0x3e0   : > { %v2127_v43 = vadd.f32 %v2126_v11, %v16039_v26 }
 0x3e1   : > { %v4370_v12 = vadd.f32 %v4135_v53, %v3059_v58  ;;  %v3697_v58 = vsel %vm2295_vm4, %v3694_v52, %v3696_v14 }
 0x3e3   : > { %v5456_v51 = vpop.f32.mrf.mxu0  ;;  %v13752_v40 = vadd.f32 %v5454_v61, %v4370_v12  ;;  %v4855_v61 = vsel %vm4442_vm5, %v4845_v18, %v4854_v19  ;;  %v4862_v18 = vrot.slane %v4860_v54, 2  ;;  %v16045_v54 = vld [vmem:[#allocation21_spill] sm:$0xff] }
 0x3e5   : > { %16038 = vst [vmem:[#allocation9_spill] sm:$0xff] %v13752_v40 }
 0x3e6   : > { %v2826_v60 = vpop.f32.mrf.mxu2  ;;  %v4137_v39 = vpop.f32.mrf.mxu3 }
 0x3e7   : > { %v3060_v3 = vadd.f32 %v2826_v60, %v2127_v43  ;;  %v2129_v31 = vpop.f32.mrf.mxu1  ;;  %v4859_v43 = vrot.slane %v4857_v57, 1  ;;  %v12244_v57 = vld [vmem:[%s12600_s29 + $0x188] sm:$0xff] }
 0x3e8   : > { %v2130_v11 = vadd.f32 %v2129_v31, %v16041_v27  ;;  %v3698_v31 = vrot.slane %v12243_v38, 1 }
 0x3e9   : > { %v4371_v33 = vadd.f32 %v4137_v39, %v3060_v3  ;;  %v16043_v3 = vld [vmem:[#allocation18_spill] sm:$0xff] }
 0x3ea   : > { %11086 = vmatmul.msk.bf16.gmra.mxu1 %vm1240_vm3, %v12414_v62 }
 0x3eb   : > { %v5459_v53 = vpop.f32.mrf.mxu0  ;;  %11155 = vmatmul.msk.bf16.gmra.mxu2 %vm1240_vm3, %v2386_v1  ;;  %v13762_v9 = vadd.f32 %v5456_v51, %v4371_v33  ;;  %11492 = vmatmul.msk.bf16.gmra.mxu3 %vm1240_vm3, %v3697_v58  ;;  %v12416_v33 = vld [vmem:[%s12600_s29 + $0x170] sm:$0xff] }
 0x3ec   : > { %v2387_v51 = vrot.slane %v12416_v33, 1 }
 0x3ed   : > { %16040 = vst [vmem:[#allocation12_spill] sm:$0xff] %v13762_v9 }
 0x3ee   : > { %11561 = vmatmul.msk.bf16.gmra.mxu0 %vm1240_vm3, %v4855_v61  ;;  %v2829_v10 = vpop.f32.mrf.mxu2  ;;  %v4140_v52 = vpop.f32.mrf.mxu3  ;;  %v2388_v9 = vsel %vm2295_vm4, %v2385_v24, %v2387_v51 }
 0x3ef   : > { %v3061_v12 = vadd.f32 %v2829_v10, %v2130_v11  ;;  %v2131_v62 = vpop.f32.mrf.mxu1  ;;  %v4863_v11 = vor.u32 %v4862_v18, %v4859_v43  ;;  %v4866_v43 = vshrl.u32 %v12244_v57, 16  ;;  %v4869_v18 = vshll.u32 %v12244_v57, 16 }
 0x3f0   : > { %v2132_v39 = vadd.f32 %v2131_v62, %v16043_v3 }
 0x3f1   : > { %v4372_v26 = vadd.f32 %v4140_v52, %v3061_v12  ;;  %v3699_v12 = vsel %vm2295_vm4, %v3696_v14, %v3698_v31 }
 0x3f3   : > { %v5461_v1 = vpop.f32.mrf.mxu0  ;;  %v13767_v60 = vadd.f32 %v5459_v53, %v4372_v26  ;;  %v4864_v53 = vsel %vm4442_vm5, %v4854_v19, %v4863_v11  ;;  %v4871_v19 = vrot.slane %v4869_v18, 2  ;;  %v16049_v18 = vld [vmem:[#allocation27_spill] sm:$0xff] }
 0x3f5   : > { %16042 = vst [vmem:[#allocation15_spill] sm:$0xff] %v13767_v60 }
 0x3f6   : > { %v2831_v58 = vpop.f32.mrf.mxu2  ;;  %v4142_v27 = vpop.f32.mrf.mxu3 }
 0x3f7   : > { %v3062_v61 = vadd.f32 %v2831_v58, %v2132_v39  ;;  %v2134_v10 = vpop.f32.mrf.mxu1  ;;  %v4868_v39 = vrot.slane %v4866_v43, 1  ;;  %v12245_v43 = vld [vmem:[%s12600_s29 + $0x190] sm:$0xff] }
 0x3f8   : > { %v2135_v62 = vadd.f32 %v2134_v10, %v16045_v54  ;;  %v3700_v10 = vrot.slane %v12244_v57, 1 }
 0x3f9   : > { %v4373_v40 = vadd.f32 %v4142_v27, %v3062_v61  ;;  %v16047_v61 = vld [vmem:[#allocation24_spill] sm:$0xff] }
 0x3fa   : > { %11087 = vmatmul.msk.bf16.gmra.mxu1 %vm1240_vm3, %v12415_v16 }
 0x3fb   : > { %v5464_v52 = vpop.f32.mrf.mxu0  ;;  %11156 = vmatmul.msk.bf16.gmra.mxu2 %vm1240_vm3, %v2388_v9  ;;  %v13777_v38 = vadd.f32 %v5461_v1, %v4373_v40  ;;  %11493 = vmatmul.msk.bf16.gmra.mxu3 %vm1240_vm3, %v3699_v12  ;;  %v12417_v40 = vld [vmem:[%s12600_s29 + $0x178] sm:$0xff] }
 0x3fc   : > { %v2389_v1 = vrot.slane %v12417_v40, 1 }
 0x3fd   : > { %16044 = vst [vmem:[#allocation18_spill] sm:$0xff] %v13777_v38 }
 0x3fe   : > { %11562 = vmatmul.msk.bf16.gmra.mxu0 %vm1240_vm3, %v4864_v53  ;;  %v2834_v24 = vpop.f32.mrf.mxu2  ;;  %v4145_v14 = vpop.f32.mrf.mxu3  ;;  %v2390_v38 = vsel %vm2295_vm4, %v2387_v51, %v2389_v1 }
 0x3ff   : > { %v3063_v26 = vadd.f32 %v2834_v24, %v2135_v62  ;;  %v2136_v16 = vpop.f32.mrf.mxu1  ;;  %v4872_v62 = vor.u32 %v4871_v19, %v4868_v39  ;;  %v4875_v39 = vshrl.u32 %v12245_v43, 16  ;;  %v4878_v19 = vshll.u32 %v12245_v43, 16 }
 0x400   : > { %v2137_v27 = vadd.f32 %v2136_v16, %v16047_v61 }
 0x401   : > { %v4374_v3 = vadd.f32 %v4145_v14, %v3063_v26  ;;  %v3701_v26 = vsel %vm2295_vm4, %v3698_v31, %v3700_v10 }
 0x403   : > { %v5466_v9 = vpop.f32.mrf.mxu0  ;;  %v13782_v58 = vadd.f32 %v5464_v52, %v4374_v3  ;;  %v4873_v52 = vsel %vm4442_vm5, %v4863_v11, %v4872_v62  ;;  %v4880_v11 = vrot.slane %v4878_v19, 2  ;;  %v16053_v19 = vld [vmem:[#allocation33_spill] sm:$0xff] }
 0x405   : > { %16046 = vst [vmem:[#allocation21_spill] sm:$0xff] %v13782_v58 }
 0x406   : > { %v2836_v12 = vpop.f32.mrf.mxu2  ;;  %v4147_v54 = vpop.f32.mrf.mxu3 }
 0x407   : > { %v3064_v53 = vadd.f32 %v2836_v12, %v2137_v27  ;;  %v2139_v24 = vpop.f32.mrf.mxu1  ;;  %v4877_v27 = vrot.slane %v4875_v39, 1  ;;  %v12246_v39 = vld [vmem:[%s12600_s29 + $0x198] sm:$0xff] }
 0x408   : > { %v2140_v16 = vadd.f32 %v2139_v24, %v16049_v18  ;;  %v3702_v24 = vrot.slane %v12245_v43, 1 }
 0x409   : > { %v4375_v60 = vadd.f32 %v4147_v54, %v3064_v53  ;;  %v16051_v53 = vld [vmem:[#allocation30_spill] sm:$0xff] }
 0x40a   : > { %11088 = vmatmul.msk.bf16.gmra.mxu1 %vm1240_vm3, %v12416_v33 }
 0x40b   : > { %v5469_v14 = vpop.f32.mrf.mxu0  ;;  %11157 = vmatmul.msk.bf16.gmra.mxu2 %vm1240_vm3, %v2390_v38  ;;  %v13792_v57 = vadd.f32 %v5466_v9, %v4375_v60  ;;  %11494 = vmatmul.msk.bf16.gmra.mxu3 %vm1240_vm3, %v3701_v26  ;;  %v12418_v60 = vld [vmem:[%s12600_s29 + $0x180] sm:$0xff] }
 0x40c   : > { %v2391_v9 = vrot.slane %v12418_v60, 1 }
 0x40d   : > { %16048 = vst [vmem:[#allocation24_spill] sm:$0xff] %v13792_v57 }
 0x40e   : > { %11563 = vmatmul.msk.bf16.gmra.mxu0 %vm1240_vm3, %v4873_v52  ;;  %v2839_v51 = vpop.f32.mrf.mxu2  ;;  %v4150_v31 = vpop.f32.mrf.mxu3  ;;  %v2392_v57 = vsel %vm2295_vm4, %v2389_v1, %v2391_v9 }
 0x40f   : > { %v3065_v3 = vadd.f32 %v2839_v51, %v2140_v16  ;;  %v2141_v33 = vpop.f32.mrf.mxu1  ;;  %v4881_v16 = vor.u32 %v4880_v11, %v4877_v27  ;;  %v4884_v27 = vshrl.u32 %v12246_v39, 16  ;;  %v4887_v11 = vshll.u32 %v12246_v39, 16 }
 0x410   : > { %v2142_v54 = vadd.f32 %v2141_v33, %v16051_v53 }
 0x411   : > { %v4376_v61 = vadd.f32 %v4150_v31, %v3065_v3  ;;  %v3703_v3 = vsel %vm2295_vm4, %v3700_v10, %v3702_v24 }
 0x413   : > { %v5471_v38 = vpop.f32.mrf.mxu0  ;;  %v13797_v12 = vadd.f32 %v5469_v14, %v4376_v61  ;;  %v4882_v14 = vsel %vm4442_vm5, %v4872_v62, %v4881_v16  ;;  %v4889_v62 = vrot.slane %v4887_v11, 2  ;;  %v16057_v11 = vld [vmem:[#allocation39_spill] sm:$0xff] }
 0x415   : > { %16050 = vst [vmem:[#allocation27_spill] sm:$0xff] %v13797_v12 }
 0x416   : > { %v2841_v26 = vpop.f32.mrf.mxu2  ;;  %v4152_v18 = vpop.f32.mrf.mxu3 }
 0x417   : > { %v3066_v52 = vadd.f32 %v2841_v26, %v2142_v54  ;;  %v2144_v51 = vpop.f32.mrf.mxu1  ;;  %v4886_v54 = vrot.slane %v4884_v27, 1  ;;  %v12247_v27 = vld [vmem:[%s12600_s29 + $0x1a0] sm:$0xff] }
 0x418   : > { %v2145_v33 = vadd.f32 %v2144_v51, %v16053_v19  ;;  %v3704_v51 = vrot.slane %v12246_v39, 1 }
 0x419   : > { %v4377_v58 = vadd.f32 %v4152_v18, %v3066_v52  ;;  %v16055_v52 = vld [vmem:[#allocation36_spill] sm:$0xff] }
 0x41a   : > { %11089 = vmatmul.msk.bf16.gmra.mxu1 %vm1240_vm3, %v12417_v40 }
 0x41b   : > { %v5474_v31 = vpop.f32.mrf.mxu0  ;;  %11158 = vmatmul.msk.bf16.gmra.mxu2 %vm1240_vm3, %v2392_v57  ;;  %v13807_v43 = vadd.f32 %v5471_v38, %v4377_v58  ;;  %11495 = vmatmul.msk.bf16.gmra.mxu3 %vm1240_vm3, %v3703_v3  ;;  %v12419_v58 = vld [vmem:[%s12600_s29 + $0x188] sm:$0xff] }
 0x41c   : > { %v2393_v38 = vrot.slane %v12419_v58, 1 }
 0x41d   : > { %16052 = vst [vmem:[#allocation30_spill] sm:$0xff] %v13807_v43 }
 0x41e   : > { %11564 = vmatmul.msk.bf16.gmra.mxu0 %vm1240_vm3, %v4882_v14  ;;  %v2844_v1 = vpop.f32.mrf.mxu2  ;;  %v4155_v10 = vpop.f32.mrf.mxu3  ;;  %v2394_v43 = vsel %vm2295_vm4, %v2391_v9, %v2393_v38 }
 0x41f   : > { %v3067_v61 = vadd.f32 %v2844_v1, %v2145_v33  ;;  %v2146_v40 = vpop.f32.mrf.mxu1  ;;  %v4890_v33 = vor.u32 %v4889_v62, %v4886_v54  ;;  %v4893_v54 = vshrl.u32 %v12247_v27, 16  ;;  %v4896_v62 = vshll.u32 %v12247_v27, 16 }
 0x420   : > { %v2147_v18 = vadd.f32 %v2146_v40, %v16055_v52 }
 0x421   : > { %v4378_v53 = vadd.f32 %v4155_v10, %v3067_v61  ;;  %v3705_v61 = vsel %vm2295_vm4, %v3702_v24, %v3704_v51 }
 0x423   : > { %v5476_v57 = vpop.f32.mrf.mxu0  ;;  %v13812_v26 = vadd.f32 %v5474_v31, %v4378_v53  ;;  %v4891_v31 = vsel %vm4442_vm5, %v4881_v16, %v4890_v33  ;;  %v4898_v16 = vrot.slane %v4896_v62, 2  ;;  %v16061_v62 = vld [vmem:[#allocation46_spill] sm:$0xff] }
 0x425   : > { %16054 = vst [vmem:[#allocation33_spill] sm:$0xff] %v13812_v26 }
 0x426   : > { %v2846_v3 = vpop.f32.mrf.mxu2  ;;  %v4157_v19 = vpop.f32.mrf.mxu3 }
 0x427   : > { %v3068_v14 = vadd.f32 %v2846_v3, %v2147_v18  ;;  %v2149_v1 = vpop.f32.mrf.mxu1  ;;  %v4895_v18 = vrot.slane %v4893_v54, 1  ;;  %v12248_v54 = vld [vmem:[%s12600_s29 + $0x1a8] sm:$0xff] }
 0x428   : > { %v2150_v40 = vadd.f32 %v2149_v1, %v16057_v11  ;;  %v3706_v1 = vrot.slane %v12247_v27, 1 }
 0x429   : > { %v4379_v12 = vadd.f32 %v4157_v19, %v3068_v14  ;;  %v16059_v14 = vld [vmem:[#allocation42_spill] sm:$0xff] }
 0x42a   : > { %11090 = vmatmul.msk.bf16.gmra.mxu1 %vm1240_vm3, %v12418_v60 }
 0x42b   : > { %v5479_v10 = vpop.f32.mrf.mxu0  ;;  %11159 = vmatmul.msk.bf16.gmra.mxu2 %vm1240_vm3, %v2394_v43  ;;  %v13822_v39 = vadd.f32 %v5476_v57, %v4379_v12  ;;  %11496 = vmatmul.msk.bf16.gmra.mxu3 %vm1240_vm3, %v3705_v61  ;;  %v12420_v12 = vld [vmem:[%s12600_s29 + $0x190] sm:$0xff] }
 0x42c   : > { %v2395_v57 = vrot.slane %v12420_v12, 1 }
 0x42d   : > { %16056 = vst [vmem:[#allocation36_spill] sm:$0xff] %v13822_v39 }
 0x42e   : > { %11565 = vmatmul.msk.bf16.gmra.mxu0 %vm1240_vm3, %v4891_v31  ;;  %v2849_v9 = vpop.f32.mrf.mxu2  ;;  %v4160_v24 = vpop.f32.mrf.mxu3  ;;  %v2396_v39 = vsel %vm2295_vm4, %v2393_v38, %v2395_v57 }
 0x42f   : > { %v3069_v53 = vadd.f32 %v2849_v9, %v2150_v40  ;;  %v2151_v60 = vpop.f32.mrf.mxu1  ;;  %v4899_v40 = vor.u32 %v4898_v16, %v4895_v18  ;;  %v4902_v18 = vshrl.u32 %v12248_v54, 16  ;;  %v4905_v16 = vshll.u32 %v12248_v54, 16 }
 0x430   : > { %v2152_v19 = vadd.f32 %v2151_v60, %v16059_v14 }
 0x431   : > { %v4380_v52 = vadd.f32 %v4160_v24, %v3069_v53  ;;  %v3707_v53 = vsel %vm2295_vm4, %v3704_v51, %v3706_v1 }
 0x433   : > { %v5481_v43 = vpop.f32.mrf.mxu0  ;;  %v13827_v3 = vadd.f32 %v5479_v10, %v4380_v52  ;;  %v4900_v10 = vsel %vm4442_vm5, %v4890_v33, %v4899_v40  ;;  %v4907_v33 = vrot.slane %v4905_v16, 2  ;;  %v16065_v16 = vld [vmem:[#allocation53_spill] sm:$0xff] }
 0x435   : > { %16058 = vst [vmem:[#allocation39_spill] sm:$0xff] %v13827_v3 }
 0x436   : > { %v2851_v61 = vpop.f32.mrf.mxu2  ;;  %v4162_v11 = vpop.f32.mrf.mxu3 }
 0x437   : > { %v3070_v31 = vadd.f32 %v2851_v61, %v2152_v19  ;;  %v2154_v9 = vpop.f32.mrf.mxu1  ;;  %v4904_v19 = vrot.slane %v4902_v18, 1  ;;  %v12249_v18 = vld [vmem:[%s12600_s29 + $0x1b0] sm:$0xff] }
 0x438   : > { %v2155_v60 = vadd.f32 %v2154_v9, %v16061_v62  ;;  %v3708_v9 = vrot.slane %v12248_v54, 1 }
 0x439   : > { %v4381_v26 = vadd.f32 %v4162_v11, %v3070_v31  ;;  %v16063_v31 = vld [vmem:[#allocation50_spill] sm:$0xff] }
 0x43a   : > { %11091 = vmatmul.msk.bf16.gmra.mxu1 %vm1240_vm3, %v12419_v58 }
 0x43b   : > { %v5484_v24 = vpop.f32.mrf.mxu0  ;;  %11160 = vmatmul.msk.bf16.gmra.mxu2 %vm1240_vm3, %v2396_v39  ;;  %v13837_v27 = vadd.f32 %v5481_v43, %v4381_v26  ;;  %11497 = vmatmul.msk.bf16.gmra.mxu3 %vm1240_vm3, %v3707_v53  ;;  %v12421_v26 = vld [vmem:[%s12600_s29 + $0x198] sm:$0xff] }
 0x43c   : > { %v2397_v43 = vrot.slane %v12421_v26, 1 }
 0x43d   : > { %16060 = vst [vmem:[#allocation42_spill] sm:$0xff] %v13837_v27 }
 0x43e   : > { %11566 = vmatmul.msk.bf16.gmra.mxu0 %vm1240_vm3, %v4900_v10  ;;  %v2854_v38 = vpop.f32.mrf.mxu2  ;;  %v4165_v51 = vpop.f32.mrf.mxu3  ;;  %v2398_v27 = vsel %vm2295_vm4, %v2395_v57, %v2397_v43 }
 0x43f   : > { %v3071_v52 = vadd.f32 %v2854_v38, %v2155_v60  ;;  %v2156_v58 = vpop.f32.mrf.mxu1  ;;  %v4908_v60 = vor.u32 %v4907_v33, %v4904_v19  ;;  %v4911_v19 = vshrl.u32 %v12249_v18, 16  ;;  %v4914_v33 = vshll.u32 %v12249_v18, 16 }
 0x440   : > { %v2157_v11 = vadd.f32 %v2156_v58, %v16063_v31 }
 0x441   : > { %v4382_v14 = vadd.f32 %v4165_v51, %v3071_v52  ;;  %v3709_v52 = vsel %vm2295_vm4, %v3706_v1, %v3708_v9 }
 0x443   : > { %v5486_v39 = vpop.f32.mrf.mxu0  ;;  %v13842_v61 = vadd.f32 %v5484_v24, %v4382_v14  ;;  %v4909_v24 = vsel %vm4442_vm5, %v4899_v40, %v4908_v60  ;;  %v4916_v40 = vrot.slane %v4914_v33, 2  ;;  %v16069_v33 = vld [vmem:[#allocation59_spill] sm:$0xff] }
 0x445   : > { %16062 = vst [vmem:[#allocation46_spill] sm:$0xff] %v13842_v61 }
 0x446   : > { %v2856_v53 = vpop.f32.mrf.mxu2  ;;  %v4167_v62 = vpop.f32.mrf.mxu3 }
 0x447   : > { %v3072_v10 = vadd.f32 %v2856_v53, %v2157_v11  ;;  %v2159_v38 = vpop.f32.mrf.mxu1  ;;  %v4913_v11 = vrot.slane %v4911_v19, 1  ;;  %v12250_v19 = vld [vmem:[%s12600_s29 + $0x1b8] sm:$0xff] }
 0x448   : > { %v2160_v58 = vadd.f32 %v2159_v38, %v16065_v16  ;;  %v3710_v38 = vrot.slane %v12249_v18, 1 }
 0x449   : > { %v4383_v3 = vadd.f32 %v4167_v62, %v3072_v10  ;;  %v16067_v10 = vld [vmem:[#allocation56_spill] sm:$0xff] }
 0x44a   : > { %11092 = vmatmul.msk.bf16.gmra.mxu1 %vm1240_vm3, %v12420_v12 }
 0x44b   : > { %v5489_v51 = vpop.f32.mrf.mxu0  ;;  %11161 = vmatmul.msk.bf16.gmra.mxu2 %vm1240_vm3, %v2398_v27  ;;  %v13852_v54 = vadd.f32 %v5486_v39, %v4383_v3  ;;  %11498 = vmatmul.msk.bf16.gmra.mxu3 %vm1240_vm3, %v3709_v52  ;;  %v12422_v3 = vld [vmem:[%s12600_s29 + $0x1a0] sm:$0xff] }
 0x44c   : > { %v2399_v39 = vrot.slane %v12422_v3, 1 }
 0x44d   : > { %16064 = vst [vmem:[#allocation50_spill] sm:$0xff] %v13852_v54 }
 0x44e   : > { %11567 = vmatmul.msk.bf16.gmra.mxu0 %vm1240_vm3, %v4909_v24  ;;  %v2859_v57 = vpop.f32.mrf.mxu2  ;;  %v4170_v1 = vpop.f32.mrf.mxu3  ;;  %v2400_v54 = vsel %vm2295_vm4, %v2397_v43, %v2399_v39 }
 0x44f   : > { %v3073_v14 = vadd.f32 %v2859_v57, %v2160_v58  ;;  %v2161_v12 = vpop.f32.mrf.mxu1  ;;  %v4917_v58 = vor.u32 %v4916_v40, %v4913_v11  ;;  %v4920_v11 = vshrl.u32 %v12250_v19, 16  ;;  %v4923_v40 = vshll.u32 %v12250_v19, 16 }
 0x450   : > { %v2162_v62 = vadd.f32 %v2161_v12, %v16067_v10 }
 0x451   : > { %v4384_v31 = vadd.f32 %v4170_v1, %v3073_v14  ;;  %v3711_v14 = vsel %vm2295_vm4, %v3708_v9, %v3710_v38 }
 0x453   : > { %v5491_v27 = vpop.f32.mrf.mxu0  ;;  %v13857_v53 = vadd.f32 %v5489_v51, %v4384_v31  ;;  %v4918_v51 = vsel %vm4442_vm5, %v4908_v60, %v4917_v58  ;;  %v4925_v60 = vrot.slane %v4923_v40, 2  ;;  %v16073_v40 = vld [vmem:[#allocation65_spill] sm:$0xff] }
 0x455   : > { %16066 = vst [vmem:[#allocation53_spill] sm:$0xff] %v13857_v53 }
 0x456   : > { %v2861_v52 = vpop.f32.mrf.mxu2  ;;  %v4172_v16 = vpop.f32.mrf.mxu3 }
 0x457   : > { %v3074_v24 = vadd.f32 %v2861_v52, %v2162_v62  ;;  %v2164_v57 = vpop.f32.mrf.mxu1  ;;  %v4922_v62 = vrot.slane %v4920_v11, 1  ;;  %v12251_v11 = vld [vmem:[%s12600_s29 + $0x1c0] sm:$0xff] }
 0x458   : > { %v2165_v12 = vadd.f32 %v2164_v57, %v16069_v33  ;;  %v3712_v57 = vrot.slane %v12250_v19, 1 }
 0x459   : > { %v4385_v61 = vadd.f32 %v4172_v16, %v3074_v24  ;;  %v16071_v24 = vld [vmem:[#allocation62_spill] sm:$0xff] }
 0x45a   : > { %11093 = vmatmul.msk.bf16.gmra.mxu1 %vm1240_vm3, %v12421_v26 }
 0x45b   : > { %v5494_v1 = vpop.f32.mrf.mxu0  ;;  %11162 = vmatmul.msk.bf16.gmra.mxu2 %vm1240_vm3, %v2400_v54  ;;  %v13867_v18 = vadd.f32 %v5491_v27, %v4385_v61  ;;  %11499 = vmatmul.msk.bf16.gmra.mxu3 %vm1240_vm3, %v3711_v14  ;;  %v12423_v61 = vld [vmem:[%s12600_s29 + $0x1a8] sm:$0xff] }
 0x45c   : > { %v2401_v27 = vrot.slane %v12423_v61, 1 }
 0x45d   : > { %16068 = vst [vmem:[#allocation56_spill] sm:$0xff] %v13867_v18 }
 0x45e   : > { %11568 = vmatmul.msk.bf16.gmra.mxu0 %vm1240_vm3, %v4918_v51  ;;  %v2864_v43 = vpop.f32.mrf.mxu2  ;;  %v4175_v9 = vpop.f32.mrf.mxu3  ;;  %v2402_v18 = vsel %vm2295_vm4, %v2399_v39, %v2401_v27 }
 0x45f   : > { %v3075_v31 = vadd.f32 %v2864_v43, %v2165_v12  ;;  %v2166_v26 = vpop.f32.mrf.mxu1  ;;  %v4926_v12 = vor.u32 %v4925_v60, %v4922_v62  ;;  %v4929_v62 = vshrl.u32 %v12251_v11, 16  ;;  %v4932_v60 = vshll.u32 %v12251_v11, 16 }
 0x460   : > { %v2167_v16 = vadd.f32 %v2166_v26, %v16071_v24 }
 0x461   : > { %v4386_v10 = vadd.f32 %v4175_v9, %v3075_v31  ;;  %v3713_v31 = vsel %vm2295_vm4, %v3710_v38, %v3712_v57 }
 0x463   : > { %v5496_v54 = vpop.f32.mrf.mxu0  ;;  %v13872_v52 = vadd.f32 %v5494_v1, %v4386_v10  ;;  %v4927_v1 = vsel %vm4442_vm5, %v4917_v58, %v4926_v12  ;;  %v4934_v58 = vrot.slane %v4932_v60, 2  ;;  %v16077_v60 = vld [vmem:[#allocation71_spill] sm:$0xff] }
 0x465   : > { %16070 = vst [vmem:[#allocation59_spill] sm:$0xff] %v13872_v52 }
 0x466   : > { %v2866_v14 = vpop.f32.mrf.mxu2  ;;  %v4177_v33 = vpop.f32.mrf.mxu3 }
 0x467   : > { %v3076_v51 = vadd.f32 %v2866_v14, %v2167_v16  ;;  %v2169_v43 = vpop.f32.mrf.mxu1  ;;  %v4931_v16 = vrot.slane %v4929_v62, 1  ;;  %v12252_v62 = vld [vmem:[%s12600_s29 + $0x1c8] sm:$0xff] }
 0x468   : > { %v2170_v26 = vadd.f32 %v2169_v43, %v16073_v40  ;;  %v3714_v43 = vrot.slane %v12251_v11, 1 }
 0x469   : > { %v4387_v53 = vadd.f32 %v4177_v33, %v3076_v51  ;;  %v16075_v51 = vld [vmem:[#allocation68_spill] sm:$0xff] }
 0x46a   : > { %11094 = vmatmul.msk.bf16.gmra.mxu1 %vm1240_vm3, %v12422_v3 }
 0x46b   : > { %v5499_v9 = vpop.f32.mrf.mxu0  ;;  %11163 = vmatmul.msk.bf16.gmra.mxu2 %vm1240_vm3, %v2402_v18  ;;  %v13882_v19 = vadd.f32 %v5496_v54, %v4387_v53  ;;  %11500 = vmatmul.msk.bf16.gmra.mxu3 %vm1240_vm3, %v3713_v31  ;;  %v12424_v53 = vld [vmem:[%s12600_s29 + $0x1b0] sm:$0xff] }
 0x46c   : > { %v2403_v54 = vrot.slane %v12424_v53, 1 }
 0x46d   : > { %16072 = vst [vmem:[#allocation62_spill] sm:$0xff] %v13882_v19 }
 0x46e   : > { %11569 = vmatmul.msk.bf16.gmra.mxu0 %vm1240_vm3, %v4927_v1  ;;  %v2869_v39 = vpop.f32.mrf.mxu2  ;;  %v4180_v38 = vpop.f32.mrf.mxu3  ;;  %v2404_v19 = vsel %vm2295_vm4, %v2401_v27, %v2403_v54 }
 0x46f   : > { %v3077_v10 = vadd.f32 %v2869_v39, %v2170_v26  ;;  %v2171_v3 = vpop.f32.mrf.mxu1  ;;  %v4935_v26 = vor.u32 %v4934_v58, %v4931_v16  ;;  %v4938_v16 = vshrl.u32 %v12252_v62, 16  ;;  %v4941_v58 = vshll.u32 %v12252_v62, 16 }
 0x470   : > { %v2172_v33 = vadd.f32 %v2171_v3, %v16075_v51 }
 0x471   : > { %v4388_v24 = vadd.f32 %v4180_v38, %v3077_v10  ;;  %v3715_v10 = vsel %vm2295_vm4, %v3712_v57, %v3714_v43 }
 0x473   : > { %v5501_v18 = vpop.f32.mrf.mxu0  ;;  %v13887_v14 = vadd.f32 %v5499_v9, %v4388_v24  ;;  %v4936_v9 = vsel %vm4442_vm5, %v4926_v12, %v4935_v26  ;;  %v4943_v12 = vrot.slane %v4941_v58, 2  ;;  %v16081_v58 = vld [vmem:[#allocation77_spill] sm:$0xff] }
 0x475   : > { %16074 = vst [vmem:[#allocation65_spill] sm:$0xff] %v13887_v14 }
 0x476   : > { %v2871_v31 = vpop.f32.mrf.mxu2  ;;  %v4182_v40 = vpop.f32.mrf.mxu3 }
 0x477   : > { %v3078_v1 = vadd.f32 %v2871_v31, %v2172_v33  ;;  %v2174_v39 = vpop.f32.mrf.mxu1  ;;  %v4940_v33 = vrot.slane %v4938_v16, 1  ;;  %v12253_v16 = vld [vmem:[%s12600_s29 + $0x1d0] sm:$0xff] }
 0x478   : > { %v2175_v3 = vadd.f32 %v2174_v39, %v16077_v60  ;;  %v3716_v39 = vrot.slane %v12252_v62, 1 }
 0x479   : > { %v4389_v52 = vadd.f32 %v4182_v40, %v3078_v1  ;;  %v16079_v1 = vld [vmem:[#allocation74_spill] sm:$0xff] }
 0x47a   : > { %11095 = vmatmul.msk.bf16.gmra.mxu1 %vm1240_vm3, %v12423_v61 }
 0x47b   : > { %v5504_v38 = vpop.f32.mrf.mxu0  ;;  %11164 = vmatmul.msk.bf16.gmra.mxu2 %vm1240_vm3, %v2404_v19  ;;  %v13897_v11 = vadd.f32 %v5501_v18, %v4389_v52  ;;  %11501 = vmatmul.msk.bf16.gmra.mxu3 %vm1240_vm3, %v3715_v10  ;;  %v12425_v52 = vld [vmem:[%s12600_s29 + $0x1b8] sm:$0xff] }
 0x47c   : > { %v2405_v18 = vrot.slane %v12425_v52, 1 }
 0x47d   : > { %16076 = vst [vmem:[#allocation68_spill] sm:$0xff] %v13897_v11 }
 0x47e   : > { %11570 = vmatmul.msk.bf16.gmra.mxu0 %vm1240_vm3, %v4936_v9  ;;  %v2874_v27 = vpop.f32.mrf.mxu2  ;;  %v4185_v57 = vpop.f32.mrf.mxu3  ;;  %v2406_v11 = vsel %vm2295_vm4, %v2403_v54, %v2405_v18 }
 0x47f   : > { %v3079_v24 = vadd.f32 %v2874_v27, %v2175_v3  ;;  %v2176_v61 = vpop.f32.mrf.mxu1  ;;  %v4944_v3 = vor.u32 %v4943_v12, %v4940_v33  ;;  %v4947_v33 = vshrl.u32 %v12253_v16, 16  ;;  %v4950_v12 = vshll.u32 %v12253_v16, 16 }
 0x480   : > { %v2177_v40 = vadd.f32 %v2176_v61, %v16079_v1 }
 0x481   : > { %v4390_v51 = vadd.f32 %v4185_v57, %v3079_v24  ;;  %v3717_v24 = vsel %vm2295_vm4, %v3714_v43, %v3716_v39 }
 0x483   : > { %v5506_v19 = vpop.f32.mrf.mxu0  ;;  %v13902_v31 = vadd.f32 %v5504_v38, %v4390_v51  ;;  %v4945_v38 = vsel %vm4442_vm5, %v4935_v26, %v4944_v3  ;;  %v4952_v26 = vrot.slane %v4950_v12, 2  ;;  %v16085_v12 = vld [vmem:[#allocation83_spill] sm:$0xff] }
 0x485   : > { %16078 = vst [vmem:[#allocation71_spill] sm:$0xff] %v13902_v31 }
 0x486   : > { %v2876_v10 = vpop.f32.mrf.mxu2  ;;  %v4187_v60 = vpop.f32.mrf.mxu3 }
 0x487   : > { %v3080_v9 = vadd.f32 %v2876_v10, %v2177_v40  ;;  %v2179_v27 = vpop.f32.mrf.mxu1  ;;  %v4949_v40 = vrot.slane %v4947_v33, 1  ;;  %v12254_v33 = vld [vmem:[%s12600_s29 + $0x1d8] sm:$0xff] }
 0x488   : > { %v2180_v61 = vadd.f32 %v2179_v27, %v16081_v58  ;;  %v3718_v27 = vrot.slane %v12253_v16, 1 }
 0x489   : > { %v4391_v14 = vadd.f32 %v4187_v60, %v3080_v9  ;;  %v16083_v9 = vld [vmem:[#allocation80_spill] sm:$0xff] }
 0x48a   : > { %11096 = vmatmul.msk.bf16.gmra.mxu1 %vm1240_vm3, %v12424_v53 }
 0x48b   : > { %v5509_v57 = vpop.f32.mrf.mxu0  ;;  %11165 = vmatmul.msk.bf16.gmra.mxu2 %vm1240_vm3, %v2406_v11  ;;  %v13912_v62 = vadd.f32 %v5506_v19, %v4391_v14  ;;  %11502 = vmatmul.msk.bf16.gmra.mxu3 %vm1240_vm3, %v3717_v24  ;;  %v12426_v14 = vld [vmem:[%s12600_s29 + $0x1c0] sm:$0xff] }
 0x48c   : > { %v2407_v19 = vrot.slane %v12426_v14, 1 }
 0x48d   : > { %16080 = vst [vmem:[#allocation74_spill] sm:$0xff] %v13912_v62 }
 0x48e   : > { %11571 = vmatmul.msk.bf16.gmra.mxu0 %vm1240_vm3, %v4945_v38  ;;  %v2879_v54 = vpop.f32.mrf.mxu2  ;;  %v4190_v43 = vpop.f32.mrf.mxu3  ;;  %v2408_v62 = vsel %vm2295_vm4, %v2405_v18, %v2407_v19 }
 0x48f   : > { %v3081_v51 = vadd.f32 %v2879_v54, %v2180_v61  ;;  %v2181_v53 = vpop.f32.mrf.mxu1  ;;  %v4953_v61 = vor.u32 %v4952_v26, %v4949_v40  ;;  %v4956_v40 = vshrl.u32 %v12254_v33, 16  ;;  %v4959_v26 = vshll.u32 %v12254_v33, 16 }
 0x490   : > { %v2182_v60 = vadd.f32 %v2181_v53, %v16083_v9 }
 0x491   : > { %v4392_v1 = vadd.f32 %v4190_v43, %v3081_v51  ;;  %v3719_v51 = vsel %vm2295_vm4, %v3716_v39, %v3718_v27 }
 0x493   : > { %v5511_v11 = vpop.f32.mrf.mxu0  ;;  %v13917_v10 = vadd.f32 %v5509_v57, %v4392_v1  ;;  %v4954_v57 = vsel %vm4442_vm5, %v4944_v3, %v4953_v61  ;;  %v4961_v3 = vrot.slane %v4959_v26, 2  ;;  %v16089_v26 = vld [vmem:[#allocation89_spill] sm:$0xff] }
 0x495   : > { %16082 = vst [vmem:[#allocation77_spill] sm:$0xff] %v13917_v10 }
 0x496   : > { %v2881_v24 = vpop.f32.mrf.mxu2  ;;  %v4192_v58 = vpop.f32.mrf.mxu3 }
 0x497   : > { %v3082_v38 = vadd.f32 %v2881_v24, %v2182_v60  ;;  %v2184_v54 = vpop.f32.mrf.mxu1  ;;  %v4958_v60 = vrot.slane %v4956_v40, 1  ;;  %v12255_v40 = vld [vmem:[%s12600_s29 + $0x1e0] sm:$0xff] }
 0x498   : > { %v2185_v53 = vadd.f32 %v2184_v54, %v16085_v12  ;;  %v3720_v54 = vrot.slane %v12254_v33, 1 }
 0x499   : > { %v4393_v31 = vadd.f32 %v4192_v58, %v3082_v38  ;;  %v16087_v38 = vld [vmem:[#allocation86_spill] sm:$0xff] }
 0x49a   : > { %11097 = vmatmul.msk.bf16.gmra.mxu1 %vm1240_vm3, %v12425_v52 }
 0x49b   : > { %v5514_v43 = vpop.f32.mrf.mxu0  ;;  %11166 = vmatmul.msk.bf16.gmra.mxu2 %vm1240_vm3, %v2408_v62  ;;  %v13927_v16 = vadd.f32 %v5511_v11, %v4393_v31  ;;  %11503 = vmatmul.msk.bf16.gmra.mxu3 %vm1240_vm3, %v3719_v51  ;;  %v12427_v31 = vld [vmem:[%s12600_s29 + $0x1c8] sm:$0xff] }
 0x49c   : > { %v2409_v11 = vrot.slane %v12427_v31, 1 }
 0x49d   : > { %16084 = vst [vmem:[#allocation80_spill] sm:$0xff] %v13927_v16 }
 0x49e   : > { %11572 = vmatmul.msk.bf16.gmra.mxu0 %vm1240_vm3, %v4954_v57  ;;  %v2884_v18 = vpop.f32.mrf.mxu2  ;;  %v4195_v39 = vpop.f32.mrf.mxu3  ;;  %v2410_v16 = vsel %vm2295_vm4, %v2407_v19, %v2409_v11 }
 0x49f   : > { %v3083_v1 = vadd.f32 %v2884_v18, %v2185_v53  ;;  %v2186_v52 = vpop.f32.mrf.mxu1  ;;  %v4962_v53 = vor.u32 %v4961_v3, %v4958_v60  ;;  %v4965_v60 = vshrl.u32 %v12255_v40, 16  ;;  %v4968_v3 = vshll.u32 %v12255_v40, 16 }
 0x4a0   : > { %v2187_v58 = vadd.f32 %v2186_v52, %v16087_v38 }
 0x4a1   : > { %v4394_v9 = vadd.f32 %v4195_v39, %v3083_v1  ;;  %v3721_v1 = vsel %vm2295_vm4, %v3718_v27, %v3720_v54 }
 0x4a3   : > { %v5516_v62 = vpop.f32.mrf.mxu0  ;;  %v13932_v24 = vadd.f32 %v5514_v43, %v4394_v9  ;;  %v4963_v43 = vsel %vm4442_vm5, %v4953_v61, %v4962_v53  ;;  %v4970_v61 = vrot.slane %v4968_v3, 2  ;;  %v16093_v3 = vld [vmem:[#allocation95_spill] sm:$0xff] }
 0x4a5   : > { %16086 = vst [vmem:[#allocation83_spill] sm:$0xff] %v13932_v24 }
 0x4a6   : > { %v2886_v51 = vpop.f32.mrf.mxu2  ;;  %v4197_v12 = vpop.f32.mrf.mxu3 }
 0x4a7   : > { %v3084_v57 = vadd.f32 %v2886_v51, %v2187_v58  ;;  %v2189_v18 = vpop.f32.mrf.mxu1  ;;  %v4967_v58 = vrot.slane %v4965_v60, 1  ;;  %v12256_v60 = vld [vmem:[%s12600_s29 + $0x1e8] sm:$0xff] }
 0x4a8   : > { %v2190_v52 = vadd.f32 %v2189_v18, %v16089_v26  ;;  %v3722_v18 = vrot.slane %v12255_v40, 1 }
 0x4a9   : > { %v4395_v10 = vadd.f32 %v4197_v12, %v3084_v57  ;;  %v16091_v57 = vld [vmem:[#allocation92_spill] sm:$0xff] }
 0x4aa   : > { %11098 = vmatmul.msk.bf16.gmra.mxu1 %vm1240_vm3, %v12426_v14 }
 0x4ab   : > { %v5519_v39 = vpop.f32.mrf.mxu0  ;;  %11167 = vmatmul.msk.bf16.gmra.mxu2 %vm1240_vm3, %v2410_v16  ;;  %v13942_v33 = vadd.f32 %v5516_v62, %v4395_v10  ;;  %11504 = vmatmul.msk.bf16.gmra.mxu3 %vm1240_vm3, %v3721_v1  ;;  %v12428_v10 = vld [vmem:[%s12600_s29 + $0x1d0] sm:$0xff] }
 0x4ac   : > { %v2411_v62 = vrot.slane %v12428_v10, 1 }
 0x4ad   : > { %16088 = vst [vmem:[#allocation86_spill] sm:$0xff] %v13942_v33 }
 0x4ae   : > { %11573 = vmatmul.msk.bf16.gmra.mxu0 %vm1240_vm3, %v4963_v43  ;;  %v2889_v19 = vpop.f32.mrf.mxu2  ;;  %v4200_v27 = vpop.f32.mrf.mxu3  ;;  %v2412_v33 = vsel %vm2295_vm4, %v2409_v11, %v2411_v62 }
 0x4af   : > { %v3085_v9 = vadd.f32 %v2889_v19, %v2190_v52  ;;  %v2191_v14 = vpop.f32.mrf.mxu1  ;;  %v4971_v52 = vor.u32 %v4970_v61, %v4967_v58  ;;  %v4974_v58 = vshrl.u32 %v12256_v60, 16  ;;  %v4977_v61 = vshll.u32 %v12256_v60, 16 }
 0x4b0   : > { %v2192_v12 = vadd.f32 %v2191_v14, %v16091_v57 }
 0x4b1   : > { %v4396_v38 = vadd.f32 %v4200_v27, %v3085_v9  ;;  %v3723_v9 = vsel %vm2295_vm4, %v3720_v54, %v3722_v18 }
 0x4b3   : > { %v5521_v16 = vpop.f32.mrf.mxu0  ;;  %v13947_v51 = vadd.f32 %v5519_v39, %v4396_v38  ;;  %v4972_v39 = vsel %vm4442_vm5, %v4962_v53, %v4971_v52  ;;  %v4979_v53 = vrot.slane %v4977_v61, 2  ;;  %v16097_v61 = vld [vmem:[#allocation101_spill] sm:$0xff] }
 0x4b5   : > { %16090 = vst [vmem:[#allocation89_spill] sm:$0xff] %v13947_v51 }
 0x4b6   : > { %v2891_v1 = vpop.f32.mrf.mxu2  ;;  %v4202_v26 = vpop.f32.mrf.mxu3 }
 0x4b7   : > { %v3086_v43 = vadd.f32 %v2891_v1, %v2192_v12  ;;  %v2194_v19 = vpop.f32.mrf.mxu1  ;;  %v4976_v12 = vrot.slane %v4974_v58, 1  ;;  %v12257_v58 = vld [vmem:[%s12600_s29 + $0x1f0] sm:$0xff] }
 0x4b8   : > { %v2195_v14 = vadd.f32 %v2194_v19, %v16093_v3  ;;  %v3724_v19 = vrot.slane %v12256_v60, 1 }
 0x4b9   : > { %v4397_v24 = vadd.f32 %v4202_v26, %v3086_v43  ;;  %v16095_v43 = vld [vmem:[#allocation98_spill] sm:$0xff] }
 0x4ba   : > { %11099 = vmatmul.msk.bf16.gmra.mxu1 %vm1240_vm3, %v12427_v31 }
 0x4bb   : > { %v5524_v27 = vpop.f32.mrf.mxu0  ;;  %11168 = vmatmul.msk.bf16.gmra.mxu2 %vm1240_vm3, %v2412_v33  ;;  %v13957_v40 = vadd.f32 %v5521_v16, %v4397_v24  ;;  %11505 = vmatmul.msk.bf16.gmra.mxu3 %vm1240_vm3, %v3723_v9  ;;  %v12429_v24 = vld [vmem:[%s12600_s29 + $0x1d8] sm:$0xff] }
 0x4bc   : > { %v2413_v16 = vrot.slane %v12429_v24, 1 }
 0x4bd   : > { %16092 = vst [vmem:[#allocation92_spill] sm:$0xff] %v13957_v40 }
 0x4be   : > { %11574 = vmatmul.msk.bf16.gmra.mxu0 %vm1240_vm3, %v4972_v39  ;;  %v2894_v11 = vpop.f32.mrf.mxu2  ;;  %v4205_v54 = vpop.f32.mrf.mxu3  ;;  %v2414_v40 = vsel %vm2295_vm4, %v2411_v62, %v2413_v16 }
 0x4bf   : > { %v3087_v38 = vadd.f32 %v2894_v11, %v2195_v14  ;;  %v2196_v31 = vpop.f32.mrf.mxu1  ;;  %v4980_v14 = vor.u32 %v4979_v53, %v4976_v12  ;;  %v4983_v12 = vshrl.u32 %v12257_v58, 16  ;;  %v4986_v53 = vshll.u32 %v12257_v58, 16 }
 0x4c0   : > { %v2197_v26 = vadd.f32 %v2196_v31, %v16095_v43 }
 0x4c1   : > { %v4398_v57 = vadd.f32 %v4205_v54, %v3087_v38  ;;  %v3725_v38 = vsel %vm2295_vm4, %v3722_v18, %v3724_v19 }
 0x4c3   : > { %v5526_v33 = vpop.f32.mrf.mxu0  ;;  %v13962_v1 = vadd.f32 %v5524_v27, %v4398_v57  ;;  %v4981_v27 = vsel %vm4442_vm5, %v4971_v52, %v4980_v14  ;;  %v4988_v52 = vrot.slane %v4986_v53, 2  ;;  %v16101_v53 = vld [vmem:[#allocation4_spill] sm:$0xff] }
 0x4c5   : > { %16094 = vst [vmem:[#allocation95_spill] sm:$0xff] %v13962_v1 }
 0x4c6   : > { %v2896_v9 = vpop.f32.mrf.mxu2  ;;  %v4207_v3 = vpop.f32.mrf.mxu3 }
 0x4c7   : > { %v3088_v39 = vadd.f32 %v2896_v9, %v2197_v26  ;;  %v2199_v11 = vpop.f32.mrf.mxu1  ;;  %v4985_v26 = vrot.slane %v4983_v12, 1  ;;  %v12258_v12 = vld [vmem:[%s12600_s29 + $0x1f8] sm:$0xff] }
 0x4c8   : > { %v2200_v31 = vadd.f32 %v2199_v11, %v16097_v61  ;;  %v3726_v11 = vrot.slane %v12257_v58, 1 }
 0x4c9   : > { %v4399_v51 = vadd.f32 %v4207_v3, %v3088_v39  ;;  %v16099_v39 = vld [vmem:[#allocation104_spill] sm:$0xff] }
 0x4ca   : > { %11100 = vmatmul.msk.bf16.gmra.mxu1 %vm1240_vm3, %v12428_v10 }
 0x4cb   : > { %v5529_v54 = vpop.f32.mrf.mxu0  ;;  %11169 = vmatmul.msk.bf16.gmra.mxu2 %vm1240_vm3, %v2414_v40  ;;  %v13972_v60 = vadd.f32 %v5526_v33, %v4399_v51  ;;  %11506 = vmatmul.msk.bf16.gmra.mxu3 %vm1240_vm3, %v3725_v38  ;;  %v12430_v51 = vld [vmem:[%s12600_s29 + $0x1e0] sm:$0xff] }
 0x4cc   : > { %v2415_v33 = vrot.slane %v12430_v51, 1 }
 0x4cd   : > { %16096 = vst [vmem:[#allocation98_spill] sm:$0xff] %v13972_v60 }
 0x4ce   : > { %11575 = vmatmul.msk.bf16.gmra.mxu0 %vm1240_vm3, %v4981_v27  ;;  %v2899_v62 = vpop.f32.mrf.mxu2  ;;  %v4210_v18 = vpop.f32.mrf.mxu3  ;;  %v2416_v60 = vsel %vm2295_vm4, %v2413_v16, %v2415_v33 }
 0x4cf   : > { %v3089_v57 = vadd.f32 %v2899_v62, %v2200_v31  ;;  %v2201_v10 = vpop.f32.mrf.mxu1  ;;  %v4989_v31 = vor.u32 %v4988_v52, %v4985_v26  ;;  %v4992_v26 = vshrl.u32 %v12258_v12, 16  ;;  %v4995_v52 = vshll.u32 %v12258_v12, 16 }
 0x4d0   : > { %v2202_v3 = vadd.f32 %v2201_v10, %v16099_v39 }
 0x4d1   : > { %v4400_v43 = vadd.f32 %v4210_v18, %v3089_v57  ;;  %v3727_v57 = vsel %vm2295_vm4, %v3724_v19, %v3726_v11 }
 0x4d3   : > { %v5531_v40 = vpop.f32.mrf.mxu0  ;;  %v13977_v9 = vadd.f32 %v5529_v54, %v4400_v43  ;;  %v4990_v54 = vsel %vm4442_vm5, %v4980_v14, %v4989_v31  ;;  %v4997_v14 = vrot.slane %v4995_v52, 2  ;;  %v16105_v52 = vld [vmem:[#allocation10_spill] sm:$0xff] }
 0x4d5   : > { %16098 = vst [vmem:[#allocation101_spill] sm:$0xff] %v13977_v9 }
 0x4d6   : > { %v2901_v38 = vpop.f32.mrf.mxu2  ;;  %v4212_v61 = vpop.f32.mrf.mxu3 }
 0x4d7   : > { %v3090_v27 = vadd.f32 %v2901_v38, %v2202_v3  ;;  %v2204_v62 = vpop.f32.mrf.mxu1  ;;  %v4994_v3 = vrot.slane %v4992_v26, 1  ;;  %v12259_v26 = vld [vmem:[%s12600_s29 + $0x200] sm:$0xff] }
 0x4d8   : > { %v2205_v10 = vadd.f32 %v2204_v62, %v16101_v53  ;;  %v3728_v62 = vrot.slane %v12258_v12, 1 }
 0x4d9   : > { %v4401_v1 = vadd.f32 %v4212_v61, %v3090_v27  ;;  %v16103_v27 = vld [vmem:[#allocation7_spill] sm:$0xff] }
 0x4da   : > { %11101 = vmatmul.msk.bf16.gmra.mxu1 %vm1240_vm3, %v12429_v24 }
 0x4db   : > { %v5534_v18 = vpop.f32.mrf.mxu0  ;;  %11170 = vmatmul.msk.bf16.gmra.mxu2 %vm1240_vm3, %v2416_v60  ;;  %v13987_v58 = vadd.f32 %v5531_v40, %v4401_v1  ;;  %11507 = vmatmul.msk.bf16.gmra.mxu3 %vm1240_vm3, %v3727_v57  ;;  %v12431_v1 = vld [vmem:[%s12600_s29 + $0x1e8] sm:$0xff] }
 0x4dc   : > { %v2417_v40 = vrot.slane %v12431_v1, 1 }
 0x4dd   : > { %16100 = vst [vmem:[#allocation104_spill] sm:$0xff] %v13987_v58 }
 0x4de   : > { %11576 = vmatmul.msk.bf16.gmra.mxu0 %vm1240_vm3, %v4990_v54  ;;  %v2904_v16 = vpop.f32.mrf.mxu2  ;;  %v4215_v19 = vpop.f32.mrf.mxu3  ;;  %v2418_v58 = vsel %vm2295_vm4, %v2415_v33, %v2417_v40 }
 0x4df   : > { %v3091_v43 = vadd.f32 %v2904_v16, %v2205_v10  ;;  %v2206_v24 = vpop.f32.mrf.mxu1  ;;  %v4998_v10 = vor.u32 %v4997_v14, %v4994_v3  ;;  %v5001_v3 = vshrl.u32 %v12259_v26, 16  ;;  %v5004_v14 = vshll.u32 %v12259_v26, 16 }
 0x4e0   : > { %v2207_v61 = vadd.f32 %v2206_v24, %v16103_v27 }
 0x4e1   : > { %v4402_v39 = vadd.f32 %v4215_v19, %v3091_v43  ;;  %v3729_v43 = vsel %vm2295_vm4, %v3726_v11, %v3728_v62 }
 0x4e3   : > { %v5536_v60 = vpop.f32.mrf.mxu0  ;;  %v13992_v38 = vadd.f32 %v5534_v18, %v4402_v39  ;;  %v4999_v18 = vsel %vm4442_vm5, %v4989_v31, %v4998_v10  ;;  %v5006_v31 = vrot.slane %v5004_v14, 2  ;;  %v16109_v14 = vld [vmem:[#allocation16_spill] sm:$0xff] }
 0x4e5   : > { %16102 = vst [vmem:[#allocation4_spill] sm:$0xff] %v13992_v38 }
 0x4e6   : > { %v2906_v57 = vpop.f32.mrf.mxu2  ;;  %v4217_v53 = vpop.f32.mrf.mxu3 }
 0x4e7   : > { %v3092_v54 = vadd.f32 %v2906_v57, %v2207_v61  ;;  %v2209_v16 = vpop.f32.mrf.mxu1  ;;  %v5003_v61 = vrot.slane %v5001_v3, 1  ;;  %v12260_v3 = vld [vmem:[%s12600_s29 + $0x208] sm:$0xff] }
 0x4e8   : > { %v2210_v24 = vadd.f32 %v2209_v16, %v16105_v52  ;;  %v3730_v16 = vrot.slane %v12259_v26, 1 }
 0x4e9   : > { %v4403_v9 = vadd.f32 %v4217_v53, %v3092_v54  ;;  %v16107_v54 = vld [vmem:[#allocation13_spill] sm:$0xff] }
 0x4ea   : > { %11102 = vmatmul.msk.bf16.gmra.mxu1 %vm1240_vm3, %v12430_v51 }
 0x4eb   : > { %v5539_v19 = vpop.f32.mrf.mxu0  ;;  %11171 = vmatmul.msk.bf16.gmra.mxu2 %vm1240_vm3, %v2418_v58  ;;  %v14002_v12 = vadd.f32 %v5536_v60, %v4403_v9  ;;  %11508 = vmatmul.msk.bf16.gmra.mxu3 %vm1240_vm3, %v3729_v43  ;;  %v12432_v9 = vld [vmem:[%s12600_s29 + $0x1f0] sm:$0xff] }
 0x4ec   : > { %v2419_v60 = vrot.slane %v12432_v9, 1 }
 0x4ed   : > { %16104 = vst [vmem:[#allocation7_spill] sm:$0xff] %v14002_v12 }
 0x4ee   : > { %11577 = vmatmul.msk.bf16.gmra.mxu0 %vm1240_vm3, %v4999_v18  ;;  %v2909_v33 = vpop.f32.mrf.mxu2  ;;  %v4220_v11 = vpop.f32.mrf.mxu3  ;;  %v2420_v12 = vsel %vm2295_vm4, %v2417_v40, %v2419_v60 }
 0x4ef   : > { %v3093_v39 = vadd.f32 %v2909_v33, %v2210_v24  ;;  %v2211_v51 = vpop.f32.mrf.mxu1  ;;  %v5007_v24 = vor.u32 %v5006_v31, %v5003_v61  ;;  %v5010_v61 = vshrl.u32 %v12260_v3, 16  ;;  %v5013_v31 = vshll.u32 %v12260_v3, 16 }
 0x4f0   : > { %v2212_v53 = vadd.f32 %v2211_v51, %v16107_v54 }
 0x4f1   : > { %v4404_v27 = vadd.f32 %v4220_v11, %v3093_v39  ;;  %v3731_v39 = vsel %vm2295_vm4, %v3728_v62, %v3730_v16 }
 0x4f3   : > { %v5541_v58 = vpop.f32.mrf.mxu0  ;;  %v14007_v57 = vadd.f32 %v5539_v19, %v4404_v27  ;;  %v5008_v19 = vsel %vm4442_vm5, %v4998_v10, %v5007_v24  ;;  %v5015_v10 = vrot.slane %v5013_v31, 2  ;;  %v16113_v31 = vld [vmem:[#allocation22_spill] sm:$0xff] }
 0x4f5   : > { %16106 = vst [vmem:[#allocation10_spill] sm:$0xff] %v14007_v57 }
 0x4f6   : > { %v2911_v43 = vpop.f32.mrf.mxu2  ;;  %v4222_v52 = vpop.f32.mrf.mxu3 }
 0x4f7   : > { %v3094_v18 = vadd.f32 %v2911_v43, %v2212_v53  ;;  %v2214_v33 = vpop.f32.mrf.mxu1  ;;  %v5012_v53 = vrot.slane %v5010_v61, 1  ;;  %v12261_v61 = vld [vmem:[%s12600_s29 + $0x210] sm:$0xff] }
 0x4f8   : > { %v2215_v51 = vadd.f32 %v2214_v33, %v16109_v14  ;;  %v3732_v33 = vrot.slane %v12260_v3, 1 }
 0x4f9   : > { %v4405_v38 = vadd.f32 %v4222_v52, %v3094_v18  ;;  %v16111_v18 = vld [vmem:[#allocation19_spill] sm:$0xff] }
 0x4fa   : > { %11103 = vmatmul.msk.bf16.gmra.mxu1 %vm1240_vm3, %v12431_v1 }
 0x4fb   : > { %v5544_v11 = vpop.f32.mrf.mxu0  ;;  %11172 = vmatmul.msk.bf16.gmra.mxu2 %vm1240_vm3, %v2420_v12  ;;  %v14017_v26 = vadd.f32 %v5541_v58, %v4405_v38  ;;  %11509 = vmatmul.msk.bf16.gmra.mxu3 %vm1240_vm3, %v3731_v39  ;;  %v12433_v38 = vld [vmem:[%s12600_s29 + $0x1f8] sm:$0xff] }
 0x4fc   : > { %v2421_v58 = vrot.slane %v12433_v38, 1 }
 0x4fd   : > { %16108 = vst [vmem:[#allocation13_spill] sm:$0xff] %v14017_v26 }
 0x4fe   : > { %11578 = vmatmul.msk.bf16.gmra.mxu0 %vm1240_vm3, %v5008_v19  ;;  %v2914_v40 = vpop.f32.mrf.mxu2  ;;  %v4225_v62 = vpop.f32.mrf.mxu3  ;;  %v2422_v26 = vsel %vm2295_vm4, %v2419_v60, %v2421_v58 }
 0x4ff   : > { %v3095_v27 = vadd.f32 %v2914_v40, %v2215_v51  ;;  %v2216_v1 = vpop.f32.mrf.mxu1  ;;  %v5016_v51 = vor.u32 %v5015_v10, %v5012_v53  ;;  %v5019_v53 = vshrl.u32 %v12261_v61, 16  ;;  %v5022_v10 = vshll.u32 %v12261_v61, 16 }
 0x500   : > { %v2217_v52 = vadd.f32 %v2216_v1, %v16111_v18 }
 0x501   : > { %v4406_v54 = vadd.f32 %v4225_v62, %v3095_v27  ;;  %v3733_v27 = vsel %vm2295_vm4, %v3730_v16, %v3732_v33 }
 0x503   : > { %v5546_v12 = vpop.f32.mrf.mxu0  ;;  %v14022_v43 = vadd.f32 %v5544_v11, %v4406_v54  ;;  %v5017_v11 = vsel %vm4442_vm5, %v5007_v24, %v5016_v51  ;;  %v5024_v24 = vrot.slane %v5022_v10, 2  ;;  %v16117_v10 = vld [vmem:[#allocation28_spill] sm:$0xff] }
 0x505   : > { %16110 = vst [vmem:[#allocation16_spill] sm:$0xff] %v14022_v43 }
 0x506   : > { %v2916_v39 = vpop.f32.mrf.mxu2  ;;  %v4227_v14 = vpop.f32.mrf.mxu3 }
 0x507   : > { %v3096_v19 = vadd.f32 %v2916_v39, %v2217_v52  ;;  %v2219_v40 = vpop.f32.mrf.mxu1  ;;  %v5021_v52 = vrot.slane %v5019_v53, 1  ;;  %v12262_v53 = vld [vmem:[%s12600_s29 + $0x218] sm:$0xff] }
 0x508   : > { %v2220_v1 = vadd.f32 %v2219_v40, %v16113_v31  ;;  %v3734_v40 = vrot.slane %v12261_v61, 1 }
 0x509   : > { %v4407_v57 = vadd.f32 %v4227_v14, %v3096_v19  ;;  %v16115_v19 = vld [vmem:[#allocation25_spill] sm:$0xff] }
 0x50a   : > { %11104 = vmatmul.msk.bf16.gmra.mxu1 %vm1240_vm3, %v12432_v9 }
 0x50b   : > { %v5549_v62 = vpop.f32.mrf.mxu0  ;;  %11173 = vmatmul.msk.bf16.gmra.mxu2 %vm1240_vm3, %v2422_v26  ;;  %v14032_v3 = vadd.f32 %v5546_v12, %v4407_v57  ;;  %11510 = vmatmul.msk.bf16.gmra.mxu3 %vm1240_vm3, %v3733_v27  ;;  %v12434_v57 = vld [vmem:[%s12600_s29 + $0x200] sm:$0xff] }
 0x50c   : > { %v2423_v12 = vrot.slane %v12434_v57, 1 }
 0x50d   : > { %16112 = vst [vmem:[#allocation19_spill] sm:$0xff] %v14032_v3 }
 0x50e   : > { %11579 = vmatmul.msk.bf16.gmra.mxu0 %vm1240_vm3, %v5017_v11  ;;  %v2919_v60 = vpop.f32.mrf.mxu2  ;;  %v4230_v16 = vpop.f32.mrf.mxu3  ;;  %v2424_v3 = vsel %vm2295_vm4, %v2421_v58, %v2423_v12 }
 0x50f   : > { %v3097_v54 = vadd.f32 %v2919_v60, %v2220_v1  ;;  %v2221_v9 = vpop.f32.mrf.mxu1  ;;  %v5025_v1 = vor.u32 %v5024_v24, %v5021_v52  ;;  %v5028_v52 = vshrl.u32 %v12262_v53, 16  ;;  %v5031_v24 = vshll.u32 %v12262_v53, 16 }
 0x510   : > { %v2222_v14 = vadd.f32 %v2221_v9, %v16115_v19 }
 0x511   : > { %v4408_v18 = vadd.f32 %v4230_v16, %v3097_v54  ;;  %v3735_v54 = vsel %vm2295_vm4, %v3732_v33, %v3734_v40 }
 0x513   : > { %v5551_v26 = vpop.f32.mrf.mxu0  ;;  %v14037_v39 = vadd.f32 %v5549_v62, %v4408_v18  ;;  %v5026_v62 = vsel %vm4442_vm5, %v5016_v51, %v5025_v1  ;;  %v5033_v51 = vrot.slane %v5031_v24, 2  ;;  %v16121_v24 = vld [vmem:[#allocation34_spill] sm:$0xff] }
 0x515   : > { %16114 = vst [vmem:[#allocation22_spill] sm:$0xff] %v14037_v39 }
 0x516   : > { %v2921_v27 = vpop.f32.mrf.mxu2  ;;  %v4232_v31 = vpop.f32.mrf.mxu3 }
 0x517   : > { %v3098_v11 = vadd.f32 %v2921_v27, %v2222_v14  ;;  %v2224_v60 = vpop.f32.mrf.mxu1  ;;  %v5030_v14 = vrot.slane %v5028_v52, 1  ;;  %v14062_v52 = vld [vmem:[%s12600_s29 + $0x220] sm:$0xff] }
 0x518   : > { %v2225_v9 = vadd.f32 %v2224_v60, %v16117_v10  ;;  %v3736_v60 = vrot.slane %v12262_v53, 1 }
 0x519   : > { %v4409_v43 = vadd.f32 %v4232_v31, %v3098_v11  ;;  %v16119_v11 = vld [vmem:[#allocation31_spill] sm:$0xff] }
 0x51a   : > { %11105 = vmatmul.msk.bf16.gmra.mxu1 %vm1240_vm3, %v12433_v38 }
 0x51b   : > { %v5554_v16 = vpop.f32.mrf.mxu0  ;;  %11174 = vmatmul.msk.bf16.gmra.mxu2 %vm1240_vm3, %v2424_v3  ;;  %v14047_v61 = vadd.f32 %v5551_v26, %v4409_v43  ;;  %11511 = vmatmul.msk.bf16.gmra.mxu3 %vm1240_vm3, %v3735_v54  ;;  %v12435_v43 = vld [vmem:[%s12600_s29 + $0x208] sm:$0xff] }
 0x51c   : > { %v2425_v26 = vrot.slane %v12435_v43, 1 }
 0x51d   : > { %16116 = vst [vmem:[#allocation25_spill] sm:$0xff] %v14047_v61 }
 0x51e   : > { %11580 = vmatmul.msk.bf16.gmra.mxu0 %vm1240_vm3, %v5026_v62  ;;  %v2924_v58 = vpop.f32.mrf.mxu2  ;;  %v4235_v33 = vpop.f32.mrf.mxu3  ;;  %v2426_v61 = vsel %vm2295_vm4, %v2423_v12, %v2425_v26 }
 0x51f   : > { %v3099_v18 = vadd.f32 %v2924_v58, %v2225_v9  ;;  %v2226_v38 = vpop.f32.mrf.mxu1  ;;  %v5034_v9 = vor.u32 %v5033_v51, %v5030_v14 }
 0x520   : > { %v2227_v31 = vadd.f32 %v2226_v38, %v16119_v11 }
 0x521   : > { %v4410_v19 = vadd.f32 %v4235_v33, %v3099_v18  ;;  %v3737_v18 = vsel %vm2295_vm4, %v3734_v40, %v3736_v60 }
 0x523   : > { %v5556_v3 = vpop.f32.mrf.mxu0  ;;  %v14052_v27 = vadd.f32 %v5554_v16, %v4410_v19  ;;  %v5035_v16 = vsel %vm4442_vm5, %v5025_v1, %v5034_v9 }
 0x525   : > { %16118 = vst [vmem:[#allocation28_spill] sm:$0xff] %v14052_v27 }
 0x526   : > { %v2926_v54 = vpop.f32.mrf.mxu2  ;;  %v4237_v10 = vpop.f32.mrf.mxu3 }
 0x527   : > { %v3100_v62 = vadd.f32 %v2926_v54, %v2227_v31  ;;  %v2229_v58 = vpop.f32.mrf.mxu1 }
 0x528   : > { %v2230_v38 = vadd.f32 %v2229_v58, %v16121_v24  ;;  %v3738_v58 = vrot.slane %v14062_v52, 1 }
 0x529   : > { %v4411_v39 = vadd.f32 %v4237_v10, %v3100_v62  ;;  %v16123_v62 = vld [vmem:[#allocation37_spill] sm:$0xff] }
 0x52a   : > { %11106 = vmatmul.msk.bf16.gmra.mxu1 %vm1240_vm3, %v12434_v57  ;;  %v5037_v57 = vshrl.u32 %v14062_v52, 16 }
 0x52b   : > { %v5559_v33 = vpop.f32.mrf.mxu0  ;;  %11175 = vmatmul.msk.bf16.gmra.mxu2 %vm1240_vm3, %v2426_v61  ;;  %v14064_v53 = vadd.f32 %v5556_v3, %v4411_v39  ;;  %11512 = vmatmul.msk.bf16.gmra.mxu3 %vm1240_vm3, %v3737_v18  ;;  %v5040_v61 = vshll.u32 %v14062_v52, 16  ;;  %v12436_v3 = vld [vmem:[%s12600_s29 + $0x210] sm:$0xff] }
 0x52c   : > { %v5039_v11 = vrot.slane %v5037_v57, 1  ;;  %v2427_v54 = vrot.slane %v12436_v3, 1 }
 0x52d   : > { %16120 = vst [vmem:[#allocation31_spill] sm:$0xff] %v14064_v53  ;;  %v5042_v31 = vrot.slane %v5040_v61, 2  ;;  %v14082_v61 = vld [vmem:[%s12600_s29 + $0x228] sm:$0xff] }
 0x52e   : > { %11581 = vmatmul.msk.bf16.gmra.mxu0 %vm1240_vm3, %v5035_v16  ;;  %v2929_v12 = vpop.f32.mrf.mxu2  ;;  %v4240_v19 = vpop.f32.mrf.mxu3  ;;  %v2428_v53 = vsel %vm2295_vm4, %v2425_v26, %v2427_v54 }
 0x52f   : > { %v3101_v40 = vadd.f32 %v2929_v12, %v2230_v38  ;;  %v2231_v14 = vpop.f32.mrf.mxu1  ;;  %v5043_v38 = vor.u32 %v5042_v31, %v5039_v11 }
 0x530   : > { %v2232_v10 = vadd.f32 %v2231_v14, %v16123_v62  ;;  %v16125_v14 = vld [vmem:[#allocation40_spill] sm:$0xff] }
 0x531   : > { %v4412_v1 = vadd.f32 %v4240_v19, %v3101_v40  ;;  %v3739_v19 = vsel %vm2295_vm4, %v3736_v60, %v3738_v58 }
 0x533   : > { %v5561_v51 = vpop.f32.mrf.mxu0  ;;  %v14071_v39 = vadd.f32 %v5559_v33, %v4412_v1  ;;  %v5044_v33 = vsel %vm4442_vm5, %v5034_v9, %v5043_v38 }
 0x535   : > { %16122 = vst [vmem:[#allocation34_spill] sm:$0xff] %v14071_v39 }
 0x536   : > { %v2931_v18 = vpop.f32.mrf.mxu2  ;;  %v4242_v24 = vpop.f32.mrf.mxu3 }
 0x537   : > { %v3102_v16 = vadd.f32 %v2931_v18, %v2232_v10  ;;  %v2234_v12 = vpop.f32.mrf.mxu1 }
 0x538   : > { %v2235_v26 = vadd.f32 %v2234_v12, %v16125_v14  ;;  %v4436_v12 = vld [vmem:[%s12600_s29 + $0x230] sm:$0x3] }
 0x539   : > { %v4413_v40 = vadd.f32 %v4242_v24, %v3102_v16  ;;  %v12437_v16 = vld [vmem:[%s12600_s29 + $0x218] sm:$0xff]  ;;  %v4440_v39 = vunpack.c.l.b16 %v4436_v12 }
 0x53a   : > { %11107 = vmatmul.msk.bf16.gmra.mxu1 %vm1240_vm3, %v12435_v43  ;;  %v5046_v43 = vshrl.u32 %v14082_v61, 16  ;;  %v2429_v24 = vrot.slane %v12437_v16, 1 }
 0x53b   : > { %v5564_v57 = vpop.f32.mrf.mxu0  ;;  %11176 = vmatmul.msk.bf16.gmra.mxu2 %vm1240_vm3, %v2428_v53  ;;  %v14084_v52 = vadd.f32 %v5561_v51, %v4413_v40  ;;  %11513 = vmatmul.msk.bf16.gmra.mxu3 %vm1240_vm3, %v3739_v19  ;;  %v5049_v53 = vshll.u32 %v14082_v61, 16  ;;  %v16127_v40 = vld [vmem:[#allocation43_spill] sm:$0xff] }
 0x53c   : > { %v5048_v10 = vrot.slane %v5046_v43, 1 }
 0x53d   : > { %16124 = vst [vmem:[#allocation37_spill] sm:$0xff] %v14084_v52  ;;  %v5051_v51 = vrot.slane %v5049_v53, 2 }
 0x53e   : > { %11582 = vmatmul.msk.bf16.gmra.mxu0 %vm1240_vm3, %v5044_v33  ;;  %v2934_v60 = vpop.f32.mrf.mxu2  ;;  %v4245_v11 = vpop.f32.mrf.mxu3  ;;  %v3740_v33 = vrot.slane %v14082_v61, 1 }
 0x53f   : > { %v3103_v1 = vadd.f32 %v2934_v60, %v2235_v26  ;;  %v2236_v9 = vpop.f32.mrf.mxu1  ;;  %v5052_v52 = vor.u32 %v5051_v51, %v5048_v10 }
 0x540   : > { %v2237_v19 = vadd.f32 %v2236_v9, %v16127_v40  ;;  %v3741_v43 = vsel %vm2295_vm4, %v3738_v58, %v3740_v33  ;;  %v14103_v9 = vpack.c.b16 %v4440_v39, %v4440_v39 }
 0x541   : > { %v4414_v31 = vadd.f32 %v4245_v11, %v3103_v1  ;;  %v2430_v1 = vsel %vm2295_vm4, %v2427_v54, %v2429_v24  ;;  %v5053_v61 = vsel %vm4442_vm5, %v5043_v38, %v5052_v52  ;;  %v16130_v54 = vld [vmem:[#allocation47_spill] sm:$0xff] }
 0x542   : > { %16128 = vst [vmem:[#allocation43_spill] sm:$0xff] %v14103_v9  ;;  %v5055_v40 = vshrl.u32 %v14103_v9, 16 }
 0x543   : > { %v5566_v62 = vpop.f32.mrf.mxu0  ;;  %v14091_v18 = vadd.f32 %v5564_v57, %v4414_v31  ;;  %v3261_v57 = vld [vmem:[%s12600_s29 + $0x230] sm:$0x1] }
 0x544   : > { %v3537_v51 = vunpack.c.l.b16 %v3261_v57 }
 0x545   : > { %16126 = vst [vmem:[#allocation40_spill] sm:$0xff] %v14091_v18 }
 0x546   : > { %v2936_v14 = vpop.f32.mrf.mxu2  ;;  %v4247_v60 = vpop.f32.mrf.mxu3  ;;  %v3606_v39 = vpack.c.b16 %v3537_v51, %v3537_v51 }
 0x547   : > { %v3104_v26 = vadd.f32 %v2936_v14, %v2237_v19  ;;  %v2239_v27 = vpop.f32.mrf.mxu1  ;;  %v5058_v19 = vshll.u32 %v14103_v9, 16 }
 0x548   : > { %v2240_v10 = vadd.f32 %v2239_v27, %v16130_v54 }
 0x549   : > { %v4415_v11 = vadd.f32 %v4247_v60, %v3104_v26  ;;  %v6591_v26 = vld [vmem:[%s12600_s29 + $0x20] sm:$0xc]  ;;  %v6592_v60 = vld [vmem:[%s12600_s29 + $0x24] sm:$0xf] }
 0x54a   : > { %11108 = vmatmul.msk.bf16.gmra.mxu1 %vm1240_vm3, %v12436_v3  ;;  %v6868_v54 = vunpack.c.l.b16 %v6592_v60  ;;  %v9221_v60 = vld [vmem:[%s12600_s29 + $0x20] sm:$0x8] }
 0x54b   : > { %v5569_v53 = vpop.f32.mrf.mxu0  ;;  %11177 = vmatmul.msk.bf16.gmra.mxu2 %vm1240_vm3, %v2430_v1  ;;  %11514 = vmatmul.msk.bf16.gmra.mxu3 %vm1240_vm3, %v3741_v43  ;;  %v14106_v31 = vadd.f32 %v5566_v62, %v4415_v11  ;;  %v5057_v62 = vrot.slane %v5055_v40, 1  ;;  %v5060_v11 = vrot.slane %v5058_v19, 2  ;;  %v16132_v43 = vld [vmem:[#allocation45_spill] sm:$0xff] }
 0x54c   : > { %v2431_v57 = vrot.slane %v16132_v43, 1 }
 0x54d   : > { %16129 = vst [vmem:[#allocation107_spill] sm:$0xff] %v14106_v31  ;;  %v3742_v31 = vrot.slane %v3606_v39, 1  ;;  %v5061_v51 = vor.u32 %v5060_v11, %v5057_v62 }
 0x54e   : > { %11583 = vmatmul.msk.bf16.gmra.mxu0 %vm1240_vm3, %v5053_v61  ;;  %v2939_v58 = vpop.f32.mrf.mxu2  ;;  %v4250_v3 = vpop.f32.mrf.mxu3  ;;  %v6867_v61 = vunpack.c.l.b16 %v6591_v26  ;;  %v2432_v40 = vsel %vm2295_vm4, %v2429_v24, %v2431_v57  ;;  %v16136_v57 = vld [vmem:[#allocation49_spill] sm:$0xff] }
 0x54f   : > { %v3105_v12 = vadd.f32 %v2939_v58, %v2240_v10  ;;  %v2241_v38 = vpop.f32.mrf.mxu1  ;;  %v16133_v10 = vld [vmem:[#allocation51_spill] sm:$0xff] }
 0x550   : > { %v2242_v58 = vadd.f32 %v2241_v38, %v16133_v10  ;;  %v7004_v19 = vpack.c.b16 %v6868_v54, %v6867_v61  ;;  %v16137_v61 = vunpack.c.l.b16 %v16136_v57  ;;  %v14147_v57 = vld [vmem:[%s12600_s29 + $0x30] sm:$0xff] }
 0x551   : > { %v4416_v14 = vadd.f32 %v4250_v3, %v3105_v12 }
 0x552   : > { %v7910_v24 = vshrl.u32 %v7004_v19, 16  ;;  %v7073_v30 = vrot.slane %v7004_v19, 2 }
 0x553   : > { %v5571_v1 = vpop.f32.mrf.mxu0  ;;  %v14114_v27 = vadd.f32 %v5569_v53, %v4416_v14  ;;  %v3743_v53 = vsel %vm2295_vm4, %v3740_v33, %v3742_v31  ;;  %v5755_v14 = vld [vmem:[%s12600_s29 + $0x10] sm:$0xc]  ;;  %v7913_v33 = vshll.u32 %v7004_v19, 16 }
 0x554   : > { %v5759_v39 = vunpack.c.l.b16 %v5755_v14 }
 0x555   : > { %16131 = vst [vmem:[#allocation47_spill] sm:$0xff] %v14114_v27  ;;  %v14122_v27 = vld [vmem:[%s12600_s29 + $0x28] sm:$0xff] }
 0x556   : > { %v2941_v9 = vpop.f32.mrf.mxu2  ;;  %v4252_v12 = vpop.f32.mrf.mxu3  ;;  %v7918_v31 = vshrl.u32 %v14122_v27, 16  ;;  %v7921_v11 = vshll.u32 %v14122_v27, 16  ;;  %v5760_v10 = vpack.c.b16 %v16137_v61, %v5759_v39 }
 0x557   : > { %v3106_v18 = vadd.f32 %v2941_v9, %v2242_v58  ;;  %v2244_v3 = vpop.f32.mrf.mxu1  ;;  %v5062_v9 = vsel %vm4442_vm5, %v5052_v52, %v5061_v51  ;;  %v7912_v58 = vrot.slane %v7910_v24, 2  ;;  %v7915_v51 = vrot.slane %v7913_v33, 3 }
 0x559   : > { %v4417_v28 = vadd.f32 %v4252_v12, %v3106_v18  ;;  %v16135_v18 = vld [vmem:[#allocation54_spill] sm:$0xff]  ;;  %v7916_v39 = vor.u32 %v7915_v51, %v7912_v58  ;;  %v7927_v58 = vshrl.u32 %v14147_v57, 16 }
 0x55a   : > { %11109 = vmatmul.msk.bf16.gmra.mxu1 %vm1240_vm3, %v12437_v16  ;;  %v2245_v62 = vadd.f32 %v2244_v3, %v16135_v18  ;;  %v7920_v3 = vrot.slane %v7918_v31, 2 }
 0x55b   : > { %v5574_v26 = vpop.f32.mrf.mxu0  ;;  %11178 = vmatmul.msk.bf16.gmra.mxu2 %vm1240_vm3, %v2432_v40  ;;  %v14127_v38 = vadd.f32 %v5571_v1, %v4417_v28  ;;  %11515 = vmatmul.msk.bf16.gmra.mxu3 %vm1240_vm3, %v3743_v53  ;;  %v9225_v28 = vunpack.c.l.b16 %v9221_v60  ;;  %v7923_v40 = vrot.slane %v7921_v11, 3  ;;  %v16138_v60 = vld [vmem:[#allocation57_spill] sm:$0xff] }
 0x55d   : > { %16134 = vst [vmem:[#allocation45_spill] sm:$0xff] %v14127_v38  ;;  %v9226_v14 = vpack.c.b16 %v6868_v54, %v9225_v28  ;;  %v5762_v38 = vrot.slane %v5760_v10, 2  ;;  %v7924_v24 = vor.u32 %v7923_v40, %v7920_v3  ;;  %v9229_v54 = vrot.slane %v14122_v27, 3 }
 0x55e   : > { %11584 = vmatmul.msk.bf16.gmra.mxu0 %vm1240_vm3, %v5062_v9  ;;  %v2944_v16 = vpop.f32.mrf.mxu2  ;;  %v4255_v52 = vpop.f32.mrf.mxu3  ;;  %v12438_v9 = vld [vmem:[%s12600_s29 + $0x18] sm:$0xff] }
 0x55f   : > { %v3107_v43 = vadd.f32 %v2944_v16, %v2245_v62  ;;  %v2246_v1 = vpop.f32.mrf.mxu1  ;;  %v5763_v36 = vrot.slane %v12438_v9, 2  ;;  %v7074_v62 = vrot.slane %v14122_v27, 2  ;;  %v9228_v11 = vrot.slane %v9226_v14, 3 }
 0x560   : > { %v2247_v16 = vadd.f32 %v2246_v1, %v16138_v60  ;;  %v7925_v1 = vsel %vm7908_vm7, %v7916_v39, %v7924_v24  ;;  %v7929_v60 = vrot.slane %v7927_v58, 2 }
 0x561   : > { %v4418_v12 = vadd.f32 %v4255_v52, %v3107_v43  ;;  %v5764_v52 = vsel %vm5761_vm6, %v5762_v38, %v5763_v36  ;;  %v7075_v19 = vsel %vm5761_vm6, %v7073_v30, %v7074_v62  ;;  %v9230_v10 = vsel %vm9227_vm8, %v9228_v11, %v9229_v54  ;;  %v16139_v38 = vld [vmem:[#allocation60_spill] sm:$0xff]  ;;  %v16140_v11 = vld [vmem:[#allocation63_spill] sm:$0xff] }
 0x563   : > { %v5576_v53 = vpop.f32.mrf.mxu0  ;;  %v14137_v18 = vadd.f32 %v5574_v26, %v4418_v12  ;;  %v7930_v12 = vshll.u32 %v14147_v57, 16 }
 0x566   : > { %v2946_v43 = vpop.f32.mrf.mxu2  ;;  %v4257_v31 = vpop.f32.mrf.mxu3 }
 0x567   : > { %v3108_v33 = vadd.f32 %v2946_v43, %v2247_v16  ;;  %v2249_v26 = vpop.f32.mrf.mxu1  ;;  %v7932_v16 = vrot.slane %v7930_v12, 3  ;;  %v12439_v43 = vld [vmem:[%s12600_s29 + $0x20] sm:$0xff] }
 0x568   : > { %v2250_v30 = vadd.f32 %v2249_v26, %v16139_v38 }
 0x569   : > { %v4419_v28 = vadd.f32 %v4257_v31, %v3108_v33  ;;  %v5765_v33 = vrot.slane %v12439_v43, 2  ;;  %v7076_v31 = vrot.slane %v14147_v57, 2 }
 0x56a   : > { %11586 = vmatmul.msk.bf16.vlgmr.msra.gmra.mxu1 %vm1240_vm3, %v5764_v52  ;;  %v7933_v52 = vor.u32 %v7932_v16, %v7929_v60 }
 0x56b   : > { %v5579_v61 = vpop.f32.mrf.mxu0  ;;  %11923 = vmatmul.msk.bf16.vlgmr.msra.gmra.mxu2 %vm1240_vm3, %v7075_v19  ;;  %v14152_v27 = vadd.f32 %v5576_v53, %v4419_v28  ;;  %11992 = vmatmul.msk.bf16.vlgmr.msra.gmra.mxu3 %vm1240_vm3, %v7925_v1  ;;  %v7077_v58 = vsel %vm5761_vm6, %v7074_v62, %v7076_v31 }
 0x56e   : > { %12061 = vmatmul.msk.bf16.vlgmr.msra.gmra.mxu0 %vm1240_vm3, %v9230_v10  ;;  %v2949_v51 = vpop.f32.mrf.mxu2  ;;  %v4260_v40 = vpop.f32.mrf.mxu3  ;;  %v9231_v10 = vrot.slane %v14147_v57, 3 }
 0x56f   : > { %v3109_v3 = vadd.f32 %v2949_v51, %v2250_v30  ;;  %v2251_v14 = vpop.f32.mrf.mxu1  ;;  %v5766_v30 = vsel %vm5761_vm6, %v5763_v36, %v5765_v33  ;;  %v14169_v51 = vld [vmem:[%s12600_s29 + $0x38] sm:$0xff]  ;;  %v16141_v36 = vld [vmem:[#allocation66_spill] sm:$0xff] }
 0x570   : > { %v2252_v26 = vadd.f32 %v2251_v14, %v16140_v11  ;;  %v7936_v62 = vshrl.u32 %v14169_v51, 16 }
 0x571   : > { %v4420_v9 = vadd.f32 %v4260_v40, %v3109_v3  ;;  %v9232_v40 = vsel %vm9227_vm8, %v9229_v54, %v9231_v10 }
 0x573   : > { %v5581_v39 = vpop.f32.mrf.mxu0  ;;  %v14159_v53 = vadd.f32 %v5579_v61, %v4420_v9  ;;  %v7934_v61 = vsel %vm7908_vm7, %v7924_v24, %v7933_v52  ;;  %v7939_v24 = vshll.u32 %v14169_v51, 16 }
 0x575   : > { %v7941_v54 = vrot.slane %v7939_v24, 3 }
 0x576   : > { %v2951_v19 = vpop.f32.mrf.mxu2  ;;  %v4262_v1 = vpop.f32.mrf.mxu3 }
 0x577   : > { %v3110_v28 = vadd.f32 %v2951_v19, %v2252_v26  ;;  %v2254_v38 = vpop.f32.mrf.mxu1  ;;  %v7938_v26 = vrot.slane %v7936_v62, 2 }
 0x578   : > { %v2255_v57 = vadd.f32 %v2254_v38, %v16141_v36  ;;  %v7078_v38 = vrot.slane %v14169_v51, 2 }
 0x579   : > { %v4421_v12 = vadd.f32 %v4262_v1, %v3110_v28  ;;  %v12440_v28 = vld [vmem:[%s12600_s29 + $0x28] sm:$0xff] }
 0x57a   : > { %11587 = vmatmul.msk.bf16.gmra.mxu1 %vm1240_vm3, %v5766_v30  ;;  %v5767_v1 = vrot.slane %v12440_v28, 2  ;;  %v16143_v30 = vld [vmem:[#allocation69_spill] sm:$0xff]  ;;  %v7079_v24 = vsel %vm5761_vm6, %v7076_v31, %v7078_v38 }
 0x57b   : > { %v5584_v3 = vpop.f32.mrf.mxu0  ;;  %11924 = vmatmul.msk.bf16.gmra.mxu2 %vm1240_vm3, %v7077_v58  ;;  %v14174_v14 = vadd.f32 %v5581_v39, %v4421_v12  ;;  %11993 = vmatmul.msk.bf16.gmra.mxu3 %vm1240_vm3, %v7934_v61  ;;  %v7942_v12 = vor.u32 %v7941_v54, %v7938_v26 }
 0x57c   : > { %v5768_v62 = vsel %vm5761_vm6, %v5765_v33, %v5767_v1  ;;  %v16145_v33 = vld [vmem:[#allocation72_spill] sm:$0xff] }
 0x57e   : > { %12062 = vmatmul.msk.bf16.gmra.mxu0 %vm1240_vm3, %v9232_v40  ;;  %v2954_v9 = vpop.f32.mrf.mxu2  ;;  %v4265_v16 = vpop.f32.mrf.mxu3 }
 0x57f   : > { %v3111_v60 = vadd.f32 %v2954_v9, %v2255_v57  ;;  %v2256_v43 = vpop.f32.mrf.mxu1  ;;  %v9233_v57 = vrot.slane %v14169_v51, 3 }
 0x580   : > { %v2257_v58 = vadd.f32 %v2256_v43, %v16143_v30 }
 0x581   : > { %v4422_v11 = vadd.f32 %v4265_v16, %v3111_v60  ;;  %v14191_v16 = vld [vmem:[%s12600_s29 + $0x40] sm:$0xff]  ;;  %v9234_v43 = vsel %vm9227_vm8, %v9231_v10, %v9233_v57 }
 0x582   : > { %v7945_v31 = vshrl.u32 %v14191_v16, 16 }
 0x583   : > { %v5586_v19 = vpop.f32.mrf.mxu0  ;;  %v14181_v39 = vadd.f32 %v5584_v3, %v4422_v11  ;;  %v7943_v3 = vsel %vm7908_vm7, %v7933_v52, %v7942_v12  ;;  %v7948_v52 = vshll.u32 %v14191_v16, 16 }
 0x585   : > { %16142 = vst [vmem:[#allocation51_spill] sm:$0xff] %v14181_v39  ;;  %v7950_v10 = vrot.slane %v7948_v52, 3 }
 0x586   : > { %v2956_v61 = vpop.f32.mrf.mxu2  ;;  %v4267_v36 = vpop.f32.mrf.mxu3 }
 0x587   : > { %v3112_v40 = vadd.f32 %v2956_v61, %v2257_v58  ;;  %v2259_v9 = vpop.f32.mrf.mxu1 }
 0x588   : > { %v2260_v51 = vadd.f32 %v2259_v9, %v16145_v33  ;;  %v7080_v9 = vrot.slane %v14191_v16, 2 }
 0x589   : > { %v4423_v60 = vadd.f32 %v4267_v36, %v3112_v40  ;;  %v7947_v40 = vrot.slane %v7945_v31, 2 }
 0x58a   : > { %11588 = vmatmul.msk.bf16.gmra.mxu1 %vm1240_vm3, %v5768_v62  ;;  %v12441_v62 = vld [vmem:[%s12600_s29 + $0x30] sm:$0xff]  ;;  %v7081_v52 = vsel %vm5761_vm6, %v7078_v38, %v7080_v9 }
 0x58b   : > { %v5589_v11 = vpop.f32.mrf.mxu0  ;;  %11925 = vmatmul.msk.bf16.gmra.mxu2 %vm1240_vm3, %v7079_v24  ;;  %v14196_v26 = vadd.f32 %v5586_v19, %v4423_v60  ;;  %11994 = vmatmul.msk.bf16.gmra.mxu3 %vm1240_vm3, %v7943_v3  ;;  %v5769_v24 = vrot.slane %v12441_v62, 2  ;;  %v16147_v60 = vld [vmem:[#allocation75_spill] sm:$0xff]  ;;  %v7951_v33 = vor.u32 %v7950_v10, %v7947_v40 }
 0x58d   : > { %16144 = vst [vmem:[#allocation54_spill] sm:$0xff] %v14196_v26  ;;  %v5770_v31 = vsel %vm5761_vm6, %v5767_v1, %v5769_v24  ;;  %v16149_v1 = vld [vmem:[#allocation78_spill] sm:$0xff] }
 0x58e   : > { %12063 = vmatmul.msk.bf16.gmra.mxu0 %vm1240_vm3, %v9234_v43  ;;  %v2959_v54 = vpop.f32.mrf.mxu2  ;;  %v4270_v30 = vpop.f32.mrf.mxu3 }
 0x58f   : > { %v3113_v28 = vadd.f32 %v2959_v54, %v2260_v51  ;;  %v2261_v58 = vpop.f32.mrf.mxu1  ;;  %v9235_v51 = vrot.slane %v14191_v16, 3 }
 0x590   : > { %v2262_v3 = vadd.f32 %v2261_v58, %v16147_v60 }
 0x591   : > { %v4424_v61 = vadd.f32 %v4270_v30, %v3113_v28  ;;  %v14213_v30 = vld [vmem:[%s12600_s29 + $0x48] sm:$0xff] }
 0x592   : > { %v7957_v38 = vshll.u32 %v14213_v30, 16 }
 0x593   : > { %v5591_v36 = vpop.f32.mrf.mxu0  ;;  %v14203_v19 = vadd.f32 %v5589_v11, %v4424_v61  ;;  %v7952_v11 = vsel %vm7908_vm7, %v7942_v12, %v7951_v33 }
 0x595   : > { %16146 = vst [vmem:[#allocation49_spill] sm:$0xff] %v14203_v19 }
 0x596   : > { %v2961_v26 = vpop.f32.mrf.mxu2  ;;  %v4272_v39 = vpop.f32.mrf.mxu3 }
 0x597   : > { %v3114_v43 = vadd.f32 %v2961_v26, %v2262_v3  ;;  %v2264_v54 = vpop.f32.mrf.mxu1  ;;  %v9236_v26 = vsel %vm9227_vm8, %v9233_v57, %v9235_v51  ;;  %v7959_v57 = vrot.slane %v7957_v38, 3 }
 0x598   : > { %v2265_v16 = vadd.f32 %v2264_v54, %v16149_v1  ;;  %v7082_v54 = vrot.slane %v14213_v30, 2 }
 0x599   : > { %v4425_v28 = vadd.f32 %v4272_v39, %v3114_v43  ;;  %v7954_v39 = vshrl.u32 %v14213_v30, 16 }
 0x59a   : > { %11589 = vmatmul.msk.bf16.gmra.mxu1 %vm1240_vm3, %v5770_v31  ;;  %v12442_v31 = vld [vmem:[%s12600_s29 + $0x38] sm:$0xff]  ;;  %v7083_v38 = vsel %vm5761_vm6, %v7080_v9, %v7082_v54 }
 0x59b   : > { %v5594_v61 = vpop.f32.mrf.mxu0  ;;  %11926 = vmatmul.msk.bf16.gmra.mxu2 %vm1240_vm3, %v7081_v52  ;;  %v14218_v58 = vadd.f32 %v5591_v36, %v4425_v28  ;;  %11995 = vmatmul.msk.bf16.gmra.mxu3 %vm1240_vm3, %v7952_v11  ;;  %v7956_v3 = vrot.slane %v7954_v39, 2  ;;  %v5771_v52 = vrot.slane %v12442_v31, 2  ;;  %v16151_v28 = vld [vmem:[#allocation81_spill] sm:$0xff] }
 0x59d   : > { %16148 = vst [vmem:[#allocation57_spill] sm:$0xff] %v14218_v58  ;;  %v7960_v1 = vor.u32 %v7959_v57, %v7956_v3  ;;  %v5772_v39 = vsel %vm5761_vm6, %v5769_v24, %v5771_v52  ;;  %v16153_v24 = vld [vmem:[#allocation84_spill] sm:$0xff] }
 0x59e   : > { %12064 = vmatmul.msk.bf16.gmra.mxu0 %vm1240_vm3, %v9236_v26  ;;  %v2964_v12 = vpop.f32.mrf.mxu2  ;;  %v4275_v10 = vpop.f32.mrf.mxu3 }
 0x59f   : > { %v3115_v40 = vadd.f32 %v2964_v12, %v2265_v16  ;;  %v2266_v62 = vpop.f32.mrf.mxu1  ;;  %v9237_v16 = vrot.slane %v14213_v30, 3 }
 0x5a0   : > { %v2267_v11 = vadd.f32 %v2266_v62, %v16151_v28 }
 0x5a1   : > { %v4426_v60 = vadd.f32 %v4275_v10, %v3115_v40  ;;  %v14235_v10 = vld [vmem:[%s12600_s29 + $0x50] sm:$0xff] }
 0x5a2   : > { %v7966_v9 = vshll.u32 %v14235_v10, 16 }
 0x5a3   : > { %v5596_v43 = vpop.f32.mrf.mxu0  ;;  %v14225_v36 = vadd.f32 %v5594_v61, %v4426_v60  ;;  %v7961_v61 = vsel %vm7908_vm7, %v7951_v33, %v7960_v1 }
 0x5a5   : > { %16150 = vst [vmem:[#allocation60_spill] sm:$0xff] %v14225_v36 }
 0x5a6   : > { %v2966_v58 = vpop.f32.mrf.mxu2  ;;  %v4277_v19 = vpop.f32.mrf.mxu3 }
 0x5a7   : > { %v3116_v26 = vadd.f32 %v2966_v58, %v2267_v11  ;;  %v2269_v12 = vpop.f32.mrf.mxu1  ;;  %v9238_v58 = vsel %vm9227_vm8, %v9235_v51, %v9237_v16  ;;  %v7968_v51 = vrot.slane %v7966_v9, 3 }
 0x5a8   : > { %v2270_v30 = vadd.f32 %v2269_v12, %v16153_v24  ;;  %v7084_v12 = vrot.slane %v14235_v10, 2 }
 0x5a9   : > { %v4427_v40 = vadd.f32 %v4277_v19, %v3116_v26  ;;  %v7963_v19 = vshrl.u32 %v14235_v10, 16 }
 0x5aa   : > { %11590 = vmatmul.msk.bf16.gmra.mxu1 %vm1240_vm3, %v5772_v39  ;;  %v12443_v39 = vld [vmem:[%s12600_s29 + $0x40] sm:$0xff]  ;;  %v7085_v9 = vsel %vm5761_vm6, %v7082_v54, %v7084_v12 }
 0x5ab   : > { %v5599_v60 = vpop.f32.mrf.mxu0  ;;  %11927 = vmatmul.msk.bf16.gmra.mxu2 %vm1240_vm3, %v7083_v38  ;;  %v14240_v62 = vadd.f32 %v5596_v43, %v4427_v40  ;;  %11996 = vmatmul.msk.bf16.gmra.mxu3 %vm1240_vm3, %v7961_v61  ;;  %v7965_v11 = vrot.slane %v7963_v19, 2  ;;  %v5773_v38 = vrot.slane %v12443_v39, 2  ;;  %v16155_v40 = vld [vmem:[#allocation87_spill] sm:$0xff] }
 0x5ad   : > { %16152 = vst [vmem:[#allocation63_spill] sm:$0xff] %v14240_v62  ;;  %v7969_v24 = vor.u32 %v7968_v51, %v7965_v11  ;;  %v5774_v19 = vsel %vm5761_vm6, %v5771_v52, %v5773_v38  ;;  %v16157_v52 = vld [vmem:[#allocation90_spill] sm:$0xff] }
 0x5ae   : > { %12065 = vmatmul.msk.bf16.gmra.mxu0 %vm1240_vm3, %v9238_v58  ;;  %v2969_v33 = vpop.f32.mrf.mxu2  ;;  %v4280_v57 = vpop.f32.mrf.mxu3 }
 0x5af   : > { %v3117_v3 = vadd.f32 %v2969_v33, %v2270_v30  ;;  %v2271_v31 = vpop.f32.mrf.mxu1  ;;  %v9239_v30 = vrot.slane %v14235_v10, 3 }
 0x5b0   : > { %v2272_v61 = vadd.f32 %v2271_v31, %v16155_v40 }
 0x5b1   : > { %v4428_v28 = vadd.f32 %v4280_v57, %v3117_v3  ;;  %v14257_v57 = vld [vmem:[%s12600_s29 + $0x58] sm:$0xff] }
 0x5b2   : > { %v7975_v54 = vshll.u32 %v14257_v57, 16 }
 0x5b3   : > { %v5601_v26 = vpop.f32.mrf.mxu0  ;;  %v14247_v43 = vadd.f32 %v5599_v60, %v4428_v28  ;;  %v7970_v60 = vsel %vm7908_vm7, %v7960_v1, %v7969_v24 }
 0x5b5   : > { %16154 = vst [vmem:[#allocation66_spill] sm:$0xff] %v14247_v43 }
 0x5b6   : > { %v2971_v62 = vpop.f32.mrf.mxu2  ;;  %v4282_v36 = vpop.f32.mrf.mxu3 }
 0x5b7   : > { %v3118_v58 = vadd.f32 %v2971_v62, %v2272_v61  ;;  %v2274_v33 = vpop.f32.mrf.mxu1  ;;  %v9240_v62 = vsel %vm9227_vm8, %v9237_v16, %v9239_v30  ;;  %v7977_v16 = vrot.slane %v7975_v54, 3 }
 0x5b8   : > { %v2275_v10 = vadd.f32 %v2274_v33, %v16157_v52  ;;  %v7086_v33 = vrot.slane %v14257_v57, 2 }
 0x5b9   : > { %v4429_v3 = vadd.f32 %v4282_v36, %v3118_v58  ;;  %v7972_v36 = vshrl.u32 %v14257_v57, 16 }
 0x5ba   : > { %11591 = vmatmul.msk.bf16.gmra.mxu1 %vm1240_vm3, %v5774_v19  ;;  %v12444_v19 = vld [vmem:[%s12600_s29 + $0x48] sm:$0xff]  ;;  %v7087_v54 = vsel %vm5761_vm6, %v7084_v12, %v7086_v33 }
 0x5bb   : > { %v5604_v28 = vpop.f32.mrf.mxu0  ;;  %11928 = vmatmul.msk.bf16.gmra.mxu2 %vm1240_vm3, %v7085_v9  ;;  %v14262_v31 = vadd.f32 %v5601_v26, %v4429_v3  ;;  %11997 = vmatmul.msk.bf16.gmra.mxu3 %vm1240_vm3, %v7970_v60  ;;  %v7974_v61 = vrot.slane %v7972_v36, 2  ;;  %v5775_v9 = vrot.slane %v12444_v19, 2  ;;  %v16159_v3 = vld [vmem:[#allocation93_spill] sm:$0xff] }
 0x5bd   : > { %16156 = vst [vmem:[#allocation69_spill] sm:$0xff] %v14262_v31  ;;  %v7978_v52 = vor.u32 %v7977_v16, %v7974_v61  ;;  %v5776_v36 = vsel %vm5761_vm6, %v5773_v38, %v5775_v9  ;;  %v16161_v38 = vld [vmem:[#allocation96_spill] sm:$0xff] }
 0x5be   : > { %12066 = vmatmul.msk.bf16.gmra.mxu0 %vm1240_vm3, %v9240_v62  ;;  %v2974_v1 = vpop.f32.mrf.mxu2  ;;  %v4285_v51 = vpop.f32.mrf.mxu3 }
 0x5bf   : > { %v3119_v11 = vadd.f32 %v2974_v1, %v2275_v10  ;;  %v2276_v39 = vpop.f32.mrf.mxu1  ;;  %v9241_v10 = vrot.slane %v14257_v57, 3 }
 0x5c0   : > { %v2277_v60 = vadd.f32 %v2276_v39, %v16159_v3 }
 0x5c1   : > { %v4430_v40 = vadd.f32 %v4285_v51, %v3119_v11  ;;  %v14279_v51 = vld [vmem:[%s12600_s29 + $0x60] sm:$0xff] }
 0x5c2   : > { %v7984_v12 = vshll.u32 %v14279_v51, 16 }
 0x5c3   : > { %v5606_v58 = vpop.f32.mrf.mxu0  ;;  %v14269_v26 = vadd.f32 %v5604_v28, %v4430_v40  ;;  %v7979_v28 = vsel %vm7908_vm7, %v7969_v24, %v7978_v52 }
 0x5c5   : > { %16158 = vst [vmem:[#allocation72_spill] sm:$0xff] %v14269_v26 }
 0x5c6   : > { %v2976_v31 = vpop.f32.mrf.mxu2  ;;  %v4287_v43 = vpop.f32.mrf.mxu3 }
 0x5c7   : > { %v3120_v62 = vadd.f32 %v2976_v31, %v2277_v60  ;;  %v2279_v1 = vpop.f32.mrf.mxu1  ;;  %v9242_v31 = vsel %vm9227_vm8, %v9239_v30, %v9241_v10  ;;  %v7986_v30 = vrot.slane %v7984_v12, 3 }
 0x5c8   : > { %v2280_v57 = vadd.f32 %v2279_v1, %v16161_v38  ;;  %v7088_v1 = vrot.slane %v14279_v51, 2 }
 0x5c9   : > { %v4431_v11 = vadd.f32 %v4287_v43, %v3120_v62  ;;  %v7981_v43 = vshrl.u32 %v14279_v51, 16 }
 0x5ca   : > { %11592 = vmatmul.msk.bf16.gmra.mxu1 %vm1240_vm3, %v5776_v36  ;;  %v12445_v36 = vld [vmem:[%s12600_s29 + $0x50] sm:$0xff]  ;;  %v7089_v12 = vsel %vm5761_vm6, %v7086_v33, %v7088_v1 }
 0x5cb   : > { %v5609_v40 = vpop.f32.mrf.mxu0  ;;  %11929 = vmatmul.msk.bf16.gmra.mxu2 %vm1240_vm3, %v7087_v54  ;;  %v14284_v39 = vadd.f32 %v5606_v58, %v4431_v11  ;;  %11998 = vmatmul.msk.bf16.gmra.mxu3 %vm1240_vm3, %v7979_v28  ;;  %v7983_v60 = vrot.slane %v7981_v43, 2  ;;  %v5777_v54 = vrot.slane %v12445_v36, 2  ;;  %v16163_v11 = vld [vmem:[#allocation99_spill] sm:$0xff] }
 0x5cd   : > { %16160 = vst [vmem:[#allocation75_spill] sm:$0xff] %v14284_v39  ;;  %v7987_v38 = vor.u32 %v7986_v30, %v7983_v60  ;;  %v5778_v43 = vsel %vm5761_vm6, %v5775_v9, %v5777_v54  ;;  %v16165_v9 = vld [vmem:[#allocation102_spill] sm:$0xff] }
 0x5ce   : > { %12067 = vmatmul.msk.bf16.gmra.mxu0 %vm1240_vm3, %v9242_v31  ;;  %v2979_v24 = vpop.f32.mrf.mxu2  ;;  %v4290_v16 = vpop.f32.mrf.mxu3 }
 0x5cf   : > { %v3121_v61 = vadd.f32 %v2979_v24, %v2280_v57  ;;  %v2281_v19 = vpop.f32.mrf.mxu1  ;;  %v9243_v57 = vrot.slane %v14279_v51, 3 }
 0x5d0   : > { %v2282_v28 = vadd.f32 %v2281_v19, %v16163_v11 }
 0x5d1   : > { %v4432_v3 = vadd.f32 %v4290_v16, %v3121_v61  ;;  %v14301_v16 = vld [vmem:[%s12600_s29 + $0x68] sm:$0xff] }
 0x5d2   : > { %v7993_v33 = vshll.u32 %v14301_v16, 16 }
 0x5d3   : > { %v5611_v62 = vpop.f32.mrf.mxu0  ;;  %v14291_v58 = vadd.f32 %v5609_v40, %v4432_v3  ;;  %v7988_v40 = vsel %vm7908_vm7, %v7978_v52, %v7987_v38 }
 0x5d5   : > { %16162 = vst [vmem:[#allocation78_spill] sm:$0xff] %v14291_v58 }
 0x5d6   : > { %v2981_v39 = vpop.f32.mrf.mxu2  ;;  %v4292_v26 = vpop.f32.mrf.mxu3 }
 0x5d7   : > { %v3122_v31 = vadd.f32 %v2981_v39, %v2282_v28  ;;  %v2284_v24 = vpop.f32.mrf.mxu1  ;;  %v9244_v39 = vsel %vm9227_vm8, %v9241_v10, %v9243_v57  ;;  %v7995_v10 = vrot.slane %v7993_v33, 3 }
 0x5d8   : > { %v2285_v51 = vadd.f32 %v2284_v24, %v16165_v9  ;;  %v7090_v24 = vrot.slane %v14301_v16, 2 }
 0x5d9   : > { %v4433_v61 = vadd.f32 %v4292_v26, %v3122_v31  ;;  %v7990_v26 = vshrl.u32 %v14301_v16, 16 }
 0x5da   : > { %11593 = vmatmul.msk.bf16.gmra.mxu1 %vm1240_vm3, %v5778_v43  ;;  %v12446_v43 = vld [vmem:[%s12600_s29 + $0x58] sm:$0xff]  ;;  %v7091_v33 = vsel %vm5761_vm6, %v7088_v1, %v7090_v24 }
 0x5db   : > { %v5614_v3 = vpop.f32.mrf.mxu0  ;;  %11930 = vmatmul.msk.bf16.gmra.mxu2 %vm1240_vm3, %v7089_v12  ;;  %v14306_v19 = vadd.f32 %v5611_v62, %v4433_v61  ;;  %11999 = vmatmul.msk.bf16.gmra.mxu3 %vm1240_vm3, %v7988_v40  ;;  %v7992_v28 = vrot.slane %v7990_v26, 2  ;;  %v5779_v12 = vrot.slane %v12446_v43, 2  ;;  %v16166_v61 = vld [vmem:[#allocation105_spill] sm:$0xff] }
 0x5dd   : > { %16164 = vst [vmem:[#allocation81_spill] sm:$0xff] %v14306_v19  ;;  %v7996_v9 = vor.u32 %v7995_v10, %v7992_v28  ;;  %v5780_v26 = vsel %vm5761_vm6, %v5777_v54, %v5779_v12 }
 0x5de   : > { %12068 = vmatmul.msk.bf16.gmra.mxu0 %vm1240_vm3, %v9244_v39  ;;  %v2984_v52 = vpop.f32.mrf.mxu2  ;;  %v4295_v30 = vpop.f32.mrf.mxu3 }
 0x5df   : > { %v3123_v60 = vadd.f32 %v2984_v52, %v2285_v51  ;;  %v2286_v36 = vpop.f32.mrf.mxu1  ;;  %v9245_v51 = vrot.slane %v14301_v16, 3 }
 0x5e0   : > { %v2287_v40 = vadd.f32 %v2286_v36, %v16166_v61 }
 0x5e1   : > { %v4434_v11 = vadd.f32 %v4295_v30, %v3123_v60  ;;  %v14323_v30 = vld [vmem:[%s12600_s29 + $0x70] sm:$0xff] }
 0x5e2   : > { %v8002_v1 = vshll.u32 %v14323_v30, 16 }
 0x5e3   : > { %v5616_v31 = vpop.f32.mrf.mxu0  ;;  %v14313_v62 = vadd.f32 %v5614_v3, %v4434_v11  ;;  %v7997_v3 = vsel %vm7908_vm7, %v7987_v38, %v7996_v9 }
 0x5e4   : > { %v8004_v61 = vrot.slane %v8002_v1, 3 }
 0x5e6   : > { %v2986_v19 = vpop.f32.mrf.mxu2  ;;  %v4297_v58 = vpop.f32.mrf.mxu3 }
 0x5e7   : > { %v3124_v39 = vadd.f32 %v2986_v19, %v2287_v40  ;;  %v6115_v52 = vpop.f32.mrf.mxu1  ;;  %v9246_v19 = vsel %vm9227_vm8, %v9243_v57, %v9245_v51  ;;  %v14338_v57 = vld [vmem:[%s15854_s2] ss:$0 sm:$0xff] }
 0x5e8   : > { %v6455_v54 = vadd.f32 %v6115_v52, %v13223_v63 }
 0x5e9   : > { %v4435_v60 = vadd.f32 %v4297_v58, %v3124_v39  ;;  %v7999_v58 = vshrl.u32 %v14323_v30, 16  ;;  %v12447_v39 = vld [vmem:[%s12600_s29 + $0x60] sm:$0xff] }
 0x5ea   : > { %11594 = vmatmul.msk.bf16.gmra.mxu1 %vm1240_vm3, %v5780_v26  ;;  %v5781_v52 = vrot.slane %v12447_v39, 2  ;;  %v7092_v26 = vrot.slane %v14323_v30, 2 }
 0x5eb   : > { %v9581_v11 = vpop.f32.mrf.mxu0  ;;  %11931 = vmatmul.msk.bf16.gmra.mxu2 %vm1240_vm3, %v7091_v33  ;;  %v14328_v36 = vadd.f32 %v5616_v31, %v4435_v60  ;;  %12000 = vmatmul.msk.bf16.gmra.mxu3 %vm1240_vm3, %v7997_v3  ;;  %v8001_v31 = vrot.slane %v7999_v58, 2  ;;  %v9247_v58 = vrot.slane %v14323_v30, 3 }
 0x5ec   : > { %v5782_v1 = vsel %vm5761_vm6, %v5779_v12, %v5781_v52 }
 0x5ed   : > { %v8005_v3 = vor.u32 %v8004_v61, %v8001_v31  ;;  %v14355_v31 = vld [vmem:[%s12600_s29 + $0x78] sm:$0xff] }
 0x5ee   : > { %12069 = vmatmul.msk.bf16.gmra.mxu0 %vm1240_vm3, %v9246_v19  ;;  %v7426_v38 = vpop.f32.mrf.mxu2  ;;  %v8745_v28 = vpop.f32.mrf.mxu3  ;;  %v8011_v39 = vshll.u32 %v14355_v31, 16 }
 0x5ef   : > { %v7766_v16 = vadd.f32 %v7426_v38, %v6455_v54  ;;  %v6117_v10 = vpop.f32.mrf.mxu1 }
 0x5f0   : > { %v6456_v60 = vadd.f32 %v6117_v10, %v13233_v13 }
 0x5f1   : > { %v9085_v43 = vadd.f32 %v8745_v28, %v7766_v16  ;;  %v7093_v28 = vsel %vm5761_vm6, %v7090_v24, %v7092_v26 }
 0x5f3   : > { %v9921_v40 = vadd.f32 %v9581_v11, %v9085_v43  ;;  %v9583_v63 = vpop.f32.mrf.mxu0  ;;  %v8006_v43 = vsel %vm7908_vm7, %v7996_v9, %v8005_v3  ;;  %v8008_v9 = vshrl.u32 %v14355_v31, 16 }
 0x5f5   : > { %v10061_v33 = vadd.f32 %v14338_v57, %v9921_v40  ;;  %v9248_v40 = vsel %vm9227_vm8, %v9245_v51, %v9247_v58 }
 0x5f6   : > { %v7428_v19 = vpop.f32.mrf.mxu2  ;;  %v8747_v16 = vpop.f32.mrf.mxu3 }
 0x5f7   : > { %v10197_v54 = vmax.f32 %v10061_v33, 0.0  ;;  %v7767_v38 = vadd.f32 %v7428_v19, %v6456_v60  ;;  %v6120_v11 = vpop.f32.mrf.mxu1 }
 0x5f8   : > { %v6457_v24 = vadd.f32 %v6120_v11, %v13238_v29  ;;  %v12448_v11 = vld [vmem:[%s12600_s29 + $0x68] sm:$0xff] }
 0x5f9   : > { %v10333_v13 = vpack.c.bf16 %v10197_v54, %v10197_v54  ;;  %v9086_v10 = vadd.f32 %v8747_v16, %v7767_v38  ;;  %v8010_v16 = vrot.slane %v8008_v9, 2 }
 0x5fa   : > { %11595 = vmatmul.msk.bf16.gmra.mxu1 %vm1240_vm3, %v5782_v1  ;;  %v8013_v1 = vrot.slane %v8011_v39, 3  ;;  %v9249_v39 = vrot.slane %v14355_v31, 3 }
 0x5fb   : > { %10470 = vst.msk [vmem:[%s14349_s12] sm:$0xf] %vm10469_vm9, %v10333_v13  ;;  %v9922_v30 = vadd.f32 %v9583_v63, %v9086_v10  ;;  %v9586_v61 = vpop.f32.mrf.mxu0  ;;  %11932 = vmatmul.msk.bf16.gmra.mxu2 %vm1240_vm3, %v7093_v28  ;;  %12001 = vmatmul.msk.bf16.gmra.mxu3 %vm1240_vm3, %v8006_v43  ;;  %v5783_v13 = vrot.slane %v12448_v11, 2  ;;  %v7094_v10 = vrot.slane %v14355_v31, 2  ;;  %v14379_v11 = vld [vmem:[%s12600_s29 + $0x80] sm:$0xff] }
 0x5fc   : > { %v9250_v31 = vsel %vm9227_vm8, %v9247_v58, %v9249_v39 }
 0x5fd   : > { %v10062_v12 = vadd.f32 %v14338_v57, %v9922_v30 }
 0x5fe   : > { %12070 = vmatmul.msk.bf16.gmra.mxu0 %vm1240_vm3, %v9248_v40  ;;  %v7431_v63 = vpop.f32.mrf.mxu2  ;;  %v8750_v19 = vpop.f32.mrf.mxu3  ;;  %v8014_v40 = vor.u32 %v8013_v1, %v8010_v16  ;;  %v8020_v16 = vshll.u32 %v14379_v11, 16 }
 0x5ff   : > { %v10198_v33 = vmax.f32 %v10062_v12, 0.0  ;;  %v7768_v60 = vadd.f32 %v7431_v63, %v6457_v24  ;;  %v6122_v54 = vpop.f32.mrf.mxu1 }
 0x600   : > { %v6458_v30 = vadd.f32 %v6122_v54, %v13248_v48 }
 0x601   : > { %v10334_v51 = vpack.c.bf16 %v10198_v33, %v10198_v33  ;;  %v9087_v38 = vadd.f32 %v8750_v19, %v7768_v60  ;;  %v7095_v60 = vsel %vm5761_vm6, %v7092_v26, %v7094_v10 }
 0x603   : > { %10471 = vst.msk [vmem:[%s14349_s12 + $0x4] sm:$0xf] %vm10469_vm9, %v10334_v51  ;;  %v9923_v28 = vadd.f32 %v9586_v61, %v9087_v38  ;;  %v9588_v29 = vpop.f32.mrf.mxu0  ;;  %v5784_v61 = vsel %vm5761_vm6, %v5781_v52, %v5783_v13  ;;  %v8015_v38 = vsel %vm7908_vm7, %v8005_v3, %v8014_v40  ;;  %v8017_v3 = vshrl.u32 %v14379_v11, 16 }
 0x605   : > { %v10063_v43 = vadd.f32 %v14338_v57, %v9923_v28 }
 0x606   : > { %v7433_v12 = vpop.f32.mrf.mxu2  ;;  %v8752_v9 = vpop.f32.mrf.mxu3 }
 0x607   : > { %v10199_v24 = vmax.f32 %v10063_v43, 0.0  ;;  %v7769_v63 = vadd.f32 %v7433_v12, %v6458_v30  ;;  %v6125_v33 = vpop.f32.mrf.mxu1 }
 0x608   : > { %v6459_v26 = vadd.f32 %v6125_v33, %v13253_v46  ;;  %v12449_v33 = vld [vmem:[%s12600_s29 + $0x70] sm:$0xff] }
 0x609   : > { %v10335_v19 = vpack.c.bf16 %v10199_v24, %v10199_v24  ;;  %v9088_v51 = vadd.f32 %v8752_v9, %v7769_v63  ;;  %v8019_v24 = vrot.slane %v8017_v3, 2  ;;  %v8022_v63 = vrot.slane %v8020_v16, 3 }
 0x60a   : > { %11596 = vmatmul.msk.bf16.gmra.mxu1 %vm1240_vm3, %v5784_v61  ;;  %v5785_v61 = vrot.slane %v12449_v33, 2  ;;  %v9251_v3 = vrot.slane %v14379_v11, 3 }
 0x60b   : > { %10472 = vst.msk [vmem:[%s14349_s12 + $0x8] sm:$0xf] %vm10469_vm9, %v10335_v19  ;;  %v9924_v48 = vadd.f32 %v9588_v29, %v9088_v51  ;;  %v9591_v54 = vpop.f32.mrf.mxu0  ;;  %11933 = vmatmul.msk.bf16.gmra.mxu2 %vm1240_vm3, %v7095_v60  ;;  %12002 = vmatmul.msk.bf16.gmra.mxu3 %vm1240_vm3, %v8015_v38  ;;  %v7096_v60 = vrot.slane %v14379_v11, 2  ;;  %v8023_v38 = vor.u32 %v8022_v63, %v8019_v24 }
 0x60c   : > { %v9252_v11 = vsel %vm9227_vm8, %v9249_v39, %v9251_v3 }
 0x60d   : > { %v10064_v52 = vadd.f32 %v14338_v57, %v9924_v48 }
 0x60e   : > { %12071 = vmatmul.msk.bf16.gmra.mxu0 %vm1240_vm3, %v9250_v31  ;;  %v7436_v1 = vpop.f32.mrf.mxu2  ;;  %v8755_v43 = vpop.f32.mrf.mxu3 }
 0x60f   : > { %v10200_v28 = vmax.f32 %v10064_v52, 0.0  ;;  %v7770_v29 = vadd.f32 %v7436_v1, %v6459_v26  ;;  %v6127_v30 = vpop.f32.mrf.mxu1  ;;  %v7097_v1 = vsel %vm5761_vm6, %v7094_v10, %v7096_v60 }
 0x610   : > { %v6460_v51 = vadd.f32 %v6127_v30, %v13263_v25 }
 0x611   : > { %v10336_v58 = vpack.c.bf16 %v10200_v28, %v10200_v28  ;;  %v9089_v12 = vadd.f32 %v8755_v43, %v7770_v29  ;;  %v8024_v43 = vsel %vm7908_vm7, %v8014_v40, %v8023_v38 }
 0x613   : > { %10473 = vst.msk [vmem:[%s14349_s12 + $0xc] sm:$0xf] %vm10469_vm9, %v10336_v58  ;;  %v9925_v9 = vadd.f32 %v9591_v54, %v9089_v12  ;;  %v9593_v46 = vpop.f32.mrf.mxu0  ;;  %v5786_v54 = vsel %vm5761_vm6, %v5783_v13, %v5785_v61  ;;  %v14403_v58 = vld [vmem:[%s12600_s29 + $0x88] sm:$0xff] }
 0x614   : > { %v8026_v40 = vshrl.u32 %v14403_v58, 16  ;;  %v8029_v12 = vshll.u32 %v14403_v58, 16 }
 0x615   : > { %v10065_v19 = vadd.f32 %v14338_v57, %v9925_v9 }
 0x616   : > { %v7438_v48 = vpop.f32.mrf.mxu2  ;;  %v8757_v26 = vpop.f32.mrf.mxu3 }
 0x617   : > { %v10201_v31 = vmax.f32 %v10065_v19, 0.0  ;;  %v7771_v52 = vadd.f32 %v7438_v48, %v6460_v51  ;;  %v6130_v16 = vpop.f32.mrf.mxu1  ;;  %v8028_v51 = vrot.slane %v8026_v40, 2  ;;  %v8031_v48 = vrot.slane %v8029_v12, 3 }
 0x618   : > { %v6461_v10 = vadd.f32 %v6130_v16, %v13268_v42  ;;  %v7098_v16 = vrot.slane %v14403_v58, 2 }
 0x619   : > { %v10337_v28 = vpack.c.bf16 %v10201_v31, %v10201_v31  ;;  %v9090_v29 = vadd.f32 %v8757_v26, %v7771_v52  ;;  %v12450_v52 = vld [vmem:[%s12600_s29 + $0x78] sm:$0xff] }
 0x61a   : > { %11597 = vmatmul.msk.bf16.gmra.mxu1 %vm1240_vm3, %v5786_v54  ;;  %v5787_v26 = vrot.slane %v12450_v52, 2  ;;  %v7099_v40 = vsel %vm5761_vm6, %v7096_v60, %v7098_v16 }
 0x61b   : > { %10474 = vst.msk [vmem:[%s14349_s12 + $0x10] sm:$0xf] %vm10469_vm9, %v10337_v28  ;;  %v9926_v25 = vadd.f32 %v9593_v46, %v9090_v29  ;;  %v9596_v30 = vpop.f32.mrf.mxu0  ;;  %11934 = vmatmul.msk.bf16.gmra.mxu2 %vm1240_vm3, %v7097_v1  ;;  %12003 = vmatmul.msk.bf16.gmra.mxu3 %vm1240_vm3, %v8024_v43  ;;  %v8032_v28 = vor.u32 %v8031_v48, %v8028_v51 }
 0x61d   : > { %v10066_v13 = vadd.f32 %v14338_v57, %v9926_v25 }
 0x61e   : > { %12072 = vmatmul.msk.bf16.gmra.mxu0 %vm1240_vm3, %v9252_v11  ;;  %v7441_v24 = vpop.f32.mrf.mxu2  ;;  %v8760_v46 = vpop.f32.mrf.mxu3 }
 0x61f   : > { %v10202_v63 = vmax.f32 %v10066_v13, 0.0  ;;  %v7772_v9 = vadd.f32 %v7441_v24, %v6461_v10  ;;  %v6132_v33 = vpop.f32.mrf.mxu1  ;;  %v9253_v13 = vrot.slane %v14403_v58, 3 }
 0x620   : > { %v6462_v1 = vadd.f32 %v6132_v33, %v13278_v20 }
 0x621   : > { %v10338_v39 = vpack.c.bf16 %v10202_v63, %v10202_v63  ;;  %v9091_v19 = vadd.f32 %v8760_v46, %v7772_v9  ;;  %v8033_v63 = vsel %vm7908_vm7, %v8023_v38, %v8032_v28  ;;  %v14427_v9 = vld [vmem:[%s12600_s29 + $0x90] sm:$0xff]  ;;  %v9254_v58 = vsel %vm9227_vm8, %v9251_v3, %v9253_v13 }
 0x622   : > { %v8035_v38 = vshrl.u32 %v14427_v9, 16  ;;  %v8038_v33 = vshll.u32 %v14427_v9, 16 }
 0x623   : > { %10475 = vst.msk [vmem:[%s14349_s12 + $0x14] sm:$0xf] %vm10469_vm9, %v10338_v39  ;;  %v9927_v31 = vadd.f32 %v9596_v30, %v9091_v19  ;;  %v9598_v42 = vpop.f32.mrf.mxu0  ;;  %v5788_v30 = vsel %vm5761_vm6, %v5785_v61, %v5787_v26 }
 0x624   : > { %v8037_v52 = vrot.slane %v8035_v38, 2 }
 0x625   : > { %v10067_v54 = vadd.f32 %v14338_v57, %v9927_v31 }
 0x626   : > { %v7443_v29 = vpop.f32.mrf.mxu2  ;;  %v8762_v11 = vpop.f32.mrf.mxu3 }
 0x627   : > { %v10203_v43 = vmax.f32 %v10067_v54, 0.0  ;;  %v7773_v25 = vadd.f32 %v7443_v29, %v6462_v1  ;;  %v6135_v10 = vpop.f32.mrf.mxu1  ;;  %v8040_v54 = vrot.slane %v8038_v33, 3  ;;  %v12451_v29 = vld [vmem:[%s12600_s29 + $0x80] sm:$0xff] }
 0x628   : > { %v6463_v60 = vadd.f32 %v6135_v10, %v13283_v47 }
 0x629   : > { %v10339_v12 = vpack.c.bf16 %v10203_v43, %v10203_v43  ;;  %v9092_v24 = vadd.f32 %v8762_v11, %v7773_v25  ;;  %v5789_v43 = vrot.slane %v12451_v29, 2  ;;  %v7100_v25 = vrot.slane %v14427_v9, 2 }
 0x62a   : > { %11598 = vmatmul.msk.bf16.gmra.mxu1 %vm1240_vm3, %v5788_v30  ;;  %v8041_v30 = vor.u32 %v8040_v54, %v8037_v52 }
 0x62b   : > { %10476 = vst.msk [vmem:[%s14349_s12 + $0x18] sm:$0xf] %vm10469_vm9, %v10339_v12  ;;  %v9928_v20 = vadd.f32 %v9598_v42, %v9092_v24  ;;  %v9601_v46 = vpop.f32.mrf.mxu0  ;;  %11935 = vmatmul.msk.bf16.gmra.mxu2 %vm1240_vm3, %v7099_v40  ;;  %12004 = vmatmul.msk.bf16.gmra.mxu3 %vm1240_vm3, %v8033_v63 }
 0x62c   : > { %v8042_v33 = vsel %vm7908_vm7, %v8032_v28, %v8041_v30 }
 0x62d   : > { %v10068_v61 = vadd.f32 %v14338_v57, %v9928_v20  ;;  %v9255_v20 = vrot.slane %v14427_v9, 3 }
 0x62e   : > { %12073 = vmatmul.msk.bf16.gmra.mxu0 %vm1240_vm3, %v9254_v58  ;;  %v7446_v39 = vpop.f32.mrf.mxu2  ;;  %v8765_v48 = vpop.f32.mrf.mxu3 }
 0x62f   : > { %v10204_v19 = vmax.f32 %v10068_v61, 0.0  ;;  %v7774_v51 = vadd.f32 %v7446_v39, %v6463_v60  ;;  %v6137_v31 = vpop.f32.mrf.mxu1  ;;  %v7101_v61 = vsel %vm5761_vm6, %v7098_v16, %v7100_v25  ;;  %v14451_v39 = vld [vmem:[%s12600_s29 + $0x98] sm:$0xff]  ;;  %v9256_v9 = vsel %vm9227_vm8, %v9253_v13, %v9255_v20 }
 0x630   : > { %v6464_v10 = vadd.f32 %v6137_v31, %v13294_v21  ;;  %v8044_v28 = vshrl.u32 %v14451_v39, 16 }
 0x631   : > { %v10340_v3 = vpack.c.bf16 %v10204_v19, %v10204_v19  ;;  %v9093_v42 = vadd.f32 %v8765_v48, %v7774_v51  ;;  %v8047_v51 = vshll.u32 %v14451_v39, 16 }
 0x633   : > { %10477 = vst.msk [vmem:[%s14349_s12 + $0x1c] sm:$0xf] %vm10469_vm9, %v10340_v3  ;;  %v9929_v1 = vadd.f32 %v9601_v46, %v9093_v42  ;;  %v9603_v47 = vpop.f32.mrf.mxu0  ;;  %v5790_v46 = vsel %vm5761_vm6, %v5787_v26, %v5789_v43 }
 0x635   : > { %v10069_v11 = vadd.f32 %v14338_v57, %v9929_v1  ;;  %v8046_v1 = vrot.slane %v8044_v28, 2  ;;  %v14475_v28 = vld [vmem:[%s12600_s29 + $0xa0] sm:$0xff] }
 0x636   : > { %v7448_v40 = vpop.f32.mrf.mxu2  ;;  %v8767_v63 = vpop.f32.mrf.mxu3 }
 0x637   : > { %v10205_v12 = vmax.f32 %v10069_v11, 0.0  ;;  %v7775_v24 = vadd.f32 %v7448_v40, %v6464_v10  ;;  %v6140_v58 = vpop.f32.mrf.mxu1  ;;  %v12452_v11 = vld [vmem:[%s12600_s29 + $0x88] sm:$0xff]  ;;  %v7102_v40 = vrot.slane %v14451_v39, 2 }
 0x638   : > { %v6465_v16 = vadd.f32 %v6140_v58, %v13299_v49  ;;  %v5791_v10 = vrot.slane %v12452_v11, 2 }
 0x639   : > { %v10341_v60 = vpack.c.bf16 %v10205_v12, %v10205_v12  ;;  %v9094_v38 = vadd.f32 %v8767_v63, %v7775_v24 }
 0x63a   : > { %11599 = vmatmul.msk.bf16.gmra.mxu1 %vm1240_vm3, %v5790_v46 }
 0x63b   : > { %10478 = vst.msk [vmem:[%s14349_s12 + $0x20] sm:$0xf] %vm10469_vm9, %v10341_v60  ;;  %v9930_v21 = vadd.f32 %v9603_v47, %v9094_v38  ;;  %v9606_v19 = vpop.f32.mrf.mxu0  ;;  %11936 = vmatmul.msk.bf16.gmra.mxu2 %vm1240_vm3, %v7101_v61  ;;  %12005 = vmatmul.msk.bf16.gmra.mxu3 %vm1240_vm3, %v8042_v33  ;;  %v8049_v47 = vrot.slane %v8047_v51, 3  ;;  %v9257_v38 = vrot.slane %v14451_v39, 3 }
 0x63d   : > { %v10070_v26 = vadd.f32 %v14338_v57, %v9930_v21  ;;  %v8050_v63 = vor.u32 %v8049_v47, %v8046_v1  ;;  %v5792_v21 = vsel %vm5761_vm6, %v5789_v43, %v5791_v10  ;;  %v9258_v39 = vsel %vm9227_vm8, %v9255_v20, %v9257_v38 }
 0x63e   : > { %12074 = vmatmul.msk.bf16.gmra.mxu0 %vm1240_vm3, %v9256_v9  ;;  %v7451_v48 = vpop.f32.mrf.mxu2  ;;  %v8770_v42 = vpop.f32.mrf.mxu3 }
 0x63f   : > { %v10206_v31 = vmax.f32 %v10070_v26, 0.0  ;;  %v7776_v3 = vadd.f32 %v7451_v48, %v6465_v16  ;;  %v6142_v52 = vpop.f32.mrf.mxu1  ;;  %v8051_v16 = vsel %vm7908_vm7, %v8041_v30, %v8050_v63  ;;  %v8053_v30 = vshrl.u32 %v14475_v28, 16 }
 0x640   : > { %v6466_v24 = vadd.f32 %v6142_v52, %v13310_v59  ;;  %v8056_v48 = vshll.u32 %v14475_v28, 16 }
 0x641   : > { %v10342_v13 = vpack.c.bf16 %v10206_v31, %v10206_v31  ;;  %v9095_v54 = vadd.f32 %v8770_v42, %v7776_v3  ;;  %v8055_v1 = vrot.slane %v8053_v30, 2 }
 0x642   : > { %v8058_v47 = vrot.slane %v8056_v48, 3 }
 0x643   : > { %10479 = vst.msk [vmem:[%s14349_s12 + $0x24] sm:$0xf] %vm10469_vm9, %v10342_v13  ;;  %v9931_v29 = vadd.f32 %v9606_v19, %v9095_v54  ;;  %v9608_v49 = vpop.f32.mrf.mxu0  ;;  %v7103_v19 = vsel %vm5761_vm6, %v7100_v25, %v7102_v40 }
 0x645   : > { %v10071_v12 = vadd.f32 %v14338_v57, %v9931_v29 }
 0x646   : > { %v7453_v58 = vpop.f32.mrf.mxu2  ;;  %v8772_v60 = vpop.f32.mrf.mxu3 }
 0x647   : > { %v10207_v46 = vmax.f32 %v10071_v12, 0.0  ;;  %v7777_v61 = vadd.f32 %v7453_v58, %v6466_v24  ;;  %v6145_v33 = vpop.f32.mrf.mxu1  ;;  %v7104_v12 = vrot.slane %v14475_v28, 2 }
 0x648   : > { %v6467_v25 = vadd.f32 %v6145_v33, %v13315_v55 }
 0x649   : > { %v10343_v9 = vpack.c.bf16 %v10207_v46, %v10207_v46  ;;  %v9096_v26 = vadd.f32 %v8772_v60, %v7777_v61  ;;  %v8059_v46 = vor.u32 %v8058_v47, %v8055_v1  ;;  %v12454_v47 = vld [vmem:[%s12600_s29 + $0x98] sm:$0xff] }
 0x64a   : > { %11600 = vmatmul.msk.bf16.gmra.mxu1 %vm1240_vm3, %v5792_v21 }
 0x64b   : > { %10480 = vst.msk [vmem:[%s14349_s12 + $0x28] sm:$0xf] %vm10469_vm9, %v10343_v9  ;;  %v9932_v59 = vadd.f32 %v9608_v49, %v9096_v26  ;;  %v9611_v51 = vpop.f32.mrf.mxu0  ;;  %11937 = vmatmul.msk.bf16.gmra.mxu2 %vm1240_vm3, %v7103_v19  ;;  %12006 = vmatmul.msk.bf16.gmra.mxu3 %vm1240_vm3, %v8051_v16  ;;  %v12453_v49 = vld [vmem:[%s12600_s29 + $0x90] sm:$0xff]  ;;  %v9259_v19 = vrot.slane %v14475_v28, 3  ;;  %v7105_v16 = vsel %vm5761_vm6, %v7102_v40, %v7104_v12 }
 0x64c   : > { %v5793_v11 = vrot.slane %v12453_v49, 2 }
 0x64d   : > { %v10072_v43 = vadd.f32 %v14338_v57, %v9932_v59  ;;  %v9260_v28 = vsel %vm9227_vm8, %v9257_v38, %v9259_v19 }
 0x64e   : > { %12075 = vmatmul.msk.bf16.gmra.mxu0 %vm1240_vm3, %v9258_v39  ;;  %v7456_v31 = vpop.f32.mrf.mxu2  ;;  %v8775_v52 = vpop.f32.mrf.mxu3  ;;  %v5794_v26 = vsel %vm5761_vm6, %v5791_v10, %v5793_v11  ;;  %v8060_v39 = vsel %vm7908_vm7, %v8050_v63, %v8059_v46 }
 0x64f   : > { %v10208_v3 = vmax.f32 %v10072_v43, 0.0  ;;  %v7778_v42 = vadd.f32 %v7456_v31, %v6467_v25  ;;  %v6147_v13 = vpop.f32.mrf.mxu1  ;;  %v14499_v43 = vld [vmem:[%s12600_s29 + $0xa8] sm:$0xff] }
 0x650   : > { %v6468_v58 = vadd.f32 %v6147_v13, %v13326_v17  ;;  %v8062_v63 = vshrl.u32 %v14499_v43, 16  ;;  %v8065_v30 = vshll.u32 %v14499_v43, 16 }
 0x651   : > { %v10344_v20 = vpack.c.bf16 %v10208_v3, %v10208_v3  ;;  %v9097_v54 = vadd.f32 %v8775_v52, %v7778_v42 }
 0x653   : > { %10481 = vst.msk [vmem:[%s14349_s12 + $0x2c] sm:$0xf] %vm10469_vm9, %v10344_v20  ;;  %v9933_v29 = vadd.f32 %v9611_v51, %v9097_v54  ;;  %v9613_v55 = vpop.f32.mrf.mxu0  ;;  %v8064_v20 = vrot.slane %v8062_v63, 2  ;;  %v8067_v54 = vrot.slane %v8065_v30, 3 }
 0x655   : > { %v10073_v24 = vadd.f32 %v14338_v57, %v9933_v29  ;;  %v5795_v29 = vrot.slane %v12454_v47, 2 }
 0x656   : > { %v7458_v61 = vpop.f32.mrf.mxu2  ;;  %v8777_v21 = vpop.f32.mrf.mxu3 }
 0x657   : > { %v10209_v60 = vmax.f32 %v10073_v24, 0.0  ;;  %v7779_v33 = vadd.f32 %v7458_v61, %v6468_v58  ;;  %v6150_v9 = vpop.f32.mrf.mxu1  ;;  %v8068_v58 = vor.u32 %v8067_v54, %v8064_v20 }
 0x658   : > { %v6469_v40 = vadd.f32 %v6150_v9, %v13331_v7  ;;  %v9261_v9 = vrot.slane %v14499_v43, 3 }
 0x659   : > { %v10345_v59 = vpack.c.bf16 %v10209_v60, %v10209_v60  ;;  %v9098_v51 = vadd.f32 %v8777_v21, %v7779_v33 }
 0x65a   : > { %11601 = vmatmul.msk.bf16.gmra.mxu1 %vm1240_vm3, %v5794_v26 }
 0x65b   : > { %10482 = vst.msk [vmem:[%s14349_s12 + $0x30] sm:$0xf] %vm10469_vm9, %v10345_v59  ;;  %v9934_v17 = vadd.f32 %v9613_v55, %v9098_v51  ;;  %v9616_v25 = vpop.f32.mrf.mxu0  ;;  %11938 = vmatmul.msk.bf16.gmra.mxu2 %vm1240_vm3, %v7105_v16  ;;  %12007 = vmatmul.msk.bf16.gmra.mxu3 %vm1240_vm3, %v8060_v39  ;;  %v7106_v55 = vrot.slane %v14499_v43, 2  ;;  %v5796_v16 = vsel %vm5761_vm6, %v5793_v11, %v5795_v29 }
 0x65c   : > { %v9262_v43 = vsel %vm9227_vm8, %v9259_v19, %v9261_v9 }
 0x65d   : > { %v10074_v10 = vadd.f32 %v14338_v57, %v9934_v17  ;;  %v7107_v59 = vsel %vm5761_vm6, %v7104_v12, %v7106_v55  ;;  %v8069_v17 = vsel %vm7908_vm7, %v8059_v46, %v8068_v58 }
 0x65e   : > { %12076 = vmatmul.msk.bf16.gmra.mxu0 %vm1240_vm3, %v9260_v28  ;;  %v7461_v48 = vpop.f32.mrf.mxu2  ;;  %v8780_v42 = vpop.f32.mrf.mxu3 }
 0x65f   : > { %v10210_v31 = vmax.f32 %v10074_v10, 0.0  ;;  %v7780_v3 = vadd.f32 %v7461_v48, %v6469_v40  ;;  %v6152_v52 = vpop.f32.mrf.mxu1 }
 0x660   : > { %v6470_v24 = vadd.f32 %v6152_v52, %v13342_v45 }
 0x661   : > { %v10346_v38 = vpack.c.bf16 %v10210_v31, %v10210_v31  ;;  %v9099_v13 = vadd.f32 %v8780_v42, %v7780_v3 }
 0x663   : > { %10483 = vst.msk [vmem:[%s14349_s12 + $0x34] sm:$0xf] %vm10469_vm9, %v10346_v38  ;;  %v9935_v1 = vadd.f32 %v9616_v25, %v9099_v13  ;;  %v9618_v7 = vpop.f32.mrf.mxu0  ;;  %v14523_v25 = vld [vmem:[%s12600_s29 + $0xb0] sm:$0xff]  ;;  %v12455_v13 = vld [vmem:[%s12600_s29 + $0xa0] sm:$0xff] }
 0x664   : > { %v8071_v46 = vshrl.u32 %v14523_v25, 16  ;;  %v8074_v10 = vshll.u32 %v14523_v25, 16  ;;  %v5797_v20 = vrot.slane %v12455_v13, 2  ;;  %v7108_v54 = vrot.slane %v14523_v25, 2 }
 0x665   : > { %v10075_v49 = vadd.f32 %v14338_v57, %v9935_v1 }
 0x666   : > { %v7463_v61 = vpop.f32.mrf.mxu2  ;;  %v8782_v21 = vpop.f32.mrf.mxu3  ;;  %v8073_v42 = vrot.slane %v8071_v46, 2  ;;  %v8076_v52 = vrot.slane %v8074_v10, 3 }
 0x667   : > { %v10211_v60 = vmax.f32 %v10075_v49, 0.0  ;;  %v7781_v33 = vadd.f32 %v7463_v61, %v6470_v24  ;;  %v6155_v26 = vpop.f32.mrf.mxu1 }
 0x668   : > { %v6471_v12 = vadd.f32 %v6155_v26, %v13347_v32  ;;  %v8077_v47 = vor.u32 %v8076_v52, %v8073_v42  ;;  %v5798_v26 = vsel %vm5761_vm6, %v5795_v29, %v5797_v20 }
 0x669   : > { %v10347_v51 = vpack.c.bf16 %v10211_v60, %v10211_v60  ;;  %v9100_v39 = vadd.f32 %v8782_v21, %v7781_v33  ;;  %v9263_v33 = vrot.slane %v14523_v25, 3 }
 0x66a   : > { %11602 = vmatmul.msk.bf16.gmra.mxu1 %vm1240_vm3, %v5796_v16  ;;  %v7109_v16 = vsel %vm5761_vm6, %v7106_v55, %v7108_v54 }
 0x66b   : > { %10484 = vst.msk [vmem:[%s14349_s12 + $0x38] sm:$0xf] %vm10469_vm9, %v10347_v51  ;;  %v9936_v45 = vadd.f32 %v9618_v7, %v9100_v39  ;;  %v9621_v28 = vpop.f32.mrf.mxu0  ;;  %11939 = vmatmul.msk.bf16.gmra.mxu2 %vm1240_vm3, %v7107_v59  ;;  %12008 = vmatmul.msk.bf16.gmra.mxu3 %vm1240_vm3, %v8069_v17  ;;  %v8078_v39 = vsel %vm7908_vm7, %v8068_v58, %v8077_v47  ;;  %v14547_v17 = vld [vmem:[%s12600_s29 + $0xb8] sm:$0xff] }
 0x66c   : > { %v9264_v25 = vsel %vm9227_vm8, %v9261_v9, %v9263_v33  ;;  %v8080_v58 = vshrl.u32 %v14547_v17, 16 }
 0x66d   : > { %v10076_v11 = vadd.f32 %v14338_v57, %v9936_v45 }
 0x66e   : > { %12077 = vmatmul.msk.bf16.gmra.mxu0 %vm1240_vm3, %v9262_v43  ;;  %v7466_v40 = vpop.f32.mrf.mxu2  ;;  %v8785_v48 = vpop.f32.mrf.mxu3 }
 0x66f   : > { %v10212_v63 = vmax.f32 %v10076_v11, 0.0  ;;  %v7782_v30 = vadd.f32 %v7466_v40, %v6471_v12  ;;  %v6157_v31 = vpop.f32.mrf.mxu1 }
 0x670   : > { %v6472_v7 = vadd.f32 %v6157_v31, %v13357_v2  ;;  %v12456_v31 = vld [vmem:[%s12600_s29 + $0xa8] sm:$0xff] }
 0x671   : > { %v10348_v19 = vpack.c.bf16 %v10212_v63, %v10212_v63  ;;  %v9101_v3 = vadd.f32 %v8785_v48, %v7782_v30  ;;  %v8082_v63 = vrot.slane %v8080_v58, 2 }
 0x673   : > { %10485 = vst.msk [vmem:[%s14349_s12 + $0x3c] sm:$0xf] %vm10469_vm9, %v10348_v19  ;;  %v9937_v38 = vadd.f32 %v9621_v28, %v9101_v3  ;;  %v9623_v32 = vpop.f32.mrf.mxu0  ;;  %v8083_v28 = vshll.u32 %v14547_v17, 16  ;;  %v5799_v19 = vrot.slane %v12456_v31, 2  ;;  %v7110_v3 = vrot.slane %v14547_v17, 2 }
 0x675   : > { %v10077_v1 = vadd.f32 %v14338_v57, %v9937_v38  ;;  %v8085_v30 = vrot.slane %v8083_v28, 3 }
 0x676   : > { %v7468_v49 = vpop.f32.mrf.mxu2  ;;  %v8787_v60 = vpop.f32.mrf.mxu3 }
 0x677   : > { %v10213_v24 = vmax.f32 %v10077_v1, 0.0  ;;  %v7783_v61 = vadd.f32 %v7468_v49, %v6472_v7  ;;  %v6160_v21 = vpop.f32.mrf.mxu1  ;;  %v8086_v38 = vor.u32 %v8085_v30, %v8082_v63  ;;  %v9265_v49 = vrot.slane %v14547_v17, 3 }
 0x678   : > { %v6473_v55 = vadd.f32 %v6160_v21, %v13362_v35 }
 0x679   : > { %v10349_v59 = vpack.c.bf16 %v10213_v24, %v10213_v24  ;;  %v9102_v51 = vadd.f32 %v8787_v60, %v7783_v61  ;;  %v5800_v61 = vsel %vm5761_vm6, %v5797_v20, %v5799_v19  ;;  %v7111_v60 = vsel %vm5761_vm6, %v7108_v54, %v7110_v3 }
 0x67a   : > { %11603 = vmatmul.msk.bf16.gmra.mxu1 %vm1240_vm3, %v5798_v26 }
 0x67b   : > { %10486 = vst.msk [vmem:[%s14349_s12 + $0x40] sm:$0xf] %vm10469_vm9, %v10349_v59  ;;  %v9938_v2 = vadd.f32 %v9623_v32, %v9102_v51  ;;  %v9626_v45 = vpop.f32.mrf.mxu0  ;;  %11940 = vmatmul.msk.bf16.gmra.mxu2 %vm1240_vm3, %v7109_v16  ;;  %12009 = vmatmul.msk.bf16.gmra.mxu3 %vm1240_vm3, %v8078_v39  ;;  %v8087_v16 = vsel %vm7908_vm7, %v8077_v47, %v8086_v38  ;;  %v14571_v59 = vld [vmem:[%s12600_s29 + $0xc0] sm:$0xff] }
 0x67c   : > { %v9266_v39 = vsel %vm9227_vm8, %v9263_v33, %v9265_v49  ;;  %v8089_v47 = vshrl.u32 %v14571_v59, 16  ;;  %v8092_v17 = vshll.u32 %v14571_v59, 16 }
 0x67d   : > { %v10078_v29 = vadd.f32 %v14338_v57, %v9938_v2 }
 0x67e   : > { %12078 = vmatmul.msk.bf16.gmra.mxu0 %vm1240_vm3, %v9264_v25  ;;  %v7471_v43 = vpop.f32.mrf.mxu2  ;;  %v8790_v46 = vpop.f32.mrf.mxu3  ;;  %v8091_v28 = vrot.slane %v8089_v47, 2 }
 0x67f   : > { %v10214_v11 = vmax.f32 %v10078_v29, 0.0  ;;  %v7784_v12 = vadd.f32 %v7471_v43, %v6473_v55  ;;  %v6162_v10 = vpop.f32.mrf.mxu1  ;;  %v8094_v43 = vrot.slane %v8092_v17, 3 }
 0x680   : > { %v6474_v52 = vadd.f32 %v6162_v10, %v13372_v4  ;;  %v7112_v10 = vrot.slane %v14571_v59, 2 }
 0x681   : > { %v10350_v9 = vpack.c.bf16 %v10214_v11, %v10214_v11  ;;  %v9103_v40 = vadd.f32 %v8790_v46, %v7784_v12  ;;  %v12457_v12 = vld [vmem:[%s12600_s29 + $0xb0] sm:$0xff]  ;;  %v8095_v63 = vor.u32 %v8094_v43, %v8091_v28 }
 0x682   : > { %v5801_v46 = vrot.slane %v12457_v12, 2 }
 0x683   : > { %10487 = vst.msk [vmem:[%s14349_s12 + $0x44] sm:$0xf] %vm10469_vm9, %v10350_v9  ;;  %v9939_v48 = vadd.f32 %v9626_v45, %v9103_v40  ;;  %v9628_v35 = vpop.f32.mrf.mxu0 }
 0x685   : > { %v10079_v42 = vadd.f32 %v14338_v57, %v9939_v48 }
 0x686   : > { %v7473_v32 = vpop.f32.mrf.mxu2  ;;  %v8792_v7 = vpop.f32.mrf.mxu3 }
 0x687   : > { %v10215_v13 = vmax.f32 %v10079_v42, 0.0  ;;  %v7785_v1 = vadd.f32 %v7473_v32, %v6474_v52  ;;  %v6165_v24 = vpop.f32.mrf.mxu1  ;;  %v9267_v42 = vrot.slane %v14571_v59, 3  ;;  %v5802_v32 = vsel %vm5761_vm6, %v5799_v19, %v5801_v46 }
 0x688   : > { %v6475_v54 = vadd.f32 %v6165_v24, %v13377_v50  ;;  %v8096_v24 = vsel %vm7908_vm7, %v8086_v38, %v8095_v63 }
 0x689   : > { %v10351_v21 = vpack.c.bf16 %v10215_v13, %v10215_v13  ;;  %v9104_v26 = vadd.f32 %v8792_v7, %v7785_v1  ;;  %v7113_v13 = vsel %vm5761_vm6, %v7110_v3, %v7112_v10 }
 0x68a   : > { %11604 = vmatmul.msk.bf16.gmra.mxu1 %vm1240_vm3, %v5800_v61  ;;  %v14595_v61 = vld [vmem:[%s12600_s29 + $0xc8] sm:$0xff] }
 0x68b   : > { %10488 = vst.msk [vmem:[%s14349_s12 + $0x48] sm:$0xf] %vm10469_vm9, %v10351_v21  ;;  %v9940_v4 = vadd.f32 %v9628_v35, %v9104_v26  ;;  %v9631_v51 = vpop.f32.mrf.mxu0  ;;  %11941 = vmatmul.msk.bf16.gmra.mxu2 %vm1240_vm3, %v7111_v60  ;;  %12010 = vmatmul.msk.bf16.gmra.mxu3 %vm1240_vm3, %v8087_v16  ;;  %v9268_v21 = vsel %vm9227_vm8, %v9265_v49, %v9267_v42  ;;  %v8098_v38 = vshrl.u32 %v14595_v61, 16  ;;  %v8101_v26 = vshll.u32 %v14595_v61, 16 }
 0x68d   : > { %v10080_v20 = vadd.f32 %v14338_v57, %v9940_v4  ;;  %v8103_v47 = vrot.slane %v8101_v26, 3 }
 0x68e   : > { %12079 = vmatmul.msk.bf16.gmra.mxu0 %vm1240_vm3, %v9266_v39  ;;  %v7476_v2 = vpop.f32.mrf.mxu2  ;;  %v8795_v29 = vpop.f32.mrf.mxu3 }
 0x68f   : > { %v10216_v45 = vmax.f32 %v10080_v20, 0.0  ;;  %v7786_v25 = vadd.f32 %v7476_v2, %v6475_v54  ;;  %v6167_v55 = vpop.f32.mrf.mxu1  ;;  %v8100_v54 = vrot.slane %v8098_v38, 2  ;;  %v12458_v2 = vld [vmem:[%s12600_s29 + $0xb8] sm:$0xff]  ;;  %v12459_v38 = vld [vmem:[%s12600_s29 + $0xc0] sm:$0xff] }
 0x690   : > { %v6476_v40 = vadd.f32 %v6167_v55, %v13387_v5  ;;  %v5805_v26 = vrot.slane %v12459_v38, 2 }
 0x691   : > { %v10352_v33 = vpack.c.bf16 %v10216_v45, %v10216_v45  ;;  %v9105_v58 = vadd.f32 %v8795_v29, %v7786_v25  ;;  %v5803_v45 = vrot.slane %v12458_v2, 2  ;;  %v7114_v25 = vrot.slane %v14595_v61, 2 }
 0x693   : > { %10489 = vst.msk [vmem:[%s14349_s12 + $0x4c] sm:$0xf] %vm10469_vm9, %v10352_v33  ;;  %v9941_v11 = vadd.f32 %v9631_v51, %v9105_v58  ;;  %v9633_v50 = vpop.f32.mrf.mxu0  ;;  %v8104_v33 = vor.u32 %v8103_v47, %v8100_v54 }
 0x695   : > { %v10081_v9 = vadd.f32 %v14338_v57, %v9941_v11 }
 0x696   : > { %v7478_v30 = vpop.f32.mrf.mxu2  ;;  %v8797_v31 = vpop.f32.mrf.mxu3 }
 0x697   : > { %v10217_v48 = vmax.f32 %v10081_v9, 0.0  ;;  %v7787_v35 = vadd.f32 %v7478_v30, %v6476_v40  ;;  %v6170_v52 = vpop.f32.mrf.mxu1  ;;  %v5804_v9 = vsel %vm5761_vm6, %v5801_v46, %v5803_v45  ;;  %v7115_v40 = vsel %vm5761_vm6, %v7112_v10, %v7114_v25 }
 0x698   : > { %v6477_v3 = vadd.f32 %v6170_v52, %v13392_v41 }
 0x699   : > { %v10353_v1 = vpack.c.bf16 %v10217_v48, %v10217_v48  ;;  %v9106_v7 = vadd.f32 %v8797_v31, %v7787_v35  ;;  %v8105_v35 = vsel %vm7908_vm7, %v8095_v63, %v8104_v33  ;;  %v14619_v31 = vld [vmem:[%s12600_s29 + $0xd0] sm:$0xff] }
 0x69a   : > { %11605 = vmatmul.msk.bf16.gmra.mxu1 %vm1240_vm3, %v5802_v32  ;;  %v8107_v63 = vshrl.u32 %v14619_v31, 16  ;;  %v9271_v47 = vrot.slane %v14619_v31, 3 }
 0x69b   : > { %10490 = vst.msk [vmem:[%s14349_s12 + $0x50] sm:$0xf] %vm10469_vm9, %v10353_v1  ;;  %v9942_v5 = vadd.f32 %v9633_v50, %v9106_v7  ;;  %v9636_v60 = vpop.f32.mrf.mxu0  ;;  %11942 = vmatmul.msk.bf16.gmra.mxu2 %vm1240_vm3, %v7113_v13  ;;  %12011 = vmatmul.msk.bf16.gmra.mxu3 %vm1240_vm3, %v8096_v24  ;;  %v9269_v50 = vrot.slane %v14595_v61, 3  ;;  %v8110_v13 = vshll.u32 %v14619_v31, 16 }
 0x69d   : > { %v10082_v19 = vadd.f32 %v14338_v57, %v9942_v5  ;;  %v9270_v32 = vsel %vm9227_vm8, %v9267_v42, %v9269_v50 }
 0x69e   : > { %12080 = vmatmul.msk.bf16.gmra.mxu0 %vm1240_vm3, %v9268_v21  ;;  %v7481_v16 = vpop.f32.mrf.mxu2  ;;  %v8800_v51 = vpop.f32.mrf.mxu3  ;;  %v8109_v21 = vrot.slane %v8107_v63, 2 }
 0x69f   : > { %v10218_v59 = vmax.f32 %v10082_v19, 0.0  ;;  %v7788_v4 = vadd.f32 %v7481_v16, %v6477_v3  ;;  %v6172_v39 = vpop.f32.mrf.mxu1  ;;  %v8112_v19 = vrot.slane %v8110_v13, 3  ;;  %v7116_v16 = vrot.slane %v14619_v31, 2 }
 0x6a0   : > { %v6478_v55 = vadd.f32 %v6172_v39, %v13402_v34 }
 0x6a1   : > { %v10354_v49 = vpack.c.bf16 %v10218_v59, %v10218_v59  ;;  %v9107_v20 = vadd.f32 %v8800_v51, %v7788_v4  ;;  %v8113_v51 = vor.u32 %v8112_v19, %v8109_v21  ;;  %v7117_v2 = vsel %vm5761_vm6, %v7114_v25, %v7116_v16 }
 0x6a3   : > { %10491 = vst.msk [vmem:[%s14349_s12 + $0x54] sm:$0xf] %vm10469_vm9, %v10354_v49  ;;  %v9943_v17 = vadd.f32 %v9636_v60, %v9107_v20  ;;  %v9638_v41 = vpop.f32.mrf.mxu0 }
 0x6a5   : > { %v10083_v29 = vadd.f32 %v14338_v57, %v9943_v17 }
 0x6a6   : > { %v7483_v58 = vpop.f32.mrf.mxu2  ;;  %v8802_v11 = vpop.f32.mrf.mxu3 }
 0x6a7   : > { %v10219_v28 = vmax.f32 %v10083_v29, 0.0  ;;  %v7789_v43 = vadd.f32 %v7483_v58, %v6478_v55  ;;  %v6175_v12 = vpop.f32.mrf.mxu1  ;;  %v8114_v58 = vsel %vm7908_vm7, %v8104_v33, %v8113_v51 }
 0x6a8   : > { %v6479_v10 = vadd.f32 %v6175_v12, %v13407_v6 }
 0x6a9   : > { %v10355_v30 = vpack.c.bf16 %v10219_v28, %v10219_v28  ;;  %v9108_v48 = vadd.f32 %v8802_v11, %v7789_v43  ;;  %v14643_v28 = vld [vmem:[%s12600_s29 + $0xd8] sm:$0xff]  ;;  %v9272_v43 = vsel %vm9227_vm8, %v9269_v50, %v9271_v47 }
 0x6aa   : > { %11606 = vmatmul.msk.bf16.gmra.mxu1 %vm1240_vm3, %v5804_v9  ;;  %v8116_v11 = vshrl.u32 %v14643_v28, 16  ;;  %v8119_v12 = vshll.u32 %v14643_v28, 16  ;;  %v7118_v63 = vrot.slane %v14643_v28, 2 }
 0x6ab   : > { %10492 = vst.msk [vmem:[%s14349_s12 + $0x58] sm:$0xf] %vm10469_vm9, %v10355_v30  ;;  %v9944_v34 = vadd.f32 %v9638_v41, %v9108_v48  ;;  %v9641_v52 = vpop.f32.mrf.mxu0  ;;  %11943 = vmatmul.msk.bf16.gmra.mxu2 %vm1240_vm3, %v7115_v40  ;;  %12012 = vmatmul.msk.bf16.gmra.mxu3 %vm1240_vm3, %v8105_v35  ;;  %v5806_v41 = vsel %vm5761_vm6, %v5803_v45, %v5805_v26  ;;  %v14654_v45 = vld [vmem:[%s15854_s2] ss:$0 sm:$0xff] }
 0x6ad   : > { %v10084_v46 = vadd.f32 %v14338_v57, %v9944_v34  ;;  %v8118_v34 = vrot.slane %v8116_v11, 2 }
 0x6ae   : > { %12081 = vmatmul.msk.bf16.gmra.mxu0 %vm1240_vm3, %v9270_v32  ;;  %v7486_v1 = vpop.f32.mrf.mxu2  ;;  %v8805_v61 = vpop.f32.mrf.mxu3 }
 0x6af   : > { %v10220_v7 = vmax.f32 %v10084_v46, 0.0  ;;  %v7790_v24 = vadd.f32 %v7486_v1, %v6479_v10  ;;  %v6177_v5 = vpop.f32.mrf.mxu1  ;;  %v12461_v46 = vld [vmem:[%s12600_s29 + $0xc8] sm:$0xff] }
 0x6b0   : > { %v6480_v4 = vadd.f32 %v6177_v5, %v13417_v15  ;;  %v5807_v10 = vrot.slane %v12461_v46, 2  ;;  %v14696_v46 = vld [vmem:[%s12600_s29 + $0xe8] sm:$0xff] }
 0x6b1   : > { %v10356_v42 = vpack.c.bf16 %v10220_v7, %v10220_v7  ;;  %v9109_v60 = vadd.f32 %v8805_v61, %v7790_v24 }
 0x6b2   : > { %v5808_v19 = vsel %vm5761_vm6, %v5805_v26, %v5807_v10 }
 0x6b3   : > { %10493 = vst.msk [vmem:[%s14349_s12 + $0x5c] sm:$0xf] %vm10469_vm9, %v10356_v42  ;;  %v9945_v3 = vadd.f32 %v9641_v52, %v9109_v60  ;;  %v9643_v6 = vpop.f32.mrf.mxu0  ;;  %v8121_v52 = vrot.slane %v8119_v12, 3  ;;  %v9273_v60 = vrot.slane %v14643_v28, 3 }
 0x6b5   : > { %v10085_v59 = vadd.f32 %v14338_v57, %v9945_v3  ;;  %v8122_v7 = vor.u32 %v8121_v52, %v8118_v34  ;;  %v7119_v3 = vsel %vm5761_vm6, %v7116_v16, %v7118_v63 }
 0x6b6   : > { %v7488_v39 = vpop.f32.mrf.mxu2  ;;  %v8807_v54 = vpop.f32.mrf.mxu3 }
 0x6b7   : > { %v10221_v49 = vmax.f32 %v10085_v59, 0.0  ;;  %v7791_v20 = vadd.f32 %v7488_v39, %v6480_v4  ;;  %v6180_v17 = vpop.f32.mrf.mxu1  ;;  %v8123_v59 = vsel %vm7908_vm7, %v8113_v51, %v8122_v7  ;;  %v14672_v4 = vld [vmem:[%s12600_s29 + $0xe0] sm:$0xff] }
 0x6b8   : > { %v6481_v33 = vadd.f32 %v6180_v17, %v13422_v0  ;;  %v8125_v51 = vshrl.u32 %v14672_v4, 16 }
 0x6b9   : > { %v10357_v29 = vpack.c.bf16 %v10221_v49, %v10221_v49  ;;  %v9110_v55 = vadd.f32 %v8807_v54, %v7791_v20  ;;  %v9274_v49 = vsel %vm9227_vm8, %v9271_v47, %v9273_v60  ;;  %v8128_v20 = vshll.u32 %v14672_v4, 16 }
 0x6ba   : > { %11607 = vmatmul.msk.bf16.gmra.mxu1 %vm1240_vm3, %v5806_v41 }
 0x6bb   : > { %10494 = vst.msk [vmem:[%s14349_s12 + $0x60] sm:$0xf] %vm10469_vm9, %v10357_v29  ;;  %v9946_v15 = vadd.f32 %v9643_v6, %v9110_v55  ;;  %v9646_v57 = vpop.f32.mrf.mxu0  ;;  %11944 = vmatmul.msk.bf16.gmra.mxu2 %vm1240_vm3, %v7117_v2  ;;  %12013 = vmatmul.msk.bf16.gmra.mxu3 %vm1240_vm3, %v8114_v58  ;;  %v8127_v58 = vrot.slane %v8125_v51, 2  ;;  %v8130_v28 = vrot.slane %v8128_v20, 3 }
 0x6bd   : > { %v10086_v25 = vadd.f32 %v14654_v45, %v9946_v15  ;;  %v8131_v12 = vor.u32 %v8130_v28, %v8127_v58 }
 0x6be   : > { %12082 = vmatmul.msk.bf16.gmra.mxu0 %vm1240_vm3, %v9272_v43  ;;  %v7491_v50 = vpop.f32.mrf.mxu2  ;;  %v8810_v30 = vpop.f32.mrf.mxu3 }
 0x6bf   : > { %v10222_v9 = vmax.f32 %v10086_v25, 0.0  ;;  %v7792_v40 = vadd.f32 %v7491_v50, %v6481_v33  ;;  %v6182_v48 = vpop.f32.mrf.mxu1  ;;  %v7120_v25 = vrot.slane %v14672_v4, 2 }
 0x6c0   : > { %v6482_v1 = vadd.f32 %v6182_v48, %v13432_v23  ;;  %v9275_v48 = vrot.slane %v14672_v4, 3  ;;  %v12463_v4 = vld [vmem:[%s12600_s29 + $0xd8] sm:$0xff] }
 0x6c1   : > { %v10358_v35 = vpack.c.bf16 %v10222_v9, %v10222_v9  ;;  %v9111_v31 = vadd.f32 %v8810_v30, %v7792_v40  ;;  %v7121_v34 = vsel %vm5761_vm6, %v7118_v63, %v7120_v25 }
 0x6c3   : > { %10495 = vst.msk [vmem:[%s14349_s12 + $0x64] sm:$0xf] %vm10469_vm9, %v10358_v35  ;;  %v9947_v32 = vadd.f32 %v9646_v57, %v9111_v31  ;;  %v9648_v0 = vpop.f32.mrf.mxu0  ;;  %v12462_v57 = vld [vmem:[%s12600_s29 + $0xd0] sm:$0xff] }
 0x6c4   : > { %v5809_v43 = vrot.slane %v12462_v57, 2 }
 0x6c5   : > { %v10087_v13 = vadd.f32 %v14654_v45, %v9947_v32 }
 0x6c6   : > { %v7493_v24 = vpop.f32.mrf.mxu2  ;;  %v8812_v42 = vpop.f32.mrf.mxu3  ;;  %v5810_v31 = vsel %vm5761_vm6, %v5807_v10, %v5809_v43 }
 0x6c7   : > { %v10223_v61 = vmax.f32 %v10087_v13, 0.0  ;;  %v7793_v5 = vadd.f32 %v7493_v24, %v6482_v1  ;;  %v6185_v21 = vpop.f32.mrf.mxu1  ;;  %v9276_v1 = vsel %vm9227_vm8, %v9273_v60, %v9275_v48  ;;  %v8137_v24 = vshll.u32 %v14696_v46, 16 }
 0x6c8   : > { %v6483_v16 = vadd.f32 %v6185_v21, %v13437_v56 }
 0x6c9   : > { %v10359_v6 = vpack.c.bf16 %v10223_v61, %v10223_v61  ;;  %v9112_v38 = vadd.f32 %v8812_v42, %v7793_v5 }
 0x6ca   : > { %11608 = vmatmul.msk.bf16.gmra.mxu1 %vm1240_vm3, %v5808_v19 }
 0x6cb   : > { %10496 = vst.msk [vmem:[%s14349_s12 + $0x68] sm:$0xf] %vm10469_vm9, %v10359_v6  ;;  %v9948_v23 = vadd.f32 %v9648_v0, %v9112_v38  ;;  %v9651_v39 = vpop.f32.mrf.mxu0  ;;  %11945 = vmatmul.msk.bf16.gmra.mxu2 %vm1240_vm3, %v7119_v3  ;;  %12014 = vmatmul.msk.bf16.gmra.mxu3 %vm1240_vm3, %v8123_v59  ;;  %v8132_v0 = vsel %vm7908_vm7, %v8122_v7, %v8131_v12  ;;  %v8134_v7 = vshrl.u32 %v14696_v46, 16  ;;  %v8139_v38 = vrot.slane %v8137_v24, 3 }
 0x6cd   : > { %v10088_v26 = vadd.f32 %v14654_v45, %v9948_v23  ;;  %v8136_v6 = vrot.slane %v8134_v7, 2  ;;  %v5811_v23 = vrot.slane %v12463_v4, 2 }
 0x6ce   : > { %12083 = vmatmul.msk.bf16.gmra.mxu0 %vm1240_vm3, %v9274_v49  ;;  %v7496_v54 = vpop.f32.mrf.mxu2  ;;  %v8815_v2 = vpop.f32.mrf.mxu3 }
 0x6cf   : > { %v10224_v17 = vmax.f32 %v10088_v26, 0.0  ;;  %v7794_v41 = vadd.f32 %v7496_v54, %v6483_v16  ;;  %v6187_v29 = vpop.f32.mrf.mxu1  ;;  %v8140_v16 = vor.u32 %v8139_v38, %v8136_v6  ;;  %v14744_v38 = vld [vmem:[%s12600_s29 + $0xf8] sm:$0xff] }
 0x6d0   : > { %v6484_v11 = vadd.f32 %v6187_v29, %v13447_v37  ;;  %v5812_v29 = vsel %vm5761_vm6, %v5809_v43, %v5811_v23 }
 0x6d1   : > { %v10360_v47 = vpack.c.bf16 %v10224_v17, %v10224_v17  ;;  %v9113_v55 = vadd.f32 %v8815_v2, %v7794_v41  ;;  %v9277_v41 = vrot.slane %v14696_v46, 3  ;;  %v8141_v28 = vsel %vm7908_vm7, %v8131_v12, %v8140_v16 }
 0x6d3   : > { %10497 = vst.msk [vmem:[%s14349_s12 + $0x6c] sm:$0xf] %vm10469_vm9, %v10360_v47  ;;  %v9949_v15 = vadd.f32 %v9651_v39, %v9113_v55  ;;  %v9653_v56 = vpop.f32.mrf.mxu0  ;;  %v7122_v39 = vrot.slane %v14696_v46, 2  ;;  %v9278_v57 = vsel %vm9227_vm8, %v9275_v48, %v9277_v41 }
 0x6d5   : > { %v10089_v33 = vadd.f32 %v14654_v45, %v9949_v15  ;;  %v7123_v47 = vsel %vm5761_vm6, %v7120_v25, %v7122_v39  ;;  %v14720_v15 = vld [vmem:[%s12600_s29 + $0xf0] sm:$0xff] }
 0x6d6   : > { %v7498_v50 = vpop.f32.mrf.mxu2  ;;  %v8817_v30 = vpop.f32.mrf.mxu3  ;;  %v7124_v46 = vrot.slane %v14720_v15, 2 }
 0x6d7   : > { %v10225_v9 = vmax.f32 %v10089_v33, 0.0  ;;  %v7795_v40 = vadd.f32 %v7498_v50, %v6484_v11  ;;  %v6190_v35 = vpop.f32.mrf.mxu1  ;;  %v8143_v33 = vshrl.u32 %v14720_v15, 16  ;;  %v8146_v11 = vshll.u32 %v14720_v15, 16 }
 0x6d8   : > { %v6485_v63 = vadd.f32 %v6190_v35, %v13452_v8 }
 0x6d9   : > { %v10361_v52 = vpack.c.bf16 %v10225_v9, %v10225_v9  ;;  %v9114_v32 = vadd.f32 %v8817_v30, %v7795_v40 }
 0x6da   : > { %11609 = vmatmul.msk.bf16.gmra.mxu1 %vm1240_vm3, %v5810_v31  ;;  %v8145_v31 = vrot.slane %v8143_v33, 2 }
 0x6db   : > { %10498 = vst.msk [vmem:[%s14349_s12 + $0x70] sm:$0xf] %vm10469_vm9, %v10361_v52  ;;  %v9950_v37 = vadd.f32 %v9653_v56, %v9114_v32  ;;  %v9656_v13 = vpop.f32.mrf.mxu0  ;;  %11946 = vmatmul.msk.bf16.gmra.mxu2 %vm1240_vm3, %v7121_v34  ;;  %12015 = vmatmul.msk.bf16.gmra.mxu3 %vm1240_vm3, %v8132_v0  ;;  %v8148_v34 = vrot.slane %v8146_v11, 3  ;;  %v12464_v32 = vld [vmem:[%s12600_s29 + $0xe0] sm:$0xff] }
 0x6dc   : > { %v5813_v0 = vrot.slane %v12464_v32, 2 }
 0x6dd   : > { %v10090_v10 = vadd.f32 %v14654_v45, %v9950_v37 }
 0x6de   : > { %12084 = vmatmul.msk.bf16.gmra.mxu0 %vm1240_vm3, %v9276_v1  ;;  %v7501_v61 = vpop.f32.mrf.mxu2  ;;  %v8820_v21 = vpop.f32.mrf.mxu3 }
 0x6df   : > { %v10226_v5 = vmax.f32 %v10090_v10, 0.0  ;;  %v7796_v42 = vadd.f32 %v7501_v61, %v6485_v63  ;;  %v6192_v19 = vpop.f32.mrf.mxu1  ;;  %v8149_v10 = vor.u32 %v8148_v34, %v8145_v31 }
 0x6e0   : > { %v6486_v26 = vadd.f32 %v6192_v19, %v13462_v22  ;;  %v7125_v19 = vsel %vm5761_vm6, %v7122_v39, %v7124_v46  ;;  %v16168_v39 = vld [vmem:[#allocation2_spill] sm:$0xff] }
 0x6e1   : > { %v10362_v60 = vpack.c.bf16 %v10226_v5, %v10226_v5  ;;  %v9115_v3 = vadd.f32 %v8820_v21, %v7796_v42  ;;  %v9279_v5 = vrot.slane %v14720_v15, 3  ;;  %v5814_v21 = vsel %vm5761_vm6, %v5811_v23, %v5813_v0  ;;  %v12465_v15 = vld [vmem:[%s12600_s29 + $0xe8] sm:$0xff] }
 0x6e2   : > { %v8150_v6 = vsel %vm7908_vm7, %v8140_v16, %v8149_v10  ;;  %v8155_v16 = vshll.u32 %v14744_v38, 16 }
 0x6e3   : > { %10499 = vst.msk [vmem:[%s14349_s12 + $0x74] sm:$0xf] %vm10469_vm9, %v10362_v60  ;;  %v9951_v59 = vadd.f32 %v9656_v13, %v9115_v3  ;;  %v9658_v8 = vpop.f32.mrf.mxu0  ;;  %v16167_v13 = vld [vmem:[#allocation106_spill] sm:$0xff]  ;;  %v9280_v4 = vsel %vm9227_vm8, %v9277_v41, %v9279_v5 }
 0x6e5   : > { %v10091_v49 = vadd.f32 %v14654_v45, %v9951_v59 }
 0x6e6   : > { %v7503_v51 = vpop.f32.mrf.mxu2  ;;  %v8822_v17 = vpop.f32.mrf.mxu3 }
 0x6e7   : > { %v10227_v20 = vmax.f32 %v10091_v49, 0.0  ;;  %v7797_v54 = vadd.f32 %v7503_v51, %v6486_v26  ;;  %v6195_v2 = vpop.f32.mrf.mxu1  ;;  %v8152_v26 = vshrl.u32 %v14744_v38, 16 }
 0x6e8   : > { %v6487_v25 = vadd.f32 %v6195_v2, %v13467_v44 }
 0x6e9   : > { %v10363_v55 = vpack.c.bf16 %v10227_v20, %v10227_v20  ;;  %v9116_v58 = vadd.f32 %v8822_v17, %v7797_v54 }
 0x6ea   : > { %11610 = vmatmul.msk.bf16.gmra.mxu1 %vm1240_vm3, %v5812_v29 }
 0x6eb   : > { %10500 = vst.msk [vmem:[%s14349_s12 + $0x78] sm:$0xf] %vm10469_vm9, %v10363_v55  ;;  %v9952_v22 = vadd.f32 %v9658_v8, %v9116_v58  ;;  %v9661_v56 = vpop.f32.mrf.mxu0  ;;  %11947 = vmatmul.msk.bf16.gmra.mxu2 %vm1240_vm3, %v7123_v47  ;;  %12016 = vmatmul.msk.bf16.gmra.mxu3 %vm1240_vm3, %v8141_v28  ;;  %v8154_v47 = vrot.slane %v8152_v26, 2  ;;  %v8157_v55 = vrot.slane %v8155_v16, 3 }
 0x6ed   : > { %v10092_v43 = vadd.f32 %v14654_v45, %v9952_v22  ;;  %v5815_v22 = vrot.slane %v12465_v15, 2  ;;  %v8158_v33 = vor.u32 %v8157_v55, %v8154_v47 }
 0x6ee   : > { %12085 = vmatmul.msk.bf16.gmra.mxu0 %vm1240_vm3, %v9278_v57  ;;  %v7506_v12 = vpop.f32.mrf.mxu2  ;;  %v8825_v40 = vpop.f32.mrf.mxu3 }
 0x6ef   : > { %v10228_v50 = vmax.f32 %v10092_v43, 0.0  ;;  %v7798_v9 = vadd.f32 %v7506_v12, %v6487_v25  ;;  %v6197_v30 = vpop.f32.mrf.mxu1  ;;  %v16169_v43 = vld [vmem:[#allocation5_spill] sm:$0xff] }
 0x6f0   : > { %v6488_v1 = vadd.f32 %v6197_v30, %v16167_v13 }
 0x6f1   : > { %v10364_v48 = vpack.c.bf16 %v10228_v50, %v10228_v50  ;;  %v9117_v35 = vadd.f32 %v8825_v40, %v7798_v9  ;;  %v9281_v40 = vrot.slane %v14744_v38, 3 }
 0x6f3   : > { %10501 = vst.msk [vmem:[%s14349_s12 + $0x7c] sm:$0xf] %vm10469_vm9, %v10364_v48  ;;  %v9953_v52 = vadd.f32 %v9661_v56, %v9117_v35  ;;  %v9663_v44 = vpop.f32.mrf.mxu0  ;;  %v7126_v56 = vrot.slane %v14744_v38, 2  ;;  %v5816_v48 = vsel %vm5761_vm6, %v5813_v0, %v5815_v22  ;;  %v9282_v13 = vsel %vm9227_vm8, %v9279_v5, %v9281_v40 }
 0x6f5   : > { %v10093_v37 = vadd.f32 %v14654_v45, %v9953_v52  ;;  %v7127_v35 = vsel %vm5761_vm6, %v7124_v46, %v7126_v56  ;;  %v8159_v52 = vsel %vm7908_vm7, %v8149_v10, %v8158_v33  ;;  %v16170_v46 = vld [vmem:[#allocation8_spill] sm:$0xff] }
 0x6f6   : > { %v7508_v63 = vpop.f32.mrf.mxu2  ;;  %v8827_v61 = vpop.f32.mrf.mxu3 }
 0x6f7   : > { %v10229_v7 = vmax.f32 %v10093_v37, 0.0  ;;  %v7799_v24 = vadd.f32 %v7508_v63, %v6488_v1  ;;  %v6200_v42 = vpop.f32.mrf.mxu1 }
 0x6f8   : > { %v6489_v49 = vadd.f32 %v6200_v42, %v16168_v39  ;;  %v16171_v39 = vld [vmem:[#allocation11_spill] sm:$0xff] }
 0x6f9   : > { %v10365_v60 = vpack.c.bf16 %v10229_v7, %v10229_v7  ;;  %v9118_v3 = vadd.f32 %v8827_v61, %v7799_v24 }
 0x6fa   : > { %11611 = vmatmul.msk.bf16.gmra.mxu1 %vm1240_vm3, %v5814_v21 }
 0x6fb   : > { %10502 = vst.msk [vmem:[%s14349_s12 + $0x80] sm:$0xf] %vm10469_vm9, %v10365_v60  ;;  %v9954_v59 = vadd.f32 %v9663_v44, %v9118_v3  ;;  %v9666_v8 = vpop.f32.mrf.mxu0  ;;  %11948 = vmatmul.msk.bf16.gmra.mxu2 %vm1240_vm3, %v7125_v19  ;;  %12017 = vmatmul.msk.bf16.gmra.mxu3 %vm1240_vm3, %v8150_v6  ;;  %v14768_v44 = vld [vmem:[%s12600_s29 + $0x100] sm:$0xff] }
 0x6fc   : > { %v8161_v10 = vshrl.u32 %v14768_v44, 16  ;;  %v8164_v63 = vshll.u32 %v14768_v44, 16 }
 0x6fd   : > { %v10094_v23 = vadd.f32 %v14654_v45, %v9954_v59  ;;  %v12466_v59 = vld [vmem:[%s12600_s29 + $0xf0] sm:$0xff] }
 0x6fe   : > { %12086 = vmatmul.msk.bf16.gmra.mxu0 %vm1240_vm3, %v9280_v4  ;;  %v7511_v51 = vpop.f32.mrf.mxu2  ;;  %v8830_v17 = vpop.f32.mrf.mxu3  ;;  %v8163_v60 = vrot.slane %v8161_v10, 2  ;;  %v8166_v3 = vrot.slane %v8164_v63, 3  ;;  %v7128_v4 = vrot.slane %v14768_v44, 2 }
 0x6ff   : > { %v10230_v20 = vmax.f32 %v10094_v23, 0.0  ;;  %v7800_v54 = vadd.f32 %v7511_v51, %v6489_v49  ;;  %v6202_v2 = vpop.f32.mrf.mxu1 }
 0x700   : > { %v6490_v25 = vadd.f32 %v6202_v2, %v16169_v43  ;;  %v8167_v26 = vor.u32 %v8166_v3, %v8163_v60 }
 0x701   : > { %v10366_v41 = vpack.c.bf16 %v10230_v20, %v10230_v20  ;;  %v9119_v29 = vadd.f32 %v8830_v17, %v7800_v54  ;;  %v9283_v17 = vrot.slane %v14768_v44, 3 }
 0x703   : > { %10503 = vst.msk [vmem:[%s14349_s12 + $0x84] sm:$0xf] %vm10469_vm9, %v10366_v41  ;;  %v9955_v58 = vadd.f32 %v9666_v8, %v9119_v29  ;;  %v9668_v28 = vpop.f32.mrf.mxu0  ;;  %v5817_v8 = vrot.slane %v12466_v59, 2  ;;  %v7129_v29 = vsel %vm5761_vm6, %v7126_v56, %v7128_v4  ;;  %v9284_v43 = vsel %vm9227_vm8, %v9281_v40, %v9283_v17  ;;  %v16172_v56 = vld [vmem:[#allocation14_spill] sm:$0xff] }
 0x705   : > { %v10095_v57 = vadd.f32 %v14654_v45, %v9955_v58  ;;  %v5818_v41 = vsel %vm5761_vm6, %v5815_v22, %v5817_v8  ;;  %v8168_v58 = vsel %vm7908_vm7, %v8158_v33, %v8167_v26 }
 0x706   : > { %v7513_v11 = vpop.f32.mrf.mxu2  ;;  %v8832_v9 = vpop.f32.mrf.mxu3 }
 0x707   : > { %v10231_v12 = vmax.f32 %v10095_v57, 0.0  ;;  %v7801_v50 = vadd.f32 %v7513_v11, %v6490_v25  ;;  %v6205_v30 = vpop.f32.mrf.mxu1 }
 0x708   : > { %v6491_v1 = vadd.f32 %v6205_v30, %v16170_v46  ;;  %v16173_v46 = vld [vmem:[#allocation17_spill] sm:$0xff] }
 0x709   : > { %v10367_v31 = vpack.c.bf16 %v10231_v12, %v10231_v12  ;;  %v9120_v34 = vadd.f32 %v8832_v9, %v7801_v50 }
 0x70a   : > { %11612 = vmatmul.msk.bf16.gmra.mxu1 %vm1240_vm3, %v5816_v48 }
 0x70b   : > { %10504 = vst.msk [vmem:[%s14349_s12 + $0x88] sm:$0xf] %vm10469_vm9, %v10367_v31  ;;  %v9956_v32 = vadd.f32 %v9668_v28, %v9120_v34  ;;  %v9671_v37 = vpop.f32.mrf.mxu0  ;;  %11949 = vmatmul.msk.bf16.gmra.mxu2 %vm1240_vm3, %v7127_v35  ;;  %12018 = vmatmul.msk.bf16.gmra.mxu3 %vm1240_vm3, %v8159_v52  ;;  %v14792_v28 = vld [vmem:[%s12600_s29 + $0x108] sm:$0xff] }
 0x70c   : > { %v8170_v33 = vshrl.u32 %v14792_v28, 16  ;;  %v8173_v11 = vshll.u32 %v14792_v28, 16 }
 0x70d   : > { %v10096_v0 = vadd.f32 %v14654_v45, %v9956_v32  ;;  %v12467_v32 = vld [vmem:[%s12600_s29 + $0xf8] sm:$0xff] }
 0x70e   : > { %12087 = vmatmul.msk.bf16.gmra.mxu0 %vm1240_vm3, %v9282_v13  ;;  %v7516_v7 = vpop.f32.mrf.mxu2  ;;  %v8835_v42 = vpop.f32.mrf.mxu3  ;;  %v8172_v31 = vrot.slane %v8170_v33, 2  ;;  %v8175_v34 = vrot.slane %v8173_v11, 3  ;;  %v7130_v13 = vrot.slane %v14792_v28, 2 }
 0x70f   : > { %v10232_v24 = vmax.f32 %v10096_v0, 0.0  ;;  %v7802_v61 = vadd.f32 %v7516_v7, %v6491_v1  ;;  %v6207_v21 = vpop.f32.mrf.mxu1 }
 0x710   : > { %v6492_v49 = vadd.f32 %v6207_v21, %v16171_v39  ;;  %v8176_v10 = vor.u32 %v8175_v34, %v8172_v31 }
 0x711   : > { %v10368_v5 = vpack.c.bf16 %v10232_v24, %v10232_v24  ;;  %v9121_v19 = vadd.f32 %v8835_v42, %v7802_v61  ;;  %v9285_v42 = vrot.slane %v14792_v28, 3 }
 0x713   : > { %10505 = vst.msk [vmem:[%s14349_s12 + $0x8c] sm:$0xf] %vm10469_vm9, %v10368_v5  ;;  %v9957_v6 = vadd.f32 %v9671_v37, %v9121_v19  ;;  %v9673_v38 = vpop.f32.mrf.mxu0  ;;  %v5819_v37 = vrot.slane %v12467_v32, 2  ;;  %v7131_v19 = vsel %vm5761_vm6, %v7128_v4, %v7130_v13  ;;  %v9286_v39 = vsel %vm9227_vm8, %v9283_v17, %v9285_v42  ;;  %v16174_v4 = vld [vmem:[#allocation20_spill] sm:$0xff] }
 0x715   : > { %v10097_v23 = vadd.f32 %v14654_v45, %v9957_v6  ;;  %v5820_v5 = vsel %vm5761_vm6, %v5817_v8, %v5819_v37  ;;  %v8177_v6 = vsel %vm7908_vm7, %v8167_v26, %v8176_v10 }
 0x716   : > { %v7518_v16 = vpop.f32.mrf.mxu2  ;;  %v8837_v54 = vpop.f32.mrf.mxu3 }
 0x717   : > { %v10233_v51 = vmax.f32 %v10097_v23, 0.0  ;;  %v7803_v20 = vadd.f32 %v7518_v16, %v6492_v49  ;;  %v6210_v2 = vpop.f32.mrf.mxu1 }
 0x718   : > { %v6493_v25 = vadd.f32 %v6210_v2, %v16172_v56  ;;  %v16175_v56 = vld [vmem:[#allocation23_spill] sm:$0xff] }
 0x719   : > { %v10369_v47 = vpack.c.bf16 %v10233_v51, %v10233_v51  ;;  %v9122_v55 = vadd.f32 %v8837_v54, %v7803_v20 }
 0x71a   : > { %11613 = vmatmul.msk.bf16.gmra.mxu1 %vm1240_vm3, %v5818_v41 }
 0x71b   : > { %10506 = vst.msk [vmem:[%s14349_s12 + $0x90] sm:$0xf] %vm10469_vm9, %v10369_v47  ;;  %v9958_v15 = vadd.f32 %v9673_v38, %v9122_v55  ;;  %v9676_v57 = vpop.f32.mrf.mxu0  ;;  %11950 = vmatmul.msk.bf16.gmra.mxu2 %vm1240_vm3, %v7129_v29  ;;  %12019 = vmatmul.msk.bf16.gmra.mxu3 %vm1240_vm3, %v8168_v58  ;;  %v14816_v38 = vld [vmem:[%s12600_s29 + $0x110] sm:$0xff] }
 0x71c   : > { %v8179_v26 = vshrl.u32 %v14816_v38, 16  ;;  %v8182_v16 = vshll.u32 %v14816_v38, 16 }
 0x71d   : > { %v10098_v22 = vadd.f32 %v14654_v45, %v9958_v15  ;;  %v12468_v15 = vld [vmem:[%s12600_s29 + $0x100] sm:$0xff] }
 0x71e   : > { %12088 = vmatmul.msk.bf16.gmra.mxu0 %vm1240_vm3, %v9284_v43  ;;  %v7521_v12 = vpop.f32.mrf.mxu2  ;;  %v8840_v30 = vpop.f32.mrf.mxu3  ;;  %v8181_v47 = vrot.slane %v8179_v26, 2  ;;  %v8184_v55 = vrot.slane %v8182_v16, 3  ;;  %v7132_v43 = vrot.slane %v14816_v38, 2 }
 0x71f   : > { %v10234_v50 = vmax.f32 %v10098_v22, 0.0  ;;  %v7804_v9 = vadd.f32 %v7521_v12, %v6493_v25  ;;  %v6212_v48 = vpop.f32.mrf.mxu1 }
 0x720   : > { %v6494_v1 = vadd.f32 %v6212_v48, %v16173_v46  ;;  %v8185_v33 = vor.u32 %v8184_v55, %v8181_v47 }
 0x721   : > { %v10370_v40 = vpack.c.bf16 %v10234_v50, %v10234_v50  ;;  %v9123_v35 = vadd.f32 %v8840_v30, %v7804_v9  ;;  %v9287_v30 = vrot.slane %v14816_v38, 3 }
 0x723   : > { %10507 = vst.msk [vmem:[%s14349_s12 + $0x94] sm:$0xf] %vm10469_vm9, %v10370_v40  ;;  %v9959_v52 = vadd.f32 %v9676_v57, %v9123_v35  ;;  %v9678_v44 = vpop.f32.mrf.mxu0  ;;  %v5821_v57 = vrot.slane %v12468_v15, 2  ;;  %v7133_v35 = vsel %vm5761_vm6, %v7130_v13, %v7132_v43  ;;  %v9288_v46 = vsel %vm9227_vm8, %v9285_v42, %v9287_v30  ;;  %v16176_v13 = vld [vmem:[#allocation26_spill] sm:$0xff] }
 0x725   : > { %v10099_v0 = vadd.f32 %v14654_v45, %v9959_v52  ;;  %v5822_v40 = vsel %vm5761_vm6, %v5819_v37, %v5821_v57  ;;  %v8186_v52 = vsel %vm7908_vm7, %v8176_v10, %v8185_v33 }
 0x726   : > { %v7523_v63 = vpop.f32.mrf.mxu2  ;;  %v8842_v61 = vpop.f32.mrf.mxu3 }
 0x727   : > { %v10235_v7 = vmax.f32 %v10099_v0, 0.0  ;;  %v7805_v24 = vadd.f32 %v7523_v63, %v6494_v1  ;;  %v6215_v21 = vpop.f32.mrf.mxu1 }
 0x728   : > { %v6495_v49 = vadd.f32 %v6215_v21, %v16174_v4  ;;  %v16177_v4 = vld [vmem:[#allocation29_spill] sm:$0xff] }
 0x729   : > { %v10371_v60 = vpack.c.bf16 %v10235_v7, %v10235_v7  ;;  %v9124_v3 = vadd.f32 %v8842_v61, %v7805_v24 }
 0x72a   : > { %11614 = vmatmul.msk.bf16.gmra.mxu1 %vm1240_vm3, %v5820_v5 }
 0x72b   : > { %10508 = vst.msk [vmem:[%s14349_s12 + $0x98] sm:$0xf] %vm10469_vm9, %v10371_v60  ;;  %v9960_v59 = vadd.f32 %v9678_v44, %v9124_v3  ;;  %v9681_v23 = vpop.f32.mrf.mxu0  ;;  %11951 = vmatmul.msk.bf16.gmra.mxu2 %vm1240_vm3, %v7131_v19  ;;  %12020 = vmatmul.msk.bf16.gmra.mxu3 %vm1240_vm3, %v8177_v6  ;;  %v14840_v44 = vld [vmem:[%s12600_s29 + $0x118] sm:$0xff] }
 0x72c   : > { %v8188_v10 = vshrl.u32 %v14840_v44, 16  ;;  %v8191_v63 = vshll.u32 %v14840_v44, 16 }
 0x72d   : > { %v10100_v8 = vadd.f32 %v14654_v45, %v9960_v59  ;;  %v12469_v59 = vld [vmem:[%s12600_s29 + $0x108] sm:$0xff] }
 0x72e   : > { %12089 = vmatmul.msk.bf16.gmra.mxu0 %vm1240_vm3, %v9286_v39  ;;  %v7526_v51 = vpop.f32.mrf.mxu2  ;;  %v8845_v2 = vpop.f32.mrf.mxu3  ;;  %v8190_v60 = vrot.slane %v8188_v10, 2  ;;  %v8193_v3 = vrot.slane %v8191_v63, 3  ;;  %v7134_v39 = vrot.slane %v14840_v44, 2 }
 0x72f   : > { %v10236_v20 = vmax.f32 %v10100_v8, 0.0  ;;  %v7806_v54 = vadd.f32 %v7526_v51, %v6495_v49  ;;  %v6217_v41 = vpop.f32.mrf.mxu1 }
 0x730   : > { %v6496_v25 = vadd.f32 %v6217_v41, %v16175_v56  ;;  %v8194_v26 = vor.u32 %v8193_v3, %v8190_v60 }
 0x731   : > { %v10372_v17 = vpack.c.bf16 %v10236_v20, %v10236_v20  ;;  %v9125_v29 = vadd.f32 %v8845_v2, %v7806_v54  ;;  %v9289_v2 = vrot.slane %v14840_v44, 3 }
 0x733   : > { %10509 = vst.msk [vmem:[%s14349_s12 + $0x9c] sm:$0xf] %vm10469_vm9, %v10372_v17  ;;  %v9961_v58 = vadd.f32 %v9681_v23, %v9125_v29  ;;  %v9683_v28 = vpop.f32.mrf.mxu0  ;;  %v5823_v23 = vrot.slane %v12469_v59, 2  ;;  %v7135_v29 = vsel %vm5761_vm6, %v7132_v43, %v7134_v39  ;;  %v9290_v56 = vsel %vm9227_vm8, %v9287_v30, %v9289_v2  ;;  %v16178_v43 = vld [vmem:[#allocation32_spill] sm:$0xff] }
 0x735   : > { %v10101_v22 = vadd.f32 %v14654_v45, %v9961_v58  ;;  %v5824_v17 = vsel %vm5761_vm6, %v5821_v57, %v5823_v23  ;;  %v8195_v58 = vsel %vm7908_vm7, %v8185_v33, %v8194_v26 }
 0x736   : > { %v7528_v11 = vpop.f32.mrf.mxu2  ;;  %v8847_v9 = vpop.f32.mrf.mxu3 }
 0x737   : > { %v10237_v12 = vmax.f32 %v10101_v22, 0.0  ;;  %v7807_v50 = vadd.f32 %v7528_v11, %v6496_v25  ;;  %v6220_v48 = vpop.f32.mrf.mxu1 }
 0x738   : > { %v6497_v1 = vadd.f32 %v6220_v48, %v16176_v13  ;;  %v16179_v13 = vld [vmem:[#allocation35_spill] sm:$0xff] }
 0x739   : > { %v10373_v31 = vpack.c.bf16 %v10237_v12, %v10237_v12  ;;  %v9126_v34 = vadd.f32 %v8847_v9, %v7807_v50 }
 0x73a   : > { %11615 = vmatmul.msk.bf16.gmra.mxu1 %vm1240_vm3, %v5822_v40 }
 0x73b   : > { %10510 = vst.msk [vmem:[%s14349_s12 + $0xa0] sm:$0xf] %vm10469_vm9, %v10373_v31  ;;  %v9962_v32 = vadd.f32 %v9683_v28, %v9126_v34  ;;  %v9686_v0 = vpop.f32.mrf.mxu0  ;;  %11952 = vmatmul.msk.bf16.gmra.mxu2 %vm1240_vm3, %v7133_v35  ;;  %12021 = vmatmul.msk.bf16.gmra.mxu3 %vm1240_vm3, %v8186_v52  ;;  %v14864_v28 = vld [vmem:[%s12600_s29 + $0x120] sm:$0xff] }
 0x73c   : > { %v8197_v33 = vshrl.u32 %v14864_v28, 16  ;;  %v8200_v11 = vshll.u32 %v14864_v28, 16 }
 0x73d   : > { %v10102_v37 = vadd.f32 %v14654_v45, %v9962_v32  ;;  %v12470_v32 = vld [vmem:[%s12600_s29 + $0x110] sm:$0xff] }
 0x73e   : > { %12090 = vmatmul.msk.bf16.gmra.mxu0 %vm1240_vm3, %v9288_v46  ;;  %v7531_v7 = vpop.f32.mrf.mxu2  ;;  %v8850_v21 = vpop.f32.mrf.mxu3  ;;  %v8199_v31 = vrot.slane %v8197_v33, 2  ;;  %v8202_v34 = vrot.slane %v8200_v11, 3  ;;  %v7136_v46 = vrot.slane %v14864_v28, 2 }
 0x73f   : > { %v10238_v24 = vmax.f32 %v10102_v37, 0.0  ;;  %v7808_v61 = vadd.f32 %v7531_v7, %v6497_v1  ;;  %v6222_v5 = vpop.f32.mrf.mxu1 }
 0x740   : > { %v6498_v49 = vadd.f32 %v6222_v5, %v16177_v4  ;;  %v8203_v10 = vor.u32 %v8202_v34, %v8199_v31 }
 0x741   : > { %v10374_v42 = vpack.c.bf16 %v10238_v24, %v10238_v24  ;;  %v9127_v19 = vadd.f32 %v8850_v21, %v7808_v61  ;;  %v9291_v21 = vrot.slane %v14864_v28, 3 }
 0x743   : > { %10511 = vst.msk [vmem:[%s14349_s12 + $0xa4] sm:$0xf] %vm10469_vm9, %v10374_v42  ;;  %v9963_v6 = vadd.f32 %v9686_v0, %v9127_v19  ;;  %v9688_v38 = vpop.f32.mrf.mxu0  ;;  %v5825_v0 = vrot.slane %v12470_v32, 2  ;;  %v7137_v19 = vsel %vm5761_vm6, %v7134_v39, %v7136_v46  ;;  %v9292_v4 = vsel %vm9227_vm8, %v9289_v2, %v9291_v21  ;;  %v16180_v39 = vld [vmem:[#allocation38_spill] sm:$0xff] }
 0x745   : > { %v10103_v8 = vadd.f32 %v14654_v45, %v9963_v6  ;;  %v5826_v42 = vsel %vm5761_vm6, %v5823_v23, %v5825_v0  ;;  %v8204_v6 = vsel %vm7908_vm7, %v8194_v26, %v8203_v10 }
 0x746   : > { %v7533_v16 = vpop.f32.mrf.mxu2  ;;  %v8852_v54 = vpop.f32.mrf.mxu3 }
 0x747   : > { %v10239_v51 = vmax.f32 %v10103_v8, 0.0  ;;  %v7809_v20 = vadd.f32 %v7533_v16, %v6498_v49  ;;  %v6225_v41 = vpop.f32.mrf.mxu1 }
 0x748   : > { %v6499_v25 = vadd.f32 %v6225_v41, %v16178_v43  ;;  %v16181_v43 = vld [vmem:[#allocation41_spill] sm:$0xff] }
 0x749   : > { %v10375_v47 = vpack.c.bf16 %v10239_v51, %v10239_v51  ;;  %v9128_v55 = vadd.f32 %v8852_v54, %v7809_v20 }
 0x74a   : > { %11616 = vmatmul.msk.bf16.gmra.mxu1 %vm1240_vm3, %v5824_v17 }
 0x74b   : > { %10512 = vst.msk [vmem:[%s14349_s12 + $0xa8] sm:$0xf] %vm10469_vm9, %v10375_v47  ;;  %v9964_v15 = vadd.f32 %v9688_v38, %v9128_v55  ;;  %v9691_v22 = vpop.f32.mrf.mxu0  ;;  %11953 = vmatmul.msk.bf16.gmra.mxu2 %vm1240_vm3, %v7135_v29  ;;  %12022 = vmatmul.msk.bf16.gmra.mxu3 %vm1240_vm3, %v8195_v58  ;;  %v14888_v38 = vld [vmem:[%s12600_s29 + $0x128] sm:$0xff] }
 0x74c   : > { %v8206_v26 = vshrl.u32 %v14888_v38, 16  ;;  %v8209_v16 = vshll.u32 %v14888_v38, 16 }
 0x74d   : > { %v10104_v57 = vadd.f32 %v14654_v45, %v9964_v15  ;;  %v12471_v15 = vld [vmem:[%s12600_s29 + $0x118] sm:$0xff] }
 0x74e   : > { %12091 = vmatmul.msk.bf16.gmra.mxu0 %vm1240_vm3, %v9290_v56  ;;  %v7536_v12 = vpop.f32.mrf.mxu2  ;;  %v8855_v48 = vpop.f32.mrf.mxu3  ;;  %v8208_v47 = vrot.slane %v8206_v26, 2  ;;  %v8211_v55 = vrot.slane %v8209_v16, 3  ;;  %v7138_v56 = vrot.slane %v14888_v38, 2 }
 0x74f   : > { %v10240_v50 = vmax.f32 %v10104_v57, 0.0  ;;  %v7810_v9 = vadd.f32 %v7536_v12, %v6499_v25  ;;  %v6227_v40 = vpop.f32.mrf.mxu1 }
 0x750   : > { %v6500_v1 = vadd.f32 %v6227_v40, %v16179_v13  ;;  %v8212_v33 = vor.u32 %v8211_v55, %v8208_v47 }
 0x751   : > { %v10376_v30 = vpack.c.bf16 %v10240_v50, %v10240_v50  ;;  %v9129_v35 = vadd.f32 %v8855_v48, %v7810_v9  ;;  %v9293_v48 = vrot.slane %v14888_v38, 3 }
 0x753   : > { %10513 = vst.msk [vmem:[%s14349_s12 + $0xac] sm:$0xf] %vm10469_vm9, %v10376_v30  ;;  %v9965_v52 = vadd.f32 %v9691_v22, %v9129_v35  ;;  %v9693_v44 = vpop.f32.mrf.mxu0  ;;  %v5827_v22 = vrot.slane %v12471_v15, 2  ;;  %v7139_v35 = vsel %vm5761_vm6, %v7136_v46, %v7138_v56  ;;  %v9294_v13 = vsel %vm9227_vm8, %v9291_v21, %v9293_v48  ;;  %v16182_v46 = vld [vmem:[#allocation44_spill] sm:$0xff] }
 0x755   : > { %v10105_v37 = vadd.f32 %v14654_v45, %v9965_v52  ;;  %v5828_v30 = vsel %vm5761_vm6, %v5825_v0, %v5827_v22  ;;  %v8213_v52 = vsel %vm7908_vm7, %v8203_v10, %v8212_v33 }
 0x756   : > { %v7538_v63 = vpop.f32.mrf.mxu2  ;;  %v8857_v61 = vpop.f32.mrf.mxu3 }
 0x757   : > { %v10241_v7 = vmax.f32 %v10105_v37, 0.0  ;;  %v7811_v24 = vadd.f32 %v7538_v63, %v6500_v1  ;;  %v6230_v5 = vpop.f32.mrf.mxu1 }
 0x758   : > { %v6501_v49 = vadd.f32 %v6230_v5, %v16180_v39  ;;  %v16183_v39 = vld [vmem:[#allocation48_spill] sm:$0xff] }
 0x759   : > { %v10377_v60 = vpack.c.bf16 %v10241_v7, %v10241_v7  ;;  %v9130_v3 = vadd.f32 %v8857_v61, %v7811_v24 }
 0x75a   : > { %11617 = vmatmul.msk.bf16.gmra.mxu1 %vm1240_vm3, %v5826_v42 }
 0x75b   : > { %10514 = vst.msk [vmem:[%s14349_s12 + $0xb0] sm:$0xf] %vm10469_vm9, %v10377_v60  ;;  %v9966_v59 = vadd.f32 %v9693_v44, %v9130_v3  ;;  %v9696_v8 = vpop.f32.mrf.mxu0  ;;  %11954 = vmatmul.msk.bf16.gmra.mxu2 %vm1240_vm3, %v7137_v19  ;;  %12023 = vmatmul.msk.bf16.gmra.mxu3 %vm1240_vm3, %v8204_v6  ;;  %v14912_v44 = vld [vmem:[%s12600_s29 + $0x130] sm:$0xff] }
 0x75c   : > { %v8215_v10 = vshrl.u32 %v14912_v44, 16  ;;  %v8218_v63 = vshll.u32 %v14912_v44, 16 }
 0x75d   : > { %v10106_v23 = vadd.f32 %v14654_v45, %v9966_v59  ;;  %v12472_v59 = vld [vmem:[%s12600_s29 + $0x120] sm:$0xff] }
 0x75e   : > { %12092 = vmatmul.msk.bf16.gmra.mxu0 %vm1240_vm3, %v9292_v4  ;;  %v7541_v51 = vpop.f32.mrf.mxu2  ;;  %v8860_v41 = vpop.f32.mrf.mxu3  ;;  %v8217_v60 = vrot.slane %v8215_v10, 2  ;;  %v8220_v3 = vrot.slane %v8218_v63, 3  ;;  %v7140_v4 = vrot.slane %v14912_v44, 2 }
 0x75f   : > { %v10242_v20 = vmax.f32 %v10106_v23, 0.0  ;;  %v7812_v54 = vadd.f32 %v7541_v51, %v6501_v49  ;;  %v6232_v17 = vpop.f32.mrf.mxu1 }
 0x760   : > { %v6502_v25 = vadd.f32 %v6232_v17, %v16181_v43  ;;  %v8221_v26 = vor.u32 %v8220_v3, %v8217_v60 }
 0x761   : > { %v10378_v2 = vpack.c.bf16 %v10242_v20, %v10242_v20  ;;  %v9131_v29 = vadd.f32 %v8860_v41, %v7812_v54  ;;  %v9295_v41 = vrot.slane %v14912_v44, 3 }
 0x763   : > { %10515 = vst.msk [vmem:[%s14349_s12 + $0xb4] sm:$0xf] %vm10469_vm9, %v10378_v2  ;;  %v9967_v58 = vadd.f32 %v9696_v8, %v9131_v29  ;;  %v9698_v28 = vpop.f32.mrf.mxu0  ;;  %v5829_v8 = vrot.slane %v12472_v59, 2  ;;  %v7141_v29 = vsel %vm5761_vm6, %v7138_v56, %v7140_v4  ;;  %v9296_v43 = vsel %vm9227_vm8, %v9293_v48, %v9295_v41  ;;  %v16184_v56 = vld [vmem:[#allocation52_spill] sm:$0xff] }
 0x765   : > { %v10107_v57 = vadd.f32 %v14654_v45, %v9967_v58  ;;  %v5830_v2 = vsel %vm5761_vm6, %v5827_v22, %v5829_v8  ;;  %v8222_v58 = vsel %vm7908_vm7, %v8212_v33, %v8221_v26 }
 0x766   : > { %v7543_v11 = vpop.f32.mrf.mxu2  ;;  %v8862_v9 = vpop.f32.mrf.mxu3 }
 0x767   : > { %v10243_v12 = vmax.f32 %v10107_v57, 0.0  ;;  %v7813_v50 = vadd.f32 %v7543_v11, %v6502_v25  ;;  %v6235_v40 = vpop.f32.mrf.mxu1 }
 0x768   : > { %v6503_v1 = vadd.f32 %v6235_v40, %v16182_v46  ;;  %v16185_v46 = vld [vmem:[#allocation55_spill] sm:$0xff] }
 0x769   : > { %v10379_v31 = vpack.c.bf16 %v10243_v12, %v10243_v12  ;;  %v9132_v34 = vadd.f32 %v8862_v9, %v7813_v50 }
 0x76a   : > { %11618 = vmatmul.msk.bf16.gmra.mxu1 %vm1240_vm3, %v5828_v30 }
 0x76b   : > { %10516 = vst.msk [vmem:[%s14349_s12 + $0xb8] sm:$0xf] %vm10469_vm9, %v10379_v31  ;;  %v9968_v32 = vadd.f32 %v9698_v28, %v9132_v34  ;;  %v9701_v37 = vpop.f32.mrf.mxu0  ;;  %11955 = vmatmul.msk.bf16.gmra.mxu2 %vm1240_vm3, %v7139_v35  ;;  %12024 = vmatmul.msk.bf16.gmra.mxu3 %vm1240_vm3, %v8213_v52  ;;  %v14936_v28 = vld [vmem:[%s12600_s29 + $0x138] sm:$0xff] }
 0x76c   : > { %v8224_v33 = vshrl.u32 %v14936_v28, 16  ;;  %v8227_v11 = vshll.u32 %v14936_v28, 16 }
 0x76d   : > { %v10108_v0 = vadd.f32 %v14654_v45, %v9968_v32  ;;  %v12473_v32 = vld [vmem:[%s12600_s29 + $0x128] sm:$0xff] }
 0x76e   : > { %12093 = vmatmul.msk.bf16.gmra.mxu0 %vm1240_vm3, %v9294_v13  ;;  %v7546_v7 = vpop.f32.mrf.mxu2  ;;  %v8865_v5 = vpop.f32.mrf.mxu3  ;;  %v8226_v31 = vrot.slane %v8224_v33, 2  ;;  %v8229_v34 = vrot.slane %v8227_v11, 3  ;;  %v7142_v13 = vrot.slane %v14936_v28, 2 }
 0x76f   : > { %v10244_v24 = vmax.f32 %v10108_v0, 0.0  ;;  %v7814_v61 = vadd.f32 %v7546_v7, %v6503_v1  ;;  %v6237_v42 = vpop.f32.mrf.mxu1 }
 0x770   : > { %v6504_v49 = vadd.f32 %v6237_v42, %v16183_v39  ;;  %v8230_v10 = vor.u32 %v8229_v34, %v8226_v31  ;;  %v16186_v39 = vld [vmem:[#allocation58_spill] sm:$0xff] }
 0x771   : > { %v10380_v21 = vpack.c.bf16 %v10244_v24, %v10244_v24  ;;  %v9133_v19 = vadd.f32 %v8865_v5, %v7814_v61  ;;  %v9297_v5 = vrot.slane %v14936_v28, 3 }
 0x773   : > { %10517 = vst.msk [vmem:[%s14349_s12 + $0xbc] sm:$0xf] %vm10469_vm9, %v10380_v21  ;;  %v9969_v6 = vadd.f32 %v9701_v37, %v9133_v19  ;;  %v9703_v38 = vpop.f32.mrf.mxu0  ;;  %v5831_v37 = vrot.slane %v12473_v32, 2  ;;  %v7143_v19 = vsel %vm5761_vm6, %v7140_v4, %v7142_v13 }
 0x775   : > { %v10109_v23 = vadd.f32 %v14654_v45, %v9969_v6  ;;  %v5832_v21 = vsel %vm5761_vm6, %v5829_v8, %v5831_v37  ;;  %v8231_v6 = vsel %vm7908_vm7, %v8221_v26, %v8230_v10  ;;  %v14971_v8 = vld [vmem:[%s15854_s2] ss:$0 sm:$0xff] }
 0x776   : > { %v7548_v16 = vpop.f32.mrf.mxu2  ;;  %v8867_v54 = vpop.f32.mrf.mxu3 }
 0x777   : > { %v10245_v51 = vmax.f32 %v10109_v23, 0.0  ;;  %v7815_v20 = vadd.f32 %v7548_v16, %v6504_v49  ;;  %v6240_v17 = vpop.f32.mrf.mxu1  ;;  %v9298_v23 = vsel %vm9227_vm8, %v9295_v41, %v9297_v5 }
 0x778   : > { %v6505_v25 = vadd.f32 %v6240_v17, %v16184_v56  ;;  %v16187_v56 = vld [vmem:[#allocation61_spill] sm:$0xff] }
 0x779   : > { %v10381_v47 = vpack.c.bf16 %v10245_v51, %v10245_v51  ;;  %v9134_v55 = vadd.f32 %v8867_v54, %v7815_v20 }
 0x77a   : > { %11619 = vmatmul.msk.bf16.gmra.mxu1 %vm1240_vm3, %v5830_v2 }
 0x77b   : > { %10518 = vst.msk [vmem:[%s14349_s12 + $0xc0] sm:$0xf] %vm10469_vm9, %v10381_v47  ;;  %v9970_v15 = vadd.f32 %v9703_v38, %v9134_v55  ;;  %v9706_v57 = vpop.f32.mrf.mxu0  ;;  %11956 = vmatmul.msk.bf16.gmra.mxu2 %vm1240_vm3, %v7141_v29  ;;  %12025 = vmatmul.msk.bf16.gmra.mxu3 %vm1240_vm3, %v8222_v58  ;;  %v14960_v38 = vld [vmem:[%s12600_s29 + $0x140] sm:$0xff] }
 0x77c   : > { %v8233_v26 = vshrl.u32 %v14960_v38, 16  ;;  %v8236_v16 = vshll.u32 %v14960_v38, 16 }
 0x77d   : > { %v10110_v22 = vadd.f32 %v14654_v45, %v9970_v15  ;;  %v12475_v15 = vld [vmem:[%s12600_s29 + $0x130] sm:$0xff] }
 0x77e   : > { %12094 = vmatmul.msk.bf16.gmra.mxu0 %vm1240_vm3, %v9296_v43  ;;  %v7551_v12 = vpop.f32.mrf.mxu2  ;;  %v8870_v40 = vpop.f32.mrf.mxu3  ;;  %v8235_v47 = vrot.slane %v8233_v26, 2  ;;  %v8238_v55 = vrot.slane %v8236_v16, 3  ;;  %v7144_v43 = vrot.slane %v14960_v38, 2 }
 0x77f   : > { %v10246_v50 = vmax.f32 %v10110_v22, 0.0  ;;  %v7816_v9 = vadd.f32 %v7551_v12, %v6505_v25  ;;  %v6242_v30 = vpop.f32.mrf.mxu1 }
 0x780   : > { %v6506_v1 = vadd.f32 %v6242_v30, %v16185_v46  ;;  %v8239_v33 = vor.u32 %v8238_v55, %v8235_v47 }
 0x781   : > { %v10382_v48 = vpack.c.bf16 %v10246_v50, %v10246_v50  ;;  %v9135_v35 = vadd.f32 %v8870_v40, %v7816_v9  ;;  %v9299_v40 = vrot.slane %v14960_v38, 3 }
 0x783   : > { %10519 = vst.msk [vmem:[%s14349_s12 + $0xc4] sm:$0xf] %vm10469_vm9, %v10382_v48  ;;  %v9971_v52 = vadd.f32 %v9706_v57, %v9135_v35  ;;  %v9708_v44 = vpop.f32.mrf.mxu0  ;;  %v5833_v57 = vrot.slane %v12475_v15, 2  ;;  %v7145_v35 = vsel %vm5761_vm6, %v7142_v13, %v7144_v43  ;;  %v9300_v46 = vsel %vm9227_vm8, %v9297_v5, %v9299_v40  ;;  %v16188_v13 = vld [vmem:[#allocation64_spill] sm:$0xff] }
 0x785   : > { %v10111_v0 = vadd.f32 %v14654_v45, %v9971_v52  ;;  %v5834_v48 = vsel %vm5761_vm6, %v5831_v37, %v5833_v57  ;;  %v8240_v52 = vsel %vm7908_vm7, %v8230_v10, %v8239_v33 }
 0x786   : > { %v7553_v63 = vpop.f32.mrf.mxu2  ;;  %v8872_v61 = vpop.f32.mrf.mxu3 }
 0x787   : > { %v10247_v7 = vmax.f32 %v10111_v0, 0.0  ;;  %v7817_v24 = vadd.f32 %v7553_v63, %v6506_v1  ;;  %v6245_v42 = vpop.f32.mrf.mxu1 }
 0x788   : > { %v6507_v49 = vadd.f32 %v6245_v42, %v16186_v39  ;;  %v16189_v39 = vld [vmem:[#allocation67_spill] sm:$0xff] }
 0x789   : > { %v10383_v60 = vpack.c.bf16 %v10247_v7, %v10247_v7  ;;  %v9136_v3 = vadd.f32 %v8872_v61, %v7817_v24 }
 0x78a   : > { %11620 = vmatmul.msk.bf16.gmra.mxu1 %vm1240_vm3, %v5832_v21 }
 0x78b   : > { %10520 = vst.msk [vmem:[%s14349_s12 + $0xc8] sm:$0xf] %vm10469_vm9, %v10383_v60  ;;  %v9972_v45 = vadd.f32 %v9708_v44, %v9136_v3  ;;  %v9711_v59 = vpop.f32.mrf.mxu0  ;;  %11957 = vmatmul.msk.bf16.gmra.mxu2 %vm1240_vm3, %v7143_v19  ;;  %12026 = vmatmul.msk.bf16.gmra.mxu3 %vm1240_vm3, %v8231_v6  ;;  %v14989_v44 = vld [vmem:[%s12600_s29 + $0x148] sm:$0xff] }
 0x78c   : > { %v8242_v10 = vshrl.u32 %v14989_v44, 16  ;;  %v8245_v63 = vshll.u32 %v14989_v44, 16 }
 0x78d   : > { %v10112_v4 = vadd.f32 %v14971_v8, %v9972_v45  ;;  %v12476_v45 = vld [vmem:[%s12600_s29 + $0x138] sm:$0xff] }
 0x78e   : > { %12095 = vmatmul.msk.bf16.gmra.mxu0 %vm1240_vm3, %v9298_v23  ;;  %v7556_v51 = vpop.f32.mrf.mxu2  ;;  %v8875_v41 = vpop.f32.mrf.mxu3  ;;  %v8244_v60 = vrot.slane %v8242_v10, 2  ;;  %v8247_v3 = vrot.slane %v8245_v63, 3  ;;  %v7146_v23 = vrot.slane %v14989_v44, 2 }
 0x78f   : > { %v10248_v20 = vmax.f32 %v10112_v4, 0.0  ;;  %v7818_v54 = vadd.f32 %v7556_v51, %v6507_v49  ;;  %v6247_v17 = vpop.f32.mrf.mxu1 }
 0x790   : > { %v6508_v25 = vadd.f32 %v6247_v17, %v16187_v56  ;;  %v8248_v26 = vor.u32 %v8247_v3, %v8244_v60 }
 0x791   : > { %v10384_v2 = vpack.c.bf16 %v10248_v20, %v10248_v20  ;;  %v9137_v29 = vadd.f32 %v8875_v41, %v7818_v54  ;;  %v9301_v41 = vrot.slane %v14989_v44, 3 }
 0x793   : > { %10521 = vst.msk [vmem:[%s14349_s12 + $0xcc] sm:$0xf] %vm10469_vm9, %v10384_v2  ;;  %v9973_v58 = vadd.f32 %v9711_v59, %v9137_v29  ;;  %v9713_v28 = vpop.f32.mrf.mxu0  ;;  %v5835_v59 = vrot.slane %v12476_v45, 2  ;;  %v7147_v29 = vsel %vm5761_vm6, %v7144_v43, %v7146_v23  ;;  %v9302_v56 = vsel %vm9227_vm8, %v9299_v40, %v9301_v41  ;;  %v16190_v43 = vld [vmem:[#allocation70_spill] sm:$0xff] }
 0x795   : > { %v10113_v22 = vadd.f32 %v14971_v8, %v9973_v58  ;;  %v5836_v2 = vsel %vm5761_vm6, %v5833_v57, %v5835_v59  ;;  %v8249_v58 = vsel %vm7908_vm7, %v8239_v33, %v8248_v26 }
 0x796   : > { %v7558_v11 = vpop.f32.mrf.mxu2  ;;  %v8877_v9 = vpop.f32.mrf.mxu3 }
 0x797   : > { %v10249_v12 = vmax.f32 %v10113_v22, 0.0  ;;  %v7819_v50 = vadd.f32 %v7558_v11, %v6508_v25  ;;  %v6250_v30 = vpop.f32.mrf.mxu1 }
 0x798   : > { %v6509_v1 = vadd.f32 %v6250_v30, %v16188_v13  ;;  %v16191_v13 = vld [vmem:[#allocation73_spill] sm:$0xff] }
 0x799   : > { %v10385_v31 = vpack.c.bf16 %v10249_v12, %v10249_v12  ;;  %v9138_v34 = vadd.f32 %v8877_v9, %v7819_v50 }
 0x79a   : > { %11621 = vmatmul.msk.bf16.gmra.mxu1 %vm1240_vm3, %v5834_v48 }
 0x79b   : > { %10522 = vst.msk [vmem:[%s14349_s12 + $0xd0] sm:$0xf] %vm10469_vm9, %v10385_v31  ;;  %v9974_v32 = vadd.f32 %v9713_v28, %v9138_v34  ;;  %v9716_v0 = vpop.f32.mrf.mxu0  ;;  %11958 = vmatmul.msk.bf16.gmra.mxu2 %vm1240_vm3, %v7145_v35  ;;  %12027 = vmatmul.msk.bf16.gmra.mxu3 %vm1240_vm3, %v8240_v52  ;;  %v15013_v28 = vld [vmem:[%s12600_s29 + $0x150] sm:$0xff] }
 0x79c   : > { %v8251_v33 = vshrl.u32 %v15013_v28, 16  ;;  %v8254_v11 = vshll.u32 %v15013_v28, 16 }
 0x79d   : > { %v10114_v37 = vadd.f32 %v14971_v8, %v9974_v32  ;;  %v12477_v32 = vld [vmem:[%s12600_s29 + $0x140] sm:$0xff] }
 0x79e   : > { %12096 = vmatmul.msk.bf16.gmra.mxu0 %vm1240_vm3, %v9300_v46  ;;  %v7561_v7 = vpop.f32.mrf.mxu2  ;;  %v8880_v42 = vpop.f32.mrf.mxu3  ;;  %v8253_v31 = vrot.slane %v8251_v33, 2  ;;  %v8256_v34 = vrot.slane %v8254_v11, 3  ;;  %v7148_v46 = vrot.slane %v15013_v28, 2 }
 0x79f   : > { %v10250_v24 = vmax.f32 %v10114_v37, 0.0  ;;  %v7820_v61 = vadd.f32 %v7561_v7, %v6509_v1  ;;  %v6252_v21 = vpop.f32.mrf.mxu1 }
 0x7a0   : > { %v6510_v49 = vadd.f32 %v6252_v21, %v16189_v39  ;;  %v8257_v10 = vor.u32 %v8256_v34, %v8253_v31 }
 0x7a1   : > { %v10386_v5 = vpack.c.bf16 %v10250_v24, %v10250_v24  ;;  %v9139_v19 = vadd.f32 %v8880_v42, %v7820_v61  ;;  %v9303_v42 = vrot.slane %v15013_v28, 3 }
 0x7a3   : > { %10523 = vst.msk [vmem:[%s14349_s12 + $0xd4] sm:$0xf] %vm10469_vm9, %v10386_v5  ;;  %v9975_v6 = vadd.f32 %v9716_v0, %v9139_v19  ;;  %v9718_v38 = vpop.f32.mrf.mxu0  ;;  %v5837_v0 = vrot.slane %v12477_v32, 2  ;;  %v7149_v19 = vsel %vm5761_vm6, %v7146_v23, %v7148_v46  ;;  %v9304_v39 = vsel %vm9227_vm8, %v9301_v41, %v9303_v42  ;;  %v16192_v23 = vld [vmem:[#allocation76_spill] sm:$0xff] }
 0x7a5   : > { %v10115_v4 = vadd.f32 %v14971_v8, %v9975_v6  ;;  %v5838_v5 = vsel %vm5761_vm6, %v5835_v59, %v5837_v0  ;;  %v8258_v6 = vsel %vm7908_vm7, %v8248_v26, %v8257_v10 }
 0x7a6   : > { %v7563_v16 = vpop.f32.mrf.mxu2  ;;  %v8882_v54 = vpop.f32.mrf.mxu3 }
 0x7a7   : > { %v10251_v51 = vmax.f32 %v10115_v4, 0.0  ;;  %v7821_v20 = vadd.f32 %v7563_v16, %v6510_v49  ;;  %v6255_v17 = vpop.f32.mrf.mxu1 }
 0x7a8   : > { %v6511_v25 = vadd.f32 %v6255_v17, %v16190_v43  ;;  %v16193_v43 = vld [vmem:[#allocation79_spill] sm:$0xff] }
 0x7a9   : > { %v10387_v47 = vpack.c.bf16 %v10251_v51, %v10251_v51  ;;  %v9140_v55 = vadd.f32 %v8882_v54, %v7821_v20 }
 0x7aa   : > { %11622 = vmatmul.msk.bf16.gmra.mxu1 %vm1240_vm3, %v5836_v2 }
 0x7ab   : > { %10524 = vst.msk [vmem:[%s14349_s12 + $0xd8] sm:$0xf] %vm10469_vm9, %v10387_v47  ;;  %v9976_v15 = vadd.f32 %v9718_v38, %v9140_v55  ;;  %v9721_v22 = vpop.f32.mrf.mxu0  ;;  %11959 = vmatmul.msk.bf16.gmra.mxu2 %vm1240_vm3, %v7147_v29  ;;  %12028 = vmatmul.msk.bf16.gmra.mxu3 %vm1240_vm3, %v8249_v58  ;;  %v15037_v38 = vld [vmem:[%s12600_s29 + $0x158] sm:$0xff] }
 0x7ac   : > { %v8260_v26 = vshrl.u32 %v15037_v38, 16  ;;  %v8263_v16 = vshll.u32 %v15037_v38, 16 }
 0x7ad   : > { %v10116_v57 = vadd.f32 %v14971_v8, %v9976_v15  ;;  %v12478_v15 = vld [vmem:[%s12600_s29 + $0x148] sm:$0xff] }
 0x7ae   : > { %12097 = vmatmul.msk.bf16.gmra.mxu0 %vm1240_vm3, %v9302_v56  ;;  %v7566_v12 = vpop.f32.mrf.mxu2  ;;  %v8885_v30 = vpop.f32.mrf.mxu3  ;;  %v8262_v47 = vrot.slane %v8260_v26, 2  ;;  %v8265_v55 = vrot.slane %v8263_v16, 3  ;;  %v7150_v56 = vrot.slane %v15037_v38, 2 }
 0x7af   : > { %v10252_v50 = vmax.f32 %v10116_v57, 0.0  ;;  %v7822_v9 = vadd.f32 %v7566_v12, %v6511_v25  ;;  %v6257_v48 = vpop.f32.mrf.mxu1 }
 0x7b0   : > { %v6512_v1 = vadd.f32 %v6257_v48, %v16191_v13  ;;  %v8266_v33 = vor.u32 %v8265_v55, %v8262_v47 }
 0x7b1   : > { %v10388_v40 = vpack.c.bf16 %v10252_v50, %v10252_v50  ;;  %v9141_v35 = vadd.f32 %v8885_v30, %v7822_v9  ;;  %v9305_v30 = vrot.slane %v15037_v38, 3 }
 0x7b3   : > { %10525 = vst.msk [vmem:[%s14349_s12 + $0xdc] sm:$0xf] %vm10469_vm9, %v10388_v40  ;;  %v9977_v52 = vadd.f32 %v9721_v22, %v9141_v35  ;;  %v9723_v44 = vpop.f32.mrf.mxu0  ;;  %v5839_v22 = vrot.slane %v12478_v15, 2  ;;  %v7151_v35 = vsel %vm5761_vm6, %v7148_v46, %v7150_v56  ;;  %v9306_v13 = vsel %vm9227_vm8, %v9303_v42, %v9305_v30  ;;  %v16194_v46 = vld [vmem:[#allocation82_spill] sm:$0xff] }
 0x7b5   : > { %v10117_v37 = vadd.f32 %v14971_v8, %v9977_v52  ;;  %v5840_v40 = vsel %vm5761_vm6, %v5837_v0, %v5839_v22  ;;  %v8267_v52 = vsel %vm7908_vm7, %v8257_v10, %v8266_v33 }
 0x7b6   : > { %v7568_v63 = vpop.f32.mrf.mxu2  ;;  %v8887_v61 = vpop.f32.mrf.mxu3 }
 0x7b7   : > { %v10253_v7 = vmax.f32 %v10117_v37, 0.0  ;;  %v7823_v24 = vadd.f32 %v7568_v63, %v6512_v1  ;;  %v6260_v21 = vpop.f32.mrf.mxu1 }
 0x7b8   : > { %v6513_v49 = vadd.f32 %v6260_v21, %v16192_v23  ;;  %v16195_v23 = vld [vmem:[#allocation85_spill] sm:$0xff] }
 0x7b9   : > { %v10389_v60 = vpack.c.bf16 %v10253_v7, %v10253_v7  ;;  %v9142_v3 = vadd.f32 %v8887_v61, %v7823_v24 }
 0x7ba   : > { %11623 = vmatmul.msk.bf16.gmra.mxu1 %vm1240_vm3, %v5838_v5 }
 0x7bb   : > { %10526 = vst.msk [vmem:[%s14349_s12 + $0xe0] sm:$0xf] %vm10469_vm9, %v10389_v60  ;;  %v9978_v45 = vadd.f32 %v9723_v44, %v9142_v3  ;;  %v9726_v4 = vpop.f32.mrf.mxu0  ;;  %11960 = vmatmul.msk.bf16.gmra.mxu2 %vm1240_vm3, %v7149_v19  ;;  %12029 = vmatmul.msk.bf16.gmra.mxu3 %vm1240_vm3, %v8258_v6  ;;  %v15061_v44 = vld [vmem:[%s12600_s29 + $0x160] sm:$0xff] }
 0x7bc   : > { %v8269_v10 = vshrl.u32 %v15061_v44, 16  ;;  %v8272_v63 = vshll.u32 %v15061_v44, 16 }
 0x7bd   : > { %v10118_v59 = vadd.f32 %v14971_v8, %v9978_v45  ;;  %v12479_v45 = vld [vmem:[%s12600_s29 + $0x150] sm:$0xff] }
 0x7be   : > { %12098 = vmatmul.msk.bf16.gmra.mxu0 %vm1240_vm3, %v9304_v39  ;;  %v7571_v51 = vpop.f32.mrf.mxu2  ;;  %v8890_v17 = vpop.f32.mrf.mxu3  ;;  %v8271_v60 = vrot.slane %v8269_v10, 2  ;;  %v8274_v3 = vrot.slane %v8272_v63, 3  ;;  %v7152_v39 = vrot.slane %v15061_v44, 2 }
 0x7bf   : > { %v10254_v20 = vmax.f32 %v10118_v59, 0.0  ;;  %v7824_v54 = vadd.f32 %v7571_v51, %v6513_v49  ;;  %v6262_v2 = vpop.f32.mrf.mxu1 }
 0x7c0   : > { %v6514_v25 = vadd.f32 %v6262_v2, %v16193_v43  ;;  %v8275_v26 = vor.u32 %v8274_v3, %v8271_v60 }
 0x7c1   : > { %v10390_v41 = vpack.c.bf16 %v10254_v20, %v10254_v20  ;;  %v9143_v29 = vadd.f32 %v8890_v17, %v7824_v54  ;;  %v9307_v17 = vrot.slane %v15061_v44, 3 }
 0x7c3   : > { %10527 = vst.msk [vmem:[%s14349_s12 + $0xe4] sm:$0xf] %vm10469_vm9, %v10390_v41  ;;  %v9979_v58 = vadd.f32 %v9726_v4, %v9143_v29  ;;  %v9728_v28 = vpop.f32.mrf.mxu0  ;;  %v5841_v4 = vrot.slane %v12479_v45, 2  ;;  %v7153_v29 = vsel %vm5761_vm6, %v7150_v56, %v7152_v39  ;;  %v9308_v43 = vsel %vm9227_vm8, %v9305_v30, %v9307_v17  ;;  %v16196_v56 = vld [vmem:[#allocation88_spill] sm:$0xff] }
 0x7c5   : > { %v10119_v57 = vadd.f32 %v14971_v8, %v9979_v58  ;;  %v5842_v41 = vsel %vm5761_vm6, %v5839_v22, %v5841_v4  ;;  %v8276_v58 = vsel %vm7908_vm7, %v8266_v33, %v8275_v26 }
 0x7c6   : > { %v7573_v11 = vpop.f32.mrf.mxu2  ;;  %v8892_v9 = vpop.f32.mrf.mxu3 }
 0x7c7   : > { %v10255_v12 = vmax.f32 %v10119_v57, 0.0  ;;  %v7825_v50 = vadd.f32 %v7573_v11, %v6514_v25  ;;  %v6265_v48 = vpop.f32.mrf.mxu1 }
 0x7c8   : > { %v6515_v1 = vadd.f32 %v6265_v48, %v16194_v46  ;;  %v16197_v46 = vld [vmem:[#allocation91_spill] sm:$0xff] }
 0x7c9   : > { %v10391_v31 = vpack.c.bf16 %v10255_v12, %v10255_v12  ;;  %v9144_v34 = vadd.f32 %v8892_v9, %v7825_v50 }
 0x7ca   : > { %11624 = vmatmul.msk.bf16.gmra.mxu1 %vm1240_vm3, %v5840_v40 }
 0x7cb   : > { %10528 = vst.msk [vmem:[%s14349_s12 + $0xe8] sm:$0xf] %vm10469_vm9, %v10391_v31  ;;  %v9980_v32 = vadd.f32 %v9728_v28, %v9144_v34  ;;  %v9731_v37 = vpop.f32.mrf.mxu0  ;;  %11961 = vmatmul.msk.bf16.gmra.mxu2 %vm1240_vm3, %v7151_v35  ;;  %12030 = vmatmul.msk.bf16.gmra.mxu3 %vm1240_vm3, %v8267_v52  ;;  %v15085_v28 = vld [vmem:[%s12600_s29 + $0x168] sm:$0xff] }
 0x7cc   : > { %v8278_v33 = vshrl.u32 %v15085_v28, 16  ;;  %v8281_v11 = vshll.u32 %v15085_v28, 16 }
 0x7cd   : > { %v10120_v0 = vadd.f32 %v14971_v8, %v9980_v32  ;;  %v12480_v32 = vld [vmem:[%s12600_s29 + $0x158] sm:$0xff] }
 0x7ce   : > { %12099 = vmatmul.msk.bf16.gmra.mxu0 %vm1240_vm3, %v9306_v13  ;;  %v7576_v7 = vpop.f32.mrf.mxu2  ;;  %v8895_v21 = vpop.f32.mrf.mxu3  ;;  %v8280_v31 = vrot.slane %v8278_v33, 2  ;;  %v8283_v34 = vrot.slane %v8281_v11, 3  ;;  %v7154_v13 = vrot.slane %v15085_v28, 2 }
 0x7cf   : > { %v10256_v24 = vmax.f32 %v10120_v0, 0.0  ;;  %v7826_v61 = vadd.f32 %v7576_v7, %v6515_v1  ;;  %v6267_v5 = vpop.f32.mrf.mxu1 }
 0x7d0   : > { %v6516_v49 = vadd.f32 %v6267_v5, %v16195_v23  ;;  %v8284_v10 = vor.u32 %v8283_v34, %v8280_v31 }
 0x7d1   : > { %v10392_v42 = vpack.c.bf16 %v10256_v24, %v10256_v24  ;;  %v9145_v19 = vadd.f32 %v8895_v21, %v7826_v61  ;;  %v9309_v21 = vrot.slane %v15085_v28, 3 }
 0x7d3   : > { %10529 = vst.msk [vmem:[%s14349_s12 + $0xec] sm:$0xf] %vm10469_vm9, %v10392_v42  ;;  %v9981_v6 = vadd.f32 %v9731_v37, %v9145_v19  ;;  %v9733_v38 = vpop.f32.mrf.mxu0  ;;  %v5843_v37 = vrot.slane %v12480_v32, 2  ;;  %v7155_v19 = vsel %vm5761_vm6, %v7152_v39, %v7154_v13  ;;  %v9310_v23 = vsel %vm9227_vm8, %v9307_v17, %v9309_v21  ;;  %v16198_v39 = vld [vmem:[#allocation94_spill] sm:$0xff] }
 0x7d5   : > { %v10121_v59 = vadd.f32 %v14971_v8, %v9981_v6  ;;  %v5844_v42 = vsel %vm5761_vm6, %v5841_v4, %v5843_v37  ;;  %v8285_v6 = vsel %vm7908_vm7, %v8275_v26, %v8284_v10 }
 0x7d6   : > { %v7578_v16 = vpop.f32.mrf.mxu2  ;;  %v8897_v54 = vpop.f32.mrf.mxu3 }
 0x7d7   : > { %v10257_v51 = vmax.f32 %v10121_v59, 0.0  ;;  %v7827_v20 = vadd.f32 %v7578_v16, %v6516_v49  ;;  %v6270_v2 = vpop.f32.mrf.mxu1 }
 0x7d8   : > { %v6517_v25 = vadd.f32 %v6270_v2, %v16196_v56  ;;  %v16199_v56 = vld [vmem:[#allocation97_spill] sm:$0xff] }
 0x7d9   : > { %v10393_v47 = vpack.c.bf16 %v10257_v51, %v10257_v51  ;;  %v9146_v55 = vadd.f32 %v8897_v54, %v7827_v20 }
 0x7da   : > { %11625 = vmatmul.msk.bf16.gmra.mxu1 %vm1240_vm3, %v5842_v41 }
 0x7db   : > { %10530 = vst.msk [vmem:[%s14349_s12 + $0xf0] sm:$0xf] %vm10469_vm9, %v10393_v47  ;;  %v9982_v15 = vadd.f32 %v9733_v38, %v9146_v55  ;;  %v9736_v57 = vpop.f32.mrf.mxu0  ;;  %11962 = vmatmul.msk.bf16.gmra.mxu2 %vm1240_vm3, %v7153_v29  ;;  %12031 = vmatmul.msk.bf16.gmra.mxu3 %vm1240_vm3, %v8276_v58  ;;  %v15109_v38 = vld [vmem:[%s12600_s29 + $0x170] sm:$0xff] }
 0x7dc   : > { %v8287_v26 = vshrl.u32 %v15109_v38, 16  ;;  %v8290_v16 = vshll.u32 %v15109_v38, 16 }
 0x7dd   : > { %v10122_v22 = vadd.f32 %v14971_v8, %v9982_v15  ;;  %v12481_v15 = vld [vmem:[%s12600_s29 + $0x160] sm:$0xff] }
 0x7de   : > { %12100 = vmatmul.msk.bf16.gmra.mxu0 %vm1240_vm3, %v9308_v43  ;;  %v7581_v12 = vpop.f32.mrf.mxu2  ;;  %v8900_v48 = vpop.f32.mrf.mxu3  ;;  %v8289_v47 = vrot.slane %v8287_v26, 2  ;;  %v8292_v55 = vrot.slane %v8290_v16, 3  ;;  %v7156_v43 = vrot.slane %v15109_v38, 2 }
 0x7df   : > { %v10258_v50 = vmax.f32 %v10122_v22, 0.0  ;;  %v7828_v9 = vadd.f32 %v7581_v12, %v6517_v25  ;;  %v6272_v40 = vpop.f32.mrf.mxu1 }
 0x7e0   : > { %v6518_v1 = vadd.f32 %v6272_v40, %v16197_v46  ;;  %v8293_v33 = vor.u32 %v8292_v55, %v8289_v47 }
 0x7e1   : > { %v10394_v30 = vpack.c.bf16 %v10258_v50, %v10258_v50  ;;  %v9147_v35 = vadd.f32 %v8900_v48, %v7828_v9  ;;  %v9311_v48 = vrot.slane %v15109_v38, 3 }
 0x7e3   : > { %10531 = vst.msk [vmem:[%s14349_s12 + $0xf4] sm:$0xf] %vm10469_vm9, %v10394_v30  ;;  %v9983_v52 = vadd.f32 %v9736_v57, %v9147_v35  ;;  %v9738_v44 = vpop.f32.mrf.mxu0  ;;  %v5845_v57 = vrot.slane %v12481_v15, 2  ;;  %v7157_v35 = vsel %vm5761_vm6, %v7154_v13, %v7156_v43  ;;  %v9312_v46 = vsel %vm9227_vm8, %v9309_v21, %v9311_v48  ;;  %v16200_v13 = vld [vmem:[#allocation100_spill] sm:$0xff] }
 0x7e5   : > { %v10123_v0 = vadd.f32 %v14971_v8, %v9983_v52  ;;  %v5846_v30 = vsel %vm5761_vm6, %v5843_v37, %v5845_v57  ;;  %v8294_v52 = vsel %vm7908_vm7, %v8284_v10, %v8293_v33 }
 0x7e6   : > { %v7583_v63 = vpop.f32.mrf.mxu2  ;;  %v8902_v61 = vpop.f32.mrf.mxu3 }
 0x7e7   : > { %v10259_v7 = vmax.f32 %v10123_v0, 0.0  ;;  %v7829_v24 = vadd.f32 %v7583_v63, %v6518_v1  ;;  %v6275_v5 = vpop.f32.mrf.mxu1 }
 0x7e8   : > { %v6519_v49 = vadd.f32 %v6275_v5, %v16198_v39  ;;  %v16201_v39 = vld [vmem:[#allocation103_spill] sm:$0xff] }
 0x7e9   : > { %v10395_v60 = vpack.c.bf16 %v10259_v7, %v10259_v7  ;;  %v9148_v3 = vadd.f32 %v8902_v61, %v7829_v24 }
 0x7ea   : > { %11626 = vmatmul.msk.bf16.gmra.mxu1 %vm1240_vm3, %v5844_v42 }
 0x7eb   : > { %10532 = vst.msk [vmem:[%s14349_s12 + $0xf8] sm:$0xf] %vm10469_vm9, %v10395_v60  ;;  %v9984_v45 = vadd.f32 %v9738_v44, %v9148_v3  ;;  %v9741_v59 = vpop.f32.mrf.mxu0  ;;  %11963 = vmatmul.msk.bf16.gmra.mxu2 %vm1240_vm3, %v7155_v19  ;;  %12032 = vmatmul.msk.bf16.gmra.mxu3 %vm1240_vm3, %v8285_v6  ;;  %v15133_v44 = vld [vmem:[%s12600_s29 + $0x178] sm:$0xff] }
 0x7ec   : > { %v8296_v10 = vshrl.u32 %v15133_v44, 16  ;;  %v8299_v63 = vshll.u32 %v15133_v44, 16 }
 0x7ed   : > { %v10124_v4 = vadd.f32 %v14971_v8, %v9984_v45  ;;  %v12482_v45 = vld [vmem:[%s12600_s29 + $0x168] sm:$0xff] }
 0x7ee   : > { %12101 = vmatmul.msk.bf16.gmra.mxu0 %vm1240_vm3, %v9310_v23  ;;  %v7586_v51 = vpop.f32.mrf.mxu2  ;;  %v8905_v2 = vpop.f32.mrf.mxu3  ;;  %v8298_v60 = vrot.slane %v8296_v10, 2  ;;  %v8301_v3 = vrot.slane %v8299_v63, 3  ;;  %v7158_v23 = vrot.slane %v15133_v44, 2 }
 0x7ef   : > { %v10260_v20 = vmax.f32 %v10124_v4, 0.0  ;;  %v7830_v54 = vadd.f32 %v7586_v51, %v6519_v49  ;;  %v6277_v41 = vpop.f32.mrf.mxu1 }
 0x7f0   : > { %v6520_v25 = vadd.f32 %v6277_v41, %v16199_v56  ;;  %v8302_v26 = vor.u32 %v8301_v3, %v8298_v60 }
 0x7f1   : > { %v10396_v17 = vpack.c.bf16 %v10260_v20, %v10260_v20  ;;  %v9149_v29 = vadd.f32 %v8905_v2, %v7830_v54  ;;  %v9313_v2 = vrot.slane %v15133_v44, 3 }
 0x7f3   : > { %10533 = vst.msk [vmem:[%s14349_s12 + $0xfc] sm:$0xf] %vm10469_vm9, %v10396_v17  ;;  %v9985_v58 = vadd.f32 %v9741_v59, %v9149_v29  ;;  %v9743_v28 = vpop.f32.mrf.mxu0  ;;  %v5847_v59 = vrot.slane %v12482_v45, 2  ;;  %v7159_v29 = vsel %vm5761_vm6, %v7156_v43, %v7158_v23  ;;  %v9314_v56 = vsel %vm9227_vm8, %v9311_v48, %v9313_v2  ;;  %v16202_v43 = vld [vmem:[#allocation3_spill] sm:$0xff] }
 0x7f5   : > { %v10125_v22 = vadd.f32 %v14971_v8, %v9985_v58  ;;  %v5848_v17 = vsel %vm5761_vm6, %v5845_v57, %v5847_v59  ;;  %v8303_v58 = vsel %vm7908_vm7, %v8293_v33, %v8302_v26 }
 0x7f6   : > { %v7588_v11 = vpop.f32.mrf.mxu2  ;;  %v8907_v9 = vpop.f32.mrf.mxu3 }
 0x7f7   : > { %v10261_v12 = vmax.f32 %v10125_v22, 0.0  ;;  %v7831_v50 = vadd.f32 %v7588_v11, %v6520_v25  ;;  %v6280_v40 = vpop.f32.mrf.mxu1 }
 0x7f8   : > { %v6521_v1 = vadd.f32 %v6280_v40, %v16200_v13  ;;  %v16203_v13 = vld [vmem:[#allocation6_spill] sm:$0xff] }
 0x7f9   : > { %v10397_v31 = vpack.c.bf16 %v10261_v12, %v10261_v12  ;;  %v9150_v34 = vadd.f32 %v8907_v9, %v7831_v50 }
 0x7fa   : > { %11627 = vmatmul.msk.bf16.gmra.mxu1 %vm1240_vm3, %v5846_v30 }
 0x7fb   : > { %10534 = vst.msk [vmem:[%s14349_s12 + $0x100] sm:$0xf] %vm10469_vm9, %v10397_v31  ;;  %v9986_v32 = vadd.f32 %v9743_v28, %v9150_v34  ;;  %v9746_v0 = vpop.f32.mrf.mxu0  ;;  %11964 = vmatmul.msk.bf16.gmra.mxu2 %vm1240_vm3, %v7157_v35  ;;  %12033 = vmatmul.msk.bf16.gmra.mxu3 %vm1240_vm3, %v8294_v52  ;;  %v15157_v28 = vld [vmem:[%s12600_s29 + $0x180] sm:$0xff] }
 0x7fc   : > { %v8305_v33 = vshrl.u32 %v15157_v28, 16  ;;  %v8308_v11 = vshll.u32 %v15157_v28, 16 }
 0x7fd   : > { %v10126_v37 = vadd.f32 %v14971_v8, %v9986_v32  ;;  %v12483_v32 = vld [vmem:[%s12600_s29 + $0x170] sm:$0xff] }
 0x7fe   : > { %12102 = vmatmul.msk.bf16.gmra.mxu0 %vm1240_vm3, %v9312_v46  ;;  %v7591_v7 = vpop.f32.mrf.mxu2  ;;  %v8910_v5 = vpop.f32.mrf.mxu3  ;;  %v8307_v31 = vrot.slane %v8305_v33, 2  ;;  %v8310_v34 = vrot.slane %v8308_v11, 3  ;;  %v7160_v46 = vrot.slane %v15157_v28, 2 }
 0x7ff   : > { %v10262_v24 = vmax.f32 %v10126_v37, 0.0  ;;  %v7832_v61 = vadd.f32 %v7591_v7, %v6521_v1  ;;  %v6282_v42 = vpop.f32.mrf.mxu1 }
 0x800   : > { %v6522_v49 = vadd.f32 %v6282_v42, %v16201_v39  ;;  %v8311_v10 = vor.u32 %v8310_v34, %v8307_v31 }
 0x801   : > { %v10398_v21 = vpack.c.bf16 %v10262_v24, %v10262_v24  ;;  %v9151_v19 = vadd.f32 %v8910_v5, %v7832_v61  ;;  %v9315_v5 = vrot.slane %v15157_v28, 3 }
 0x803   : > { %10535 = vst.msk [vmem:[%s14349_s12 + $0x104] sm:$0xf] %vm10469_vm9, %v10398_v21  ;;  %v9987_v6 = vadd.f32 %v9746_v0, %v9151_v19  ;;  %v9748_v38 = vpop.f32.mrf.mxu0  ;;  %v5849_v0 = vrot.slane %v12483_v32, 2  ;;  %v7161_v19 = vsel %vm5761_vm6, %v7158_v23, %v7160_v46  ;;  %v9316_v39 = vsel %vm9227_vm8, %v9313_v2, %v9315_v5  ;;  %v16204_v23 = vld [vmem:[#allocation9_spill] sm:$0xff] }
 0x805   : > { %v10127_v4 = vadd.f32 %v14971_v8, %v9987_v6  ;;  %v5850_v21 = vsel %vm5761_vm6, %v5847_v59, %v5849_v0  ;;  %v8312_v6 = vsel %vm7908_vm7, %v8302_v26, %v8311_v10 }
 0x806   : > { %v7593_v16 = vpop.f32.mrf.mxu2  ;;  %v8912_v54 = vpop.f32.mrf.mxu3 }
 0x807   : > { %v10263_v51 = vmax.f32 %v10127_v4, 0.0  ;;  %v7833_v20 = vadd.f32 %v7593_v16, %v6522_v49  ;;  %v6285_v41 = vpop.f32.mrf.mxu1 }
 0x808   : > { %v6523_v25 = vadd.f32 %v6285_v41, %v16202_v43  ;;  %v16205_v43 = vld [vmem:[#allocation12_spill] sm:$0xff] }
 0x809   : > { %v10399_v47 = vpack.c.bf16 %v10263_v51, %v10263_v51  ;;  %v9152_v55 = vadd.f32 %v8912_v54, %v7833_v20 }
 0x80a   : > { %11628 = vmatmul.msk.bf16.gmra.mxu1 %vm1240_vm3, %v5848_v17 }
 0x80b   : > { %10536 = vst.msk [vmem:[%s14349_s12 + $0x108] sm:$0xf] %vm10469_vm9, %v10399_v47  ;;  %v9988_v15 = vadd.f32 %v9748_v38, %v9152_v55  ;;  %v9751_v22 = vpop.f32.mrf.mxu0  ;;  %11965 = vmatmul.msk.bf16.gmra.mxu2 %vm1240_vm3, %v7159_v29  ;;  %12034 = vmatmul.msk.bf16.gmra.mxu3 %vm1240_vm3, %v8303_v58  ;;  %v15181_v38 = vld [vmem:[%s12600_s29 + $0x188] sm:$0xff] }
 0x80c   : > { %v8314_v26 = vshrl.u32 %v15181_v38, 16  ;;  %v8317_v16 = vshll.u32 %v15181_v38, 16 }
 0x80d   : > { %v10128_v57 = vadd.f32 %v14971_v8, %v9988_v15  ;;  %v12484_v15 = vld [vmem:[%s12600_s29 + $0x178] sm:$0xff] }
 0x80e   : > { %12103 = vmatmul.msk.bf16.gmra.mxu0 %vm1240_vm3, %v9314_v56  ;;  %v7596_v12 = vpop.f32.mrf.mxu2  ;;  %v8915_v40 = vpop.f32.mrf.mxu3  ;;  %v8316_v47 = vrot.slane %v8314_v26, 2  ;;  %v8319_v55 = vrot.slane %v8317_v16, 3  ;;  %v7162_v56 = vrot.slane %v15181_v38, 2 }
 0x80f   : > { %v10264_v50 = vmax.f32 %v10128_v57, 0.0  ;;  %v7834_v9 = vadd.f32 %v7596_v12, %v6523_v25  ;;  %v6287_v30 = vpop.f32.mrf.mxu1 }
 0x810   : > { %v6524_v1 = vadd.f32 %v6287_v30, %v16203_v13  ;;  %v8320_v33 = vor.u32 %v8319_v55, %v8316_v47 }
 0x811   : > { %v10400_v48 = vpack.c.bf16 %v10264_v50, %v10264_v50  ;;  %v9153_v35 = vadd.f32 %v8915_v40, %v7834_v9  ;;  %v9317_v40 = vrot.slane %v15181_v38, 3 }
 0x813   : > { %10537 = vst.msk [vmem:[%s14349_s12 + $0x10c] sm:$0xf] %vm10469_vm9, %v10400_v48  ;;  %v9989_v52 = vadd.f32 %v9751_v22, %v9153_v35  ;;  %v9753_v44 = vpop.f32.mrf.mxu0  ;;  %v5851_v22 = vrot.slane %v12484_v15, 2  ;;  %v7163_v35 = vsel %vm5761_vm6, %v7160_v46, %v7162_v56  ;;  %v9318_v13 = vsel %vm9227_vm8, %v9315_v5, %v9317_v40  ;;  %v16206_v46 = vld [vmem:[#allocation15_spill] sm:$0xff] }
 0x815   : > { %v10129_v37 = vadd.f32 %v14971_v8, %v9989_v52  ;;  %v5852_v48 = vsel %vm5761_vm6, %v5849_v0, %v5851_v22  ;;  %v8321_v52 = vsel %vm7908_vm7, %v8311_v10, %v8320_v33 }
 0x816   : > { %v7598_v63 = vpop.f32.mrf.mxu2  ;;  %v8917_v61 = vpop.f32.mrf.mxu3 }
 0x817   : > { %v10265_v7 = vmax.f32 %v10129_v37, 0.0  ;;  %v7835_v24 = vadd.f32 %v7598_v63, %v6524_v1  ;;  %v6290_v42 = vpop.f32.mrf.mxu1 }
 0x818   : > { %v6525_v49 = vadd.f32 %v6290_v42, %v16204_v23  ;;  %v16207_v23 = vld [vmem:[#allocation18_spill] sm:$0xff] }
 0x819   : > { %v10401_v60 = vpack.c.bf16 %v10265_v7, %v10265_v7  ;;  %v9154_v3 = vadd.f32 %v8917_v61, %v7835_v24 }
 0x81a   : > { %11629 = vmatmul.msk.bf16.gmra.mxu1 %vm1240_vm3, %v5850_v21 }
 0x81b   : > { %10538 = vst.msk [vmem:[%s14349_s12 + $0x110] sm:$0xf] %vm10469_vm9, %v10401_v60  ;;  %v9990_v45 = vadd.f32 %v9753_v44, %v9154_v3  ;;  %v9756_v4 = vpop.f32.mrf.mxu0  ;;  %11966 = vmatmul.msk.bf16.gmra.mxu2 %vm1240_vm3, %v7161_v19  ;;  %12035 = vmatmul.msk.bf16.gmra.mxu3 %vm1240_vm3, %v8312_v6  ;;  %v15205_v44 = vld [vmem:[%s12600_s29 + $0x190] sm:$0xff] }
 0x81c   : > { %v8323_v10 = vshrl.u32 %v15205_v44, 16  ;;  %v8326_v63 = vshll.u32 %v15205_v44, 16 }
 0x81d   : > { %v10130_v59 = vadd.f32 %v14971_v8, %v9990_v45  ;;  %v12485_v45 = vld [vmem:[%s12600_s29 + $0x180] sm:$0xff] }
 0x81e   : > { %12104 = vmatmul.msk.bf16.gmra.mxu0 %vm1240_vm3, %v9316_v39  ;;  %v7601_v51 = vpop.f32.mrf.mxu2  ;;  %v8920_v41 = vpop.f32.mrf.mxu3  ;;  %v8325_v60 = vrot.slane %v8323_v10, 2  ;;  %v8328_v3 = vrot.slane %v8326_v63, 3  ;;  %v7164_v39 = vrot.slane %v15205_v44, 2 }
 0x81f   : > { %v10266_v20 = vmax.f32 %v10130_v59, 0.0  ;;  %v7836_v54 = vadd.f32 %v7601_v51, %v6525_v49  ;;  %v6292_v17 = vpop.f32.mrf.mxu1 }
 0x820   : > { %v6526_v25 = vadd.f32 %v6292_v17, %v16205_v43  ;;  %v8329_v26 = vor.u32 %v8328_v3, %v8325_v60 }
 0x821   : > { %v10402_v2 = vpack.c.bf16 %v10266_v20, %v10266_v20  ;;  %v9155_v29 = vadd.f32 %v8920_v41, %v7836_v54  ;;  %v9319_v41 = vrot.slane %v15205_v44, 3 }
 0x823   : > { %10539 = vst.msk [vmem:[%s14349_s12 + $0x114] sm:$0xf] %vm10469_vm9, %v10402_v2  ;;  %v9991_v58 = vadd.f32 %v9756_v4, %v9155_v29  ;;  %v9758_v28 = vpop.f32.mrf.mxu0  ;;  %v5853_v4 = vrot.slane %v12485_v45, 2  ;;  %v7165_v29 = vsel %vm5761_vm6, %v7162_v56, %v7164_v39  ;;  %v9320_v43 = vsel %vm9227_vm8, %v9317_v40, %v9319_v41  ;;  %v16208_v56 = vld [vmem:[#allocation21_spill] sm:$0xff] }
 0x825   : > { %v10131_v57 = vadd.f32 %v14971_v8, %v9991_v58  ;;  %v5854_v2 = vsel %vm5761_vm6, %v5851_v22, %v5853_v4  ;;  %v8330_v58 = vsel %vm7908_vm7, %v8320_v33, %v8329_v26 }
 0x826   : > { %v7603_v11 = vpop.f32.mrf.mxu2  ;;  %v8922_v9 = vpop.f32.mrf.mxu3 }
 0x827   : > { %v10267_v12 = vmax.f32 %v10131_v57, 0.0  ;;  %v7837_v50 = vadd.f32 %v7603_v11, %v6526_v25  ;;  %v6295_v30 = vpop.f32.mrf.mxu1 }
 0x828   : > { %v6527_v1 = vadd.f32 %v6295_v30, %v16206_v46  ;;  %v16209_v46 = vld [vmem:[#allocation24_spill] sm:$0xff] }
 0x829   : > { %v10403_v31 = vpack.c.bf16 %v10267_v12, %v10267_v12  ;;  %v9156_v34 = vadd.f32 %v8922_v9, %v7837_v50 }
 0x82a   : > { %11630 = vmatmul.msk.bf16.gmra.mxu1 %vm1240_vm3, %v5852_v48 }
 0x82b   : > { %10540 = vst.msk [vmem:[%s14349_s12 + $0x118] sm:$0xf] %vm10469_vm9, %v10403_v31  ;;  %v9992_v32 = vadd.f32 %v9758_v28, %v9156_v34  ;;  %v9761_v37 = vpop.f32.mrf.mxu0  ;;  %11967 = vmatmul.msk.bf16.gmra.mxu2 %vm1240_vm3, %v7163_v35  ;;  %12036 = vmatmul.msk.bf16.gmra.mxu3 %vm1240_vm3, %v8321_v52  ;;  %v15229_v28 = vld [vmem:[%s12600_s29 + $0x198] sm:$0xff] }
 0x82c   : > { %v8332_v33 = vshrl.u32 %v15229_v28, 16  ;;  %v8335_v11 = vshll.u32 %v15229_v28, 16 }
 0x82d   : > { %v10132_v0 = vadd.f32 %v14971_v8, %v9992_v32  ;;  %v12486_v32 = vld [vmem:[%s12600_s29 + $0x188] sm:$0xff] }
 0x82e   : > { %12105 = vmatmul.msk.bf16.gmra.mxu0 %vm1240_vm3, %v9318_v13  ;;  %v7606_v7 = vpop.f32.mrf.mxu2  ;;  %v8925_v42 = vpop.f32.mrf.mxu3  ;;  %v8334_v31 = vrot.slane %v8332_v33, 2  ;;  %v8337_v34 = vrot.slane %v8335_v11, 3  ;;  %v7166_v13 = vrot.slane %v15229_v28, 2 }
 0x82f   : > { %v10268_v24 = vmax.f32 %v10132_v0, 0.0  ;;  %v7838_v61 = vadd.f32 %v7606_v7, %v6527_v1  ;;  %v6297_v21 = vpop.f32.mrf.mxu1 }
 0x830   : > { %v6528_v49 = vadd.f32 %v6297_v21, %v16207_v23  ;;  %v8338_v10 = vor.u32 %v8337_v34, %v8334_v31 }
 0x831   : > { %v10404_v5 = vpack.c.bf16 %v10268_v24, %v10268_v24  ;;  %v9157_v19 = vadd.f32 %v8925_v42, %v7838_v61  ;;  %v9321_v42 = vrot.slane %v15229_v28, 3 }
 0x833   : > { %10541 = vst.msk [vmem:[%s14349_s12 + $0x11c] sm:$0xf] %vm10469_vm9, %v10404_v5  ;;  %v9993_v6 = vadd.f32 %v9761_v37, %v9157_v19  ;;  %v9763_v38 = vpop.f32.mrf.mxu0  ;;  %v5855_v37 = vrot.slane %v12486_v32, 2  ;;  %v7167_v19 = vsel %vm5761_vm6, %v7164_v39, %v7166_v13  ;;  %v9322_v23 = vsel %vm9227_vm8, %v9319_v41, %v9321_v42  ;;  %v16210_v39 = vld [vmem:[#allocation27_spill] sm:$0xff] }
 0x835   : > { %v10133_v59 = vadd.f32 %v14971_v8, %v9993_v6  ;;  %v5856_v5 = vsel %vm5761_vm6, %v5853_v4, %v5855_v37  ;;  %v8339_v6 = vsel %vm7908_vm7, %v8329_v26, %v8338_v10 }
 0x836   : > { %v7608_v16 = vpop.f32.mrf.mxu2  ;;  %v8927_v54 = vpop.f32.mrf.mxu3 }
 0x837   : > { %v10269_v51 = vmax.f32 %v10133_v59, 0.0  ;;  %v7839_v20 = vadd.f32 %v7608_v16, %v6528_v49  ;;  %v6300_v17 = vpop.f32.mrf.mxu1 }
 0x838   : > { %v6529_v25 = vadd.f32 %v6300_v17, %v16208_v56  ;;  %v16211_v56 = vld [vmem:[#allocation30_spill] sm:$0xff] }
 0x839   : > { %v10405_v47 = vpack.c.bf16 %v10269_v51, %v10269_v51  ;;  %v9158_v55 = vadd.f32 %v8927_v54, %v7839_v20 }
 0x83a   : > { %11631 = vmatmul.msk.bf16.gmra.mxu1 %vm1240_vm3, %v5854_v2 }
 0x83b   : > { %10542 = vst.msk [vmem:[%s14349_s12 + $0x120] sm:$0xf] %vm10469_vm9, %v10405_v47  ;;  %v9994_v15 = vadd.f32 %v9763_v38, %v9158_v55  ;;  %v9766_v57 = vpop.f32.mrf.mxu0  ;;  %11968 = vmatmul.msk.bf16.gmra.mxu2 %vm1240_vm3, %v7165_v29  ;;  %12037 = vmatmul.msk.bf16.gmra.mxu3 %vm1240_vm3, %v8330_v58  ;;  %v15253_v38 = vld [vmem:[%s12600_s29 + $0x1a0] sm:$0xff] }
 0x83c   : > { %v8341_v26 = vshrl.u32 %v15253_v38, 16  ;;  %v8344_v16 = vshll.u32 %v15253_v38, 16 }
 0x83d   : > { %v10134_v22 = vadd.f32 %v14971_v8, %v9994_v15  ;;  %v12487_v15 = vld [vmem:[%s12600_s29 + $0x190] sm:$0xff] }
 0x83e   : > { %12106 = vmatmul.msk.bf16.gmra.mxu0 %vm1240_vm3, %v9320_v43  ;;  %v7611_v12 = vpop.f32.mrf.mxu2  ;;  %v8930_v30 = vpop.f32.mrf.mxu3  ;;  %v8343_v47 = vrot.slane %v8341_v26, 2  ;;  %v8346_v55 = vrot.slane %v8344_v16, 3  ;;  %v7168_v43 = vrot.slane %v15253_v38, 2 }
 0x83f   : > { %v10270_v50 = vmax.f32 %v10134_v22, 0.0  ;;  %v7840_v9 = vadd.f32 %v7611_v12, %v6529_v25  ;;  %v6302_v48 = vpop.f32.mrf.mxu1 }
 0x840   : > { %v6530_v1 = vadd.f32 %v6302_v48, %v16209_v46  ;;  %v8347_v33 = vor.u32 %v8346_v55, %v8343_v47  ;;  %v16212_v46 = vld [vmem:[#allocation33_spill] sm:$0xff] }
 0x841   : > { %v10406_v40 = vpack.c.bf16 %v10270_v50, %v10270_v50  ;;  %v9159_v35 = vadd.f32 %v8930_v30, %v7840_v9  ;;  %v9323_v30 = vrot.slane %v15253_v38, 3 }
 0x843   : > { %10543 = vst.msk [vmem:[%s14349_s12 + $0x124] sm:$0xf] %vm10469_vm9, %v10406_v40  ;;  %v9995_v52 = vadd.f32 %v9766_v57, %v9159_v35  ;;  %v9768_v44 = vpop.f32.mrf.mxu0  ;;  %v5857_v57 = vrot.slane %v12487_v15, 2  ;;  %v7169_v35 = vsel %vm5761_vm6, %v7166_v13, %v7168_v43 }
 0x845   : > { %v10135_v0 = vadd.f32 %v14971_v8, %v9995_v52  ;;  %v5858_v40 = vsel %vm5761_vm6, %v5855_v37, %v5857_v57  ;;  %v8348_v52 = vsel %vm7908_vm7, %v8338_v10, %v8347_v33  ;;  %v15288_v37 = vld [vmem:[%s15854_s2] ss:$0 sm:$0xff] }
 0x846   : > { %v7613_v63 = vpop.f32.mrf.mxu2  ;;  %v8932_v61 = vpop.f32.mrf.mxu3 }
 0x847   : > { %v10271_v7 = vmax.f32 %v10135_v0, 0.0  ;;  %v7841_v24 = vadd.f32 %v7613_v63, %v6530_v1  ;;  %v6305_v21 = vpop.f32.mrf.mxu1  ;;  %v9324_v0 = vsel %vm9227_vm8, %v9321_v42, %v9323_v30 }
 0x848   : > { %v6531_v49 = vadd.f32 %v6305_v21, %v16210_v39  ;;  %v16213_v39 = vld [vmem:[#allocation36_spill] sm:$0xff] }
 0x849   : > { %v10407_v60 = vpack.c.bf16 %v10271_v7, %v10271_v7  ;;  %v9160_v3 = vadd.f32 %v8932_v61, %v7841_v24 }
 0x84a   : > { %11632 = vmatmul.msk.bf16.gmra.mxu1 %vm1240_vm3, %v5856_v5 }
 0x84b   : > { %10544 = vst.msk [vmem:[%s14349_s12 + $0x128] sm:$0xf] %vm10469_vm9, %v10407_v60  ;;  %v9996_v45 = vadd.f32 %v9768_v44, %v9160_v3  ;;  %v9771_v59 = vpop.f32.mrf.mxu0  ;;  %11969 = vmatmul.msk.bf16.gmra.mxu2 %vm1240_vm3, %v7167_v19  ;;  %12038 = vmatmul.msk.bf16.gmra.mxu3 %vm1240_vm3, %v8339_v6  ;;  %v15277_v44 = vld [vmem:[%s12600_s29 + $0x1a8] sm:$0xff] }
 0x84c   : > { %v8350_v10 = vshrl.u32 %v15277_v44, 16  ;;  %v8353_v63 = vshll.u32 %v15277_v44, 16 }
 0x84d   : > { %v10136_v4 = vadd.f32 %v14971_v8, %v9996_v45  ;;  %v12489_v45 = vld [vmem:[%s12600_s29 + $0x198] sm:$0xff] }
 0x84e   : > { %12107 = vmatmul.msk.bf16.gmra.mxu0 %vm1240_vm3, %v9322_v23  ;;  %v7616_v51 = vpop.f32.mrf.mxu2  ;;  %v8935_v17 = vpop.f32.mrf.mxu3  ;;  %v8352_v60 = vrot.slane %v8350_v10, 2  ;;  %v8355_v3 = vrot.slane %v8353_v63, 3  ;;  %v7170_v23 = vrot.slane %v15277_v44, 2 }
 0x84f   : > { %v10272_v20 = vmax.f32 %v10136_v4, 0.0  ;;  %v7842_v54 = vadd.f32 %v7616_v51, %v6531_v49  ;;  %v6307_v2 = vpop.f32.mrf.mxu1 }
 0x850   : > { %v6532_v25 = vadd.f32 %v6307_v2, %v16211_v56  ;;  %v8356_v26 = vor.u32 %v8355_v3, %v8352_v60 }
 0x851   : > { %v10408_v41 = vpack.c.bf16 %v10272_v20, %v10272_v20  ;;  %v9161_v29 = vadd.f32 %v8935_v17, %v7842_v54  ;;  %v9325_v17 = vrot.slane %v15277_v44, 3 }
 0x853   : > { %10545 = vst.msk [vmem:[%s14349_s12 + $0x12c] sm:$0xf] %vm10469_vm9, %v10408_v41  ;;  %v9997_v58 = vadd.f32 %v9771_v59, %v9161_v29  ;;  %v9773_v28 = vpop.f32.mrf.mxu0  ;;  %v5859_v59 = vrot.slane %v12489_v45, 2  ;;  %v7171_v29 = vsel %vm5761_vm6, %v7168_v43, %v7170_v23  ;;  %v9326_v56 = vsel %vm9227_vm8, %v9323_v30, %v9325_v17  ;;  %v16214_v43 = vld [vmem:[#allocation39_spill] sm:$0xff] }
 0x855   : > { %v10137_v22 = vadd.f32 %v14971_v8, %v9997_v58  ;;  %v5860_v41 = vsel %vm5761_vm6, %v5857_v57, %v5859_v59  ;;  %v8357_v58 = vsel %vm7908_vm7, %v8347_v33, %v8356_v26 }
 0x856   : > { %v7618_v11 = vpop.f32.mrf.mxu2  ;;  %v8937_v9 = vpop.f32.mrf.mxu3 }
 0x857   : > { %v10273_v12 = vmax.f32 %v10137_v22, 0.0  ;;  %v7843_v50 = vadd.f32 %v7618_v11, %v6532_v25  ;;  %v6310_v48 = vpop.f32.mrf.mxu1 }
 0x858   : > { %v6533_v1 = vadd.f32 %v6310_v48, %v16212_v46  ;;  %v16215_v46 = vld [vmem:[#allocation42_spill] sm:$0xff] }
 0x859   : > { %v10409_v31 = vpack.c.bf16 %v10273_v12, %v10273_v12  ;;  %v9162_v34 = vadd.f32 %v8937_v9, %v7843_v50 }
 0x85a   : > { %11633 = vmatmul.msk.bf16.gmra.mxu1 %vm1240_vm3, %v5858_v40 }
 0x85b   : > { %10546 = vst.msk [vmem:[%s14349_s12 + $0x130] sm:$0xf] %vm10469_vm9, %v10409_v31  ;;  %v9998_v8 = vadd.f32 %v9773_v28, %v9162_v34  ;;  %v9776_v32 = vpop.f32.mrf.mxu0  ;;  %11970 = vmatmul.msk.bf16.gmra.mxu2 %vm1240_vm3, %v7169_v35  ;;  %12039 = vmatmul.msk.bf16.gmra.mxu3 %vm1240_vm3, %v8348_v52  ;;  %v15306_v28 = vld [vmem:[%s12600_s29 + $0x1b0] sm:$0xff] }
 0x85c   : > { %v8359_v33 = vshrl.u32 %v15306_v28, 16  ;;  %v8362_v11 = vshll.u32 %v15306_v28, 16 }
 0x85d   : > { %v10138_v13 = vadd.f32 %v15288_v37, %v9998_v8  ;;  %v12490_v8 = vld [vmem:[%s12600_s29 + $0x1a0] sm:$0xff] }
 0x85e   : > { %12108 = vmatmul.msk.bf16.gmra.mxu0 %vm1240_vm3, %v9324_v0  ;;  %v7621_v7 = vpop.f32.mrf.mxu2  ;;  %v8940_v42 = vpop.f32.mrf.mxu3  ;;  %v8361_v31 = vrot.slane %v8359_v33, 2  ;;  %v8364_v34 = vrot.slane %v8362_v11, 3  ;;  %v7172_v0 = vrot.slane %v15306_v28, 2 }
 0x85f   : > { %v10274_v24 = vmax.f32 %v10138_v13, 0.0  ;;  %v7844_v61 = vadd.f32 %v7621_v7, %v6533_v1  ;;  %v6312_v21 = vpop.f32.mrf.mxu1 }
 0x860   : > { %v6534_v49 = vadd.f32 %v6312_v21, %v16213_v39  ;;  %v8365_v10 = vor.u32 %v8364_v34, %v8361_v31 }
 0x861   : > { %v10410_v5 = vpack.c.bf16 %v10274_v24, %v10274_v24  ;;  %v9163_v19 = vadd.f32 %v8940_v42, %v7844_v61  ;;  %v9327_v42 = vrot.slane %v15306_v28, 3 }
 0x863   : > { %10547 = vst.msk [vmem:[%s14349_s12 + $0x134] sm:$0xf] %vm10469_vm9, %v10410_v5  ;;  %v9999_v6 = vadd.f32 %v9776_v32, %v9163_v19  ;;  %v9778_v38 = vpop.f32.mrf.mxu0  ;;  %v5861_v32 = vrot.slane %v12490_v8, 2  ;;  %v7173_v19 = vsel %vm5761_vm6, %v7170_v23, %v7172_v0  ;;  %v9328_v39 = vsel %vm9227_vm8, %v9325_v17, %v9327_v42  ;;  %v16216_v23 = vld [vmem:[#allocation46_spill] sm:$0xff] }
 0x865   : > { %v10139_v4 = vadd.f32 %v15288_v37, %v9999_v6  ;;  %v5862_v5 = vsel %vm5761_vm6, %v5859_v59, %v5861_v32  ;;  %v8366_v6 = vsel %vm7908_vm7, %v8356_v26, %v8365_v10 }
 0x866   : > { %v7623_v16 = vpop.f32.mrf.mxu2  ;;  %v8942_v54 = vpop.f32.mrf.mxu3 }
 0x867   : > { %v10275_v51 = vmax.f32 %v10139_v4, 0.0  ;;  %v7845_v20 = vadd.f32 %v7623_v16, %v6534_v49  ;;  %v6315_v2 = vpop.f32.mrf.mxu1 }
 0x868   : > { %v6535_v25 = vadd.f32 %v6315_v2, %v16214_v43  ;;  %v16217_v43 = vld [vmem:[#allocation50_spill] sm:$0xff] }
 0x869   : > { %v10411_v47 = vpack.c.bf16 %v10275_v51, %v10275_v51  ;;  %v9164_v55 = vadd.f32 %v8942_v54, %v7845_v20 }
 0x86a   : > { %11634 = vmatmul.msk.bf16.gmra.mxu1 %vm1240_vm3, %v5860_v41 }
 0x86b   : > { %10548 = vst.msk [vmem:[%s14349_s12 + $0x138] sm:$0xf] %vm10469_vm9, %v10411_v47  ;;  %v10000_v15 = vadd.f32 %v9778_v38, %v9164_v55  ;;  %v9781_v22 = vpop.f32.mrf.mxu0  ;;  %11971 = vmatmul.msk.bf16.gmra.mxu2 %vm1240_vm3, %v7171_v29  ;;  %12040 = vmatmul.msk.bf16.gmra.mxu3 %vm1240_vm3, %v8357_v58  ;;  %v15330_v38 = vld [vmem:[%s12600_s29 + $0x1b8] sm:$0xff] }
 0x86c   : > { %v8368_v26 = vshrl.u32 %v15330_v38, 16  ;;  %v8371_v16 = vshll.u32 %v15330_v38, 16 }
 0x86d   : > { %v10140_v57 = vadd.f32 %v15288_v37, %v10000_v15  ;;  %v12491_v15 = vld [vmem:[%s12600_s29 + $0x1a8] sm:$0xff] }
 0x86e   : > { %12109 = vmatmul.msk.bf16.gmra.mxu0 %vm1240_vm3, %v9326_v56  ;;  %v7626_v12 = vpop.f32.mrf.mxu2  ;;  %v8945_v48 = vpop.f32.mrf.mxu3  ;;  %v8370_v47 = vrot.slane %v8368_v26, 2  ;;  %v8373_v55 = vrot.slane %v8371_v16, 3  ;;  %v7174_v56 = vrot.slane %v15330_v38, 2 }
 0x86f   : > { %v10276_v50 = vmax.f32 %v10140_v57, 0.0  ;;  %v7846_v9 = vadd.f32 %v7626_v12, %v6535_v25  ;;  %v6317_v40 = vpop.f32.mrf.mxu1 }
 0x870   : > { %v6536_v1 = vadd.f32 %v6317_v40, %v16215_v46  ;;  %v8374_v33 = vor.u32 %v8373_v55, %v8370_v47 }
 0x871   : > { %v10412_v30 = vpack.c.bf16 %v10276_v50, %v10276_v50  ;;  %v9165_v35 = vadd.f32 %v8945_v48, %v7846_v9  ;;  %v9329_v48 = vrot.slane %v15330_v38, 3 }
 0x873   : > { %10549 = vst.msk [vmem:[%s14349_s12 + $0x13c] sm:$0xf] %vm10469_vm9, %v10412_v30  ;;  %v10001_v52 = vadd.f32 %v9781_v22, %v9165_v35  ;;  %v9783_v44 = vpop.f32.mrf.mxu0  ;;  %v5863_v22 = vrot.slane %v12491_v15, 2  ;;  %v7175_v35 = vsel %vm5761_vm6, %v7172_v0, %v7174_v56  ;;  %v9330_v46 = vsel %vm9227_vm8, %v9327_v42, %v9329_v48  ;;  %v16218_v0 = vld [vmem:[#allocation53_spill] sm:$0xff] }
 0x875   : > { %v10141_v13 = vadd.f32 %v15288_v37, %v10001_v52  ;;  %v5864_v30 = vsel %vm5761_vm6, %v5861_v32, %v5863_v22  ;;  %v8375_v52 = vsel %vm7908_vm7, %v8365_v10, %v8374_v33 }
 0x876   : > { %v7628_v63 = vpop.f32.mrf.mxu2  ;;  %v8947_v61 = vpop.f32.mrf.mxu3 }
 0x877   : > { %v10277_v7 = vmax.f32 %v10141_v13, 0.0  ;;  %v7847_v24 = vadd.f32 %v7628_v63, %v6536_v1  ;;  %v6320_v21 = vpop.f32.mrf.mxu1 }
 0x878   : > { %v6537_v49 = vadd.f32 %v6320_v21, %v16216_v23  ;;  %v16219_v23 = vld [vmem:[#allocation56_spill] sm:$0xff] }
 0x879   : > { %v10413_v60 = vpack.c.bf16 %v10277_v7, %v10277_v7  ;;  %v9166_v3 = vadd.f32 %v8947_v61, %v7847_v24 }
 0x87a   : > { %11635 = vmatmul.msk.bf16.gmra.mxu1 %vm1240_vm3, %v5862_v5 }
 0x87b   : > { %10550 = vst.msk [vmem:[%s14349_s12 + $0x140] sm:$0xf] %vm10469_vm9, %v10413_v60  ;;  %v10002_v45 = vadd.f32 %v9783_v44, %v9166_v3  ;;  %v9786_v4 = vpop.f32.mrf.mxu0  ;;  %11972 = vmatmul.msk.bf16.gmra.mxu2 %vm1240_vm3, %v7173_v19  ;;  %12041 = vmatmul.msk.bf16.gmra.mxu3 %vm1240_vm3, %v8366_v6  ;;  %v15354_v44 = vld [vmem:[%s12600_s29 + $0x1c0] sm:$0xff] }
 0x87c   : > { %v8377_v10 = vshrl.u32 %v15354_v44, 16  ;;  %v8380_v63 = vshll.u32 %v15354_v44, 16 }
 0x87d   : > { %v10142_v59 = vadd.f32 %v15288_v37, %v10002_v45  ;;  %v12492_v45 = vld [vmem:[%s12600_s29 + $0x1b0] sm:$0xff] }
 0x87e   : > { %12110 = vmatmul.msk.bf16.gmra.mxu0 %vm1240_vm3, %v9328_v39  ;;  %v7631_v51 = vpop.f32.mrf.mxu2  ;;  %v8950_v2 = vpop.f32.mrf.mxu3  ;;  %v8379_v60 = vrot.slane %v8377_v10, 2  ;;  %v8382_v3 = vrot.slane %v8380_v63, 3  ;;  %v7176_v39 = vrot.slane %v15354_v44, 2 }
 0x87f   : > { %v10278_v20 = vmax.f32 %v10142_v59, 0.0  ;;  %v7848_v54 = vadd.f32 %v7631_v51, %v6537_v49  ;;  %v6322_v41 = vpop.f32.mrf.mxu1 }
 0x880   : > { %v6538_v25 = vadd.f32 %v6322_v41, %v16217_v43  ;;  %v8383_v26 = vor.u32 %v8382_v3, %v8379_v60 }
 0x881   : > { %v10414_v17 = vpack.c.bf16 %v10278_v20, %v10278_v20  ;;  %v9167_v29 = vadd.f32 %v8950_v2, %v7848_v54  ;;  %v9331_v2 = vrot.slane %v15354_v44, 3 }
 0x883   : > { %10551 = vst.msk [vmem:[%s14349_s12 + $0x144] sm:$0xf] %vm10469_vm9, %v10414_v17  ;;  %v10003_v58 = vadd.f32 %v9786_v4, %v9167_v29  ;;  %v9788_v28 = vpop.f32.mrf.mxu0  ;;  %v5865_v4 = vrot.slane %v12492_v45, 2  ;;  %v7177_v29 = vsel %vm5761_vm6, %v7174_v56, %v7176_v39  ;;  %v9332_v43 = vsel %vm9227_vm8, %v9329_v48, %v9331_v2  ;;  %v16220_v56 = vld [vmem:[#allocation59_spill] sm:$0xff] }
 0x885   : > { %v10143_v57 = vadd.f32 %v15288_v37, %v10003_v58  ;;  %v5866_v17 = vsel %vm5761_vm6, %v5863_v22, %v5865_v4  ;;  %v8384_v58 = vsel %vm7908_vm7, %v8374_v33, %v8383_v26 }
 0x886   : > { %v7633_v11 = vpop.f32.mrf.mxu2  ;;  %v8952_v9 = vpop.f32.mrf.mxu3 }
 0x887   : > { %v10279_v12 = vmax.f32 %v10143_v57, 0.0  ;;  %v7849_v50 = vadd.f32 %v7633_v11, %v6538_v25  ;;  %v6325_v40 = vpop.f32.mrf.mxu1 }
 0x888   : > { %v6539_v1 = vadd.f32 %v6325_v40, %v16218_v0  ;;  %v16221_v0 = vld [vmem:[#allocation62_spill] sm:$0xff] }
 0x889   : > { %v10415_v31 = vpack.c.bf16 %v10279_v12, %v10279_v12  ;;  %v9168_v34 = vadd.f32 %v8952_v9, %v7849_v50 }
 0x88a   : > { %11636 = vmatmul.msk.bf16.gmra.mxu1 %vm1240_vm3, %v5864_v30 }
 0x88b   : > { %10552 = vst.msk [vmem:[%s14349_s12 + $0x148] sm:$0xf] %vm10469_vm9, %v10415_v31  ;;  %v10004_v8 = vadd.f32 %v9788_v28, %v9168_v34  ;;  %v9791_v13 = vpop.f32.mrf.mxu0  ;;  %11973 = vmatmul.msk.bf16.gmra.mxu2 %vm1240_vm3, %v7175_v35  ;;  %12042 = vmatmul.msk.bf16.gmra.mxu3 %vm1240_vm3, %v8375_v52  ;;  %v15378_v28 = vld [vmem:[%s12600_s29 + $0x1c8] sm:$0xff] }
 0x88c   : > { %v8386_v33 = vshrl.u32 %v15378_v28, 16  ;;  %v8389_v11 = vshll.u32 %v15378_v28, 16 }
 0x88d   : > { %v10144_v32 = vadd.f32 %v15288_v37, %v10004_v8  ;;  %v12493_v8 = vld [vmem:[%s12600_s29 + $0x1b8] sm:$0xff] }
 0x88e   : > { %12111 = vmatmul.msk.bf16.gmra.mxu0 %vm1240_vm3, %v9330_v46  ;;  %v7636_v7 = vpop.f32.mrf.mxu2  ;;  %v8955_v21 = vpop.f32.mrf.mxu3  ;;  %v8388_v31 = vrot.slane %v8386_v33, 2  ;;  %v8391_v34 = vrot.slane %v8389_v11, 3  ;;  %v7178_v46 = vrot.slane %v15378_v28, 2 }
 0x88f   : > { %v10280_v24 = vmax.f32 %v10144_v32, 0.0  ;;  %v7850_v61 = vadd.f32 %v7636_v7, %v6539_v1  ;;  %v6327_v5 = vpop.f32.mrf.mxu1 }
 0x890   : > { %v6540_v49 = vadd.f32 %v6327_v5, %v16219_v23  ;;  %v8392_v10 = vor.u32 %v8391_v34, %v8388_v31 }
 0x891   : > { %v10416_v42 = vpack.c.bf16 %v10280_v24, %v10280_v24  ;;  %v9169_v19 = vadd.f32 %v8955_v21, %v7850_v61  ;;  %v9333_v21 = vrot.slane %v15378_v28, 3 }
 0x893   : > { %10553 = vst.msk [vmem:[%s14349_s12 + $0x14c] sm:$0xf] %vm10469_vm9, %v10416_v42  ;;  %v10005_v6 = vadd.f32 %v9791_v13, %v9169_v19  ;;  %v9793_v38 = vpop.f32.mrf.mxu0  ;;  %v5867_v13 = vrot.slane %v12493_v8, 2  ;;  %v7179_v19 = vsel %vm5761_vm6, %v7176_v39, %v7178_v46  ;;  %v9334_v23 = vsel %vm9227_vm8, %v9331_v2, %v9333_v21  ;;  %v16222_v39 = vld [vmem:[#allocation65_spill] sm:$0xff] }
 0x895   : > { %v10145_v59 = vadd.f32 %v15288_v37, %v10005_v6  ;;  %v5868_v42 = vsel %vm5761_vm6, %v5865_v4, %v5867_v13  ;;  %v8393_v6 = vsel %vm7908_vm7, %v8383_v26, %v8392_v10 }
 0x896   : > { %v7638_v16 = vpop.f32.mrf.mxu2  ;;  %v8957_v54 = vpop.f32.mrf.mxu3 }
 0x897   : > { %v10281_v51 = vmax.f32 %v10145_v59, 0.0  ;;  %v7851_v20 = vadd.f32 %v7638_v16, %v6540_v49  ;;  %v6330_v41 = vpop.f32.mrf.mxu1 }
 0x898   : > { %v6541_v25 = vadd.f32 %v6330_v41, %v16220_v56  ;;  %v16223_v56 = vld [vmem:[#allocation68_spill] sm:$0xff] }
 0x899   : > { %v10417_v47 = vpack.c.bf16 %v10281_v51, %v10281_v51  ;;  %v9170_v55 = vadd.f32 %v8957_v54, %v7851_v20 }
 0x89a   : > { %11637 = vmatmul.msk.bf16.gmra.mxu1 %vm1240_vm3, %v5866_v17 }
 0x89b   : > { %10554 = vst.msk [vmem:[%s14349_s12 + $0x150] sm:$0xf] %vm10469_vm9, %v10417_v47  ;;  %v10006_v15 = vadd.f32 %v9793_v38, %v9170_v55  ;;  %v9796_v57 = vpop.f32.mrf.mxu0  ;;  %11974 = vmatmul.msk.bf16.gmra.mxu2 %vm1240_vm3, %v7177_v29  ;;  %12043 = vmatmul.msk.bf16.gmra.mxu3 %vm1240_vm3, %v8384_v58  ;;  %v15402_v38 = vld [vmem:[%s12600_s29 + $0x1d0] sm:$0xff] }
 0x89c   : > { %v8395_v26 = vshrl.u32 %v15402_v38, 16  ;;  %v8398_v16 = vshll.u32 %v15402_v38, 16 }
 0x89d   : > { %v10146_v22 = vadd.f32 %v15288_v37, %v10006_v15  ;;  %v12494_v15 = vld [vmem:[%s12600_s29 + $0x1c0] sm:$0xff] }
 0x89e   : > { %12112 = vmatmul.msk.bf16.gmra.mxu0 %vm1240_vm3, %v9332_v43  ;;  %v7641_v12 = vpop.f32.mrf.mxu2  ;;  %v8960_v40 = vpop.f32.mrf.mxu3  ;;  %v8397_v47 = vrot.slane %v8395_v26, 2  ;;  %v8400_v55 = vrot.slane %v8398_v16, 3  ;;  %v7180_v43 = vrot.slane %v15402_v38, 2 }
 0x89f   : > { %v10282_v50 = vmax.f32 %v10146_v22, 0.0  ;;  %v7852_v9 = vadd.f32 %v7641_v12, %v6541_v25  ;;  %v6332_v30 = vpop.f32.mrf.mxu1 }
 0x8a0   : > { %v6542_v1 = vadd.f32 %v6332_v30, %v16221_v0  ;;  %v8401_v33 = vor.u32 %v8400_v55, %v8397_v47 }
 0x8a1   : > { %v10418_v48 = vpack.c.bf16 %v10282_v50, %v10282_v50  ;;  %v9171_v35 = vadd.f32 %v8960_v40, %v7852_v9  ;;  %v9335_v40 = vrot.slane %v15402_v38, 3 }
 0x8a3   : > { %10555 = vst.msk [vmem:[%s14349_s12 + $0x154] sm:$0xf] %vm10469_vm9, %v10418_v48  ;;  %v10007_v52 = vadd.f32 %v9796_v57, %v9171_v35  ;;  %v9798_v44 = vpop.f32.mrf.mxu0  ;;  %v5869_v57 = vrot.slane %v12494_v15, 2  ;;  %v7181_v35 = vsel %vm5761_vm6, %v7178_v46, %v7180_v43  ;;  %v9336_v0 = vsel %vm9227_vm8, %v9333_v21, %v9335_v40  ;;  %v16224_v46 = vld [vmem:[#allocation71_spill] sm:$0xff] }
 0x8a5   : > { %v10147_v32 = vadd.f32 %v15288_v37, %v10007_v52  ;;  %v5870_v48 = vsel %vm5761_vm6, %v5867_v13, %v5869_v57  ;;  %v8402_v52 = vsel %vm7908_vm7, %v8392_v10, %v8401_v33 }
 0x8a6   : > { %v7643_v63 = vpop.f32.mrf.mxu2  ;;  %v8962_v61 = vpop.f32.mrf.mxu3 }
 0x8a7   : > { %v10283_v7 = vmax.f32 %v10147_v32, 0.0  ;;  %v7853_v24 = vadd.f32 %v7643_v63, %v6542_v1  ;;  %v6335_v5 = vpop.f32.mrf.mxu1 }
 0x8a8   : > { %v6543_v49 = vadd.f32 %v6335_v5, %v16222_v39  ;;  %v16225_v39 = vld [vmem:[#allocation74_spill] sm:$0xff] }
 0x8a9   : > { %v10419_v60 = vpack.c.bf16 %v10283_v7, %v10283_v7  ;;  %v9172_v3 = vadd.f32 %v8962_v61, %v7853_v24 }
 0x8aa   : > { %11638 = vmatmul.msk.bf16.gmra.mxu1 %vm1240_vm3, %v5868_v42 }
 0x8ab   : > { %10556 = vst.msk [vmem:[%s14349_s12 + $0x158] sm:$0xf] %vm10469_vm9, %v10419_v60  ;;  %v10008_v45 = vadd.f32 %v9798_v44, %v9172_v3  ;;  %v9801_v59 = vpop.f32.mrf.mxu0  ;;  %11975 = vmatmul.msk.bf16.gmra.mxu2 %vm1240_vm3, %v7179_v19  ;;  %12044 = vmatmul.msk.bf16.gmra.mxu3 %vm1240_vm3, %v8393_v6  ;;  %v15426_v44 = vld [vmem:[%s12600_s29 + $0x1d8] sm:$0xff] }
 0x8ac   : > { %v8404_v10 = vshrl.u32 %v15426_v44, 16  ;;  %v8407_v63 = vshll.u32 %v15426_v44, 16 }
 0x8ad   : > { %v10148_v4 = vadd.f32 %v15288_v37, %v10008_v45  ;;  %v12495_v45 = vld [vmem:[%s12600_s29 + $0x1c8] sm:$0xff] }
 0x8ae   : > { %12113 = vmatmul.msk.bf16.gmra.mxu0 %vm1240_vm3, %v9334_v23  ;;  %v7646_v51 = vpop.f32.mrf.mxu2  ;;  %v8965_v41 = vpop.f32.mrf.mxu3  ;;  %v8406_v60 = vrot.slane %v8404_v10, 2  ;;  %v8409_v3 = vrot.slane %v8407_v63, 3  ;;  %v7182_v23 = vrot.slane %v15426_v44, 2 }
 0x8af   : > { %v10284_v20 = vmax.f32 %v10148_v4, 0.0  ;;  %v7854_v54 = vadd.f32 %v7646_v51, %v6543_v49  ;;  %v6337_v17 = vpop.f32.mrf.mxu1 }
 0x8b0   : > { %v6544_v25 = vadd.f32 %v6337_v17, %v16223_v56  ;;  %v8410_v26 = vor.u32 %v8409_v3, %v8406_v60 }
 0x8b1   : > { %v10420_v2 = vpack.c.bf16 %v10284_v20, %v10284_v20  ;;  %v9173_v29 = vadd.f32 %v8965_v41, %v7854_v54  ;;  %v9337_v41 = vrot.slane %v15426_v44, 3 }
 0x8b3   : > { %10557 = vst.msk [vmem:[%s14349_s12 + $0x15c] sm:$0xf] %vm10469_vm9, %v10420_v2  ;;  %v10009_v58 = vadd.f32 %v9801_v59, %v9173_v29  ;;  %v9803_v28 = vpop.f32.mrf.mxu0  ;;  %v5871_v59 = vrot.slane %v12495_v45, 2  ;;  %v7183_v29 = vsel %vm5761_vm6, %v7180_v43, %v7182_v23  ;;  %v9338_v56 = vsel %vm9227_vm8, %v9335_v40, %v9337_v41  ;;  %v16226_v43 = vld [vmem:[#allocation77_spill] sm:$0xff] }
 0x8b5   : > { %v10149_v22 = vadd.f32 %v15288_v37, %v10009_v58  ;;  %v5872_v2 = vsel %vm5761_vm6, %v5869_v57, %v5871_v59  ;;  %v8411_v58 = vsel %vm7908_vm7, %v8401_v33, %v8410_v26 }
 0x8b6   : > { %v7648_v11 = vpop.f32.mrf.mxu2  ;;  %v8967_v9 = vpop.f32.mrf.mxu3 }
 0x8b7   : > { %v10285_v12 = vmax.f32 %v10149_v22, 0.0  ;;  %v7855_v50 = vadd.f32 %v7648_v11, %v6544_v25  ;;  %v6340_v30 = vpop.f32.mrf.mxu1 }
 0x8b8   : > { %v6545_v1 = vadd.f32 %v6340_v30, %v16224_v46  ;;  %v16227_v46 = vld [vmem:[#allocation80_spill] sm:$0xff] }
 0x8b9   : > { %v10421_v31 = vpack.c.bf16 %v10285_v12, %v10285_v12  ;;  %v9174_v34 = vadd.f32 %v8967_v9, %v7855_v50 }
 0x8ba   : > { %11639 = vmatmul.msk.bf16.gmra.mxu1 %vm1240_vm3, %v5870_v48 }
 0x8bb   : > { %10558 = vst.msk [vmem:[%s14349_s12 + $0x160] sm:$0xf] %vm10469_vm9, %v10421_v31  ;;  %v10010_v8 = vadd.f32 %v9803_v28, %v9174_v34  ;;  %v9806_v32 = vpop.f32.mrf.mxu0  ;;  %11976 = vmatmul.msk.bf16.gmra.mxu2 %vm1240_vm3, %v7181_v35  ;;  %12045 = vmatmul.msk.bf16.gmra.mxu3 %vm1240_vm3, %v8402_v52  ;;  %v15450_v28 = vld [vmem:[%s12600_s29 + $0x1e0] sm:$0xff] }
 0x8bc   : > { %v8413_v33 = vshrl.u32 %v15450_v28, 16  ;;  %v8416_v11 = vshll.u32 %v15450_v28, 16 }
 0x8bd   : > { %v10150_v13 = vadd.f32 %v15288_v37, %v10010_v8  ;;  %v12496_v8 = vld [vmem:[%s12600_s29 + $0x1d0] sm:$0xff] }
 0x8be   : > { %12114 = vmatmul.msk.bf16.gmra.mxu0 %vm1240_vm3, %v9336_v0  ;;  %v7651_v7 = vpop.f32.mrf.mxu2  ;;  %v8970_v5 = vpop.f32.mrf.mxu3  ;;  %v8415_v31 = vrot.slane %v8413_v33, 2  ;;  %v8418_v34 = vrot.slane %v8416_v11, 3  ;;  %v7184_v0 = vrot.slane %v15450_v28, 2 }
 0x8bf   : > { %v10286_v24 = vmax.f32 %v10150_v13, 0.0  ;;  %v7856_v61 = vadd.f32 %v7651_v7, %v6545_v1  ;;  %v6342_v42 = vpop.f32.mrf.mxu1 }
 0x8c0   : > { %v6546_v49 = vadd.f32 %v6342_v42, %v16225_v39  ;;  %v8419_v10 = vor.u32 %v8418_v34, %v8415_v31 }
 0x8c1   : > { %v10422_v21 = vpack.c.bf16 %v10286_v24, %v10286_v24  ;;  %v9175_v19 = vadd.f32 %v8970_v5, %v7856_v61  ;;  %v9339_v5 = vrot.slane %v15450_v28, 3 }
 0x8c3   : > { %10559 = vst.msk [vmem:[%s14349_s12 + $0x164] sm:$0xf] %vm10469_vm9, %v10422_v21  ;;  %v10011_v6 = vadd.f32 %v9806_v32, %v9175_v19  ;;  %v9808_v38 = vpop.f32.mrf.mxu0  ;;  %v5873_v32 = vrot.slane %v12496_v8, 2  ;;  %v7185_v19 = vsel %vm5761_vm6, %v7182_v23, %v7184_v0  ;;  %v9340_v39 = vsel %vm9227_vm8, %v9337_v41, %v9339_v5  ;;  %v16228_v23 = vld [vmem:[#allocation83_spill] sm:$0xff] }
 0x8c5   : > { %v10151_v4 = vadd.f32 %v15288_v37, %v10011_v6  ;;  %v5874_v21 = vsel %vm5761_vm6, %v5871_v59, %v5873_v32  ;;  %v8420_v6 = vsel %vm7908_vm7, %v8410_v26, %v8419_v10 }
 0x8c6   : > { %v7653_v16 = vpop.f32.mrf.mxu2  ;;  %v8972_v54 = vpop.f32.mrf.mxu3 }
 0x8c7   : > { %v10287_v51 = vmax.f32 %v10151_v4, 0.0  ;;  %v7857_v20 = vadd.f32 %v7653_v16, %v6546_v49  ;;  %v6345_v17 = vpop.f32.mrf.mxu1 }
 0x8c8   : > { %v6547_v25 = vadd.f32 %v6345_v17, %v16226_v43  ;;  %v16229_v43 = vld [vmem:[#allocation86_spill] sm:$0xff] }
 0x8c9   : > { %v10423_v47 = vpack.c.bf16 %v10287_v51, %v10287_v51  ;;  %v9176_v55 = vadd.f32 %v8972_v54, %v7857_v20 }
 0x8ca   : > { %11640 = vmatmul.msk.bf16.gmra.mxu1 %vm1240_vm3, %v5872_v2 }
 0x8cb   : > { %10560 = vst.msk [vmem:[%s14349_s12 + $0x168] sm:$0xf] %vm10469_vm9, %v10423_v47  ;;  %v10012_v15 = vadd.f32 %v9808_v38, %v9176_v55  ;;  %v9811_v22 = vpop.f32.mrf.mxu0  ;;  %11977 = vmatmul.msk.bf16.gmra.mxu2 %vm1240_vm3, %v7183_v29  ;;  %12046 = vmatmul.msk.bf16.gmra.mxu3 %vm1240_vm3, %v8411_v58  ;;  %v15474_v38 = vld [vmem:[%s12600_s29 + $0x1e8] sm:$0xff] }
 0x8cc   : > { %v8422_v26 = vshrl.u32 %v15474_v38, 16  ;;  %v8425_v16 = vshll.u32 %v15474_v38, 16 }
 0x8cd   : > { %v10152_v57 = vadd.f32 %v15288_v37, %v10012_v15  ;;  %v12497_v15 = vld [vmem:[%s12600_s29 + $0x1d8] sm:$0xff] }
 0x8ce   : > { %12115 = vmatmul.msk.bf16.gmra.mxu0 %vm1240_vm3, %v9338_v56  ;;  %v7656_v12 = vpop.f32.mrf.mxu2  ;;  %v8975_v30 = vpop.f32.mrf.mxu3  ;;  %v8424_v47 = vrot.slane %v8422_v26, 2  ;;  %v8427_v55 = vrot.slane %v8425_v16, 3  ;;  %v7186_v56 = vrot.slane %v15474_v38, 2 }
 0x8cf   : > { %v10288_v50 = vmax.f32 %v10152_v57, 0.0  ;;  %v7858_v9 = vadd.f32 %v7656_v12, %v6547_v25  ;;  %v6347_v48 = vpop.f32.mrf.mxu1 }
 0x8d0   : > { %v6548_v1 = vadd.f32 %v6347_v48, %v16227_v46  ;;  %v8428_v33 = vor.u32 %v8427_v55, %v8424_v47 }
 0x8d1   : > { %v10424_v40 = vpack.c.bf16 %v10288_v50, %v10288_v50  ;;  %v9177_v35 = vadd.f32 %v8975_v30, %v7858_v9  ;;  %v9341_v30 = vrot.slane %v15474_v38, 3 }
 0x8d3   : > { %10561 = vst.msk [vmem:[%s14349_s12 + $0x16c] sm:$0xf] %vm10469_vm9, %v10424_v40  ;;  %v10013_v52 = vadd.f32 %v9811_v22, %v9177_v35  ;;  %v9813_v44 = vpop.f32.mrf.mxu0  ;;  %v5875_v22 = vrot.slane %v12497_v15, 2  ;;  %v7187_v35 = vsel %vm5761_vm6, %v7184_v0, %v7186_v56  ;;  %v9342_v46 = vsel %vm9227_vm8, %v9339_v5, %v9341_v30  ;;  %v16230_v0 = vld [vmem:[#allocation89_spill] sm:$0xff] }
 0x8d5   : > { %v10153_v13 = vadd.f32 %v15288_v37, %v10013_v52  ;;  %v5876_v40 = vsel %vm5761_vm6, %v5873_v32, %v5875_v22  ;;  %v8429_v52 = vsel %vm7908_vm7, %v8419_v10, %v8428_v33 }
 0x8d6   : > { %v7658_v63 = vpop.f32.mrf.mxu2  ;;  %v8977_v61 = vpop.f32.mrf.mxu3 }
 0x8d7   : > { %v10289_v7 = vmax.f32 %v10153_v13, 0.0  ;;  %v7859_v24 = vadd.f32 %v7658_v63, %v6548_v1  ;;  %v6350_v42 = vpop.f32.mrf.mxu1 }
 0x8d8   : > { %v6549_v49 = vadd.f32 %v6350_v42, %v16228_v23  ;;  %v16231_v23 = vld [vmem:[#allocation92_spill] sm:$0xff] }
 0x8d9   : > { %v10425_v60 = vpack.c.bf16 %v10289_v7, %v10289_v7  ;;  %v9178_v3 = vadd.f32 %v8977_v61, %v7859_v24 }
 0x8da   : > { %11641 = vmatmul.msk.bf16.gmra.mxu1 %vm1240_vm3, %v5874_v21 }
 0x8db   : > { %10562 = vst.msk [vmem:[%s14349_s12 + $0x170] sm:$0xf] %vm10469_vm9, %v10425_v60  ;;  %v10014_v45 = vadd.f32 %v9813_v44, %v9178_v3  ;;  %v9816_v4 = vpop.f32.mrf.mxu0  ;;  %11978 = vmatmul.msk.bf16.gmra.mxu2 %vm1240_vm3, %v7185_v19  ;;  %12047 = vmatmul.msk.bf16.gmra.mxu3 %vm1240_vm3, %v8420_v6  ;;  %v15498_v44 = vld [vmem:[%s12600_s29 + $0x1f0] sm:$0xff] }
 0x8dc   : > { %v8431_v10 = vshrl.u32 %v15498_v44, 16  ;;  %v8434_v63 = vshll.u32 %v15498_v44, 16 }
 0x8dd   : > { %v10154_v59 = vadd.f32 %v15288_v37, %v10014_v45  ;;  %v12498_v45 = vld [vmem:[%s12600_s29 + $0x1e0] sm:$0xff] }
 0x8de   : > { %12116 = vmatmul.msk.bf16.gmra.mxu0 %vm1240_vm3, %v9340_v39  ;;  %v7661_v51 = vpop.f32.mrf.mxu2  ;;  %v8980_v17 = vpop.f32.mrf.mxu3  ;;  %v8433_v60 = vrot.slane %v8431_v10, 2  ;;  %v8436_v3 = vrot.slane %v8434_v63, 3  ;;  %v7188_v39 = vrot.slane %v15498_v44, 2 }
 0x8df   : > { %v10290_v20 = vmax.f32 %v10154_v59, 0.0  ;;  %v7860_v54 = vadd.f32 %v7661_v51, %v6549_v49  ;;  %v6352_v2 = vpop.f32.mrf.mxu1 }
 0x8e0   : > { %v6550_v25 = vadd.f32 %v6352_v2, %v16229_v43  ;;  %v8437_v26 = vor.u32 %v8436_v3, %v8433_v60 }
 0x8e1   : > { %v10426_v41 = vpack.c.bf16 %v10290_v20, %v10290_v20  ;;  %v9179_v29 = vadd.f32 %v8980_v17, %v7860_v54  ;;  %v9343_v17 = vrot.slane %v15498_v44, 3 }
 0x8e3   : > { %10563 = vst.msk [vmem:[%s14349_s12 + $0x174] sm:$0xf] %vm10469_vm9, %v10426_v41  ;;  %v10015_v58 = vadd.f32 %v9816_v4, %v9179_v29  ;;  %v9818_v28 = vpop.f32.mrf.mxu0  ;;  %v5877_v4 = vrot.slane %v12498_v45, 2  ;;  %v7189_v29 = vsel %vm5761_vm6, %v7186_v56, %v7188_v39  ;;  %v9344_v43 = vsel %vm9227_vm8, %v9341_v30, %v9343_v17  ;;  %v16232_v56 = vld [vmem:[#allocation95_spill] sm:$0xff] }
 0x8e5   : > { %v10155_v57 = vadd.f32 %v15288_v37, %v10015_v58  ;;  %v5878_v41 = vsel %vm5761_vm6, %v5875_v22, %v5877_v4  ;;  %v8438_v58 = vsel %vm7908_vm7, %v8428_v33, %v8437_v26 }
 0x8e6   : > { %v7663_v11 = vpop.f32.mrf.mxu2  ;;  %v8982_v9 = vpop.f32.mrf.mxu3 }
 0x8e7   : > { %v10291_v12 = vmax.f32 %v10155_v57, 0.0  ;;  %v7861_v50 = vadd.f32 %v7663_v11, %v6550_v25  ;;  %v6355_v48 = vpop.f32.mrf.mxu1 }
 0x8e8   : > { %v6551_v1 = vadd.f32 %v6355_v48, %v16230_v0  ;;  %v16233_v0 = vld [vmem:[#allocation98_spill] sm:$0xff] }
 0x8e9   : > { %v10427_v31 = vpack.c.bf16 %v10291_v12, %v10291_v12  ;;  %v9180_v34 = vadd.f32 %v8982_v9, %v7861_v50 }
 0x8ea   : > { %11642 = vmatmul.msk.bf16.gmra.mxu1 %vm1240_vm3, %v5876_v40 }
 0x8eb   : > { %10564 = vst.msk [vmem:[%s14349_s12 + $0x178] sm:$0xf] %vm10469_vm9, %v10427_v31  ;;  %v10016_v8 = vadd.f32 %v9818_v28, %v9180_v34  ;;  %v9821_v13 = vpop.f32.mrf.mxu0  ;;  %11979 = vmatmul.msk.bf16.gmra.mxu2 %vm1240_vm3, %v7187_v35  ;;  %12048 = vmatmul.msk.bf16.gmra.mxu3 %vm1240_vm3, %v8429_v52  ;;  %v15522_v28 = vld [vmem:[%s12600_s29 + $0x1f8] sm:$0xff] }
 0x8ec   : > { %v8440_v33 = vshrl.u32 %v15522_v28, 16  ;;  %v8443_v11 = vshll.u32 %v15522_v28, 16 }
 0x8ed   : > { %v10156_v32 = vadd.f32 %v15288_v37, %v10016_v8  ;;  %v12499_v8 = vld [vmem:[%s12600_s29 + $0x1e8] sm:$0xff] }
 0x8ee   : > { %12117 = vmatmul.msk.bf16.gmra.mxu0 %vm1240_vm3, %v9342_v46  ;;  %v7666_v7 = vpop.f32.mrf.mxu2  ;;  %v8985_v42 = vpop.f32.mrf.mxu3  ;;  %v8442_v31 = vrot.slane %v8440_v33, 2  ;;  %v8445_v34 = vrot.slane %v8443_v11, 3  ;;  %v7190_v46 = vrot.slane %v15522_v28, 2 }
 0x8ef   : > { %v10292_v24 = vmax.f32 %v10156_v32, 0.0  ;;  %v7862_v61 = vadd.f32 %v7666_v7, %v6551_v1  ;;  %v6357_v21 = vpop.f32.mrf.mxu1 }
 0x8f0   : > { %v6552_v49 = vadd.f32 %v6357_v21, %v16231_v23  ;;  %v8446_v10 = vor.u32 %v8445_v34, %v8442_v31 }
 0x8f1   : > { %v10428_v5 = vpack.c.bf16 %v10292_v24, %v10292_v24  ;;  %v9181_v19 = vadd.f32 %v8985_v42, %v7862_v61  ;;  %v9345_v42 = vrot.slane %v15522_v28, 3 }
 0x8f3   : > { %10565 = vst.msk [vmem:[%s14349_s12 + $0x17c] sm:$0xf] %vm10469_vm9, %v10428_v5  ;;  %v10017_v6 = vadd.f32 %v9821_v13, %v9181_v19  ;;  %v9823_v38 = vpop.f32.mrf.mxu0  ;;  %v5879_v13 = vrot.slane %v12499_v8, 2  ;;  %v7191_v19 = vsel %vm5761_vm6, %v7188_v39, %v7190_v46  ;;  %v9346_v23 = vsel %vm9227_vm8, %v9343_v17, %v9345_v42  ;;  %v16234_v39 = vld [vmem:[#allocation101_spill] sm:$0xff] }
 0x8f5   : > { %v10157_v59 = vadd.f32 %v15288_v37, %v10017_v6  ;;  %v5880_v5 = vsel %vm5761_vm6, %v5877_v4, %v5879_v13  ;;  %v8447_v6 = vsel %vm7908_vm7, %v8437_v26, %v8446_v10 }
 0x8f6   : > { %v7668_v16 = vpop.f32.mrf.mxu2  ;;  %v8987_v54 = vpop.f32.mrf.mxu3 }
 0x8f7   : > { %v10293_v51 = vmax.f32 %v10157_v59, 0.0  ;;  %v7863_v20 = vadd.f32 %v7668_v16, %v6552_v49  ;;  %v6360_v2 = vpop.f32.mrf.mxu1 }
 0x8f8   : > { %v6553_v25 = vadd.f32 %v6360_v2, %v16232_v56  ;;  %v16235_v56 = vld [vmem:[#allocation104_spill] sm:$0xff] }
 0x8f9   : > { %v10429_v47 = vpack.c.bf16 %v10293_v51, %v10293_v51  ;;  %v9182_v55 = vadd.f32 %v8987_v54, %v7863_v20 }
 0x8fa   : > { %11643 = vmatmul.msk.bf16.gmra.mxu1 %vm1240_vm3, %v5878_v41 }
 0x8fb   : > { %10566 = vst.msk [vmem:[%s14349_s12 + $0x180] sm:$0xf] %vm10469_vm9, %v10429_v47  ;;  %v10018_v15 = vadd.f32 %v9823_v38, %v9182_v55  ;;  %v9826_v57 = vpop.f32.mrf.mxu0  ;;  %11980 = vmatmul.msk.bf16.gmra.mxu2 %vm1240_vm3, %v7189_v29  ;;  %12049 = vmatmul.msk.bf16.gmra.mxu3 %vm1240_vm3, %v8438_v58  ;;  %v15546_v38 = vld [vmem:[%s12600_s29 + $0x200] sm:$0xff] }
 0x8fc   : > { %v8449_v26 = vshrl.u32 %v15546_v38, 16  ;;  %v8452_v16 = vshll.u32 %v15546_v38, 16 }
 0x8fd   : > { %v10158_v22 = vadd.f32 %v15288_v37, %v10018_v15  ;;  %v12500_v15 = vld [vmem:[%s12600_s29 + $0x1f0] sm:$0xff] }
 0x8fe   : > { %12118 = vmatmul.msk.bf16.gmra.mxu0 %vm1240_vm3, %v9344_v43  ;;  %v7671_v12 = vpop.f32.mrf.mxu2  ;;  %v8990_v48 = vpop.f32.mrf.mxu3  ;;  %v8451_v47 = vrot.slane %v8449_v26, 2  ;;  %v8454_v55 = vrot.slane %v8452_v16, 3  ;;  %v7192_v43 = vrot.slane %v15546_v38, 2 }
 0x8ff   : > { %v10294_v50 = vmax.f32 %v10158_v22, 0.0  ;;  %v7864_v9 = vadd.f32 %v7671_v12, %v6553_v25  ;;  %v6362_v40 = vpop.f32.mrf.mxu1 }
 0x900   : > { %v6554_v1 = vadd.f32 %v6362_v40, %v16233_v0  ;;  %v8455_v33 = vor.u32 %v8454_v55, %v8451_v47 }
 0x901   : > { %v10430_v30 = vpack.c.bf16 %v10294_v50, %v10294_v50  ;;  %v9183_v35 = vadd.f32 %v8990_v48, %v7864_v9  ;;  %v9347_v48 = vrot.slane %v15546_v38, 3 }
 0x903   : > { %10567 = vst.msk [vmem:[%s14349_s12 + $0x184] sm:$0xf] %vm10469_vm9, %v10430_v30  ;;  %v10019_v52 = vadd.f32 %v9826_v57, %v9183_v35  ;;  %v9828_v44 = vpop.f32.mrf.mxu0  ;;  %v5881_v57 = vrot.slane %v12500_v15, 2  ;;  %v7193_v35 = vsel %vm5761_vm6, %v7190_v46, %v7192_v43  ;;  %v9348_v0 = vsel %vm9227_vm8, %v9345_v42, %v9347_v48  ;;  %v16236_v46 = vld [vmem:[#allocation4_spill] sm:$0xff] }
 0x905   : > { %v10159_v32 = vadd.f32 %v15288_v37, %v10019_v52  ;;  %v5882_v30 = vsel %vm5761_vm6, %v5879_v13, %v5881_v57  ;;  %v8456_v52 = vsel %vm7908_vm7, %v8446_v10, %v8455_v33 }
 0x906   : > { %v7673_v63 = vpop.f32.mrf.mxu2  ;;  %v8992_v61 = vpop.f32.mrf.mxu3 }
 0x907   : > { %v10295_v7 = vmax.f32 %v10159_v32, 0.0  ;;  %v7865_v24 = vadd.f32 %v7673_v63, %v6554_v1  ;;  %v6365_v21 = vpop.f32.mrf.mxu1 }
 0x908   : > { %v6555_v49 = vadd.f32 %v6365_v21, %v16234_v39  ;;  %v16237_v39 = vld [vmem:[#allocation7_spill] sm:$0xff] }
 0x909   : > { %v10431_v60 = vpack.c.bf16 %v10295_v7, %v10295_v7  ;;  %v9184_v3 = vadd.f32 %v8992_v61, %v7865_v24 }
 0x90a   : > { %11644 = vmatmul.msk.bf16.gmra.mxu1 %vm1240_vm3, %v5880_v5 }
 0x90b   : > { %10568 = vst.msk [vmem:[%s14349_s12 + $0x188] sm:$0xf] %vm10469_vm9, %v10431_v60  ;;  %v10020_v45 = vadd.f32 %v9828_v44, %v9184_v3  ;;  %v9831_v59 = vpop.f32.mrf.mxu0  ;;  %11981 = vmatmul.msk.bf16.gmra.mxu2 %vm1240_vm3, %v7191_v19  ;;  %12050 = vmatmul.msk.bf16.gmra.mxu3 %vm1240_vm3, %v8447_v6  ;;  %v15570_v44 = vld [vmem:[%s12600_s29 + $0x208] sm:$0xff] }
 0x90c   : > { %v8458_v10 = vshrl.u32 %v15570_v44, 16  ;;  %v8461_v63 = vshll.u32 %v15570_v44, 16 }
 0x90d   : > { %v10160_v4 = vadd.f32 %v15288_v37, %v10020_v45  ;;  %v12501_v45 = vld [vmem:[%s12600_s29 + $0x1f8] sm:$0xff] }
 0x90e   : > { %12119 = vmatmul.msk.bf16.gmra.mxu0 %vm1240_vm3, %v9346_v23  ;;  %v7676_v51 = vpop.f32.mrf.mxu2  ;;  %v8995_v2 = vpop.f32.mrf.mxu3  ;;  %v8460_v60 = vrot.slane %v8458_v10, 2  ;;  %v8463_v3 = vrot.slane %v8461_v63, 3  ;;  %v7194_v23 = vrot.slane %v15570_v44, 2 }
 0x90f   : > { %v10296_v20 = vmax.f32 %v10160_v4, 0.0  ;;  %v7866_v54 = vadd.f32 %v7676_v51, %v6555_v49  ;;  %v6367_v41 = vpop.f32.mrf.mxu1 }
 0x910   : > { %v6556_v25 = vadd.f32 %v6367_v41, %v16235_v56  ;;  %v8464_v26 = vor.u32 %v8463_v3, %v8460_v60  ;;  %v16238_v56 = vld [vmem:[#allocation10_spill] sm:$0xff] }
 0x911   : > { %v10432_v17 = vpack.c.bf16 %v10296_v20, %v10296_v20  ;;  %v9185_v29 = vadd.f32 %v8995_v2, %v7866_v54  ;;  %v9349_v2 = vrot.slane %v15570_v44, 3 }
 0x913   : > { %10569 = vst.msk [vmem:[%s14349_s12 + $0x18c] sm:$0xf] %vm10469_vm9, %v10432_v17  ;;  %v10021_v58 = vadd.f32 %v9831_v59, %v9185_v29  ;;  %v9833_v28 = vpop.f32.mrf.mxu0  ;;  %v5883_v59 = vrot.slane %v12501_v45, 2  ;;  %v7195_v29 = vsel %vm5761_vm6, %v7192_v43, %v7194_v23 }
 0x915   : > { %v10161_v22 = vadd.f32 %v15288_v37, %v10021_v58  ;;  %v5884_v17 = vsel %vm5761_vm6, %v5881_v57, %v5883_v59  ;;  %v8465_v58 = vsel %vm7908_vm7, %v8455_v33, %v8464_v26  ;;  %v15605_v57 = vld [vmem:[%s15854_s2] ss:$0 sm:$0xff] }
 0x916   : > { %v7678_v11 = vpop.f32.mrf.mxu2  ;;  %v8997_v9 = vpop.f32.mrf.mxu3 }
 0x917   : > { %v10297_v12 = vmax.f32 %v10161_v22, 0.0  ;;  %v7867_v50 = vadd.f32 %v7678_v11, %v6556_v25  ;;  %v6370_v40 = vpop.f32.mrf.mxu1  ;;  %v9350_v22 = vsel %vm9227_vm8, %v9347_v48, %v9349_v2 }
 0x918   : > { %v6557_v1 = vadd.f32 %v6370_v40, %v16236_v46  ;;  %v16239_v46 = vld [vmem:[#allocation13_spill] sm:$0xff] }
 0x919   : > { %v10433_v31 = vpack.c.bf16 %v10297_v12, %v10297_v12  ;;  %v9186_v34 = vadd.f32 %v8997_v9, %v7867_v50 }
 0x91a   : > { %11645 = vmatmul.msk.bf16.gmra.mxu1 %vm1240_vm3, %v5882_v30 }
 0x91b   : > { %10570 = vst.msk [vmem:[%s14349_s12 + $0x190] sm:$0xf] %vm10469_vm9, %v10433_v31  ;;  %v10022_v8 = vadd.f32 %v9833_v28, %v9186_v34  ;;  %v9836_v32 = vpop.f32.mrf.mxu0  ;;  %11982 = vmatmul.msk.bf16.gmra.mxu2 %vm1240_vm3, %v7193_v35  ;;  %12051 = vmatmul.msk.bf16.gmra.mxu3 %vm1240_vm3, %v8456_v52  ;;  %v15594_v28 = vld [vmem:[%s12600_s29 + $0x210] sm:$0xff] }
 0x91c   : > { %v8467_v33 = vshrl.u32 %v15594_v28, 16  ;;  %v8470_v11 = vshll.u32 %v15594_v28, 16 }
 0x91d   : > { %v10162_v13 = vadd.f32 %v15288_v37, %v10022_v8  ;;  %v12503_v8 = vld [vmem:[%s12600_s29 + $0x200] sm:$0xff] }
 0x91e   : > { %12120 = vmatmul.msk.bf16.gmra.mxu0 %vm1240_vm3, %v9348_v0  ;;  %v7681_v7 = vpop.f32.mrf.mxu2  ;;  %v9000_v21 = vpop.f32.mrf.mxu3  ;;  %v8469_v31 = vrot.slane %v8467_v33, 2  ;;  %v8472_v34 = vrot.slane %v8470_v11, 3  ;;  %v7196_v0 = vrot.slane %v15594_v28, 2 }
 0x91f   : > { %v10298_v24 = vmax.f32 %v10162_v13, 0.0  ;;  %v7868_v61 = vadd.f32 %v7681_v7, %v6557_v1  ;;  %v6372_v5 = vpop.f32.mrf.mxu1 }
 0x920   : > { %v6558_v49 = vadd.f32 %v6372_v5, %v16237_v39  ;;  %v8473_v10 = vor.u32 %v8472_v34, %v8469_v31 }
 0x921   : > { %v10434_v42 = vpack.c.bf16 %v10298_v24, %v10298_v24  ;;  %v9187_v19 = vadd.f32 %v9000_v21, %v7868_v61  ;;  %v9351_v21 = vrot.slane %v15594_v28, 3 }
 0x923   : > { %10571 = vst.msk [vmem:[%s14349_s12 + $0x194] sm:$0xf] %vm10469_vm9, %v10434_v42  ;;  %v10023_v6 = vadd.f32 %v9836_v32, %v9187_v19  ;;  %v9838_v38 = vpop.f32.mrf.mxu0  ;;  %v5885_v32 = vrot.slane %v12503_v8, 2  ;;  %v7197_v19 = vsel %vm5761_vm6, %v7194_v23, %v7196_v0  ;;  %v9352_v39 = vsel %vm9227_vm8, %v9349_v2, %v9351_v21  ;;  %v16240_v23 = vld [vmem:[#allocation16_spill] sm:$0xff] }
 0x925   : > { %v10163_v4 = vadd.f32 %v15288_v37, %v10023_v6  ;;  %v5886_v42 = vsel %vm5761_vm6, %v5883_v59, %v5885_v32  ;;  %v8474_v6 = vsel %vm7908_vm7, %v8464_v26, %v8473_v10 }
 0x926   : > { %v7683_v16 = vpop.f32.mrf.mxu2  ;;  %v9002_v54 = vpop.f32.mrf.mxu3 }
 0x927   : > { %v10299_v51 = vmax.f32 %v10163_v4, 0.0  ;;  %v7869_v20 = vadd.f32 %v7683_v16, %v6558_v49  ;;  %v6375_v41 = vpop.f32.mrf.mxu1 }
 0x928   : > { %v6559_v25 = vadd.f32 %v6375_v41, %v16238_v56  ;;  %v16241_v56 = vld [vmem:[#allocation19_spill] sm:$0xff] }
 0x929   : > { %v10435_v47 = vpack.c.bf16 %v10299_v51, %v10299_v51  ;;  %v9188_v55 = vadd.f32 %v9002_v54, %v7869_v20 }
 0x92a   : > { %11646 = vmatmul.msk.bf16.gmra.mxu1 %vm1240_vm3, %v5884_v17 }
 0x92b   : > { %10572 = vst.msk [vmem:[%s14349_s12 + $0x198] sm:$0xf] %vm10469_vm9, %v10435_v47  ;;  %v10024_v37 = vadd.f32 %v9838_v38, %v9188_v55  ;;  %v9841_v15 = vpop.f32.mrf.mxu0  ;;  %11983 = vmatmul.msk.bf16.gmra.mxu2 %vm1240_vm3, %v7195_v29  ;;  %12052 = vmatmul.msk.bf16.gmra.mxu3 %vm1240_vm3, %v8465_v58  ;;  %v15623_v38 = vld [vmem:[%s12600_s29 + $0x218] sm:$0xff] }
 0x92c   : > { %v8476_v26 = vshrl.u32 %v15623_v38, 16  ;;  %v8479_v16 = vshll.u32 %v15623_v38, 16 }
 0x92d   : > { %v10164_v43 = vadd.f32 %v15605_v57, %v10024_v37  ;;  %v12504_v37 = vld [vmem:[%s12600_s29 + $0x208] sm:$0xff] }
 0x92e   : > { %12121 = vmatmul.msk.bf16.gmra.mxu0 %vm1240_vm3, %v9350_v22  ;;  %v7686_v12 = vpop.f32.mrf.mxu2  ;;  %v9005_v48 = vpop.f32.mrf.mxu3  ;;  %v8478_v47 = vrot.slane %v8476_v26, 2  ;;  %v8481_v55 = vrot.slane %v8479_v16, 3  ;;  %v7198_v22 = vrot.slane %v15623_v38, 2 }
 0x92f   : > { %v10300_v50 = vmax.f32 %v10164_v43, 0.0  ;;  %v7870_v9 = vadd.f32 %v7686_v12, %v6559_v25  ;;  %v6377_v40 = vpop.f32.mrf.mxu1 }
 0x930   : > { %v6560_v1 = vadd.f32 %v6377_v40, %v16239_v46  ;;  %v8482_v33 = vor.u32 %v8481_v55, %v8478_v47 }
 0x931   : > { %v10436_v30 = vpack.c.bf16 %v10300_v50, %v10300_v50  ;;  %v9189_v35 = vadd.f32 %v9005_v48, %v7870_v9  ;;  %v9353_v48 = vrot.slane %v15623_v38, 3 }
 0x933   : > { %10573 = vst.msk [vmem:[%s14349_s12 + $0x19c] sm:$0xf] %vm10469_vm9, %v10436_v30  ;;  %v10025_v52 = vadd.f32 %v9841_v15, %v9189_v35  ;;  %v9843_v44 = vpop.f32.mrf.mxu0  ;;  %v5887_v15 = vrot.slane %v12504_v37, 2  ;;  %v7199_v35 = vsel %vm5761_vm6, %v7196_v0, %v7198_v22  ;;  %v9354_v46 = vsel %vm9227_vm8, %v9351_v21, %v9353_v48  ;;  %v16242_v0 = vld [vmem:[#allocation22_spill] sm:$0xff] }
 0x935   : > { %v10165_v13 = vadd.f32 %v15605_v57, %v10025_v52  ;;  %v5888_v30 = vsel %vm5761_vm6, %v5885_v32, %v5887_v15  ;;  %v8483_v52 = vsel %vm7908_vm7, %v8473_v10, %v8482_v33 }
 0x936   : > { %v7688_v63 = vpop.f32.mrf.mxu2  ;;  %v9007_v61 = vpop.f32.mrf.mxu3 }
 0x937   : > { %v10301_v7 = vmax.f32 %v10165_v13, 0.0  ;;  %v7871_v24 = vadd.f32 %v7688_v63, %v6560_v1  ;;  %v6380_v5 = vpop.f32.mrf.mxu1 }
 0x938   : > { %v6561_v49 = vadd.f32 %v6380_v5, %v16240_v23  ;;  %v16243_v23 = vld [vmem:[#allocation25_spill] sm:$0xff] }
 0x939   : > { %v10437_v60 = vpack.c.bf16 %v10301_v7, %v10301_v7  ;;  %v9190_v3 = vadd.f32 %v9007_v61, %v7871_v24 }
 0x93a   : > { %11647 = vmatmul.msk.bf16.gmra.mxu1 %vm1240_vm3, %v5886_v42 }
 0x93b   : > { %10574 = vst.msk [vmem:[%s14349_s12 + $0x1a0] sm:$0xf] %vm10469_vm9, %v10437_v60  ;;  %v10026_v45 = vadd.f32 %v9843_v44, %v9190_v3  ;;  %v9846_v4 = vpop.f32.mrf.mxu0  ;;  %11984 = vmatmul.msk.bf16.gmra.mxu2 %vm1240_vm3, %v7197_v19  ;;  %12053 = vmatmul.msk.bf16.gmra.mxu3 %vm1240_vm3, %v8474_v6  ;;  %v15647_v44 = vld [vmem:[%s12600_s29 + $0x220] sm:$0xff] }
 0x93c   : > { %v8485_v10 = vshrl.u32 %v15647_v44, 16  ;;  %v8488_v63 = vshll.u32 %v15647_v44, 16 }
 0x93d   : > { %v10166_v59 = vadd.f32 %v15605_v57, %v10026_v45  ;;  %v12505_v45 = vld [vmem:[%s12600_s29 + $0x210] sm:$0xff] }
 0x93e   : > { %12122 = vmatmul.msk.bf16.gmra.mxu0 %vm1240_vm3, %v9352_v39  ;;  %v7691_v51 = vpop.f32.mrf.mxu2  ;;  %v9010_v41 = vpop.f32.mrf.mxu3  ;;  %v8487_v60 = vrot.slane %v8485_v10, 2  ;;  %v8490_v3 = vrot.slane %v8488_v63, 3  ;;  %v7200_v39 = vrot.slane %v15647_v44, 2 }
 0x93f   : > { %v10302_v20 = vmax.f32 %v10166_v59, 0.0  ;;  %v7872_v54 = vadd.f32 %v7691_v51, %v6561_v49  ;;  %v6382_v17 = vpop.f32.mrf.mxu1 }
 0x940   : > { %v6562_v25 = vadd.f32 %v6382_v17, %v16241_v56  ;;  %v8491_v26 = vor.u32 %v8490_v3, %v8487_v60 }
 0x941   : > { %v10438_v2 = vpack.c.bf16 %v10302_v20, %v10302_v20  ;;  %v9191_v29 = vadd.f32 %v9010_v41, %v7872_v54  ;;  %v9355_v41 = vrot.slane %v15647_v44, 3 }
 0x943   : > { %10575 = vst.msk [vmem:[%s14349_s12 + $0x1a4] sm:$0xf] %vm10469_vm9, %v10438_v2  ;;  %v10027_v58 = vadd.f32 %v9846_v4, %v9191_v29  ;;  %v9848_v28 = vpop.f32.mrf.mxu0  ;;  %v5889_v4 = vrot.slane %v12505_v45, 2  ;;  %v7201_v29 = vsel %vm5761_vm6, %v7198_v22, %v7200_v39  ;;  %v9356_v56 = vsel %vm9227_vm8, %v9353_v48, %v9355_v41  ;;  %v16244_v22 = vld [vmem:[#allocation28_spill] sm:$0xff] }
 0x945   : > { %v10167_v43 = vadd.f32 %v15605_v57, %v10027_v58  ;;  %v5890_v2 = vsel %vm5761_vm6, %v5887_v15, %v5889_v4  ;;  %v8492_v58 = vsel %vm7908_vm7, %v8482_v33, %v8491_v26 }
 0x946   : > { %v7693_v11 = vpop.f32.mrf.mxu2  ;;  %v9012_v9 = vpop.f32.mrf.mxu3 }
 0x947   : > { %v10303_v12 = vmax.f32 %v10167_v43, 0.0  ;;  %v7873_v50 = vadd.f32 %v7693_v11, %v6562_v25  ;;  %v6385_v40 = vpop.f32.mrf.mxu1 }
 0x948   : > { %v6563_v1 = vadd.f32 %v6385_v40, %v16242_v0  ;;  %v16245_v0 = vld [vmem:[#allocation31_spill] sm:$0xff] }
 0x949   : > { %v10439_v31 = vpack.c.bf16 %v10303_v12, %v10303_v12  ;;  %v9192_v34 = vadd.f32 %v9012_v9, %v7873_v50 }
 0x94a   : > { %11648 = vmatmul.msk.bf16.gmra.mxu1 %vm1240_vm3, %v5888_v30 }
 0x94b   : > { %10576 = vst.msk [vmem:[%s14349_s12 + $0x1a8] sm:$0xf] %vm10469_vm9, %v10439_v31  ;;  %v10028_v8 = vadd.f32 %v9848_v28, %v9192_v34  ;;  %v9851_v13 = vpop.f32.mrf.mxu0  ;;  %11985 = vmatmul.msk.bf16.gmra.mxu2 %vm1240_vm3, %v7199_v35  ;;  %12054 = vmatmul.msk.bf16.gmra.mxu3 %vm1240_vm3, %v8483_v52  ;;  %v15671_v28 = vld [vmem:[%s12600_s29 + $0x228] sm:$0xff] }
 0x94c   : > { %v8494_v33 = vshrl.u32 %v15671_v28, 16  ;;  %v8497_v11 = vshll.u32 %v15671_v28, 16 }
 0x94d   : > { %v10168_v32 = vadd.f32 %v15605_v57, %v10028_v8  ;;  %v12506_v8 = vld [vmem:[%s12600_s29 + $0x218] sm:$0xff] }
 0x94e   : > { %12123 = vmatmul.msk.bf16.gmra.mxu0 %vm1240_vm3, %v9354_v46  ;;  %v7696_v7 = vpop.f32.mrf.mxu2  ;;  %v9015_v5 = vpop.f32.mrf.mxu3  ;;  %v8496_v31 = vrot.slane %v8494_v33, 2  ;;  %v8499_v34 = vrot.slane %v8497_v11, 3  ;;  %v7202_v46 = vrot.slane %v15671_v28, 2 }
 0x94f   : > { %v10304_v24 = vmax.f32 %v10168_v32, 0.0  ;;  %v7874_v61 = vadd.f32 %v7696_v7, %v6563_v1  ;;  %v6387_v42 = vpop.f32.mrf.mxu1 }
 0x950   : > { %v6564_v49 = vadd.f32 %v6387_v42, %v16243_v23  ;;  %v8500_v10 = vor.u32 %v8499_v34, %v8496_v31 }
 0x951   : > { %v10440_v21 = vpack.c.bf16 %v10304_v24, %v10304_v24  ;;  %v9193_v19 = vadd.f32 %v9015_v5, %v7874_v61  ;;  %v9357_v5 = vrot.slane %v15671_v28, 3 }
 0x953   : > { %10577 = vst.msk [vmem:[%s14349_s12 + $0x1ac] sm:$0xf] %vm10469_vm9, %v10440_v21  ;;  %v10029_v6 = vadd.f32 %v9851_v13, %v9193_v19  ;;  %v9853_v38 = vpop.f32.mrf.mxu0  ;;  %v5891_v13 = vrot.slane %v12506_v8, 2  ;;  %v7203_v19 = vsel %vm5761_vm6, %v7200_v39, %v7202_v46  ;;  %v9358_v23 = vsel %vm9227_vm8, %v9355_v41, %v9357_v5  ;;  %v16246_v39 = vld [vmem:[#allocation34_spill] sm:$0xff] }
 0x955   : > { %v10169_v59 = vadd.f32 %v15605_v57, %v10029_v6  ;;  %v5892_v21 = vsel %vm5761_vm6, %v5889_v4, %v5891_v13  ;;  %v8501_v6 = vsel %vm7908_vm7, %v8491_v26, %v8500_v10 }
 0x956   : > { %v7698_v16 = vpop.f32.mrf.mxu2  ;;  %v9017_v54 = vpop.f32.mrf.mxu3 }
 0x957   : > { %v10305_v51 = vmax.f32 %v10169_v59, 0.0  ;;  %v7875_v20 = vadd.f32 %v7698_v16, %v6564_v49  ;;  %v6390_v17 = vpop.f32.mrf.mxu1 }
 0x958   : > { %v6565_v25 = vadd.f32 %v6390_v17, %v16244_v22  ;;  %v16247_v22 = vld [vmem:[#allocation37_spill] sm:$0xff] }
 0x959   : > { %v10441_v47 = vpack.c.bf16 %v10305_v51, %v10305_v51  ;;  %v9194_v55 = vadd.f32 %v9017_v54, %v7875_v20 }
 0x95a   : > { %11649 = vmatmul.msk.bf16.gmra.mxu1 %vm1240_vm3, %v5890_v2 }
 0x95b   : > { %10578 = vst.msk [vmem:[%s14349_s12 + $0x1b0] sm:$0xf] %vm10469_vm9, %v10441_v47  ;;  %v10030_v37 = vadd.f32 %v9853_v38, %v9194_v55  ;;  %v9856_v43 = vpop.f32.mrf.mxu0  ;;  %11986 = vmatmul.msk.bf16.gmra.mxu2 %vm1240_vm3, %v7201_v29  ;;  %12055 = vmatmul.msk.bf16.gmra.mxu3 %vm1240_vm3, %v8492_v58  ;;  %v15695_v38 = vld [vmem:[%s12600_s29 + $0x230] sm:$0xff] }
 0x95c   : > { %v8503_v26 = vshrl.u32 %v15695_v38, 16  ;;  %v8506_v16 = vshll.u32 %v15695_v38, 16 }
 0x95d   : > { %v10170_v15 = vadd.f32 %v15605_v57, %v10030_v37  ;;  %v12507_v37 = vld [vmem:[%s12600_s29 + $0x220] sm:$0xff] }
 0x95e   : > { %12124 = vmatmul.msk.bf16.gmra.mxu0 %vm1240_vm3, %v9356_v56  ;;  %v7701_v12 = vpop.f32.mrf.mxu2  ;;  %v9020_v40 = vpop.f32.mrf.mxu3  ;;  %v8505_v47 = vrot.slane %v8503_v26, 2  ;;  %v8508_v55 = vrot.slane %v8506_v16, 3  ;;  %v7204_v56 = vrot.slane %v15695_v38, 2 }
 0x95f   : > { %v10306_v50 = vmax.f32 %v10170_v15, 0.0  ;;  %v7876_v9 = vadd.f32 %v7701_v12, %v6565_v25  ;;  %v6392_v30 = vpop.f32.mrf.mxu1 }
 0x960   : > { %v6566_v1 = vadd.f32 %v6392_v30, %v16245_v0  ;;  %v8509_v33 = vor.u32 %v8508_v55, %v8505_v47 }
 0x961   : > { %v10442_v48 = vpack.c.bf16 %v10306_v50, %v10306_v50  ;;  %v9195_v35 = vadd.f32 %v9020_v40, %v7876_v9  ;;  %v9359_v40 = vrot.slane %v15695_v38, 3 }
 0x963   : > { %10579 = vst.msk [vmem:[%s14349_s12 + $0x1b4] sm:$0xf] %vm10469_vm9, %v10442_v48  ;;  %v10031_v52 = vadd.f32 %v9856_v43, %v9195_v35  ;;  %v9858_v44 = vpop.f32.mrf.mxu0  ;;  %v5893_v43 = vrot.slane %v12507_v37, 2  ;;  %v7205_v35 = vsel %vm5761_vm6, %v7202_v46, %v7204_v56  ;;  %v9360_v0 = vsel %vm9227_vm8, %v9357_v5, %v9359_v40  ;;  %v16248_v46 = vld [vmem:[#allocation40_spill] sm:$0xff] }
 0x965   : > { %v10171_v32 = vadd.f32 %v15605_v57, %v10031_v52  ;;  %v5894_v48 = vsel %vm5761_vm6, %v5891_v13, %v5893_v43  ;;  %v8510_v52 = vsel %vm7908_vm7, %v8500_v10, %v8509_v33 }
 0x966   : > { %v7703_v63 = vpop.f32.mrf.mxu2  ;;  %v9022_v61 = vpop.f32.mrf.mxu3 }
 0x967   : > { %v10307_v7 = vmax.f32 %v10171_v32, 0.0  ;;  %v7877_v24 = vadd.f32 %v7703_v63, %v6566_v1  ;;  %v6395_v42 = vpop.f32.mrf.mxu1 }
 0x968   : > { %v6567_v49 = vadd.f32 %v6395_v42, %v16246_v39 }
 0x969   : > { %v10443_v60 = vpack.c.bf16 %v10307_v7, %v10307_v7  ;;  %v9196_v3 = vadd.f32 %v9022_v61, %v7877_v24 }
 0x96a   : > { %11650 = vmatmul.msk.bf16.gmra.mxu1 %vm1240_vm3, %v5892_v21 }
 0x96b   : > { %10580 = vst.msk [vmem:[%s14349_s12 + $0x1b8] sm:$0xf] %vm10469_vm9, %v10443_v60  ;;  %v10032_v45 = vadd.f32 %v9858_v44, %v9196_v3  ;;  %v9861_v59 = vpop.f32.mrf.mxu0  ;;  %11987 = vmatmul.msk.bf16.gmra.mxu2 %vm1240_vm3, %v7203_v19  ;;  %12056 = vmatmul.msk.bf16.gmra.mxu3 %vm1240_vm3, %v8501_v6  ;;  %v15719_v44 = vld [vmem:[%s12600_s29 + $0x238] sm:$0xff]  ;;  %v7902_v6 = vld [vmem:[%s12600_s29 + $0x240] sm:$0x7] }
 0x96c   : > { %v8512_v10 = vshrl.u32 %v15719_v44, 16  ;;  %v8515_v63 = vshll.u32 %v15719_v44, 16 }
 0x96d   : > { %v10172_v4 = vadd.f32 %v15605_v57, %v10032_v45 }
 0x96e   : > { %12125 = vmatmul.msk.bf16.gmra.mxu0 %vm1240_vm3, %v9358_v23  ;;  %v7706_v51 = vpop.f32.mrf.mxu2  ;;  %v9025_v17 = vpop.f32.mrf.mxu3  ;;  %v8514_v60 = vrot.slane %v8512_v10, 2  ;;  %v8517_v3 = vrot.slane %v8515_v63, 3 }
 0x96f   : > { %v10308_v20 = vmax.f32 %v10172_v4, 0.0  ;;  %v7878_v54 = vadd.f32 %v7706_v51, %v6567_v49  ;;  %v6397_v2 = vpop.f32.mrf.mxu1  ;;  %v7206_v4 = vrot.slane %v15719_v44, 2  ;;  %v16249_v49 = vld [vmem:[#allocation107_spill] sm:$0xff]  ;;  %v7906_v51 = vunpack.c.l.b16 %v7902_v6 }
 0x970   : > { %v6568_v25 = vadd.f32 %v6397_v2, %v16247_v22  ;;  %v8518_v16 = vor.u32 %v8517_v3, %v8514_v60 }
 0x971   : > { %v10444_v41 = vpack.c.bf16 %v10308_v20, %v10308_v20  ;;  %v9197_v29 = vadd.f32 %v9025_v17, %v7878_v54  ;;  %v7207_v55 = vsel %vm5761_vm6, %v7204_v56, %v7206_v4  ;;  %v7907_v22 = vpack.c.b16 %v7906_v51, %v7906_v51 }
 0x972   : > { %v8519_v37 = vsel %vm7908_vm7, %v8509_v33, %v8518_v16 }
 0x973   : > { %10581 = vst.msk [vmem:[%s14349_s12 + $0x1bc] sm:$0xf] %vm10469_vm9, %v10444_v41  ;;  %v10033_v58 = vadd.f32 %v9861_v59, %v9197_v29  ;;  %v9863_v28 = vpop.f32.mrf.mxu0  ;;  %v12508_v59 = vld [vmem:[%s12600_s29 + $0x228] sm:$0xff]  ;;  %v9361_v41 = vrot.slane %v15719_v44, 3  ;;  %v9363_v3 = vrot.slane %v7907_v22, 3 }
 0x974   : > { %v5895_v23 = vrot.slane %v12508_v59, 2 }
 0x975   : > { %v10173_v15 = vadd.f32 %v15605_v57, %v10033_v58 }
 0x976   : > { %v7708_v11 = vpop.f32.mrf.mxu2  ;;  %v9027_v9 = vpop.f32.mrf.mxu3  ;;  %v5896_v47 = vsel %vm5761_vm6, %v5893_v43, %v5895_v23 }
 0x977   : > { %v10309_v12 = vmax.f32 %v10173_v15, 0.0  ;;  %v7879_v50 = vadd.f32 %v7708_v11, %v6568_v25  ;;  %v6400_v30 = vpop.f32.mrf.mxu1  ;;  %v6727_v15 = vld [vmem:[%s12600_s29 + $0x240] sm:$0x3] }
 0x978   : > { %v6569_v1 = vadd.f32 %v6400_v30, %v16248_v46  ;;  %v7003_v43 = vunpack.c.l.b16 %v6727_v15  ;;  %v8524_v30 = vshll.u32 %v7907_v22, 16 }
 0x979   : > { %v10445_v31 = vpack.c.bf16 %v10309_v12, %v10309_v12  ;;  %v9198_v34 = vadd.f32 %v9027_v9, %v7879_v50  ;;  %v9362_v12 = vsel %vm9227_vm8, %v9359_v40, %v9361_v41  ;;  %v16250_v50 = vld [vmem:[#allocation47_spill] sm:$0xff]  ;;  %v8521_v9 = vshrl.u32 %v7907_v22, 16 }
 0x97a   : > { %11651 = vmatmul.msk.bf16.gmra.mxu1 %vm1240_vm3, %v5894_v48  ;;  %v7072_v44 = vpack.c.b16 %v7003_v43, %v7003_v43 }
 0x97b   : > { %10582 = vst.msk [vmem:[%s14349_s12 + $0x1c0] sm:$0xf] %vm10469_vm9, %v10445_v31  ;;  %v10034_v8 = vadd.f32 %v9863_v28, %v9198_v34  ;;  %v9866_v32 = vpop.f32.mrf.mxu0  ;;  %11988 = vmatmul.msk.bf16.gmra.mxu2 %vm1240_vm3, %v7205_v35  ;;  %12057 = vmatmul.msk.bf16.gmra.mxu3 %vm1240_vm3, %v8510_v52 }
 0x97c   : > { %v7208_v63 = vrot.slane %v7072_v44, 2 }
 0x97d   : > { %v10174_v13 = vadd.f32 %v15605_v57, %v10034_v8 }
 0x97e   : > { %12126 = vmatmul.msk.bf16.gmra.mxu0 %vm1240_vm3, %v9360_v0  ;;  %v7711_v7 = vpop.f32.mrf.mxu2  ;;  %v9030_v42 = vpop.f32.mrf.mxu3  ;;  %v8526_v0 = vrot.slane %v8524_v30, 3 }
 0x97f   : > { %v10310_v24 = vmax.f32 %v10174_v13, 0.0  ;;  %v7880_v61 = vadd.f32 %v7711_v7, %v6569_v1  ;;  %v6402_v5 = vpop.f32.mrf.mxu1  ;;  %v16251_v1 = vld [vmem:[#allocation43_spill] sm:$0xff] }
 0x980   : > { %v6570_v26 = vadd.f32 %v6402_v5, %v16249_v49  ;;  %v5897_v10 = vrot.slane %v16251_v1, 2 }
 0x981   : > { %v10446_v21 = vpack.c.bf16 %v10310_v24, %v10310_v24  ;;  %v9199_v19 = vadd.f32 %v9030_v42, %v7880_v61  ;;  %v16252_v24 = vld [vmem:[#allocation45_spill] sm:$0xff] }
 0x983   : > { %10583 = vst.msk [vmem:[%s14349_s12 + $0x1c4] sm:$0xf] %vm10469_vm9, %v10446_v21  ;;  %v10035_v38 = vadd.f32 %v9866_v32, %v9199_v19  ;;  %v9868_v45 = vpop.f32.mrf.mxu0  ;;  %v8523_v32 = vrot.slane %v8521_v9, 2 }
 0x985   : > { %v10175_v39 = vadd.f32 %v15605_v57, %v10035_v38  ;;  %v8527_v42 = vor.u32 %v8526_v0, %v8523_v32  ;;  %v5898_v38 = vsel %vm5761_vm6, %v5895_v23, %v5897_v10 }
 0x986   : > { %v7713_v20 = vpop.f32.mrf.mxu2  ;;  %v9032_v2 = vpop.f32.mrf.mxu3 }
 0x987   : > { %v10311_v54 = vmax.f32 %v10175_v39, 0.0  ;;  %v7881_v17 = vadd.f32 %v7713_v20, %v6570_v26  ;;  %v6405_v29 = vpop.f32.mrf.mxu1  ;;  %v8528_v49 = vsel %vm7908_vm7, %v8518_v16, %v8527_v42  ;;  %v9364_v20 = vsel %vm9227_vm8, %v9361_v41, %v9363_v3  ;;  %v16253_v42 = vld [vmem:[#allocation51_spill] sm:$0xff] }
 0x988   : > { %v6571_v33 = vadd.f32 %v6405_v29, %v16250_v50 }
 0x989   : > { %v10447_v58 = vpack.c.bf16 %v10311_v54, %v10311_v54  ;;  %v9200_v28 = vadd.f32 %v9032_v2, %v7881_v17 }
 0x98a   : > { %11652 = vmatmul.msk.bf16.gmra.mxu1 %vm1240_vm3, %v5896_v47 }
 0x98b   : > { %10584 = vst.msk [vmem:[%s14349_s12 + $0x1c8] sm:$0xf] %vm10469_vm9, %v10447_v58  ;;  %v10036_v25 = vadd.f32 %v9868_v45, %v9200_v28  ;;  %v9871_v11 = vpop.f32.mrf.mxu0  ;;  %11989 = vmatmul.msk.bf16.gmra.mxu2 %vm1240_vm3, %v7207_v55  ;;  %12058 = vmatmul.msk.bf16.gmra.mxu3 %vm1240_vm3, %v8519_v37  ;;  %v7209_v45 = vsel %vm5761_vm6, %v7206_v4, %v7208_v63 }
 0x98d   : > { %v10176_v56 = vadd.f32 %v15605_v57, %v10036_v25 }
 0x98e   : > { %12127 = vmatmul.msk.bf16.gmra.mxu0 %vm1240_vm3, %v9362_v12  ;;  %v7716_v48 = vpop.f32.mrf.mxu2  ;;  %v9035_v34 = vpop.f32.mrf.mxu3 }
 0x98f   : > { %v10312_v35 = vmax.f32 %v10176_v56, 0.0  ;;  %v7882_v31 = vadd.f32 %v7716_v48, %v6571_v33  ;;  %v6407_v52 = vpop.f32.mrf.mxu1 }
 0x990   : > { %v6572_v61 = vadd.f32 %v6407_v52, %v16252_v24 }
 0x991   : > { %v10448_v8 = vpack.c.bf16 %v10312_v35, %v10312_v35  ;;  %v9201_v40 = vadd.f32 %v9035_v34, %v7882_v31 }
 0x993   : > { %10585 = vst.msk [vmem:[%s14349_s12 + $0x1cc] sm:$0xf] %vm10469_vm9, %v10448_v8  ;;  %v10037_v13 = vadd.f32 %v9871_v11, %v9201_v40  ;;  %v9873_v46 = vpop.f32.mrf.mxu0 }
 0x995   : > { %v10177_v7 = vadd.f32 %v15605_v57, %v10037_v13 }
 0x996   : > { %v7718_v5 = vpop.f32.mrf.mxu2  ;;  %v9037_v60 = vpop.f32.mrf.mxu3 }
 0x997   : > { %v10313_v21 = vmax.f32 %v10177_v7, 0.0  ;;  %v7883_v19 = vadd.f32 %v7718_v5, %v6572_v61  ;;  %v6410_v6 = vpop.f32.mrf.mxu1 }
 0x998   : > { %v6573_v4 = vadd.f32 %v6410_v6, %v14137_v18 }
 0x999   : > { %v10449_v59 = vpack.c.bf16 %v10313_v21, %v10313_v21  ;;  %v9202_v39 = vadd.f32 %v9037_v60, %v7883_v19 }
 0x99a   : > { %11653 = vmatmul.msk.bf16.gmra.mxu1 %vm1240_vm3, %v5898_v38 }
 0x99b   : > { %10586 = vst.msk [vmem:[%s14349_s12 + $0x1d0] sm:$0xf] %vm10469_vm9, %v10449_v59  ;;  %v10038_v26 = vadd.f32 %v9873_v46, %v9202_v39  ;;  %v9876_v51 = vpop.f32.mrf.mxu0  ;;  %11990 = vmatmul.msk.bf16.gmra.mxu2 %vm1240_vm3, %v7209_v45  ;;  %12059 = vmatmul.msk.bf16.gmra.mxu3 %vm1240_vm3, %v8528_v49  ;;  %v16254_v49 = vld [vmem:[#allocation54_spill] sm:$0xff] }
 0x99d   : > { %v10178_v23 = vadd.f32 %v15605_v57, %v10038_v26 }
 0x99e   : > { %12128 = vmatmul.msk.bf16.gmra.mxu0 %vm1240_vm3, %v9364_v20  ;;  %v7721_v16 = vpop.f32.mrf.mxu2  ;;  %v9040_v2 = vpop.f32.mrf.mxu3 }
 0x99f   : > { %v10314_v54 = vmax.f32 %v10178_v23, 0.0  ;;  %v7884_v17 = vadd.f32 %v7721_v16, %v6573_v4  ;;  %v6412_v29 = vpop.f32.mrf.mxu1 }
 0x9a0   : > { %v6574_v37 = vadd.f32 %v6412_v29, %v14152_v27 }
 0x9a1   : > { %v10450_v47 = vpack.c.bf16 %v10314_v54, %v10314_v54  ;;  %v9203_v55 = vadd.f32 %v9040_v2, %v7884_v17 }
 0x9a3   : > { %10587 = vst.msk [vmem:[%s14349_s12 + $0x1d4] sm:$0xf] %vm10469_vm9, %v10450_v47  ;;  %v10039_v58 = vadd.f32 %v9876_v51, %v9203_v55  ;;  %v9878_v41 = vpop.f32.mrf.mxu0  ;;  %v16255_v55 = vld [vmem:[#allocation49_spill] sm:$0xff] }
 0x9a5   : > { %v10179_v28 = vadd.f32 %v15605_v57, %v10039_v58 }
 0x9a6   : > { %v7723_v15 = vpop.f32.mrf.mxu2  ;;  %v9042_v25 = vpop.f32.mrf.mxu3 }
 0x9a7   : > { %v10315_v18 = vmax.f32 %v10179_v28, 0.0  ;;  %v7885_v22 = vadd.f32 %v7723_v15, %v6574_v37  ;;  %v6415_v11 = vpop.f32.mrf.mxu1 }
 0x9a8   : > { %v6575_v9 = vadd.f32 %v6415_v11, %v14159_v53 }
 0x9a9   : > { %v10451_v12 = vpack.c.bf16 %v10315_v18, %v10315_v18  ;;  %v9204_v43 = vadd.f32 %v9042_v25, %v7885_v22 }
 0x9ab   : > { %10588 = vst.msk [vmem:[%s14349_s12 + $0x1d8] sm:$0xf] %vm10469_vm9, %v10451_v12  ;;  %v10040_v56 = vadd.f32 %v9878_v41, %v9204_v43  ;;  %v9881_v50 = vpop.f32.mrf.mxu0 }
 0x9ad   : > { %v10180_v33 = vadd.f32 %v15605_v57, %v10040_v56  ;;  %v16256_v56 = vld [vmem:[#allocation57_spill] sm:$0xff] }
 0x9ae   : > { %v7726_v30 = vpop.f32.mrf.mxu2  ;;  %v9045_v27 = vpop.f32.mrf.mxu3 }
 0x9af   : > { %v10316_v48 = vmax.f32 %v10180_v33, 0.0  ;;  %v7886_v35 = vadd.f32 %v7726_v30, %v6575_v9  ;;  %v6417_v31 = vpop.f32.mrf.mxu1 }
 0x9b0   : > { %v6576_v32 = vadd.f32 %v6417_v31, %v14174_v14 }
 0x9b1   : > { %v10452_v34 = vpack.c.bf16 %v10316_v48, %v10316_v48  ;;  %v9205_v52 = vadd.f32 %v9045_v27, %v7886_v35 }
 0x9b3   : > { %10589 = vst.msk [vmem:[%s14349_s12 + $0x1dc] sm:$0xf] %vm10469_vm9, %v10452_v34  ;;  %v10041_v44 = vadd.f32 %v9881_v50, %v9205_v52  ;;  %v9883_v8 = vpop.f32.mrf.mxu0 }
 0x9b5   : > { %v10181_v40 = vadd.f32 %v15605_v57, %v10041_v44 }
 0x9b6   : > { %v7728_v0 = vpop.f32.mrf.mxu2  ;;  %v9047_v53 = vpop.f32.mrf.mxu3 }
 0x9b7   : > { %v10317_v13 = vmax.f32 %v10181_v40, 0.0  ;;  %v7887_v46 = vadd.f32 %v7728_v0, %v6576_v32  ;;  %v6420_v1 = vpop.f32.mrf.mxu1 }
 0x9b8   : > { %v6577_v5 = vadd.f32 %v6420_v1, %v16253_v42 }
 0x9b9   : > { %v10453_v10 = vpack.c.bf16 %v10317_v13, %v10317_v13  ;;  %v9206_v63 = vadd.f32 %v9047_v53, %v7887_v46 }
 0x9bb   : > { %10590 = vst.msk [vmem:[%s14349_s12 + $0x1e0] sm:$0xf] %vm10469_vm9, %v10453_v10  ;;  %v10042_v7 = vadd.f32 %v9883_v8, %v9206_v63  ;;  %v9886_v24 = vpop.f32.mrf.mxu0  ;;  %v16257_v8 = vld [vmem:[#allocation60_spill] sm:$0xff] }
 0x9bd   : > { %v10182_v61 = vadd.f32 %v15605_v57, %v10042_v7 }
 0x9be   : > { %v7731_v21 = vpop.f32.mrf.mxu2  ;;  %v9050_v14 = vpop.f32.mrf.mxu3 }
 0x9bf   : > { %v10318_v19 = vmax.f32 %v10182_v61, 0.0  ;;  %v7888_v60 = vadd.f32 %v7731_v21, %v6577_v5  ;;  %v6422_v3 = vpop.f32.mrf.mxu1  ;;  %v16258_v61 = vld [vmem:[#allocation63_spill] sm:$0xff] }
 0x9c0   : > { %v6578_v26 = vadd.f32 %v6422_v3, %v16254_v49 }
 0x9c1   : > { %v10454_v6 = vpack.c.bf16 %v10318_v19, %v10318_v19  ;;  %v9207_v38 = vadd.f32 %v9050_v14, %v7888_v60 }
 0x9c3   : > { %10591 = vst.msk [vmem:[%s14349_s12 + $0x1e4] sm:$0xf] %vm10469_vm9, %v10454_v6  ;;  %v10043_v45 = vadd.f32 %v9886_v24, %v9207_v38  ;;  %v9888_v59 = vpop.f32.mrf.mxu0 }
 0x9c5   : > { %v10183_v39 = vadd.f32 %v15605_v57, %v10043_v45 }
 0x9c6   : > { %v7733_v51 = vpop.f32.mrf.mxu2  ;;  %v9052_v4 = vpop.f32.mrf.mxu3 }
 0x9c7   : > { %v10319_v20 = vmax.f32 %v10183_v39, 0.0  ;;  %v7889_v23 = vadd.f32 %v7733_v51, %v6578_v26  ;;  %v6425_v16 = vpop.f32.mrf.mxu1  ;;  %v16259_v39 = vld [vmem:[#allocation66_spill] sm:$0xff] }
 0x9c8   : > { %v6579_v58 = vadd.f32 %v6425_v16, %v16255_v55 }
 0x9c9   : > { %v10455_v54 = vpack.c.bf16 %v10319_v20, %v10319_v20  ;;  %v9208_v17 = vadd.f32 %v9052_v4, %v7889_v23 }
 0x9cb   : > { %10592 = vst.msk [vmem:[%s14349_s12 + $0x1e8] sm:$0xf] %vm10469_vm9, %v10455_v54  ;;  %v10044_v2 = vadd.f32 %v9888_v59, %v9208_v17  ;;  %v9891_v29 = vpop.f32.mrf.mxu0 }
 0x9cd   : > { %v10184_v47 = vadd.f32 %v15605_v57, %v10044_v2 }
 0x9ce   : > { %v7736_v41 = vpop.f32.mrf.mxu2  ;;  %v9055_v15 = vpop.f32.mrf.mxu3 }
 0x9cf   : > { %v10320_v28 = vmax.f32 %v10184_v47, 0.0  ;;  %v7890_v37 = vadd.f32 %v7736_v41, %v6579_v58  ;;  %v6427_v18 = vpop.f32.mrf.mxu1  ;;  %v16260_v47 = vld [vmem:[#allocation69_spill] sm:$0xff] }
 0x9d0   : > { %v6580_v50 = vadd.f32 %v6427_v18, %v16256_v56 }
 0x9d1   : > { %v10456_v22 = vpack.c.bf16 %v10320_v28, %v10320_v28  ;;  %v9209_v25 = vadd.f32 %v9055_v15, %v7890_v37 }
 0x9d3   : > { %10593 = vst.msk [vmem:[%s14349_s12 + $0x1ec] sm:$0xf] %vm10469_vm9, %v10456_v22  ;;  %v10045_v11 = vadd.f32 %v9891_v29, %v9209_v25  ;;  %v9893_v12 = vpop.f32.mrf.mxu0 }
 0x9d5   : > { %v10185_v43 = vadd.f32 %v15605_v57, %v10045_v11 }
 0x9d6   : > { %v7738_v33 = vpop.f32.mrf.mxu2  ;;  %v9057_v48 = vpop.f32.mrf.mxu3 }
 0x9d7   : > { %v10321_v9 = vmax.f32 %v10185_v43, 0.0  ;;  %v7891_v30 = vadd.f32 %v7738_v33, %v6580_v50  ;;  %v6430_v35 = vpop.f32.mrf.mxu1  ;;  %v16261_v43 = vld [vmem:[#allocation72_spill] sm:$0xff] }
 0x9d8   : > { %v6581_v40 = vadd.f32 %v6430_v35, %v16257_v8 }
 0x9d9   : > { %v10457_v27 = vpack.c.bf16 %v10321_v9, %v10321_v9  ;;  %v9210_v31 = vadd.f32 %v9057_v48, %v7891_v30 }
 0x9db   : > { %10594 = vst.msk [vmem:[%s14349_s12 + $0x1f0] sm:$0xf] %vm10469_vm9, %v10457_v27  ;;  %v10046_v34 = vadd.f32 %v9893_v12, %v9210_v31  ;;  %v9896_v52 = vpop.f32.mrf.mxu0 }
 0x9dd   : > { %v10186_v44 = vadd.f32 %v15605_v57, %v10046_v34 }
 0x9de   : > { %v7741_v32 = vpop.f32.mrf.mxu2  ;;  %v9060_v46 = vpop.f32.mrf.mxu3 }
 0x9df   : > { %v10322_v0 = vmax.f32 %v10186_v44, 0.0  ;;  %v7892_v13 = vadd.f32 %v7741_v32, %v6581_v40  ;;  %v6432_v53 = vpop.f32.mrf.mxu1  ;;  %v16262_v44 = vld [vmem:[#allocation75_spill] sm:$0xff] }
 0x9e0   : > { %v6582_v42 = vadd.f32 %v6432_v53, %v16258_v61 }
 0x9e1   : > { %v10458_v1 = vpack.c.bf16 %v10322_v0, %v10322_v0  ;;  %v9211_v10 = vadd.f32 %v9060_v46, %v7892_v13 }
 0x9e3   : > { %10595 = vst.msk [vmem:[%s14349_s12 + $0x1f4] sm:$0xf] %vm10469_vm9, %v10458_v1  ;;  %v10047_v63 = vadd.f32 %v9896_v52, %v9211_v10  ;;  %v9898_v7 = vpop.f32.mrf.mxu0 }
 0x9e5   : > { %v10187_v24 = vadd.f32 %v15605_v57, %v10047_v63 }
 0x9e6   : > { %v7743_v5 = vpop.f32.mrf.mxu2  ;;  %v9062_v60 = vpop.f32.mrf.mxu3 }
 0x9e7   : > { %v10323_v21 = vmax.f32 %v10187_v24, 0.0  ;;  %v7893_v19 = vadd.f32 %v7743_v5, %v6582_v42  ;;  %v6435_v14 = vpop.f32.mrf.mxu1  ;;  %v16263_v24 = vld [vmem:[#allocation78_spill] sm:$0xff] }
 0x9e8   : > { %v6583_v49 = vadd.f32 %v6435_v14, %v16259_v39 }
 0x9e9   : > { %v10459_v3 = vpack.c.bf16 %v10323_v21, %v10323_v21  ;;  %v9212_v6 = vadd.f32 %v9062_v60, %v7893_v19 }
 0x9eb   : > { %10596 = vst.msk [vmem:[%s14349_s12 + $0x1f8] sm:$0xf] %vm10469_vm9, %v10459_v3  ;;  %v10048_v38 = vadd.f32 %v9898_v7, %v9212_v6  ;;  %v9901_v45 = vpop.f32.mrf.mxu0 }
 0x9ed   : > { %v10188_v59 = vadd.f32 %v15605_v57, %v10048_v38 }
 0x9ee   : > { %v7746_v26 = vpop.f32.mrf.mxu2  ;;  %v9065_v23 = vpop.f32.mrf.mxu3 }
 0x9ef   : > { %v10324_v51 = vmax.f32 %v10188_v59, 0.0  ;;  %v7894_v20 = vadd.f32 %v7746_v26, %v6583_v49  ;;  %v6437_v4 = vpop.f32.mrf.mxu1 }
 0x9f0   : > { %v6584_v55 = vadd.f32 %v6437_v4, %v16260_v47 }
 0x9f1   : > { %v10460_v16 = vpack.c.bf16 %v10324_v51, %v10324_v51  ;;  %v9213_v54 = vadd.f32 %v9065_v23, %v7894_v20 }
 0x9f3   : > { %10597 = vst.msk [vmem:[%s14349_s12 + $0x1fc] sm:$0xf] %vm10469_vm9, %v10460_v16  ;;  %v10049_v17 = vadd.f32 %v9901_v45, %v9213_v54  ;;  %v9903_v2 = vpop.f32.mrf.mxu0  ;;  %v16264_v45 = vld [vmem:[#allocation81_spill] sm:$0xff] }
 0x9f5   : > { %v10189_v29 = vadd.f32 %v15605_v57, %v10049_v17 }
 0x9f6   : > { %v7748_v58 = vpop.f32.mrf.mxu2  ;;  %v9067_v37 = vpop.f32.mrf.mxu3 }
 0x9f7   : > { %v10325_v41 = vmax.f32 %v10189_v29, 0.0  ;;  %v7895_v28 = vadd.f32 %v7748_v58, %v6584_v55  ;;  %v6440_v15 = vpop.f32.mrf.mxu1 }
 0x9f8   : > { %v6585_v56 = vadd.f32 %v6440_v15, %v16261_v43 }
 0x9f9   : > { %v10461_v18 = vpack.c.bf16 %v10325_v41, %v10325_v41  ;;  %v9214_v22 = vadd.f32 %v9067_v37, %v7895_v28 }
 0x9fb   : > { %10598 = vst.msk [vmem:[%s14349_s12 + $0x200] sm:$0xf] %vm10469_vm9, %v10461_v18  ;;  %v10050_v25 = vadd.f32 %v9903_v2, %v9214_v22  ;;  %v9906_v11 = vpop.f32.mrf.mxu0 }
 0x9fd   : > { %v10190_v12 = vadd.f32 %v15605_v57, %v10050_v25 }
 0x9fe   : > { %v7751_v50 = vpop.f32.mrf.mxu2  ;;  %v9070_v30 = vpop.f32.mrf.mxu3 }
 0x9ff   : > { %v10326_v33 = vmax.f32 %v10190_v12, 0.0  ;;  %v7896_v9 = vadd.f32 %v7751_v50, %v6585_v56  ;;  %v6442_v48 = vpop.f32.mrf.mxu1 }
 0xa00   : > { %v6586_v8 = vadd.f32 %v6442_v48, %v16262_v44 }
 0xa01   : > { %v10462_v35 = vpack.c.bf16 %v10326_v33, %v10326_v33  ;;  %v9215_v27 = vadd.f32 %v9070_v30, %v7896_v9 }
 0xa03   : > { %10599 = vst.msk [vmem:[%s14349_s12 + $0x204] sm:$0xf] %vm10469_vm9, %v10462_v35  ;;  %v10051_v31 = vadd.f32 %v9906_v11, %v9215_v27  ;;  %v9908_v34 = vpop.f32.mrf.mxu0 }
 0xa05   : > { %v10191_v52 = vadd.f32 %v15605_v57, %v10051_v31 }
 0xa06   : > { %v7753_v40 = vpop.f32.mrf.mxu2  ;;  %v9072_v13 = vpop.f32.mrf.mxu3 }
 0xa07   : > { %v10327_v32 = vmax.f32 %v10191_v52, 0.0  ;;  %v7897_v0 = vadd.f32 %v7753_v40, %v6586_v8  ;;  %v6445_v46 = vpop.f32.mrf.mxu1 }
 0xa08   : > { %v6587_v61 = vadd.f32 %v6445_v46, %v16263_v24 }
 0xa09   : > { %v10463_v53 = vpack.c.bf16 %v10327_v32, %v10327_v32  ;;  %v9216_v1 = vadd.f32 %v9072_v13, %v7897_v0 }
 0xa0b   : > { %10600 = vst.msk [vmem:[%s14349_s12 + $0x208] sm:$0xf] %vm10469_vm9, %v10463_v53  ;;  %v10052_v10 = vadd.f32 %v9908_v34, %v9216_v1  ;;  %v9911_v63 = vpop.f32.mrf.mxu0 }
 0xa0d   : > { %v10192_v7 = vadd.f32 %v15605_v57, %v10052_v10 }
 0xa0e   : > { %v7756_v42 = vpop.f32.mrf.mxu2  ;;  %v9075_v19 = vpop.f32.mrf.mxu3 }
 0xa0f   : > { %v10328_v5 = vmax.f32 %v10192_v7, 0.0  ;;  %v7898_v21 = vadd.f32 %v7756_v42, %v6587_v61  ;;  %v6447_v60 = vpop.f32.mrf.mxu1 }
 0xa10   : > { %v6588_v59 = vadd.f32 %v6447_v60, %v16264_v45 }
 0xa11   : > { %v10464_v14 = vpack.c.bf16 %v10328_v5, %v10328_v5  ;;  %v9217_v3 = vadd.f32 %v9075_v19, %v7898_v21 }
 0xa13   : > { %10601 = vst.msk [vmem:[%s14349_s12 + $0x20c] sm:$0xf] %vm10469_vm9, %v10464_v14  ;;  %v10053_v6 = vadd.f32 %v9911_v63, %v9217_v3  ;;  %v9913_v39 = vpop.f32.mrf.mxu0 }
 0xa15   : > { %v10193_v38 = vadd.f32 %v15605_v57, %v10053_v6 }
 0xa16   : > { %v7758_v49 = vpop.f32.mrf.mxu2  ;;  %v9077_v20 = vpop.f32.mrf.mxu3 }
 0xa17   : > { %v10329_v26 = vmax.f32 %v10193_v38, 0.0  ;;  %v7899_v51 = vadd.f32 %v7758_v49, %v6588_v59  ;;  %v6450_v23 = vpop.f32.mrf.mxu1 }
 0xa18   : > { %v6589_v2 = vadd.f32 %v6450_v23, %v14313_v62 }
 0xa19   : > { %v10465_v4 = vpack.c.bf16 %v10329_v26, %v10329_v26  ;;  %v9218_v16 = vadd.f32 %v9077_v20, %v7899_v51 }
 0xa1b   : > { %10602 = vst.msk [vmem:[%s14349_s12 + $0x210] sm:$0xf] %vm10469_vm9, %v10465_v4  ;;  %v10054_v54 = vadd.f32 %v9913_v39, %v9218_v16  ;;  %v9916_v41 = vpop.f32.mrf.mxu0 }
 0xa1d   : > { %v10194_v17 = vadd.f32 %v15605_v57, %v10054_v54 }
 0xa1e   : > { %v7761_v29 = vpop.f32.mrf.mxu2  ;;  %v9080_v58 = vpop.f32.mrf.mxu3 }
 0xa1f   : > { %v10330_v47 = vmax.f32 %v10194_v17, 0.0  ;;  %v7900_v55 = vadd.f32 %v7761_v29, %v6589_v2  ;;  %v6452_v15 = vpop.f32.mrf.mxu1 }
 0xa20   : > { %v6590_v25 = vadd.f32 %v6452_v15, %v14328_v36 }
 0xa21   : > { %v10466_v28 = vpack.c.bf16 %v10330_v47, %v10330_v47  ;;  %v9219_v37 = vadd.f32 %v9080_v58, %v7900_v55 }
 0xa23   : > { %10603 = vst.msk [vmem:[%s14349_s12 + $0x214] sm:$0xf] %vm10469_vm9, %v10466_v28  ;;  %v10055_v18 = vadd.f32 %v9916_v41, %v9219_v37  ;;  %v9918_v33 = vpop.f32.mrf.mxu0 }
 0xa25   : > { %v10195_v22 = vadd.f32 %v15605_v57, %v10055_v18 }
 0xa26   : > { %v7763_v11 = vpop.f32.mrf.mxu2  ;;  %v9082_v43 = vpop.f32.mrf.mxu3 }
 0xa27   : > { %v10331_v12 = vmax.f32 %v10195_v22, 0.0  ;;  %v7901_v62 = vadd.f32 %v7763_v11, %v6590_v25 }
 0xa29   : > { %v10467_v56 = vpack.c.bf16 %v10331_v12, %v10331_v12  ;;  %v9220_v50 = vadd.f32 %v9082_v43, %v7901_v62 }
 0xa2b   : > { %10604 = vst.msk [vmem:[%s14349_s12 + $0x218] sm:$0xf] %vm10469_vm9, %v10467_v56  ;;  %v10056_v9 = vadd.f32 %v9918_v33, %v9220_v50 }
 0xa2d   : > { %v10196_v30 = vadd.f32 %v15605_v57, %v10056_v9 }
 0xa2f   : > { %v10332_v48 = vmax.f32 %v10196_v30, 0.0 }
 0xa31   : > { %v10468_v35 = vpack.c.bf16 %v10332_v48, %v10332_v48 }
 0xa33   : > { %10605 = vst.msk [vmem:[%s14349_s12 + $0x21c] sm:$0xf] %vm10469_vm9, %v10468_v35 }
 0xa34 PF: > { %s13_s14 = sadd.s32 1, %s12531_s14   ;;  %s16265_s12 = smov %s12527_s13 }
 0xa35   : > { %p10_p5 = scmp.ge.s32.totalorder %s13_s14, 4   ;;  %s16266_s13 = smov %s16268_s15 }
 0xa37   :  { %12 = sbr.rel (!%p10_p5) target bundleno = 2 (0x2), region = 70 }

</bundles_post_ra>
